<compile_context>
chip_gen: v7x
topology: tpu7x:2x2x1
jax: 0.10.0
libtpu: 0.0.40
codegen_flags: <defaults>
</compile_context>

<pallas_src>
import jax
import jax.numpy as jnp
from jax.experimental import pallas as pl
from jax.experimental.pallas import tpu as pltpu


# Explicit scoped-VMEM budget: decoder working set is ~10 MiB at tile=512, so
# 32 MiB is comfortable on every generation (v7x physical VMEM is only 64 MiB).
_VMEM_LIMIT_BYTES = 32 * 1024 * 1024


def _round_up(x, m):
    return pl.cdiv(x, m) * m


def _pick_tile(n_rows, max_tile=512, min_tile=128):
    """Largest tile <= max_tile, preferring >= 2 grid steps when there is
    enough work (keeps both TensorCores busy on v7x)."""
    t = max_tile
    while t > min_tile and _round_up(n_rows, t) // t < 2:
        t //= 2
    return t


# ----------------------------------------------------------------------------
# Encoder kernel: pointwise (1x1x1) conv == row-wise matmul + bias
# ----------------------------------------------------------------------------
def _encoder_kernel(x_ref, w_ref, b_ref, o_ref):
    o_ref[...] = (
        jnp.dot(x_ref[...], w_ref[...], preferred_element_type=jnp.float32)
        + b_ref[...]
    ).astype(o_ref.dtype)


def encoder_pointwise(x_ncdhw, w_enc, b_enc, tile=None):
    B, Cin, D, H, W = x_ncdhw.shape
    Clat = w_enc.shape[1]
    # NCDHW -> channels-last rows
    x_rows = jnp.transpose(x_ncdhw, (0, 2, 3, 4, 1)).reshape(B * D * H * W, Cin)
    R = x_rows.shape[0]
    if tile is None:
        tile = _pick_tile(R, max_tile=1024)
    Rp = _round_up(R, tile)
    if Rp != R:
        x_rows = jnp.pad(x_rows, ((0, Rp - R), (0, 0)))
    out = pl.pallas_call(
        _encoder_kernel,
        out_shape=jax.ShapeDtypeStruct((Rp, Clat), jnp.float32),
        grid_spec=pltpu.PrefetchScalarGridSpec(
            num_scalar_prefetch=0,
            grid=(Rp // tile,),
            in_specs=[
                pl.BlockSpec((tile, Cin), lambda i: (i, 0)),
                pl.BlockSpec((Cin, Clat), lambda i: (0, 0)),
                pl.BlockSpec((1, Clat), lambda i: (0, 0)),
            ],
            out_specs=pl.BlockSpec((tile, Clat), lambda i: (i, 0)),
        ),
        compiler_params=pltpu.CompilerParams(
            dimension_semantics=("parallel",),
            vmem_limit_bytes=_VMEM_LIMIT_BYTES,
        ),
    )(x_rows, w_enc, b_enc)
    return out[:R].reshape(B, D, H, W, Clat)


# ----------------------------------------------------------------------------
# grid_interp_layer: trilinear interpolation (gather glue in plain JAX)
# ----------------------------------------------------------------------------
def grid_interp_trilinear(grid, pts, xmin, xmax):
    # grid: (B, D, H, W, C) latent grid, pts: (B, N, 3) in [xmin, xmax]
    B, D, H, W, C = grid.shape
    res = jnp.array([D, H, W], jnp.float32)
    u = (pts - xmin) / (xmax - xmin) * (res - 1.0)
    u = jnp.clip(u, 0.0, res - 1.0 - 1e-6)
    i0 = jnp.floor(u).astype(jnp.int32)                      # (B, N, 3)
    frac = u - i0.astype(jnp.float32)                        # (B, N, 3)
    offsets = jnp.array(
        [[a, b, c] for a in (0, 1) for b in (0, 1) for c in (0, 1)], jnp.int32
    )                                                        # (8, 3)
    corners = i0[:, :, None, :] + offsets[None, None]        # (B, N, 8, 3)
    bidx = jnp.arange(B)[:, None, None]
    # TODO(synk): the data-dependent 8-corner gather stays in plain JAX; fusing it
    # into the decoder via scalar-prefetch + per-row DMA has no clean BlockSpec form
    # at these corner counts without thousands of tiny DMAs.
    lat = grid[bidx, corners[..., 0], corners[..., 1], corners[..., 2], :]  # (B,N,8,C)
    f = frac[:, :, None, :]                                  # (B, N, 1, 3)
    off = offsets[None, None].astype(jnp.float32)            # (1, 1, 8, 3)
    w_axes = off * f + (1.0 - off) * (1.0 - f)               # (B, N, 8, 3)
    weights = jnp.prod(w_axes, axis=-1)                      # (B, N, 8)
    xloc = f - off                                           # (B, N, 8, 3) in [-1, 1]
    return lat, weights, xloc


# ----------------------------------------------------------------------------
# Decoder kernel: 3-layer MLP over all 8*tile neighbor rows at once, fused with
# the trilinear reduction (values * weights).sum(dim=2).
# ----------------------------------------------------------------------------
def _decoder_kernel(lat_ref, xloc_ref, w_ref,
                    w1x_ref, w1l_ref, b1_ref, w2_ref, b2_ref, w3_ref, b3_ref,
                    o_ref):
    tile = o_ref.shape[0]                 # points per grid step
    rows = lat_ref.shape[0]               # tile * n_neighbors
    k = rows // tile
    hh = w2_ref.shape[1]

    # Hoist weight/bias loads once per grid step.
    w1x = w1x_ref[...]
    w1l = w1l_ref[...]
    b1 = b1_ref[...]
    w2 = w2_ref[...]
    b2 = b2_ref[...]
    w3 = w3_ref[...]
    b3 = b3_ref[...]

    lat = lat_ref[...]                    # (rows, Clat)   matmul dtype (bf16)
    xloc = xloc_ref[...]                  # (rows, 3)      matmul dtype (bf16)
    wrow = w_ref[...]                     # (rows, 1)      f32 trilinear weights

    # Layer 1: split-weight matmuls replace cat([xloc, lat], -1) @ w1.
    h = (
        jnp.dot(xloc, w1x, preferred_element_type=jnp.float32)
        + jnp.dot(lat, w1l, preferred_element_type=jnp.float32)
        + b1
    )
    h = jnp.maximum(h, 0.0)
    # Layer 2.
    h = jnp.dot(h.astype(w2.dtype), w2, preferred_element_type=jnp.float32) + b2
    h = jnp.maximum(h, 0.0)               # (rows, Hh)  f32

    # Fold the neighbor-weighted reduction BEFORE the last projection:
    #   sum_k w_k (h_k @ w3 + b3) = (sum_k w_k h_k) @ w3 + b3 * sum_k w_k
    hw = h * wrow                                           # (rows, Hh)
    acc_h = jnp.sum(hw.reshape(tile, k, hh), axis=1)        # (tile, Hh)
    wsum = jnp.sum(wrow.reshape(tile, k, 1), axis=1)        # (tile, 1)

    v = (
        jnp.dot(acc_h.astype(w3.dtype), w3, preferred_element_type=jnp.float32)
        + b3 * wsum
    )                                                       # (tile, OUT)
    # TODO(synk): lane-dense (OUT, BN) output layout skipped — it needs an in-kernel
    # (tile, OUT)->(OUT, tile) relayout; the OUT*BN output stream is negligible here
    # compared with the 8x-expanded lat read, which this kernel already halves (bf16).
    o_ref[...] = v.astype(o_ref.dtype)


def decoder_interp(lat, xloc, weights, params, mm_dtype=jnp.bfloat16, tile=None):
    # lat: (B, N, 8, Clat), xloc: (B, N, 8, 3), weights: (B, N, 8)
    B, N, K, Clat = lat.shape
    BN = B * N
    Hh = params["w1"].shape[1]
    OUT = params["w3"].shape[1]
    if tile is None:
        tile = _pick_tile(BN)
    BNp = _round_up(BN, tile)
    pad = BNp - BN

    lat_r = lat.reshape(BN, K, Clat)
    xloc_r = xloc.reshape(BN, K, 3)
    w_r = weights.reshape(BN, K)
    if pad:
        lat_r = jnp.pad(lat_r, ((0, pad), (0, 0), (0, 0)))
        xloc_r = jnp.pad(xloc_r, ((0, pad), (0, 0), (0, 0)))
        w_r = jnp.pad(w_r, ((0, pad), (0, 0)))

    # Flat row streams (point-major, neighbor-minor): no HBM transpose / concat.
    lat_rows = lat_r.reshape(BNp * K, Clat).astype(mm_dtype)
    xloc_rows = xloc_r.reshape(BNp * K, 3).astype(mm_dtype)
    w_rows = w_r.reshape(BNp * K, 1).astype(jnp.float32)

    # Split w1 into its xloc / lat parts (concat order in the module is [xloc, lat]).
    w1x = params["w1"][:3].astype(mm_dtype)
    w1l = params["w1"][3:].astype(mm_dtype)
    b1 = params["b1"].astype(jnp.float32)
    w2 = params["w2"].astype(mm_dtype)
    b2 = params["b2"].astype(jnp.float32)
    w3 = params["w3"].astype(mm_dtype)
    b3 = params["b3"].astype(jnp.float32)

    out = pl.pallas_call(
        _decoder_kernel,
        out_shape=jax.ShapeDtypeStruct((BNp, OUT), jnp.float32),
        grid_spec=pltpu.PrefetchScalarGridSpec(
            num_scalar_prefetch=0,
            grid=(BNp // tile,),
            in_specs=[
                pl.BlockSpec((tile * K, Clat), lambda i: (i, 0)),
                pl.BlockSpec((tile * K, 3), lambda i: (i, 0)),
                pl.BlockSpec((tile * K, 1), lambda i: (i, 0)),
                pl.BlockSpec((3, Hh), lambda i: (0, 0)),
                pl.BlockSpec((Clat, Hh), lambda i: (0, 0)),
                pl.BlockSpec((1, Hh), lambda i: (0, 0)),
                pl.BlockSpec((Hh, Hh), lambda i: (0, 0)),
                pl.BlockSpec((1, Hh), lambda i: (0, 0)),
                pl.BlockSpec((Hh, OUT), lambda i: (0, 0)),
                pl.BlockSpec((1, OUT), lambda i: (0, 0)),
            ],
            out_specs=pl.BlockSpec((tile, OUT), lambda i: (i, 0)),
        ),
        compiler_params=pltpu.CompilerParams(
            dimension_semantics=("parallel",),
            vmem_limit_bytes=_VMEM_LIMIT_BYTES,
        ),
    )(lat_rows, xloc_rows, w_rows, w1x, w1l, b1, w2, b2, w3, b3)
    return out[:BN]


# ----------------------------------------------------------------------------
# Full LocalImplicitGrid forward (method='linear', x_location_max=1, interp=True)
# ----------------------------------------------------------------------------
def local_implicit_grid_forward(inputs, pts, params, xmin=0.0, xmax=1.0,
                                x_location_max=1.0, mm_dtype=jnp.bfloat16):
    grid = encoder_pointwise(inputs, params["w_enc"], params["b_enc"])
    lat, weights, xloc = grid_interp_trilinear(grid, pts, xmin, xmax)
    xloc = xloc * x_location_max
    B, N = weights.shape[0], weights.shape[1]
    values = decoder_interp(lat, xloc, weights, params, mm_dtype=mm_dtype)
    return values.reshape(B, N, -1)


# ----------------------------------------------------------------------------
# Pure-JAX (f32) reference for a correctness check
# ----------------------------------------------------------------------------
def _reference_forward(inputs, pts, params, xmin=0.0, xmax=1.0, x_location_max=1.0):
    B, Cin, D, H, W = inputs.shape
    x_rows = jnp.transpose(inputs, (0, 2, 3, 4, 1)).reshape(-1, Cin)
    grid = (x_rows @ params["w_enc"] + params["b_enc"]).reshape(
        B, D, H, W, params["w_enc"].shape[1]
    )
    lat, weights, xloc = grid_interp_trilinear(grid, pts, xmin, xmax)
    feats = jnp.concatenate([xloc * x_location_max, lat], axis=3)
    h = jax.nn.relu(feats @ params["w1"] + params["b1"])
    h = jax.nn.relu(h @ params["w2"] + params["b2"])
    v = h @ params["w3"] + params["b3"]                   # (B, N, 8, OUT)
    return (v * weights[..., None]).sum(axis=2)           # (B, N, OUT)


if __name__ == "__main__":
    key = jax.random.PRNGKey(0)
    B, Cin, D, H, W = 2, 4, 4, 4, 4       # input voxel grid (NCDHW)
    Clat = 29                             # latent channels -> Din = 3 + 29 = 32
    Hh, OUT = 32, 1                       # decoder hidden / output dims
    N = 128                               # query points per batch (B*N = 256)

    ks = jax.random.split(key, 10)
    inputs = jax.random.normal(ks[0], (B, Cin, D, H, W), jnp.float32)
    pts = jax.random.uniform(ks[1], (B, N, 3), jnp.float32)
    params = {
        "w_enc": 0.1 * jax.random.normal(ks[2], (Cin, Clat), jnp.float32),
        "b_enc": 0.1 * jax.random.normal(ks[3], (1, Clat), jnp.float32),
        "w1": 0.2 * jax.random.normal(ks[4], (3 + Clat, Hh), jnp.float32),
        "b1": 0.1 * jax.random.normal(ks[5], (1, Hh), jnp.float32),
        "w2": 0.2 * jax.random.normal(ks[6], (Hh, Hh), jnp.float32),
        "b2": 0.1 * jax.random.normal(ks[7], (1, Hh), jnp.float32),
        "w3": 0.2 * jax.random.normal(ks[8], (Hh, OUT), jnp.float32),
        "b3": 0.1 * jax.random.normal(ks[9], (1, OUT), jnp.float32),
    }

    fwd = jax.jit(local_implicit_grid_forward)
    values = jax.block_until_ready(fwd(inputs, pts, params))
    ref = jax.block_until_ready(_reference_forward(inputs, pts, params))

    assert values.shape == (B, N, OUT), values.shape
    max_err = float(jnp.max(jnp.abs(values - ref)))
    assert jnp.allclose(values, ref, rtol=2e-2, atol=2e-2), max_err
    print("KERNEL_OK")
</pallas_src>

<mosaic_0001>
module attributes {stable_mosaic.version = 11 : i64} {
  func.func @_encoder_kernel(%arg0: i32, %arg1: memref<128x4xf32, #tpu.memory_space<vmem>>, %arg2: memref<4x29xf32, #tpu.memory_space<vmem>>, %arg3: memref<1x29xf32, #tpu.memory_space<vmem>>, %arg4: memref<128x29xf32, #tpu.memory_space<vmem>>) attributes {dimension_semantics = [#tpu.dimension_semantics<parallel>], iteration_bounds = array<i64: 1>, scalar_prefetch = 0 : i64, scratch_operands = 0 : i64, tpu.core_type = #tpu.core_type<tc>, window_params = [{transform_indices = @transform_0, window_bounds = array<i64: 128, 4>}, {pipeline_mode = #tpu.pipeline_mode<synchronous>, transform_indices = @transform_1, window_bounds = array<i64: 4, 29>}, {pipeline_mode = #tpu.pipeline_mode<synchronous>, transform_indices = @transform_2, window_bounds = array<i64: 1, 29>}, {transform_indices = @transform_3, window_bounds = array<i64: 128, 29>}]} {
    %c0 = arith.constant 0 : index
    %c0_0 = arith.constant 0 : index
    %0 = vector.load %arg1[%c0, %c0_0] : memref<128x4xf32, #tpu.memory_space<vmem>>, vector<128x4xf32>
    %c0_1 = arith.constant 0 : index
    %c0_2 = arith.constant 0 : index
    %1 = vector.load %arg2[%c0_1, %c0_2] : memref<4x29xf32, #tpu.memory_space<vmem>>, vector<4x29xf32>
    %cst = arith.constant dense<0.000000e+00> : vector<128x29xf32>
    %2 = tpu.matmul %0, %1, %cst {dimension_numbers = #tpu.dot_dimension_numbers<[1], [0], [0], [1], [0, 0, 1, 1], [], []>} : vector<128x4xf32>, vector<4x29xf32>, vector<128x29xf32> -> vector<128x29xf32>
    %c0_3 = arith.constant 0 : index
    %c0_4 = arith.constant 0 : index
    %3 = vector.load %arg3[%c0_3, %c0_4] : memref<1x29xf32, #tpu.memory_space<vmem>>, vector<1x29xf32>
    %4 = vector.broadcast %3 : vector<1x29xf32> to vector<128x29xf32>
    %5 = arith.addf %2, %4 : vector<128x29xf32>
    %c0_5 = arith.constant 0 : index
    %c0_6 = arith.constant 0 : index
    %6 = vector.load %arg4[%c0_5, %c0_6] : memref<128x29xf32, #tpu.memory_space<vmem>>, vector<128x29xf32>
    tpu.vector_store %arg4[%c0_5, %c0_6], %5 {strides = array<i32>} : memref<128x29xf32, #tpu.memory_space<vmem>>, vector<128x29xf32>,
    return
  }
  func.func @transform_0(%arg0: i32) -> (i32, i32) {
    %c0_i32 = arith.constant 0 : i32
    %c0_i32_0 = arith.constant 0 : i32
    return %arg0, %c0_i32 : i32, i32
  }
  func.func @transform_1(%arg0: i32) -> (i32, i32) {
    %c0_i32 = arith.constant 0 : i32
    %c0_i32_0 = arith.constant 0 : i32
    %c0_i32_1 = arith.constant 0 : i32
    return %c0_i32, %c0_i32_0 : i32, i32
  }
  func.func @transform_2(%arg0: i32) -> (i32, i32) {
    %c0_i32 = arith.constant 0 : i32
    %c0_i32_0 = arith.constant 0 : i32
    %c0_i32_1 = arith.constant 0 : i32
    return %c0_i32, %c0_i32_0 : i32, i32
  }
  func.func @transform_3(%arg0: i32) -> (i32, i32) {
    %c0_i32 = arith.constant 0 : i32
    %c0_i32_0 = arith.constant 0 : i32
    return %arg0, %c0_i32 : i32, i32
  }
}

module attributes {stable_mosaic.version = 11 : i64} {
  func.func @_decoder_kernel(%arg0: i32, %arg1: memref<1024x29xbf16, #tpu.memory_space<vmem>>, %arg2: memref<1024x3xbf16, #tpu.memory_space<vmem>>, %arg3: memref<1024x1xf32, #tpu.memory_space<vmem>>, %arg4: memref<3x32xbf16, #tpu.memory_space<vmem>>, %arg5: memref<29x32xbf16, #tpu.memory_space<vmem>>, %arg6: memref<1x32xf32, #tpu.memory_space<vmem>>, %arg7: memref<32x32xbf16, #tpu.memory_space<vmem>>, %arg8: memref<1x32xf32, #tpu.memory_space<vmem>>, %arg9: memref<32x1xbf16, #tpu.memory_space<vmem>>, %arg10: memref<1x1xf32, #tpu.memory_space<vmem>>, %arg11: memref<128x1xf32, #tpu.memory_space<vmem>>) attributes {dimension_semantics = [#tpu.dimension_semantics<parallel>], iteration_bounds = array<i64: 2>, scalar_prefetch = 0 : i64, scratch_operands = 0 : i64, tpu.core_type = #tpu.core_type<tc>, window_params = [{transform_indices = @transform_0, window_bounds = array<i64: 1024, 29>}, {transform_indices = @transform_1, window_bounds = array<i64: 1024, 3>}, {transform_indices = @transform_2, window_bounds = array<i64: 1024, 1>}, {pipeline_mode = #tpu.pipeline_mode<synchronous>, transform_indices = @transform_3, window_bounds = array<i64: 3, 32>}, {pipeline_mode = #tpu.pipeline_mode<synchronous>, transform_indices = @transform_4, window_bounds = array<i64: 29, 32>}, {pipeline_mode = #tpu.pipeline_mode<synchronous>, transform_indices = @transform_5, window_bounds = array<i64: 1, 32>}, {pipeline_mode = #tpu.pipeline_mode<synchronous>, transform_indices = @transform_6, window_bounds = array<i64: 32, 32>}, {pipeline_mode = #tpu.pipeline_mode<synchronous>, transform_indices = @transform_7, window_bounds = array<i64: 1, 32>}, {pipeline_mode = #tpu.pipeline_mode<synchronous>, transform_indices = @transform_8, window_bounds = array<i64: 32, 1>}, {pipeline_mode = #tpu.pipeline_mode<synchronous>, transform_indices = @transform_9, window_bounds = array<i64: 1, 1>}, {transform_indices = @transform_10, window_bounds = array<i64: 128, 1>}]} {
    %c0 = arith.constant 0 : index
    %c0_0 = arith.constant 0 : index
    %0 = vector.load %arg4[%c0, %c0_0] : memref<3x32xbf16, #tpu.memory_space<vmem>>, vector<3x32xbf16>
    %c0_1 = arith.constant 0 : index
    %c0_2 = arith.constant 0 : index
    %1 = vector.load %arg5[%c0_1, %c0_2] : memref<29x32xbf16, #tpu.memory_space<vmem>>, vector<29x32xbf16>
    %c0_3 = arith.constant 0 : index
    %c0_4 = arith.constant 0 : index
    %2 = vector.load %arg6[%c0_3, %c0_4] : memref<1x32xf32, #tpu.memory_space<vmem>>, vector<1x32xf32>
    %c0_5 = arith.constant 0 : index
    %c0_6 = arith.constant 0 : index
    %3 = vector.load %arg7[%c0_5, %c0_6] : memref<32x32xbf16, #tpu.memory_space<vmem>>, vector<32x32xbf16>
    %c0_7 = arith.constant 0 : index
    %c0_8 = arith.constant 0 : index
    %4 = vector.load %arg8[%c0_7, %c0_8] : memref<1x32xf32, #tpu.memory_space<vmem>>, vector<1x32xf32>
    %c0_9 = arith.constant 0 : index
    %c0_10 = arith.constant 0 : index
    %5 = vector.load %arg9[%c0_9, %c0_10] : memref<32x1xbf16, #tpu.memory_space<vmem>>, vector<32x1xbf16>
    %c0_11 = arith.constant 0 : index
    %c0_12 = arith.constant 0 : index
    %6 = vector.load %arg10[%c0_11, %c0_12] : memref<1x1xf32, #tpu.memory_space<vmem>>, vector<1x1xf32>
    %c0_13 = arith.constant 0 : index
    %c0_14 = arith.constant 0 : index
    %7 = vector.load %arg1[%c0_13, %c0_14] : memref<1024x29xbf16, #tpu.memory_space<vmem>>, vector<1024x29xbf16>
    %c0_15 = arith.constant 0 : index
    %c0_16 = arith.constant 0 : index
    %8 = vector.load %arg2[%c0_15, %c0_16] : memref<1024x3xbf16, #tpu.memory_space<vmem>>, vector<1024x3xbf16>
    %c0_17 = arith.constant 0 : index
    %c0_18 = arith.constant 0 : index
    %9 = vector.load %arg3[%c0_17, %c0_18] : memref<1024x1xf32, #tpu.memory_space<vmem>>, vector<1024x1xf32>
    %cst = arith.constant dense<0.000000e+00> : vector<1024x32xf32>
    %10 = tpu.matmul %8, %0, %cst {dimension_numbers = #tpu.dot_dimension_numbers<[1], [0], [0], [1], [0, 0, 1, 1], [], []>} : vector<1024x3xbf16>, vector<3x32xbf16>, vector<1024x32xf32> -> vector<1024x32xf32>
    %cst_19 = arith.constant dense<0.000000e+00> : vector<1024x32xf32>
    %11 = tpu.matmul %7, %1, %cst_19 {dimension_numbers = #tpu.dot_dimension_numbers<[1], [0], [0], [1], [0, 0, 1, 1], [], []>} : vector<1024x29xbf16>, vector<29x32xbf16>, vector<1024x32xf32> -> vector<1024x32xf32>
    %12 = arith.addf %10, %11 : vector<1024x32xf32>
    %13 = vector.broadcast %2 : vector<1x32xf32> to vector<1024x32xf32>
    %14 = arith.addf %12, %13 : vector<1024x32xf32>
    %cst_20 = arith.constant 0.000000e+00 : f32
    %15 = vector.broadcast %cst_20 : f32 to vector<1024x32xf32>
    %16 = arith.maximumf %14, %15 : vector<1024x32xf32>
    %17 = arith.truncf %16 : vector<1024x32xf32> to vector<1024x32xbf16>
    %cst_21 = arith.constant dense<0.000000e+00> : vector<1024x32xf32>
    %18 = tpu.matmul %17, %3, %cst_21 {dimension_numbers = #tpu.dot_dimension_numbers<[1], [0], [0], [1], [0, 0, 1, 1], [], []>} : vector<1024x32xbf16>, vector<32x32xbf16>, vector<1024x32xf32> -> vector<1024x32xf32>
    %19 = vector.broadcast %4 : vector<1x32xf32> to vector<1024x32xf32>
    %20 = arith.addf %18, %19 : vector<1024x32xf32>
    %cst_22 = arith.constant 0.000000e+00 : f32
    %21 = vector.broadcast %cst_22 : f32 to vector<1024x32xf32>
    %22 = arith.maximumf %20, %21 : vector<1024x32xf32>
    %23 = vector.broadcast %9 : vector<1024x1xf32> to vector<1024x32xf32>
    %24 = arith.mulf %22, %23 : vector<1024x32xf32>
    %25 = vector.shape_cast %24 : vector<1024x32xf32> to vector<128x8x32xf32>
    %cst_23 = arith.constant dense<0.000000e+00> : vector<128x32xf32>
    %26 = vector.multi_reduction <add>, %25, %cst_23 [1] : vector<128x8x32xf32> to vector<128x32xf32>
    %27 = vector.shape_cast %9 : vector<1024x1xf32> to vector<128x8x1xf32>
    %cst_24 = arith.constant dense<0.000000e+00> : vector<128x1xf32>
    %28 = vector.multi_reduction <add>, %27, %cst_24 [1] : vector<128x8x1xf32> to vector<128x1xf32>
    %29 = arith.truncf %26 : vector<128x32xf32> to vector<128x32xbf16>
    %cst_25 = arith.constant dense<0.000000e+00> : vector<128x1xf32>
    %30 = tpu.matmul %29, %5, %cst_25 {dimension_numbers = #tpu.dot_dimension_numbers<[1], [0], [0], [1], [0, 0, 1, 1], [], []>} : vector<128x32xbf16>, vector<32x1xbf16>, vector<128x1xf32> -> vector<128x1xf32>
    %31 = vector.broadcast %6 : vector<1x1xf32> to vector<128x1xf32>
    %32 = arith.mulf %31, %28 : vector<128x1xf32>
    %33 = arith.addf %30, %32 : vector<128x1xf32>
    %c0_26 = arith.constant 0 : index
    %c0_27 = arith.constant 0 : index
    %34 = vector.load %arg11[%c0_26, %c0_27] : memref<128x1xf32, #tpu.memory_space<vmem>>, vector<128x1xf32>
    tpu.vector_store %arg11[%c0_26, %c0_27], %33 {strides = array<i32>} : memref<128x1xf32, #tpu.memory_space<vmem>>, vector<128x1xf32>,
    return
  }
  func.func @transform_0(%arg0: i32) -> (i32, i32) {
    %c0_i32 = arith.constant 0 : i32
    %c0_i32_0 = arith.constant 0 : i32
    return %arg0, %c0_i32 : i32, i32
  }
  func.func @transform_1(%arg0: i32) -> (i32, i32) {
    %c0_i32 = arith.constant 0 : i32
    %c0_i32_0 = arith.constant 0 : i32
    return %arg0, %c0_i32 : i32, i32
  }
  func.func @transform_2(%arg0: i32) -> (i32, i32) {
    %c0_i32 = arith.constant 0 : i32
    %c0_i32_0 = arith.constant 0 : i32
    return %arg0, %c0_i32 : i32, i32
  }
  func.func @transform_3(%arg0: i32) -> (i32, i32) {
    %c0_i32 = arith.constant 0 : i32
    %c0_i32_0 = arith.constant 0 : i32
    %c0_i32_1 = arith.constant 0 : i32
    return %c0_i32, %c0_i32_0 : i32, i32
  }
  func.func @transform_4(%arg0: i32) -> (i32, i32) {
    %c0_i32 = arith.constant 0 : i32
    %c0_i32_0 = arith.constant 0 : i32
    %c0_i32_1 = arith.constant 0 : i32
    return %c0_i32, %c0_i32_0 : i32, i32
  }
  func.func @transform_5(%arg0: i32) -> (i32, i32) {
    %c0_i32 = arith.constant 0 : i32
    %c0_i32_0 = arith.constant 0 : i32
    %c0_i32_1 = arith.constant 0 : i32
    return %c0_i32, %c0_i32_0 : i32, i32
  }
  func.func @transform_6(%arg0: i32) -> (i32, i32) {
    %c0_i32 = arith.constant 0 : i32
    %c0_i32_0 = arith.constant 0 : i32
    %c0_i32_1 = arith.constant 0 : i32
    return %c0_i32, %c0_i32_0 : i32, i32
  }
  func.func @transform_7(%arg0: i32) -> (i32, i32) {
    %c0_i32 = arith.constant 0 : i32
    %c0_i32_0 = arith.constant 0 : i32
    %c0_i32_1 = arith.constant 0 : i32
    return %c0_i32, %c0_i32_0 : i32, i32
  }
  func.func @transform_8(%arg0: i32) -> (i32, i32) {
    %c0_i32 = arith.constant 0 : i32
    %c0_i32_0 = arith.constant 0 : i32
    %c0_i32_1 = arith.constant 0 : i32
    return %c0_i32, %c0_i32_0 : i32, i32
  }
  func.func @transform_9(%arg0: i32) -> (i32, i32) {
    %c0_i32 = arith.constant 0 : i32
    %c0_i32_0 = arith.constant 0 : i32
    %c0_i32_1 = arith.constant 0 : i32
    return %c0_i32, %c0_i32_0 : i32, i32
  }
  func.func @transform_10(%arg0: i32) -> (i32, i32) {
    %c0_i32 = arith.constant 0 : i32
    %c0_i32_0 = arith.constant 0 : i32
    return %arg0, %c0_i32 : i32, i32
  }
}

</mosaic_0001>

<bundles_post_ra>
// kernel: local_implicit_grid_forward.2
= control target key start
LH: loop header
LB: loop body
LE: loop exit
PB: predicated region body
PF: predicated region fallthrough
CT: control target
= control target key end

     0   :  { %vm87_vm0 = vcmask 1043456   ;;  %vm38_vm1 = vcmask 31744   ;;  %vm236_vm2 = vcmask 236544   ;;  %s474_s1 = inlined_call_operand.vmem [shape: f32[4,29], index: 1, kind: input, shape index: {}]   ;;  %s475_s0 = inlined_call_operand.vmem [shape: f32[128,4], index: 0, kind: input, shape index: {}]   ;;  %s476_s2 = inlined_call_operand.vmem [shape: f32[1,29], index: 2, kind: input, shape index: {}]   ;;  %s477_s3 = inlined_call_operand.vmem [shape: f32[128,29], index: 3, kind: output, shape index: {}]  }
   0x1   :  { %v30_v0 = vld [vmem:[%s474_s1] sm:$0xf]  ;;  %v15_v3 = vld [vmem:[%s475_s0 + $0x8] sm:$0xff]  ;;  %v16_v5 = vld [vmem:[%s475_s0 + $0x10] sm:$0xff] }
   0x2   :  { %v14_v1 = vld [vmem:[%s475_s0] sm:$0xff]  ;;  %292 = vmatprep.subr.msk.mxu0 %vm87_vm0, %v30_v0  ;;  %318 = vmatprep.subr.msk.mxu1 %vm87_vm0, %v30_v0  ;;  %v23_v4 = vld [vmem:[%s475_s0 + $0x48] sm:$0xff]  ;;  %v24_v6 = vld [vmem:[%s475_s0 + $0x50] sm:$0xff] }
   0x3   :  { %v22_v2 = vld [vmem:[%s475_s0 + $0x40] sm:$0xff]  ;;  %293 = vmatpush3.msk.msra.mxu0 %vm87_vm0, %v30_v0  ;;  %319 = vmatpush3.msk.msra.mxu1 %vm87_vm0, %v30_v0  ;;  %v17_v7 = vld [vmem:[%s475_s0 + $0x18] sm:$0xff]  ;;  %v19_v11 = vld [vmem:[%s475_s0 + $0x28] sm:$0xff] }
   0x4   :  { %294 = vmatprep.mubr.msk.f32.mxu0 %vm38_vm1, %v14_v1  ;;  %306 = vmatprep.mubr.msk.f32.mxu1 %vm38_vm1, %v22_v2  ;;  %v25_v8 = vld [vmem:[%s475_s0 + $0x58] sm:$0xff]  ;;  %v18_v9 = vld [vmem:[%s475_s0 + $0x20] sm:$0xff]  ;;  %v27_v12 = vld [vmem:[%s475_s0 + $0x68] sm:$0xff] }
   0x5   :  { %295 = vmatmul.mubr.msk.f32.vlgmr.msra.gmra.mrb[0].mxu0 %vm38_vm1, %v15_v3  ;;  %307 = vmatmul.mubr.msk.f32.vlgmr.msra.gmra.mrb[0].mxu1 %vm38_vm1, %v23_v4  ;;  %v26_v10 = vld [vmem:[%s475_s0 + $0x60] sm:$0xff]  ;;  %v20_v13 = vld [vmem:[%s475_s0 + $0x30] sm:$0xff]  ;;  %v21_v15 = vld [vmem:[%s475_s0 + $0x38] sm:$0xff] }
   0x6   :  { %297 = vmatprep.mubr.msk.f32.mxu0 %vm38_vm1, %v16_v5  ;;  %309 = vmatprep.mubr.msk.f32.mxu1 %vm38_vm1, %v24_v6  ;;  %v28_v14 = vld [vmem:[%s475_s0 + $0x70] sm:$0xff]  ;;  %v29_v16 = vld [vmem:[%s475_s0 + $0x78] sm:$0xff]  ;;  %v257_v17 = vld [vmem:[%s476_s2] ss:$0 sm:$0xff] }
   0x9   :  { %298 = vmatmul.mubr.msk.f32.gmra.mrb[2].mxu0 %vm38_vm1, %v17_v7  ;;  %310 = vmatmul.mubr.msk.f32.gmra.mrb[2].mxu1 %vm38_vm1, %v25_v8 }
   0xa   :  { %300 = vmatprep.mubr.msk.f32.mxu0 %vm38_vm1, %v18_v9  ;;  %312 = vmatprep.mubr.msk.f32.mxu1 %vm38_vm1, %v26_v10 }
   0xd   :  { %301 = vmatmul.mubr.msk.f32.gmra.mrb[4].mxu0 %vm38_vm1, %v19_v11  ;;  %313 = vmatmul.mubr.msk.f32.gmra.mrb[4].mxu1 %vm38_vm1, %v27_v12 }
   0xe   :  { %303 = vmatprep.mubr.msk.f32.mxu0 %vm38_vm1, %v20_v13  ;;  %315 = vmatprep.mubr.msk.f32.mxu1 %vm38_vm1, %v28_v14 }
  0x11   :  { %304 = vmatmul.mubr.msk.f32.gmra.mrb[6].mxu0 %vm38_vm1, %v21_v15  ;;  %316 = vmatmul.mubr.msk.f32.gmra.mrb[6].mxu1 %vm38_vm1, %v29_v16 }
  0xd8   :  { %v296_v18 = vpop.f32.mrb[0].mxu0  ;;  %v308_v19 = vpop.f32.mrb[0].mxu1 }
  0xd9   :  { %v163_v20 = vadd.f32 %v296_v18, %v257_v17  ;;  %v203_v21 = vadd.f32 %v308_v19, %v257_v17  ;;  %v157_v22 = vpop.f32.mrb[1].mxu0  ;;  %v197_v23 = vpop.f32.mrb[1].mxu1 }
  0xda   :  { %v158_v24 = vadd.f32 %v257_v17, %v157_v22  ;;  %v198_v25 = vadd.f32 %v257_v17, %v197_v23 }
  0xdb   :  { %238 = vst.msk [vmem:[%s477_s3 + $0x8] sm:$0xff] %vm236_vm2, %v163_v20  ;;  %246 = vst.msk [vmem:[%s477_s3 + $0x48] sm:$0xff] %vm236_vm2, %v203_v21 }
  0xdc   :  { %237 = vst.msk [vmem:[%s477_s3] sm:$0xff] %vm236_vm2, %v158_v24  ;;  %245 = vst.msk [vmem:[%s477_s3 + $0x40] sm:$0xff] %vm236_vm2, %v198_v25  ;;  %v299_v26 = vpop.f32.mrb[2].mxu0  ;;  %v311_v27 = vpop.f32.mrb[2].mxu1 }
  0xdd   :  { %v173_v28 = vadd.f32 %v299_v26, %v257_v17  ;;  %v213_v29 = vadd.f32 %v311_v27, %v257_v17  ;;  %v167_v30 = vpop.f32.mrb[3].mxu0  ;;  %v207_v31 = vpop.f32.mrb[3].mxu1 }
  0xde   :  { %v168_v32 = vadd.f32 %v257_v17, %v167_v30  ;;  %v208_v33 = vadd.f32 %v257_v17, %v207_v31 }
  0xdf   :  { %240 = vst.msk [vmem:[%s477_s3 + $0x18] sm:$0xff] %vm236_vm2, %v173_v28  ;;  %248 = vst.msk [vmem:[%s477_s3 + $0x58] sm:$0xff] %vm236_vm2, %v213_v29 }
  0xe0   :  { %239 = vst.msk [vmem:[%s477_s3 + $0x10] sm:$0xff] %vm236_vm2, %v168_v32  ;;  %247 = vst.msk [vmem:[%s477_s3 + $0x50] sm:$0xff] %vm236_vm2, %v208_v33  ;;  %v302_v34 = vpop.f32.mrb[4].mxu0  ;;  %v314_v35 = vpop.f32.mrb[4].mxu1 }
  0xe1   :  { %v183_v36 = vadd.f32 %v302_v34, %v257_v17  ;;  %v223_v37 = vadd.f32 %v314_v35, %v257_v17  ;;  %v177_v38 = vpop.f32.mrb[5].mxu0  ;;  %v217_v39 = vpop.f32.mrb[5].mxu1 }
  0xe2   :  { %v178_v40 = vadd.f32 %v257_v17, %v177_v38  ;;  %v218_v41 = vadd.f32 %v257_v17, %v217_v39 }
  0xe3   :  { %242 = vst.msk [vmem:[%s477_s3 + $0x28] sm:$0xff] %vm236_vm2, %v183_v36  ;;  %250 = vst.msk [vmem:[%s477_s3 + $0x68] sm:$0xff] %vm236_vm2, %v223_v37 }
  0xe4   :  { %241 = vst.msk [vmem:[%s477_s3 + $0x20] sm:$0xff] %vm236_vm2, %v178_v40  ;;  %249 = vst.msk [vmem:[%s477_s3 + $0x60] sm:$0xff] %vm236_vm2, %v218_v41  ;;  %v305_v42 = vpop.f32.mrb[6].mxu0  ;;  %v317_v43 = vpop.f32.mrb[6].mxu1 }
  0xe5   :  { %v193_v44 = vadd.f32 %v305_v42, %v257_v17  ;;  %v233_v45 = vadd.f32 %v317_v43, %v257_v17  ;;  %v187_v46 = vpop.f32.mrb[7].mxu0  ;;  %v227_v47 = vpop.f32.mrb[7].mxu1 }
  0xe6   :  { %v188_v48 = vadd.f32 %v257_v17, %v187_v46  ;;  %v228_v49 = vadd.f32 %v257_v17, %v227_v47 }
  0xe7   :  { %244 = vst.msk [vmem:[%s477_s3 + $0x38] sm:$0xff] %vm236_vm2, %v193_v44  ;;  %252 = vst.msk [vmem:[%s477_s3 + $0x78] sm:$0xff] %vm236_vm2, %v233_v45 }
  0xe8   :  { %243 = vst.msk [vmem:[%s477_s3 + $0x30] sm:$0xff] %vm236_vm2, %v188_v48  ;;  %251 = vst.msk [vmem:[%s477_s3 + $0x70] sm:$0xff] %vm236_vm2, %v228_v49 }

// kernel: local_implicit_grid_forward.3
= control target key start
LH: loop header
LB: loop body
LE: loop exit
PB: predicated region body
PF: predicated region fallthrough
CT: control target
= control target key end

     0   :  { %s9138_s15 = smov 0   ;;  %s12060_s0 = inlined_call_operand.vmem [shape: bf16[2048,29], index: 0, kind: input, shape index: {}]   ;;  %s12061_s1 = inlined_call_operand.vmem [shape: bf16[2048,3], index: 1, kind: input, shape index: {}]   ;;  %s12062_s2 = inlined_call_operand.vmem [shape: f32[2048,1], index: 2, kind: input, shape index: {}]   ;;  %s12063_s3 = inlined_call_operand.vmem [shape: bf16[3,32], index: 3, kind: input, shape index: {}]   ;;  %s12064_s4 = inlined_call_operand.vmem [shape: bf16[29,32], index: 4, kind: input, shape index: {}]   ;;  %s12065_s5 = inlined_call_operand.vmem [shape: f32[1,32], index: 5, kind: input, shape index: {}]   ;;  %s12066_s6 = inlined_call_operand.vmem [shape: bf16[32,32], index: 6, kind: input, shape index: {}]   ;;  %s12067_s7 = inlined_call_operand.vmem [shape: f32[1,32], index: 7, kind: input, shape index: {}]   ;;  %s12068_s8 = inlined_call_operand.vmem [shape: bf16[32,1], index: 8, kind: input, shape index: {}]   ;;  %s12069_s9 = inlined_call_operand.<no memory space> [shape: f32[1,1], index: 9, kind: input, shape index: {}]   ;;  %s12070_s10 = inlined_call_operand.vmem [shape: f32[256,1], index: 10, kind: output, shape index: {}]  }
   0x1   :  { %v15_v0 = vstv %s12069_s9 }
   0x2   :  { %16 = vst [vmem:[#allocation2] sm:$0x1] %v15_v0 }
   0x3 LB: > { %s7740_s16 = sadd.s32 4294967295, %s9076_s15   ;;  %p7744_p0 = scmp.ge.s32.totalorder %s9076_s15, 1  ;;  %s9076_s15 = sphi %s9138_s15, %s22_s15  }
   0x4   : > { %p337_p1 = scmp.lt.s32.totalorder %s9076_s15, 3 }
   0x6   : > { %p338_p2 = pnand %p7744_p0, %p337_p1 }
   0x8   : > { %341 = sbr.rel (%p338_p2) target bundleno = 1265 (0x4f1), region = 60 }
   0xf   : > { %v8857_v1 = vld [vmem:[%s12064_s4] sm:$0xff]   ;;  %vm1334_vm0 = vcmask 1045504   ;;  %v8858_v2 = vld [vmem:[%s12064_s4 + $0x8] sm:$0x7f]   ;;  %vm1335_vm1 = vcmask 1046528   ;;  %s7745_s20 = sshll.u32 %s7740_s16, 7 }
  0x10   : > { %8299 = vmatprep.subr.bf16.mxu0 %v8857_v1  ;;  %v410_v3 = vld [vmem:[%s12063_s3] sm:$0x3]  ;;  %8713 = vmatprep.subr.bf16.mxu1 %v8857_v1  ;;  %v9078_v4 = vmov 65535   ;;  %p386_p3 = scmp.lt.s32.totalorder %s7745_s20, 255  ;;  %vm2399_vm2 = vcmask 1040384   ;;  %vm2400_vm3 = vcmask 1041408  }
  0x11   : > { %8300 = vmatpush3.bf16.msra.mxu0 %v8857_v1  ;;  %v1336_v5 = vsel %vm1334_vm0, 4294967295, %v9078_v4  ;;  %8715 = vmatpush3.bf16.msra.mxu1 %v8857_v1  ;;  %v2401_v7 = vsel %vm2399_vm2, 4294967295, %v9078_v4  ;;  %vm1141_vm4 = vcmask 236544   ;;  %vm5825_vm5 = vcmask 7168   ;;  %s11730_s19 = sshll.u32 %s7740_s16, 4 }
  0x12   : > { %v1337_v6 = vsel %vm1335_vm1, %v1336_v5, 0  ;;  %s12512_s20 = smov (!%p386_p3, %s7745_s20), 255  ;;  %v2402_v9 = vsel %vm2400_vm3, %v2401_v7, 0  ;;  %v9079_v32 = vmov 0   ;;  %vm6984_vm6 = vcmask 1041409   ;;  %p404_p4 = scmp.lt.s32.totalorder %s11730_s19, 31 }
  0x13   : > { %v1339_v8 = vand.u32 %v8858_v2, %v1337_v6  ;;  %v2404_v10 = vand.u32 %v2402_v9, %v410_v3  ;;  %s7746_s23 = sshll.u32 %s12512_s20, 2  ;;  %s7750_s30 = sshll.u32 %s12512_s20, 3  ;;  %8856 = vset.pattern.permute.xlu1 %v9079_v32  ;;  %8855 = vset.pattern.permute.xlu0 %v9079_v32  ;;  %vm6986_vm7 = vcmask 1042434   ;;  %vm2206_vm8 = vcmask 23552  }
  0x14   : > { %s9163_s26 = scalar_lea.vmem %s12060_s0, %s7746_s23  ;;  %s9188_s29 = scalar_lea.vmem %s12061_s1, %s7746_s23  ;;  %vm6988_vm9 = vcmask 1043459   ;;  %vm3295_vm10 = vcmask 261120   ;;  %vm6990_vm11 = vcmask 1044484   ;;  %vm6992_vm12 = vcmask 1045509  }
  0x15   : > { %8301 = vmatprep.subr.bf16.mxu0 %v1339_v8  ;;  %8714 = vmatprep.subr.bf16.mxu1 %v1339_v8  ;;  %v8859_v11 = vld [vmem:[%s9163_s26] sm:$0xff]   ;;  %v8860_v12 = vld [vmem:[%s9163_s26 + $0x8] sm:$0xff]   ;;  %v8861_v13 = vld [vmem:[%s9163_s26 + $0x10] sm:$0xff]   ;;  %s9216_s13 = scalar_lea.vmem %s12062_s2, %s7750_s30  ;;  %vm6994_vm13 = vcmask 1046534   ;;  %vm6996_vm14 = vcmask 1047559   ;;  %s12514_s19 = smov (!%p404_p4, %s11730_s19), 31 }
  0x16   : > { %8302 = vmatpush3.bf16.msra.mxu0 %v1339_v8  ;;  %8716 = vmatpush3.bf16.msra.mxu1 %v1339_v8  ;;  %v8862_v14 = vld [vmem:[%s9163_s26 + $0x18] sm:$0xff]   ;;  %v8863_v15 = vld [vmem:[%s9163_s26 + $0x20] sm:$0xff]   ;;  %v8864_v16 = vld [vmem:[%s9163_s26 + $0x28] sm:$0xff]   ;;  %s7752_s16 = sshll.u32 %s12514_s19, 3 }
  0x17   : > { %8431 = vmatprep.subr.bf16.mxu0 %v2404_v10  ;;  %8303 = vmatprep.mubr.msk.bf16.mxu0 %vm1141_vm4, %v8859_v11  ;;  %v8865_v17 = vld [vmem:[%s9163_s26 + $0x30] sm:$0xff]   ;;  %v8866_v18 = vld [vmem:[%s9163_s26 + $0x38] sm:$0xff]   ;;  %v8867_v19 = vld [vmem:[%s9163_s26 + $0x40] sm:$0xff]   ;;  %s11791_s22 = scalar_lea.vmem %s12070_s10, %s7752_s16 }
  0x18   : > { %v8868_v20 = vld [vmem:[%s9163_s26 + $0x48] sm:$0xff]   ;;  %v8869_v21 = vld [vmem:[%s9163_s26 + $0x50] sm:$0xff]   ;;  %v8870_v22 = vld [vmem:[%s9163_s26 + $0x58] sm:$0xff]  }
  0x19   : > { %8304 = vmatmul.mubr.msk.bf16.vlgmr.msra.gmra.mrb[0].mxu0 %vm1141_vm4, %v8860_v12  ;;  %v8871_v23 = vld [vmem:[%s9163_s26 + $0x60] sm:$0xff]   ;;  %v8872_v24 = vld [vmem:[%s9163_s26 + $0x68] sm:$0xff]   ;;  %v8873_v25 = vld [vmem:[%s9163_s26 + $0x70] sm:$0xff]  }
  0x1a   : > { %8432 = vmatpush3.bf16.msra.mxu0 %v2404_v10  ;;  %8307 = vmatprep.mubr.msk.bf16.mxu0 %vm1141_vm4, %v8861_v13  ;;  %v8874_v26 = vld [vmem:[%s9163_s26 + $0x78] sm:$0xff]   ;;  %v8875_v27 = vld [vmem:[%s9163_s26 + $0x80] sm:$0xff]   ;;  %v8876_v28 = vld [vmem:[%s9163_s26 + $0x88] sm:$0xff]  }
  0x1b   : > { %v8877_v29 = vld [vmem:[%s9163_s26 + $0x90] sm:$0xff]   ;;  %v8878_v30 = vld [vmem:[%s9163_s26 + $0x98] sm:$0xff]   ;;  %v8879_v31 = vld [vmem:[%s9163_s26 + $0xa0] sm:$0xff]  }
  0x1c   : > { %v8880_v33 = vld [vmem:[%s9163_s26 + $0xa8] sm:$0xff]   ;;  %v684_v34 = vld [vmem:[%s9216_s13 + $0x10] sm:$0xff]  ;;  %v682_v35 = vld [vmem:[%s9216_s13] sm:$0xff] }
  0x1d   : > { %v8881_v36 = vld [vmem:[%s9163_s26 + $0xb0] sm:$0xff]   ;;  %4173 = vperm.xlu1 %8856, %v684_v34   ;;  %v5840_v37 = vsel %vm5825_vm5, %v684_v34, 0.0  ;;  %4163 = vperm.xlu0 %8855, %v682_v35   ;;  %v5826_v38 = vsel %vm5825_vm5, %v682_v35, 0.0  ;;  %v685_v45 = vld [vmem:[%s9216_s13 + $0x18] sm:$0xff]  ;;  %v683_v46 = vld [vmem:[%s9216_s13 + $0x8] sm:$0xff] }
  0x1e   : > { %v5841_v39 = vrot.slane %v5840_v37, 4  ;;  %v5827_v40 = vrot.slane %v5826_v38, 4  ;;  %v5833_v47 = vsel %vm5825_vm5, %v683_v46, 0.0  ;;  %v687_v51 = vld [vmem:[%s9216_s13 + $0x28] sm:$0xff]  ;;  %v686_v52 = vld [vmem:[%s9216_s13 + $0x20] sm:$0xff]  ;;  %v8882_v53 = vld [vmem:[%s9163_s26 + $0xb8] sm:$0xff]  }
  0x1f   : > { %v5834_v50 = vrot.slane %v5833_v47, 4  ;;  %v8883_v55 = vld [vmem:[%s9163_s26 + $0xc0] sm:$0xff]   ;;  %v689_v60 = vld [vmem:[%s9216_s13 + $0x38] sm:$0xff]  ;;  %v688_v61 = vld [vmem:[%s9216_s13 + $0x30] sm:$0xff] }
  0x20   : > { %v5842_v41 = vadd.f32 %v5841_v39, %v5840_v37  ;;  %v5828_v42 = vadd.f32 %v5827_v40, %v5826_v38  ;;  %v8884_v62 = vld [vmem:[%s9163_s26 + $0xc8] sm:$0xff]   ;;  %v690_v2 = vld [vmem:[%s9216_s13 + $0x40] sm:$0xff]  ;;  %v8885_v7 = vld [vmem:[%s9163_s26 + $0xd0] sm:$0xff]  }
  0x21   : > { %8308 = vmatmul.mubr.msk.bf16.gmra.mrb[4].mxu0 %vm1141_vm4, %v8862_v14  ;;  %4178 = vperm.xlu1 %8856, %v685_v45   ;;  %v5835_v54 = vadd.f32 %v5834_v50, %v5833_v47  ;;  %v691_v1 = vld [vmem:[%s9216_s13 + $0x48] sm:$0xff]  ;;  %v5882_v5 = vsel %vm5825_vm5, %v690_v2, 0.0  ;;  %v693_v14 = vld [vmem:[%s9216_s13 + $0x58] sm:$0xff]  ;;  %v698_v39 = vld [vmem:[%s9216_s13 + $0x80] sm:$0xff] }
  0x22   : > { %8311 = vmatprep.mubr.msk.bf16.mxu0 %vm1141_vm4, %v8863_v15  ;;  %v5843_v43 = vrot.slane %v5842_v41, 2  ;;  %v5829_v44 = vrot.slane %v5828_v42, 2  ;;  %4168 = vperm.xlu0 %8855, %v683_v46   ;;  %v5889_v4 = vsel %vm5825_vm5, %v691_v1, 0.0  ;;  %v5883_v9 = vrot.slane %v5882_v5, 4  ;;  %v692_v15 = vld [vmem:[%s9216_s13 + $0x50] sm:$0xff]  ;;  %v697_v32 = vld [vmem:[%s9216_s13 + $0x78] sm:$0xff] }
  0x23   : > { %v5836_v58 = vrot.slane %v5835_v54, 2  ;;  %v5890_v8 = vrot.slane %v5889_v4, 4  ;;  %v8888_v37 = vld [vmem:[%s9163_s26 + $0xe8] sm:$0xff]   ;;  %v700_v50 = vld [vmem:[%s9216_s13 + $0x90] sm:$0xff] }
  0x24   : > { %v5844_v48 = vadd.f32 %v5843_v43, %v5842_v41  ;;  %v5830_v49 = vadd.f32 %v5829_v44, %v5828_v42  ;;  %v5884_v13 = vadd.f32 %v5883_v9, %v5882_v5  ;;  %v5938_v41 = vsel %vm5825_vm5, %v698_v39, 0.0  ;;  %v8889_v42 = vld [vmem:[%s9163_s26 + $0xf0] sm:$0xff]   ;;  %v8923_v5 = vld [vmem:[%s9163_s26 + $0x120] sm:$0xff]   ;;  %v707_v9 = vld [vmem:[%s9216_s13 + $0xc8] sm:$0xff] }
  0x25   : > { %4188 = vperm.xlu1 %8856, %v687_v51   ;;  %v5837_v59 = vadd.f32 %v5836_v58, %v5835_v54  ;;  %v5891_v12 = vadd.f32 %v5890_v8, %v5889_v4  ;;  %v5939_v45 = vrot.slane %v5938_v41, 4  ;;  %v5952_v51 = vsel %vm5825_vm5, %v700_v50, 0.0  ;;  %v703_v54 = vld [vmem:[%s9216_s13 + $0xa8] sm:$0xff]  ;;  %v704_v4 = vld [vmem:[%s9216_s13 + $0xb0] sm:$0xff]  ;;  %8375 = vmatprep.mubr.msk.bf16.mxu1 %vm1141_vm4, %v8923_v5 }
  0x26   : > { %v5845_v56 = vrot.slane %v5844_v48, 1  ;;  %v5831_v57 = vrot.slane %v5830_v49, 1  ;;  %4183 = vperm.xlu0 %8855, %v686_v52  }
  0x27   : > { %v5838_v0 = vrot.slane %v5837_v59, 1 }
  0x28   : > { %v5832_v63 = vadd.f32 %v5831_v57, %v5830_v49  ;;  %v5846_v3 = vadd.f32 %v5845_v56, %v5844_v48  ;;  %v5940_v48 = vadd.f32 %v5939_v45, %v5938_v41  ;;  %v701_v49 = vld [vmem:[%s9216_s13 + $0x98] sm:$0xff]  ;;  %v5953_v56 = vrot.slane %v5952_v51, 4  ;;  %v702_v57 = vld [vmem:[%s9216_s13 + $0xa0] sm:$0xff]  ;;  %v712_v45 = vld [vmem:[%s9216_s13 + $0xf0] sm:$0xff] }
  0x29   : > { %8312 = vmatmul.mubr.msk.bf16.gmra.mrb[8].mxu0 %vm1141_vm4, %v8864_v16  ;;  %4198 = vperm.xlu1 %8856, %v689_v60   ;;  %v5839_v6 = vadd.f32 %v5838_v0, %v5837_v59  ;;  %v5892_v16 = vrot.slane %v5891_v12, 2  ;;  %v8891_v60 = vld [vmem:[%s9163_s26 + $0x100] sm:$0xff]  }
  0x2a   : > { %8315 = vmatprep.mubr.msk.bf16.mxu0 %vm1141_vm4, %v8865_v17  ;;  %4193 = vperm.xlu0 %8855, %v688_v61   ;;  %v5896_v17 = vsel %vm5825_vm5, %v692_v15, 0.0  ;;  %v5954_v61 = vadd.f32 %v5953_v56, %v5952_v51  ;;  %v715_v51 = vld [vmem:[%s9216_s13 + $0x108] sm:$0xff] }
  0x2b   : > { %v6985_v10 = vsel %vm6984_vm6, %v5839_v6, %v5832_v63 }
  0x2c   : > { %v9245_v11 = vsel %vm6986_vm7, %v5846_v3, %v6985_v10  ;;  %v5955_v0 = vrot.slane %v5954_v61, 2  ;;  %v705_v3 = vld [vmem:[%s9216_s13 + $0xb8] sm:$0xff]  ;;  %v8892_v10 = vld [vmem:[%s9163_s26 + $0x108] sm:$0xff]  }
  0x2d   : > { %4208 = vperm.xlu1 %8856, %v691_v1   ;;  %12097 = vst [vmem:[#allocation3_spill] sm:$0xff] %v9245_v11 }
  0x2e   : > { %4203 = vperm.xlu0 %8855, %v690_v2   ;;  %v5956_v6 = vadd.f32 %v5955_v0, %v5954_v61  ;;  %v717_v0 = vld [vmem:[%s9216_s13 + $0x118] sm:$0xff] }
  0x31   : > { %8316 = vmatmul.mubr.msk.bf16.gmra.mrb[12].mxu0 %vm1141_vm4, %v8866_v18  ;;  %4218 = vperm.xlu1 %8856, %v693_v14   ;;  %v5885_v18 = vrot.slane %v5884_v13, 2  ;;  %v6001_v14 = vsel %vm5825_vm5, %v707_v9, 0.0 }
  0x32   : > { %8319 = vmatprep.mubr.msk.bf16.mxu0 %vm1141_vm4, %v8867_v19  ;;  %4213 = vperm.xlu0 %8855, %v692_v15   ;;  %v695_v19 = vld [vmem:[%s9216_s13 + $0x68] sm:$0xff] }
  0x35   : > { %4228 = vperm.xlu1 %8856, %v695_v19  }
  0x39   : > { %8320 = vmatmul.mubr.msk.bf16.gmra.mrb[16].mxu0 %vm1141_vm4, %v8868_v20  ;;  %v8886_v20 = vld [vmem:[%s9163_s26 + $0xd8] sm:$0xff]   ;;  %4238 = vperm.xlu1 %8856, %v697_v32  }
  0x3a   : > { %8323 = vmatprep.mubr.msk.bf16.mxu0 %vm1141_vm4, %v8869_v21  ;;  %v5893_v21 = vadd.f32 %v5892_v16, %v5891_v12  ;;  %v5957_v12 = vrot.slane %v5956_v6, 1  ;;  %v8893_v16 = vld [vmem:[%s9163_s26 + $0x110] sm:$0xff]   ;;  %v8894_v32 = vld [vmem:[%s9163_s26 + $0x118] sm:$0xff]  }
  0x41   : > { %8324 = vmatmul.mubr.msk.bf16.gmra.mrb[20].mxu0 %vm1141_vm4, %v8870_v22  ;;  %v5897_v22 = vrot.slane %v5896_v17, 4 }
  0x42   : > { %8327 = vmatprep.mubr.msk.bf16.mxu0 %vm1141_vm4, %v8871_v23  ;;  %v694_v23 = vld [vmem:[%s9216_s13 + $0x60] sm:$0xff] }
  0x43   : > { %4223 = vperm.xlu0 %8855, %v694_v23   ;;  %v8927_v23 = vld [vmem:[%s12066_s6] sm:$0xff]  }
  0x44   : > { %8561 = vmatprep.subr.bf16.mxu1 %v8927_v23 }
  0x49   : > { %8328 = vmatmul.mubr.msk.bf16.gmra.mrb[24].mxu0 %vm1141_vm4, %v8872_v24  ;;  %v5886_v24 = vadd.f32 %v5885_v18, %v5884_v13  ;;  %v706_v13 = vld [vmem:[%s9216_s13 + $0xc0] sm:$0xff]  ;;  %v6002_v18 = vrot.slane %v6001_v14, 4 }
  0x4a   : > { %8331 = vmatprep.mubr.msk.bf16.mxu0 %vm1141_vm4, %v8873_v25  ;;  %v8887_v25 = vld [vmem:[%s9163_s26 + $0xe0] sm:$0xff]   ;;  %v5994_v15 = vsel %vm5825_vm5, %v706_v13, 0.0 }
  0x4b   : > { %v5995_v19 = vrot.slane %v5994_v15, 4 }
  0x51   : > { %8332 = vmatmul.mubr.msk.bf16.gmra.mrb[28].mxu0 %vm1141_vm4, %v8874_v26  ;;  %v5894_v26 = vrot.slane %v5893_v21, 1 }
  0x52   : > { %8335 = vmatprep.mubr.msk.bf16.mxu0 %vm1141_vm4, %v8875_v27  ;;  %v5898_v27 = vadd.f32 %v5897_v22, %v5896_v17  ;;  %v5958_v17 = vadd.f32 %v5957_v12, %v5956_v6  ;;  %v5996_v22 = vadd.f32 %v5995_v19, %v5994_v15 }
  0x59   : > { %8336 = vmatmul.mubr.msk.bf16.gmra.mrb[32].mxu0 %vm1141_vm4, %v8876_v28  ;;  %v5887_v28 = vrot.slane %v5886_v24, 1 }
  0x5a   : > { %8339 = vmatprep.mubr.msk.bf16.mxu0 %vm1141_vm4, %v8877_v29  ;;  %v5895_v29 = vadd.f32 %v5894_v26, %v5893_v21  ;;  %v6003_v21 = vadd.f32 %v6002_v18, %v6001_v14  ;;  %v8899_v14 = vld [vmem:[%s9188_s29 + $0x20] sm:$0xff]  }
  0x61   : > { %8340 = vmatmul.mubr.msk.bf16.gmra.mrb[36].mxu0 %vm1141_vm4, %v8878_v30  ;;  %v5899_v30 = vrot.slane %v5898_v27, 2 }
  0x62   : > { %8343 = vmatprep.mubr.msk.bf16.mxu0 %vm1141_vm4, %v8879_v31  ;;  %v5888_v31 = vadd.f32 %v5887_v28, %v5886_v24  ;;  %v709_v24 = vld [vmem:[%s9216_s13 + $0xd8] sm:$0xff]  ;;  %v6004_v28 = vrot.slane %v6003_v21, 2 }
  0x63   : > { %v5900_v34 = vadd.f32 %v5899_v30, %v5898_v27  ;;  %v8928_v27 = vld [vmem:[%s9163_s26 + $0x130] sm:$0xff]   ;;  %v711_v30 = vld [vmem:[%s9216_s13 + $0xe8] sm:$0xff] }
  0x64   : > { %v6998_v35 = vsel %vm6984_vm6, %v5895_v29, %v5888_v31  ;;  %v5997_v29 = vrot.slane %v5996_v22, 2  ;;  %v8929_v31 = vld [vmem:[%s9163_s26 + $0x138] sm:$0xff]  }
  0x65   : > { %v5901_v38 = vrot.slane %v5900_v34, 1 }
  0x67   : > { %v5902_v43 = vadd.f32 %v5901_v38, %v5900_v34  ;;  %v710_v34 = vld [vmem:[%s9216_s13 + $0xe0] sm:$0xff] }
  0x69   : > { %8344 = vmatmul.mubr.msk.bf16.gmra.mrb[40].mxu0 %vm1141_vm4, %v8880_v33  ;;  %v696_v33 = vld [vmem:[%s9216_s13 + $0x70] sm:$0xff]  ;;  %v9268_v46 = vsel %vm6986_vm7, %v5902_v43, %v6998_v35  ;;  %v6005_v35 = vadd.f32 %v6004_v28, %v6003_v21  ;;  %v723_v28 = vld [vmem:[%s9216_s13 + $0x148] sm:$0xff] }
  0x6a   : > { %8347 = vmatprep.mubr.msk.bf16.mxu0 %vm1141_vm4, %v8881_v36  ;;  %4233 = vperm.xlu0 %8855, %v696_v33   ;;  %v699_v36 = vld [vmem:[%s9216_s13 + $0x88] sm:$0xff]  ;;  %12098 = vst [vmem:[#allocation4_spill] sm:$0xff] %v9268_v46 }
  0x6b   : > { %v5945_v40 = vsel %vm5825_vm5, %v699_v36, 0.0  ;;  %4248 = vperm.xlu1 %8856, %v699_v36   ;;  %v5998_v36 = vadd.f32 %v5997_v29, %v5996_v22  ;;  %v721_v22 = vld [vmem:[%s9216_s13 + $0x138] sm:$0xff] }
  0x6c   : > { %v5946_v44 = vrot.slane %v5945_v40, 4 }
  0x6e   : > { %4243 = vperm.xlu0 %8855, %v698_v39   ;;  %v5947_v47 = vadd.f32 %v5946_v44, %v5945_v40  ;;  %v6006_v39 = vrot.slane %v6005_v35, 1  ;;  %v5999_v40 = vrot.slane %v5998_v36, 1  ;;  %v713_v44 = vld [vmem:[%s9216_s13 + $0xf8] sm:$0xff] }
  0x6f   : > { %4258 = vperm.xlu1 %8856, %v701_v49   ;;  %v8933_v49 = vld [vmem:[%s9163_s26 + $0x148] sm:$0xff]  }
  0x70   : > { %v5948_v52 = vrot.slane %v5947_v47, 2  ;;  %v6000_v43 = vadd.f32 %v5999_v40, %v5998_v36 }
  0x71   : > { %8348 = vmatmul.mubr.msk.bf16.gmra.mrb[44].mxu0 %vm1141_vm4, %v8882_v53  ;;  %v5941_v53 = vrot.slane %v5940_v48, 2 }
  0x72   : > { %8351 = vmatprep.mubr.msk.bf16.mxu0 %vm1141_vm4, %v8883_v55  ;;  %4253 = vperm.xlu0 %8855, %v700_v50   ;;  %v8890_v55 = vld [vmem:[%s9163_s26 + $0xf8] sm:$0xff]   ;;  %v5949_v58 = vadd.f32 %v5948_v52, %v5947_v47  ;;  %v8932_v47 = vld [vmem:[%s9163_s26 + $0x140] sm:$0xff]  }
  0x73   : > { %v5942_v59 = vadd.f32 %v5941_v53, %v5940_v48  ;;  %4268 = vperm.xlu1 %8856, %v703_v54   ;;  %v714_v53 = vld [vmem:[%s9216_s13 + $0x100] sm:$0xff]  ;;  %v8896_v54 = vld [vmem:[%s9188_s29 + $0x8] sm:$0xff]  }
  0x74   : > { %v6050_v56 = vsel %vm5825_vm5, %v714_v53, 0.0 }
  0x75   : > { %v5943_v63 = vrot.slane %v5942_v59, 1 }
  0x76   : > { %4263 = vperm.xlu0 %8855, %v702_v57   ;;  %v8897_v57 = vld [vmem:[%s9188_s29 + $0x10] sm:$0xff]  }
  0x77   : > { %v5944_v2 = vadd.f32 %v5943_v63, %v5942_v59  ;;  %4278 = vperm.xlu1 %8856, %v705_v3  }
  0x79   : > { %8352 = vmatmul.mubr.msk.bf16.gmra.mrb[48].mxu0 %vm1141_vm4, %v8884_v62  ;;  %v5950_v62 = vrot.slane %v5949_v58, 1 }
  0x7a   : > { %8355 = vmatprep.mubr.msk.bf16.mxu0 %vm1141_vm4, %v8885_v7  ;;  %v8924_v7 = vld [vmem:[%s9163_s26 + $0x128] sm:$0xff]   ;;  %4273 = vperm.xlu0 %8855, %v704_v4   ;;  %v8937_v4 = vld [vmem:[%s9163_s26 + $0x158] sm:$0xff]  }
  0x7b   : > { %v5951_v1 = vadd.f32 %v5950_v62, %v5949_v58  ;;  %8376 = vmatmul.mubr.msk.bf16.vlgmr.msra.gmra.mrb[0].mxu1 %vm1141_vm4, %v8924_v7  ;;  %4288 = vperm.xlu1 %8856, %v707_v9   ;;  %v719_v7 = vld [vmem:[%s9216_s13 + $0x128] sm:$0xff]  ;;  %v718_v9 = vld [vmem:[%s9216_s13 + $0x120] sm:$0xff] }
  0x7c   : > { %8562 = vmatpush3.bf16.msra.mxu1 %v8927_v23  ;;  %8379 = vmatprep.mubr.msk.bf16.mxu1 %vm1141_vm4, %v8928_v27  ;;  %v720_v23 = vld [vmem:[%s9216_s13 + $0x130] sm:$0xff] }
  0x7d   : > { %v7005_v8 = vsel %vm6984_vm6, %v5951_v1, %v5944_v2  ;;  %v716_v1 = vld [vmem:[%s9216_s13 + $0x110] sm:$0xff] }
  0x7e   : > { %4283 = vperm.xlu0 %8855, %v706_v13   ;;  %v8936_v2 = vld [vmem:[%s9163_s26 + $0x150] sm:$0xff]   ;;  %v6064_v3 = vsel %vm5825_vm5, %v716_v1, 0.0 }
  0x7f   : > { %4298 = vperm.xlu1 %8856, %v709_v24   ;;  %v8940_v24 = vld [vmem:[%s9163_s26 + $0x160] sm:$0xff]  }
  0x81   : > { %8356 = vmatmul.mubr.msk.bf16.gmra.mrb[52].mxu0 %vm1141_vm4, %v8886_v20  ;;  %v9295_v20 = vsel %vm6986_vm7, %v5958_v17, %v7005_v8  ;;  %v6065_v8 = vrot.slane %v6064_v3, 4 }
  0x82   : > { %8359 = vmatprep.mubr.msk.bf16.mxu0 %vm1141_vm4, %v8887_v25  ;;  %12099 = vst [vmem:[#allocation5_spill] sm:$0xff] %v9295_v20  ;;  %v708_v25 = vld [vmem:[%s9216_s13 + $0xd0] sm:$0xff] }
  0x83   : > { %v6008_v26 = vsel %vm5825_vm5, %v708_v25, 0.0  ;;  %4293 = vperm.xlu0 %8855, %v708_v25   ;;  %8380 = vmatmul.mubr.msk.bf16.gmra.mrb[4].mxu1 %vm1141_vm4, %v8929_v31  ;;  %v6066_v15 = vadd.f32 %v6065_v8, %v6064_v3  ;;  %v8900_v31 = vld [vmem:[%s9188_s29 + $0x28] sm:$0xff]  }
  0x84   : > { %v6009_v33 = vrot.slane %v6008_v26, 4  ;;  %4308 = vperm.xlu1 %8856, %v711_v30   ;;  %8383 = vmatprep.mubr.msk.bf16.mxu1 %vm1141_vm4, %v8932_v47  ;;  %v722_v30 = vld [vmem:[%s9216_s13 + $0x140] sm:$0xff] }
  0x85   : > { %v6067_v18 = vrot.slane %v6066_v15, 2 }
  0x86   : > { %v6010_v38 = vadd.f32 %v6009_v33, %v6008_v26  ;;  %v8941_v26 = vld [vmem:[%s9163_s26 + $0x168] sm:$0xff]   ;;  %v6106_v33 = vsel %vm5825_vm5, %v722_v30, 0.0 }
  0x87   : > { %4303 = vperm.xlu0 %8855, %v710_v34   ;;  %v6068_v25 = vadd.f32 %v6067_v18, %v6066_v15  ;;  %v8901_v34 = vld [vmem:[%s9188_s29 + $0x30] sm:$0xff]  }
  0x88   : > { %v6011_v41 = vrot.slane %v6010_v38, 2  ;;  %4318 = vperm.xlu1 %8856, %v713_v44   ;;  %v8905_v15 = vld [vmem:[%s9188_s29 + $0x50] sm:$0xff]  }
  0x89   : > { %8360 = vmatmul.mubr.msk.bf16.gmra.mrb[56].mxu0 %vm1141_vm4, %v8888_v37  ;;  %v8895_v37 = vld [vmem:[%s9188_s29] sm:$0xff]   ;;  %v6069_v29 = vrot.slane %v6068_v25, 1 }
  0x8a   : > { %8363 = vmatprep.mubr.msk.bf16.mxu0 %vm1141_vm4, %v8889_v42  ;;  %v6007_v42 = vadd.f32 %v6006_v39, %v6005_v35  ;;  %v6012_v48 = vadd.f32 %v6011_v41, %v6010_v38  ;;  %v725_v41 = vld [vmem:[%s9216_s13 + $0x158] sm:$0xff] }
  0x8b   : > { %4313 = vperm.xlu0 %8855, %v712_v45   ;;  %8384 = vmatmul.mubr.msk.bf16.gmra.mrb[8].mxu1 %vm1141_vm4, %v8933_v49  ;;  %v6070_v35 = vadd.f32 %v6069_v29, %v6068_v25  ;;  %v8945_v45 = vld [vmem:[%s9163_s26 + $0x178] sm:$0xff]   ;;  %v727_v49 = vld [vmem:[%s9216_s13 + $0x168] sm:$0xff]  ;;  %v732_v25 = vld [vmem:[%s9216_s13 + $0x190] sm:$0xff] }
  0x8c   : > { %v7012_v50 = vsel %vm6984_vm6, %v6007_v42, %v6000_v43  ;;  %v6013_v52 = vrot.slane %v6012_v48, 1  ;;  %4328 = vperm.xlu1 %8856, %v715_v51   ;;  %8387 = vmatprep.mubr.msk.bf16.mxu1 %vm1141_vm4, %v8936_v2  ;;  %v724_v42 = vld [vmem:[%s9216_s13 + $0x150] sm:$0xff] }
  0x8d   : > { %v8944_v43 = vld [vmem:[%s9163_s26 + $0x170] sm:$0xff]   ;;  %v6120_v44 = vsel %vm5825_vm5, %v724_v42, 0.0 }
  0x8e   : > { %v6014_v58 = vadd.f32 %v6013_v52, %v6012_v48  ;;  %v8902_v52 = vld [vmem:[%s9188_s29 + $0x38] sm:$0xff]  }
  0x8f   : > { %4323 = vperm.xlu0 %8855, %v714_v53  }
  0x90   : > { %v9329_v61 = vsel %vm6986_vm7, %v6014_v58, %v7012_v50  ;;  %4338 = vperm.xlu1 %8856, %v717_v0   ;;  %v6121_v50 = vrot.slane %v6120_v44, 4  ;;  %v728_v0 = vld [vmem:[%s9216_s13 + $0x170] sm:$0xff] }
  0x91   : > { %8364 = vmatmul.mubr.msk.bf16.gmra.mrb[60].mxu0 %vm1141_vm4, %v8890_v55  ;;  %v6057_v55 = vsel %vm5825_vm5, %v715_v51, 0.0  ;;  %12100 = vst [vmem:[#allocation6_spill] sm:$0xff] %v9329_v61  ;;  %v726_v51 = vld [vmem:[%s9216_s13 + $0x160] sm:$0xff] }
  0x92   : > { %8367 = vmatprep.mubr.msk.bf16.mxu0 %vm1141_vm4, %v8891_v60  ;;  %v6058_v59 = vrot.slane %v6057_v55, 4  ;;  %v6051_v60 = vrot.slane %v6050_v56, 4 }
  0x93   : > { %4333 = vperm.xlu0 %8855, %v716_v1   ;;  %8388 = vmatmul.mubr.msk.bf16.gmra.mrb[12].mxu1 %vm1141_vm4, %v8937_v4  ;;  %v8948_v1 = vld [vmem:[%s9163_s26 + $0x180] sm:$0xff]   ;;  %v8949_v4 = vld [vmem:[%s9163_s26 + $0x188] sm:$0xff]  }
  0x94   : > { %v6059_v62 = vadd.f32 %v6058_v59, %v6057_v55  ;;  %v6052_v63 = vadd.f32 %v6051_v60, %v6050_v56  ;;  %4348 = vperm.xlu1 %8856, %v719_v7   ;;  %8391 = vmatprep.mubr.msk.bf16.mxu1 %vm1141_vm4, %v8940_v24  ;;  %v8903_v55 = vld [vmem:[%s9188_s29 + $0x40] sm:$0xff]   ;;  %v6122_v56 = vadd.f32 %v6121_v50, %v6120_v44 }
  0x95   : > { %v738_v7 = vld [vmem:[%s9216_s13 + $0x1c0] sm:$0xff] }
  0x96   : > { %v6060_v5 = vrot.slane %v6059_v62, 2  ;;  %v6053_v6 = vrot.slane %v6052_v63, 2  ;;  %v6123_v59 = vrot.slane %v6122_v56, 2 }
  0x97   : > { %4343 = vperm.xlu0 %8855, %v718_v9   ;;  %v731_v9 = vld [vmem:[%s9216_s13 + $0x188] sm:$0xff] }
  0x98   : > { %v6061_v12 = vadd.f32 %v6060_v5, %v6059_v62  ;;  %v6054_v13 = vadd.f32 %v6053_v6, %v6052_v63  ;;  %4358 = vperm.xlu1 %8856, %v721_v22   ;;  %v730_v63 = vld [vmem:[%s9216_s13 + $0x180] sm:$0xff]  ;;  %v6124_v2 = vadd.f32 %v6123_v59, %v6122_v56  ;;  %v8956_v59 = vld [vmem:[%s12066_s6 + $0x8] sm:$0xff]  }
  0x99   : > { %8368 = vmatmul.mubr.msk.bf16.gmra.mrb[64].mxu0 %vm1141_vm4, %v8892_v10  ;;  %v8898_v10 = vld [vmem:[%s9188_s29 + $0x18] sm:$0xff]   ;;  %v6162_v3 = vsel %vm5825_vm5, %v730_v63, 0.0  ;;  %8563 = vmatprep.subr.bf16.mxu1 %v8956_v59 }
  0x9a   : > { %8371 = vmatprep.mubr.msk.bf16.mxu0 %vm1141_vm4, %v8893_v16  ;;  %v6062_v16 = vrot.slane %v6061_v12, 1  ;;  %v6055_v17 = vrot.slane %v6054_v13, 1  ;;  %v6163_v6 = vrot.slane %v6162_v3, 4  ;;  %v6125_v8 = vrot.slane %v6124_v2, 1  ;;  %8564 = vmatpush3.bf16.msra.mxu1 %v8956_v59 }
  0x9b   : > { %4353 = vperm.xlu0 %8855, %v720_v23   ;;  %8392 = vmatmul.mubr.msk.bf16.gmra.mrb[16].mxu1 %vm1141_vm4, %v8941_v26  ;;  %v739_v26 = vld [vmem:[%s9216_s13 + $0x1c8] sm:$0xff] }
  0x9c   : > { %v6063_v19 = vadd.f32 %v6062_v16, %v6061_v12  ;;  %v6056_v21 = vadd.f32 %v6055_v17, %v6054_v13  ;;  %4368 = vperm.xlu1 %8856, %v723_v28   ;;  %8395 = vmatprep.mubr.msk.bf16.mxu1 %vm1141_vm4, %v8944_v43  ;;  %v6164_v12 = vadd.f32 %v6163_v6, %v6162_v3  ;;  %v6218_v13 = vsel %vm5825_vm5, %v738_v7, 0.0 }
  0x9d   : > { %v6126_v16 = vadd.f32 %v6125_v8, %v6124_v2  ;;  %v6219_v18 = vrot.slane %v6218_v13, 4  ;;  %v6225_v29 = vsel %vm5825_vm5, %v739_v26, 0.0  ;;  %v8957_v2 = vld [vmem:[%s9163_s26 + $0x1a0] sm:$0xff]   ;;  %v8958_v8 = vld [vmem:[%s9163_s26 + $0x1a8] sm:$0xff]  }
  0x9e   : > { %v7019_v27 = vsel %vm6984_vm6, %v6063_v19, %v6056_v21  ;;  %v6165_v17 = vrot.slane %v6164_v12, 2 }
  0x9f   : > { %4363 = vperm.xlu0 %8855, %v722_v30   ;;  %v9360_v38 = vsel %vm6986_vm7, %v6070_v35, %v7019_v27  ;;  %v6220_v23 = vadd.f32 %v6219_v18, %v6218_v13  ;;  %v8952_v27 = vld [vmem:[%s9163_s26 + $0x190] sm:$0xff]   ;;  %v8953_v30 = vld [vmem:[%s9163_s26 + $0x198] sm:$0xff]  }
  0xa0   : > { %12101 = vst [vmem:[#allocation7_spill] sm:$0xff] %v9360_v38  ;;  %4378 = vperm.xlu1 %8856, %v725_v41   ;;  %v6166_v22 = vadd.f32 %v6165_v17, %v6164_v12  ;;  %v733_v35 = vld [vmem:[%s9216_s13 + $0x198] sm:$0xff]  ;;  %v8909_v17 = vld [vmem:[%s9188_s29 + $0x70] sm:$0xff]  }
  0xa1   : > { %8372 = vmatmul.mubr.msk.bf16.gmra.mrb[68].mxu0 %vm1141_vm4, %v8894_v32  ;;  %v6113_v32 = vsel %vm5825_vm5, %v723_v28, 0.0  ;;  %v6176_v28 = vsel %vm5825_vm5, %v732_v25, 0.0  ;;  %v8906_v41 = vld [vmem:[%s9188_s29 + $0x58] sm:$0xff]  }
  0xa2   : > { %8433 = vmatprep.mubr.msk.bf16.mxu0 %vm2206_vm8, %v8895_v37  ;;  %v6114_v36 = vrot.slane %v6113_v32, 4  ;;  %v6107_v37 = vrot.slane %v6106_v33, 4 }
  0xa3   : > { %4373 = vperm.xlu0 %8855, %v724_v42   ;;  %8396 = vmatmul.mubr.msk.bf16.gmra.mrb[20].mxu1 %vm1141_vm4, %v8945_v45  ;;  %v8907_v45 = vld [vmem:[%s9188_s29 + $0x60] sm:$0xff]  }
  0xa4   : > { %v6115_v39 = vadd.f32 %v6114_v36, %v6113_v32  ;;  %v6108_v40 = vadd.f32 %v6107_v37, %v6106_v33  ;;  %4388 = vperm.xlu1 %8856, %v727_v49   ;;  %8399 = vmatprep.mubr.msk.bf16.mxu1 %vm1141_vm4, %v8948_v1  ;;  %v6221_v32 = vrot.slane %v6220_v23, 2  ;;  %v740_v36 = vld [vmem:[%s9216_s13 + $0x1d0] sm:$0xff]  ;;  %v6226_v37 = vrot.slane %v6225_v29, 4 }
  0xa6   : > { %v6116_v47 = vrot.slane %v6115_v39, 2  ;;  %v6109_v48 = vrot.slane %v6108_v40, 2  ;;  %v6222_v42 = vadd.f32 %v6221_v32, %v6220_v23 }
  0xa7   : > { %4383 = vperm.xlu0 %8855, %v726_v51  }
  0xa8   : > { %v6117_v53 = vadd.f32 %v6116_v47, %v6115_v39  ;;  %4403 = vperm.xlu1 %8856, %v730_v63   ;;  %v6183_v39 = vsel %vm5825_vm5, %v733_v35, 0.0  ;;  %v6227_v47 = vadd.f32 %v6226_v37, %v6225_v29  ;;  %v6223_v51 = vrot.slane %v6222_v42, 1  ;;  %v729_v29 = vld [vmem:[%s9216_s13 + $0x178] sm:$0xff] }
  0xa9   : > { %8434 = vmatmul.mubr.msk.bf16.vlgmr.msra.gmra.mrb[0].mxu0 %vm2206_vm8, %v8896_v54  ;;  %v6110_v54 = vadd.f32 %v6109_v48, %v6108_v40  ;;  %v6232_v40 = vsel %vm5825_vm5, %v740_v36, 0.0  ;;  %v6184_v48 = vrot.slane %v6183_v39, 4 }
  0xaa   : > { %8437 = vmatprep.mubr.msk.bf16.mxu0 %vm2206_vm8, %v8897_v57  ;;  %v6118_v57 = vrot.slane %v6117_v53, 1  ;;  %v6233_v49 = vrot.slane %v6232_v40, 4  ;;  %v6224_v3 = vadd.f32 %v6223_v51, %v6222_v42  ;;  %v746_v51 = vld [vmem:[%s9216_s13 + $0x200] sm:$0xff] }
  0xab   : > { %v6111_v58 = vrot.slane %v6110_v54, 1  ;;  %4393 = vperm.xlu0 %8855, %v728_v0   ;;  %8400 = vmatmul.mubr.msk.bf16.gmra.mrb[24].mxu1 %vm1141_vm4, %v8949_v4 }
  0xac   : > { %v6119_v60 = vadd.f32 %v6118_v57, %v6117_v53  ;;  %4443 = vperm.xlu1 %8856, %v738_v7   ;;  %8403 = vmatprep.mubr.msk.bf16.mxu1 %vm1141_vm4, %v8952_v27  ;;  %v6234_v56 = vadd.f32 %v6233_v49, %v6232_v40  ;;  %v735_v7 = vld [vmem:[%s9216_s13 + $0x1a8] sm:$0xff]  ;;  %v8910_v40 = vld [vmem:[%s9188_s29 + $0x78] sm:$0xff]  }
  0xad   : > { %v6112_v62 = vadd.f32 %v6111_v58, %v6110_v54  ;;  %v6228_v54 = vrot.slane %v6227_v47, 2 }
  0xae   : > { %v6235_v1 = vrot.slane %v6234_v56, 2 }
  0xaf   : > { %v7026_v5 = vsel %vm6984_vm6, %v6119_v60, %v6112_v62  ;;  %4408 = vperm.xlu0 %8855, %v731_v9   ;;  %v734_v60 = vld [vmem:[%s9216_s13 + $0x1a0] sm:$0xff]  ;;  %v741_v62 = vld [vmem:[%s9216_s13 + $0x1d8] sm:$0xff]  ;;  %v6229_v63 = vadd.f32 %v6228_v54, %v6227_v47  ;;  %v6274_v54 = vsel %vm5825_vm5, %v746_v51, 0.0 }
  0xb0   : > { %v9392_v21 = vsel %vm6986_vm7, %v6126_v16, %v7026_v5  ;;  %4413 = vperm.xlu1 %8856, %v732_v25   ;;  %v6239_v6 = vsel %vm5825_vm5, %v741_v62, 0.0  ;;  %v6236_v12 = vadd.f32 %v6235_v1, %v6234_v56  ;;  %v8965_v47 = vld [vmem:[%s9163_s26 + $0x1c0] sm:$0xff]  }
  0xb1   : > { %8438 = vmatmul.mubr.msk.bf16.gmra.mrb[4].mxu0 %vm2206_vm8, %v8898_v10  ;;  %v8904_v10 = vld [vmem:[%s9188_s29 + $0x48] sm:$0xff]   ;;  %12102 = vst [vmem:[#allocation8_spill] sm:$0xff] %v9392_v21  ;;  %v6240_v13 = vrot.slane %v6239_v6, 4 }
  0xb2   : > { %8441 = vmatprep.mubr.msk.bf16.mxu0 %vm2206_vm8, %v8899_v14  ;;  %v6169_v14 = vsel %vm5825_vm5, %v731_v9, 0.0  ;;  %v6230_v9 = vrot.slane %v6229_v63, 1 }
  0xb3   : > { %v6170_v19 = vrot.slane %v6169_v14, 4  ;;  %4448 = vperm.xlu0 %8855, %v739_v26   ;;  %8404 = vmatmul.mubr.msk.bf16.gmra.mrb[28].mxu1 %vm1141_vm4, %v8953_v30  ;;  %v6241_v23 = vadd.f32 %v6240_v13, %v6239_v6  ;;  %v743_v30 = vld [vmem:[%s9216_s13 + $0x1e8] sm:$0xff]  ;;  %v756_v6 = vld [vmem:[%s9216_s13 + $0x250] sm:$0xff] }
  0xb4   : > { %4418 = vperm.xlu1 %8856, %v733_v35   ;;  %8407 = vmatprep.mubr.msk.bf16.mxu1 %vm1141_vm4, %v8957_v2  ;;  %v6231_v18 = vadd.f32 %v6230_v9, %v6229_v63  ;;  %v8962_v35 = vld [vmem:[%s9163_s26 + $0x1b8] sm:$0xff]   ;;  %v8969_v63 = vld [vmem:[%s9163_s26 + $0x1d0] sm:$0xff]   ;;  %v6344_v9 = vsel %vm5825_vm5, %v756_v6, 0.0 }
  0xb5   : > { %v6171_v24 = vadd.f32 %v6170_v19, %v6169_v14  ;;  %v742_v14 = vld [vmem:[%s9216_s13 + $0x1e0] sm:$0xff]  ;;  %v8970_v2 = vld [vmem:[%s9163_s26 + $0x1d8] sm:$0xff]  }
  0xb6   : > { %v7040_v25 = vsel %vm6984_vm6, %v6231_v18, %v6224_v3  ;;  %v6345_v18 = vrot.slane %v6344_v9, 4 }
  0xb7   : > { %v6172_v33 = vrot.slane %v6171_v24, 2  ;;  %4453 = vperm.xlu0 %8855, %v740_v36   ;;  %v744_v36 = vld [vmem:[%s9216_s13 + $0x1f0] sm:$0xff] }
  0xb8   : > { %4423 = vperm.xlu1 %8856, %v734_v60   ;;  %v755_v60 = vld [vmem:[%s9216_s13 + $0x248] sm:$0xff] }
  0xb9   : > { %8442 = vmatmul.mubr.msk.bf16.gmra.mrb[8].mxu0 %vm2206_vm8, %v8900_v31  ;;  %v6167_v31 = vrot.slane %v6166_v22, 1  ;;  %v6173_v43 = vadd.f32 %v6172_v33, %v6171_v24 }
  0xba   : > { %8445 = vmatprep.mubr.msk.bf16.mxu0 %vm2206_vm8, %v8901_v34  ;;  %v6177_v34 = vrot.slane %v6176_v28, 4 }
  0xbb   : > { %v6168_v50 = vadd.f32 %v6167_v31, %v6166_v22  ;;  %4458 = vperm.xlu0 %8855, %v741_v62   ;;  %8408 = vmatmul.mubr.msk.bf16.gmra.mrb[32].mxu1 %vm1141_vm4, %v8958_v8  ;;  %v6237_v22 = vrot.slane %v6236_v12, 1  ;;  %v8961_v31 = vld [vmem:[%s9163_s26 + $0x1b0] sm:$0xff]   ;;  %v754_v62 = vld [vmem:[%s9216_s13 + $0x240] sm:$0xff] }
  0xbc   : > { %v6178_v44 = vadd.f32 %v6177_v34, %v6176_v28  ;;  %4428 = vperm.xlu1 %8856, %v735_v7   ;;  %v6242_v28 = vrot.slane %v6241_v23, 2  ;;  %8411 = vmatprep.mubr.msk.bf16.mxu1 %vm1141_vm4, %v8961_v31  ;;  %v6330_v1 = vsel %vm5825_vm5, %v754_v62, 0.0  ;;  %v748_v7 = vld [vmem:[%s9216_s13 + $0x210] sm:$0xff]  ;;  %v762_v31 = vld [vmem:[%s9216_s13 + $0x280] sm:$0xff] }
  0xbd   : > { %v6238_v27 = vadd.f32 %v6237_v22, %v6236_v12  ;;  %v6331_v8 = vrot.slane %v6330_v1, 4  ;;  %v8914_v12 = vld [vmem:[%s9188_s29 + $0x98] sm:$0xff]  }
  0xbe   : > { %v6179_v53 = vrot.slane %v6178_v44, 2  ;;  %v6243_v34 = vadd.f32 %v6242_v28, %v6241_v23 }
  0xbf   : > { %4463 = vperm.xlu0 %8855, %v742_v14   ;;  %v7041_v33 = vsel %vm6986_vm7, %v6238_v27, %v7040_v25 }
  0xc0   : > { %v6180_v58 = vadd.f32 %v6179_v53, %v6178_v44  ;;  %4398 = vperm.xlu1 %8856, %v729_v29   ;;  %v6244_v37 = vrot.slane %v6243_v34, 1  ;;  %v745_v44 = vld [vmem:[%s9216_s13 + $0x1f8] sm:$0xff] }
  0xc1   : > { %8446 = vmatmul.mubr.msk.bf16.gmra.mrb[12].mxu0 %vm2206_vm8, %v8902_v52  ;;  %v6174_v52 = vrot.slane %v6173_v43, 1 }
  0xc2   : > { %8449 = vmatprep.mubr.msk.bf16.mxu0 %vm2206_vm8, %v8903_v55  ;;  %v6185_v55 = vadd.f32 %v6184_v48, %v6183_v39  ;;  %v6181_v5 = vrot.slane %v6180_v58, 1  ;;  %v736_v39 = vld [vmem:[%s9216_s13 + $0x1b0] sm:$0xff]  ;;  %v6245_v42 = vadd.f32 %v6244_v37, %v6243_v34  ;;  %v747_v48 = vld [vmem:[%s9216_s13 + $0x208] sm:$0xff] }
  0xc3   : > { %v6175_v57 = vadd.f32 %v6174_v52, %v6173_v43  ;;  %4468 = vperm.xlu0 %8855, %v743_v30   ;;  %8412 = vmatmul.mubr.msk.bf16.gmra.mrb[36].mxu1 %vm1141_vm4, %v8962_v35  ;;  %v6281_v49 = vsel %vm5825_vm5, %v747_v48, 0.0  ;;  %v8912_v52 = vld [vmem:[%s9188_s29 + $0x88] sm:$0xff]  }
  0xc4   : > { %v6186_v0 = vrot.slane %v6185_v55, 2  ;;  %v6182_v16 = vadd.f32 %v6181_v5, %v6180_v58  ;;  %4473 = vperm.xlu1 %8856, %v744_v36   ;;  %v9446_v43 = vsel %vm6988_vm9, %v6245_v42, %v7041_v33  ;;  %8415 = vmatprep.mubr.msk.bf16.mxu1 %vm1141_vm4, %v8965_v47  ;;  %v6282_v53 = vrot.slane %v6281_v49, 4  ;;  %v763_v30 = vld [vmem:[%s9216_s13 + $0x288] sm:$0xff]  ;;  %v8973_v33 = vld [vmem:[%s9163_s26 + $0x1e0] sm:$0xff]  }
  0xc5   : > { %v7033_v4 = vsel %vm6984_vm6, %v6175_v57, %v6168_v50  ;;  %12104 = vst [vmem:[#allocation10_spill] sm:$0xff] %v9446_v43  ;;  %v8966_v50 = vld [vmem:[%s9163_s26 + $0x1c8] sm:$0xff]   ;;  %v6275_v57 = vrot.slane %v6274_v54, 4  ;;  %v6393_v37 = vsel %vm5825_vm5, %v763_v30, 0.0 }
  0xc6   : > { %v7034_v24 = vsel %vm6986_vm7, %v6182_v16, %v7033_v4  ;;  %v6283_v56 = vadd.f32 %v6282_v53, %v6281_v49  ;;  %v8915_v16 = vld [vmem:[%s9188_s29 + $0xa0] sm:$0xff]   ;;  %v6394_v42 = vrot.slane %v6393_v37, 4 }
  0xc7   : > { %4433 = vperm.xlu0 %8855, %v736_v39   ;;  %v6276_v59 = vadd.f32 %v6275_v57, %v6274_v54  ;;  %v8974_v39 = vld [vmem:[%s9163_s26 + $0x1e8] sm:$0xff]   ;;  %v8917_v57 = vld [vmem:[%s9188_s29 + $0xb0] sm:$0xff]  }
  0xc8   : > { %4478 = vperm.xlu1 %8856, %v745_v44   ;;  %v6284_v58 = vrot.slane %v6283_v56, 2  ;;  %v6386_v44 = vsel %vm5825_vm5, %v762_v31, 0.0  ;;  %v6395_v54 = vadd.f32 %v6394_v42, %v6393_v37 }
  0xc9   : > { %8450 = vmatmul.mubr.msk.bf16.gmra.mrb[16].mxu0 %vm2206_vm8, %v8904_v10  ;;  %v6187_v10 = vadd.f32 %v6186_v0, %v6185_v55  ;;  %v8913_v55 = vld [vmem:[%s9188_s29 + $0x90] sm:$0xff]   ;;  %v6337_v0 = vsel %vm5825_vm5, %v755_v60, 0.0  ;;  %v6277_v4 = vrot.slane %v6276_v59, 2 }
  0xca   : > { %8453 = vmatprep.mubr.msk.bf16.mxu0 %vm2206_vm8, %v8905_v15  ;;  %v8908_v15 = vld [vmem:[%s9188_s29 + $0x68] sm:$0xff]   ;;  %v6285_v3 = vadd.f32 %v6284_v58, %v6283_v56  ;;  %v6338_v5 = vrot.slane %v6337_v0, 4 }
  0xcb   : > { %v6188_v19 = vrot.slane %v6187_v10, 1  ;;  %8416 = vmatmul.mubr.msk.bf16.gmra.mrb[40].mxu1 %vm1141_vm4, %v8966_v50  ;;  %v6278_v14 = vadd.f32 %v6277_v4, %v6276_v59  ;;  %v6387_v50 = vrot.slane %v6386_v44, 4 }
  0xcc   : > { %4488 = vperm.xlu1 %8856, %v747_v48   ;;  %8419 = vmatprep.mubr.msk.bf16.mxu1 %vm1141_vm4, %v8969_v63  ;;  %v6286_v13 = vrot.slane %v6285_v3, 1  ;;  %v6396_v63 = vrot.slane %v6395_v54, 2 }
  0xcd   : > { %v6189_v26 = vadd.f32 %v6188_v19, %v6187_v10  ;;  %v6288_v10 = vsel %vm5825_vm5, %v748_v7, 0.0  ;;  %v6279_v23 = vrot.slane %v6278_v14, 1 }
  0xce   : > { %v6289_v19 = vrot.slane %v6288_v10, 4  ;;  %v6287_v22 = vadd.f32 %v6286_v13, %v6285_v3 }
  0xcf   : > { %v9435_v32 = vsel %vm6988_vm9, %v6189_v26, %v7034_v24  ;;  %v6346_v26 = vadd.f32 %v6345_v18, %v6344_v9  ;;  %v6280_v28 = vadd.f32 %v6279_v23, %v6278_v14  ;;  %v757_v9 = vld [vmem:[%s9216_s13 + $0x258] sm:$0xff] }
  0xd0   : > { %12103 = vst [vmem:[#allocation9_spill] sm:$0xff] %v9435_v32  ;;  %4528 = vperm.xlu1 %8856, %v755_v60   ;;  %v6290_v27 = vadd.f32 %v6289_v19, %v6288_v10  ;;  %v749_v10 = vld [vmem:[%s9216_s13 + $0x218] sm:$0xff]  ;;  %v8982_v32 = vld [vmem:[%s9188_s29 + $0x1c8] sm:$0xff]  }
  0xd1   : > { %8454 = vmatmul.mubr.msk.bf16.gmra.mrb[20].mxu0 %vm2206_vm8, %v8906_v41  ;;  %v8911_v41 = vld [vmem:[%s9188_s29 + $0x80] sm:$0xff]   ;;  %v6347_v35 = vrot.slane %v6346_v26, 2 }
  0xd2   : > { %8457 = vmatprep.mubr.msk.bf16.mxu0 %vm2206_vm8, %v8907_v45  ;;  %v737_v45 = vld [vmem:[%s9216_s13 + $0x1b8] sm:$0xff]  ;;  %v6291_v36 = vrot.slane %v6290_v27, 2 }
  0xd3   : > { %4438 = vperm.xlu0 %8855, %v737_v45   ;;  %8420 = vmatmul.mubr.msk.bf16.gmra.mrb[44].mxu1 %vm1141_vm4, %v8970_v2  ;;  %v771_v45 = vld [vmem:[%s9216_s13 + $0x2c8] sm:$0xff]  ;;  %v6348_v48 = vadd.f32 %v6347_v35, %v6346_v26  ;;  %v8918_v26 = vld [vmem:[%s9188_s29 + $0xb8] sm:$0xff]  }
  0xd4   : > { %4533 = vperm.xlu1 %8856, %v756_v6   ;;  %8423 = vmatprep.mubr.msk.bf16.mxu1 %vm1141_vm4, %v8973_v33  ;;  %v6292_v49 = vadd.f32 %v6291_v36, %v6290_v27  ;;  %v6397_v6 = vadd.f32 %v6396_v63, %v6395_v54  ;;  %v764_v33 = vld [vmem:[%s9216_s13 + $0x290] sm:$0xff] }
  0xd5   : > { %v6349_v59 = vrot.slane %v6348_v48, 1  ;;  %v6400_v54 = vsel %vm5825_vm5, %v764_v33, 0.0  ;;  %v8921_v63 = vld [vmem:[%s9188_s29 + $0xd0] sm:$0xff]  }
  0xd6   : > { %v6293_v60 = vrot.slane %v6292_v49, 1 }
  0xd7   : > { %4483 = vperm.xlu0 %8855, %v746_v51   ;;  %v770_v51 = vld [vmem:[%s9216_s13 + $0x2c0] sm:$0xff]  ;;  %v6350_v3 = vadd.f32 %v6349_v59, %v6348_v48 }
  0xd8   : > { %4568 = vperm.xlu1 %8856, %v763_v30   ;;  %v6442_v56 = vsel %vm5825_vm5, %v770_v51, 0.0  ;;  %v6294_v4 = vadd.f32 %v6293_v60, %v6292_v49  ;;  %v758_v48 = vld [vmem:[%s9216_s13 + $0x260] sm:$0xff]  ;;  %v773_v60 = vld [vmem:[%s9216_s13 + $0x2d8] sm:$0xff] }
  0xd9   : > { %8458 = vmatmul.mubr.msk.bf16.gmra.mrb[24].mxu0 %vm2206_vm8, %v8908_v15  ;;  %v6339_v15 = vadd.f32 %v6338_v5, %v6337_v0  ;;  %v750_v49 = vld [vmem:[%s9216_s13 + $0x220] sm:$0xff] }
  0xda   : > { %8461 = vmatprep.mubr.msk.bf16.mxu0 %vm2206_vm8, %v8909_v17  ;;  %v6332_v17 = vadd.f32 %v6331_v8, %v6330_v1  ;;  %v6443_v1 = vrot.slane %v6442_v56, 4 }
  0xdb   : > { %4523 = vperm.xlu0 %8855, %v754_v62   ;;  %v6340_v24 = vrot.slane %v6339_v15, 2  ;;  %8424 = vmatmul.mubr.msk.bf16.gmra.mrb[48].mxu1 %vm1141_vm4, %v8974_v39  ;;  %v6388_v62 = vadd.f32 %v6387_v50, %v6386_v44 }
  0xdc   : > { %v6333_v25 = vrot.slane %v6332_v17, 2  ;;  %4608 = vperm.xlu1 %8856, %v771_v45   ;;  %v6444_v8 = vadd.f32 %v6443_v1, %v6442_v56 }
  0xdd   : > { %v6341_v29 = vadd.f32 %v6340_v24, %v6339_v15  ;;  %v6389_v5 = vrot.slane %v6388_v62, 2  ;;  %v6351_v15 = vsel %vm5825_vm5, %v757_v9, 0.0  ;;  %v6295_v24 = vsel %vm5825_vm5, %v749_v10, 0.0 }
  0xde   : > { %v6334_v34 = vadd.f32 %v6333_v25, %v6332_v17  ;;  %v6445_v18 = vrot.slane %v6444_v8, 2  ;;  %v6352_v19 = vrot.slane %v6351_v15, 4  ;;  %v8978_v25 = vld [vmem:[%s9163_s26 + $0x1f8] sm:$0xff]   ;;  %v6296_v36 = vrot.slane %v6295_v24, 4 }
  0xdf   : > { %4493 = vperm.xlu0 %8855, %v748_v7   ;;  %v6390_v14 = vadd.f32 %v6389_v5, %v6388_v62  ;;  %v765_v62 = vld [vmem:[%s9216_s13 + $0x298] sm:$0xff] }
  0xe0   : > { %v6335_v47 = vrot.slane %v6334_v34, 1  ;;  %4538 = vperm.xlu1 %8856, %v757_v9   ;;  %v6353_v30 = vadd.f32 %v6352_v19, %v6351_v15  ;;  %v6297_v42 = vadd.f32 %v6296_v36, %v6295_v24  ;;  %v6407_v15 = vsel %vm5825_vm5, %v765_v62, 0.0  ;;  %v8922_v19 = vld [vmem:[%s9188_s29 + $0xd8] sm:$0xff]   ;;  %v766_v24 = vld [vmem:[%s9216_s13 + $0x2a0] sm:$0xff]  ;;  %v760_v36 = vld [vmem:[%s9216_s13 + $0x270] sm:$0xff] }
  0xe1   : > { %8462 = vmatmul.mubr.msk.bf16.gmra.mrb[28].mxu0 %vm2206_vm8, %v8910_v40  ;;  %v7047_v40 = vsel %vm6984_vm6, %v6287_v22, %v6280_v28  ;;  %v8977_v22 = vld [vmem:[%s9163_s26 + $0x1f0] sm:$0xff]   ;;  %v6391_v23 = vrot.slane %v6390_v14, 1 }
  0xe2   : > { %8465 = vmatprep.mubr.msk.bf16.mxu0 %vm2206_vm8, %v8911_v41  ;;  %v6342_v41 = vrot.slane %v6341_v29, 1  ;;  %v6336_v58 = vadd.f32 %v6335_v47, %v6334_v34  ;;  %v9502_v13 = vsel %vm6986_vm7, %v6294_v4, %v7047_v40  ;;  %8427 = vmatprep.mubr.msk.bf16.mxu1 %vm1141_vm4, %v8977_v22  ;;  %v8919_v34 = vld [vmem:[%s9188_s29 + $0xc0] sm:$0xff]   ;;  %v6354_v40 = vrot.slane %v6353_v30, 2 }
  0xe3   : > { %4563 = vperm.xlu0 %8855, %v762_v31   ;;  %v772_v31 = vld [vmem:[%s9216_s13 + $0x2d0] sm:$0xff]  ;;  %v6392_v35 = vadd.f32 %v6391_v23, %v6390_v14  ;;  %8428 = vmatmul.mubr.msk.bf16.gmra.mrb[52].mxu1 %vm1141_vm4, %v8978_v25  ;;  %v6298_v50 = vrot.slane %v6297_v42, 2  ;;  %v6463_v14 = vsel %vm5825_vm5, %v773_v60, 0.0  ;;  %v6408_v22 = vrot.slane %v6407_v15, 4  ;;  %v774_v23 = vld [vmem:[%s9216_s13 + $0x2e0] sm:$0xff] }
  0xe4   : > { %v6343_v53 = vadd.f32 %v6342_v41, %v6341_v29  ;;  %v6446_v29 = vadd.f32 %v6445_v18, %v6444_v8  ;;  %4613 = vperm.xlu1 %8856, %v772_v31   ;;  %v6355_v47 = vadd.f32 %v6354_v40, %v6353_v30  ;;  %v751_v8 = vld [vmem:[%s9216_s13 + $0x228] sm:$0xff]  ;;  %v6464_v18 = vrot.slane %v6463_v14, 4  ;;  %v8925_v25 = vld [vmem:[%s9188_s29 + $0xe0] sm:$0xff]  }
  0xe5   : > { %v6409_v30 = vadd.f32 %v6408_v22, %v6407_v15  ;;  %v786_v15 = vld [vmem:[%s9216_s13 + $0x340] sm:$0xff]  ;;  %v8939_v22 = vld [vmem:[%s9188_s29 + $0x118] sm:$0xff]  }
  0xe6   : > { %v7054_v2 = vsel %vm6984_vm6, %v6343_v53, %v6336_v58  ;;  %v6447_v39 = vrot.slane %v6446_v29, 1  ;;  %v6456_v53 = vsel %vm5825_vm5, %v772_v31, 0.0  ;;  %v8920_v58 = vld [vmem:[%s9188_s29 + $0xc8] sm:$0xff]  }
  0xe7   : > { %4603 = vperm.xlu0 %8855, %v770_v51   ;;  %v6457_v56 = vrot.slane %v6456_v53, 4 }
  0xe8   : > { %4543 = vperm.xlu1 %8856, %v758_v48   ;;  %v775_v48 = vld [vmem:[%s9216_s13 + $0x2e8] sm:$0xff] }
  0xe9   : > { %8466 = vmatmul.mubr.msk.bf16.gmra.mrb[32].mxu0 %vm2206_vm8, %v8912_v52  ;;  %v8916_v52 = vld [vmem:[%s9188_s29 + $0xa8] sm:$0xff]   ;;  %v6458_v1 = vadd.f32 %v6457_v56, %v6456_v53  ;;  %v753_v56 = vld [vmem:[%s9216_s13 + $0x238] sm:$0xff] }
  0xea   : > { %8469 = vmatprep.mubr.msk.bf16.mxu0 %vm2206_vm8, %v8913_v55  ;;  %v6449_v55 = vsel %vm5825_vm5, %v771_v45, 0.0  ;;  %v6448_v45 = vadd.f32 %v6447_v39, %v6446_v29  ;;  %v9545_v29 = vpop.permute.xlu0 %4163 }
  0xeb   : > { %v6450_v0 = vrot.slane %v6449_v55, 4  ;;  %4498 = vperm.xlu0 %8855, %v749_v10   ;;  %v6459_v5 = vrot.slane %v6458_v1, 2  ;;  %12108 = vst [vmem:[#allocation14_spill] sm:$0xff] %v9545_v29 }
  0xec   : > { %4618 = vperm.xlu1 %8856, %v773_v60   ;;  %v776_v60 = vld [vmem:[%s9216_s13 + $0x2f0] sm:$0xff] }
  0xed   : > { %v6451_v7 = vadd.f32 %v6450_v0, %v6449_v55  ;;  %v6299_v55 = vadd.f32 %v6298_v50, %v6297_v42  ;;  %v6460_v10 = vadd.f32 %v6459_v5, %v6458_v1  ;;  %v8930_v50 = vld [vmem:[%s9188_s29 + $0xf0] sm:$0xff]   ;;  %v8935_v5 = vld [vmem:[%s9188_s29 + $0x108] sm:$0xff]  }
  0xef   : > { %v6452_v17 = vrot.slane %v6451_v7, 2  ;;  %4573 = vperm.xlu0 %8855, %v764_v33   ;;  %v6300_v0 = vrot.slane %v6299_v55, 1 }
  0xf1   : > { %8470 = vmatmul.mubr.msk.bf16.gmra.mrb[36].mxu0 %vm2206_vm8, %v8914_v12  ;;  %v7055_v12 = vsel %vm6986_vm7, %v6350_v3, %v7054_v2  ;;  %v6453_v28 = vadd.f32 %v6452_v17, %v6451_v7  ;;  %v6301_v4 = vadd.f32 %v6300_v0, %v6299_v55  ;;  %v759_v7 = vld [vmem:[%s9216_s13 + $0x268] sm:$0xff]  ;;  %v761_v55 = vld [vmem:[%s9216_s13 + $0x278] sm:$0xff] }
  0xf2   : > { %8473 = vmatprep.mubr.msk.bf16.mxu0 %vm2206_vm8, %v8915_v16  ;;  %v6398_v16 = vrot.slane %v6397_v6, 1  ;;  %4548 = vperm.xlu1 %8856, %v759_v7   ;;  %v778_v7 = vld [vmem:[%s9216_s13 + $0x300] sm:$0xff] }
  0xf3   : > { %v6454_v37 = vrot.slane %v6453_v28, 1  ;;  %4503 = vperm.xlu0 %8855, %v750_v49   ;;  %v9535_v9 = vsel %vm6988_vm9, %v6301_v4, %v9502_v13  ;;  %v9543_v13 = vpop.permute.xlu1 %4173  ;;  %v767_v49 = vld [vmem:[%s9216_s13 + $0x2a8] sm:$0xff]  ;;  %v769_v4 = vld [vmem:[%s9216_s13 + $0x2b8] sm:$0xff] }
  0xf4   : > { %v6399_v27 = vadd.f32 %v6398_v16, %v6397_v6  ;;  %12106 = vst [vmem:[#allocation12_spill] sm:$0xff] %v9535_v9  ;;  %v6461_v16 = vrot.slane %v6460_v10, 1  ;;  %12107 = vst [vmem:[#allocation13_spill] sm:$0xff] %v9543_v13 }
  0xf5   : > { %v6455_v44 = vadd.f32 %v6454_v37, %v6453_v28  ;;  %v6465_v28 = vadd.f32 %v6464_v18, %v6463_v14  ;;  %v752_v37 = vld [vmem:[%s9216_s13 + $0x230] sm:$0xff]  ;;  %v787_v14 = vld [vmem:[%s9216_s13 + $0x348] sm:$0xff] }
  0xf6   : > { %v7061_v41 = vsel %vm6984_vm6, %v6399_v27, %v6392_v35  ;;  %4623 = vperm.xlu1 %8856, %v774_v23   ;;  %v6410_v35 = vrot.slane %v6409_v30, 2 }
  0xf7   : > { %v7068_v51 = vsel %vm6984_vm6, %v6455_v44, %v6448_v45  ;;  %4578 = vperm.xlu0 %8855, %v765_v62   ;;  %v9553_v42 = vpop.permute.xlu1 %4178  ;;  %v8926_v44 = vld [vmem:[%s9188_s29 + $0xe8] sm:$0xff]   ;;  %v9556_v45 = vpop.permute.xlu0 %4168  ;;  %v768_v62 = vld [vmem:[%s9216_s13 + $0x2b0] sm:$0xff] }
  0xf8   : > { %v6411_v40 = vadd.f32 %v6410_v35, %v6409_v30  ;;  %12109 = vst [vmem:[#allocation15_spill] sm:$0xff] %v9553_v42  ;;  %12110 = vst [vmem:[#allocation16_spill] sm:$0xff] %v9556_v45  ;;  %v8942_v30 = vld [vmem:[%s9188_s29 + $0x120] sm:$0xff]  }
  0xf9   : > { %8474 = vmatmul.mubr.msk.bf16.gmra.mrb[40].mxu0 %vm2206_vm8, %v8916_v52  ;;  %v6356_v52 = vrot.slane %v6355_v47, 1 }
  0xfa   : > { %8477 = vmatprep.mubr.msk.bf16.mxu0 %vm2206_vm8, %v8917_v57  ;;  %v6401_v57 = vrot.slane %v6400_v54, 4  ;;  %4553 = vperm.xlu1 %8856, %v760_v36  }
  0xfb   : > { %v6357_v59 = vadd.f32 %v6356_v52, %v6355_v47  ;;  %4508 = vperm.xlu0 %8855, %v751_v8   ;;  %v6412_v47 = vrot.slane %v6411_v40, 1  ;;  %v8938_v8 = vld [vmem:[%s9188_s29 + $0x110] sm:$0xff]  }
  0xfc   : > { %v6402_v2 = vadd.f32 %v6401_v57, %v6400_v54  ;;  %v9571_v57 = vpop.permute.xlu1 %4188 }
  0xfd   : > { %v9527_v3 = vsel %vm6988_vm9, %v6357_v59, %v7055_v12  ;;  %v6413_v52 = vadd.f32 %v6412_v47, %v6411_v40  ;;  %12113 = vst [vmem:[#allocation19_spill] sm:$0xff] %v9571_v57  ;;  %v8931_v59 = vld [vmem:[%s9188_s29 + $0xf8] sm:$0xff]  }
  0xfe   : > { %12105 = vst [vmem:[#allocation11_spill] sm:$0xff] %v9527_v3  ;;  %v6403_v6 = vrot.slane %v6402_v2, 2  ;;  %4628 = vperm.xlu1 %8856, %v775_v48  }
  0xff   : > { %4583 = vperm.xlu0 %8855, %v766_v24  }
 0x100   : > { %v6404_v12 = vadd.f32 %v6403_v6, %v6402_v2  ;;  %v9579_v0 = vpop.permute.xlu1 %4198  ;;  %v777_v2 = vld [vmem:[%s9216_s13 + $0x2f8] sm:$0xff]  ;;  %v779_v6 = vld [vmem:[%s9216_s13 + $0x308] sm:$0xff] }
 0x101   : > { %8478 = vmatmul.mubr.msk.bf16.gmra.mrb[44].mxu0 %vm2206_vm8, %v8918_v26  ;;  %v6462_v26 = vadd.f32 %v6461_v16, %v6460_v10  ;;  %12115 = vst [vmem:[#allocation21_spill] sm:$0xff] %v9579_v0  ;;  %v6505_v16 = vsel %vm5825_vm5, %v779_v6, 0.0 }
 0x102   : > { %8481 = vmatprep.mubr.msk.bf16.mxu0 %vm2206_vm8, %v8919_v34  ;;  %v6405_v17 = vrot.slane %v6404_v12, 1  ;;  %v6466_v34 = vrot.slane %v6465_v28, 2  ;;  %4558 = vperm.xlu1 %8856, %v761_v55  }
 0x103   : > { %v7069_v31 = vsel %vm6986_vm7, %v6462_v26, %v7068_v51  ;;  %4513 = vperm.xlu0 %8855, %v752_v37   ;;  %v6554_v26 = vsel %vm5825_vm5, %v786_v15, 0.0 }
 0x104   : > { %v6406_v27 = vadd.f32 %v6405_v17, %v6404_v12  ;;  %v6467_v39 = vadd.f32 %v6466_v34, %v6465_v28  ;;  %v9591_v10 = vpop.permute.xlu1 %4208  ;;  %v6498_v17 = vsel %vm5825_vm5, %v778_v7, 0.0  ;;  %v780_v28 = vld [vmem:[%s9216_s13 + $0x310] sm:$0xff]  ;;  %v6555_v35 = vrot.slane %v6554_v26, 4 }
 0x105   : > { %12117 = vst [vmem:[#allocation23_spill] sm:$0xff] %v9591_v10  ;;  %v6499_v24 = vrot.slane %v6498_v17, 4 }
 0x106   : > { %v7062_v33 = vsel %vm6986_vm7, %v6406_v27, %v7061_v41  ;;  %v6468_v41 = vrot.slane %v6467_v39, 1  ;;  %4633 = vperm.xlu1 %8856, %v776_v60   ;;  %v788_v27 = vld [vmem:[%s9216_s13 + $0x350] sm:$0xff]  ;;  %v6556_v40 = vadd.f32 %v6555_v35, %v6554_v26  ;;  %v6512_v60 = vsel %vm5825_vm5, %v780_v28, 0.0 }
 0x107   : > { %4588 = vperm.xlu0 %8855, %v767_v49   ;;  %v9566_v54 = vsel %vm6988_vm9, %v6413_v52, %v7062_v33  ;;  %v6500_v33 = vadd.f32 %v6499_v24, %v6498_v17  ;;  %v6568_v55 = vsel %vm5825_vm5, %v788_v27, 0.0 }
 0x108   : > { %v6469_v51 = vadd.f32 %v6468_v41, %v6467_v39  ;;  %12112 = vst [vmem:[#allocation18_spill] sm:$0xff] %v9566_v54  ;;  %v9601_v18 = vpop.permute.xlu1 %4218  ;;  %v795_v41 = vld [vmem:[%s9216_s13 + $0x388] sm:$0xff]  ;;  %v6557_v52 = vrot.slane %v6556_v40, 2 }
 0x109   : > { %8482 = vmatmul.mubr.msk.bf16.gmra.mrb[48].mxu0 %vm2206_vm8, %v8920_v58  ;;  %v9573_v58 = vpop.permute.xlu0 %4183  ;;  %12119 = vst [vmem:[#allocation25_spill] sm:$0xff] %v9601_v18  ;;  %v6501_v37 = vrot.slane %v6500_v33, 2 }
 0x10a   : > { %8485 = vmatprep.mubr.msk.bf16.mxu0 %vm2206_vm8, %v8921_v63  ;;  %v9562_v53 = vsel %vm6988_vm9, %v6469_v51, %v7069_v31  ;;  %12114 = vst [vmem:[#allocation20_spill] sm:$0xff] %v9573_v58  ;;  %v8934_v63 = vld [vmem:[%s9188_s29 + $0x100] sm:$0xff]   ;;  %4638 = vperm.xlu1 %8856, %v777_v2   ;;  %v8991_v58 = vld [vmem:[%s9216_s13 + $0x18] sm:$0xff] }
 0x10b   : > { %12111 = vst [vmem:[#allocation17_spill] sm:$0xff] %v9562_v53  ;;  %4518 = vperm.xlu0 %8855, %v753_v56  }
 0x10c   : > { %v9615_v47 = vpop.permute.xlu1 %4228 }
 0x10d   : > { %v9582_v1 = vpop.permute.xlu0 %4193  ;;  %12121 = vst [vmem:[#allocation27_spill] sm:$0xff] %v9615_v47 }
 0x10e   : > { %12116 = vst [vmem:[#allocation22_spill] sm:$0xff] %v9582_v1  ;;  %4648 = vperm.xlu1 %8856, %v779_v6   ;;  %v6513_v6 = vrot.slane %v6512_v60, 4 }
 0x10f   : > { %4593 = vperm.xlu0 %8855, %v768_v62   ;;  %v6617_v62 = vsel %vm5825_vm5, %v795_v41, 0.0 }
 0x110   : > { %v6618_v17 = vrot.slane %v6617_v62, 4  ;;  %v6514_v26 = vadd.f32 %v6513_v6, %v6512_v60  ;;  %v796_v6 = vld [vmem:[%s9216_s13 + $0x390] sm:$0xff] }
 0x111   : > { %8486 = vmatmul.mubr.msk.bf16.gmra.mrb[52].mxu0 %vm2206_vm8, %v8922_v19  ;;  %v9593_v12 = vpop.permute.xlu0 %4203  ;;  %v6506_v19 = vrot.slane %v6505_v16, 4 }
 0x112   : > { %8489 = vmatprep.mubr.msk.bf16.mxu0 %vm2206_vm8, %v8925_v25  ;;  %12118 = vst [vmem:[#allocation24_spill] sm:$0xff] %v9593_v12  ;;  %4688 = vperm.xlu1 %8856, %v787_v14   ;;  %v6561_v25 = vsel %vm5825_vm5, %v787_v14, 0.0  ;;  %v8946_v14 = vld [vmem:[%s9188_s29 + $0x130] sm:$0xff]  }
 0x113   : > { %4598 = vperm.xlu0 %8855, %v769_v4   ;;  %v6507_v31 = vadd.f32 %v6506_v19, %v6505_v16  ;;  %v6562_v34 = vrot.slane %v6561_v25, 4 }
 0x115   : > { %v9604_v23 = vpop.permute.xlu0 %4213  ;;  %v6508_v36 = vrot.slane %v6507_v31, 2  ;;  %v6563_v39 = vadd.f32 %v6562_v34, %v6561_v25 }
 0x116   : > { %12120 = vst [vmem:[#allocation26_spill] sm:$0xff] %v9604_v23  ;;  %4693 = vperm.xlu1 %8856, %v788_v27   ;;  %v9627_v27 = vpop.permute.xlu1 %4238 }
 0x117   : > { %4643 = vperm.xlu0 %8855, %v778_v7   ;;  %v6509_v48 = vadd.f32 %v6508_v36, %v6507_v31  ;;  %v6564_v51 = vrot.slane %v6563_v39, 2  ;;  %v803_v7 = vld [vmem:[%s9216_s13 + $0x3c8] sm:$0xff]  ;;  %12123 = vst [vmem:[#allocation29_spill] sm:$0xff] %v9627_v27 }
 0x119   : > { %8490 = vmatmul.mubr.msk.bf16.gmra.mrb[56].mxu0 %vm2206_vm8, %v8926_v44  ;;  %v794_v44 = vld [vmem:[%s9216_s13 + $0x380] sm:$0xff]  ;;  %v9617_v49 = vpop.permute.xlu0 %4223  ;;  %v6510_v56 = vrot.slane %v6509_v48, 1  ;;  %v6565_v4 = vadd.f32 %v6564_v51, %v6563_v39  ;;  %v789_v39 = vld [vmem:[%s9216_s13 + $0x358] sm:$0xff] }
 0x11a   : > { %8493 = vmatprep.mubr.msk.bf16.mxu0 %vm2206_vm8, %v8930_v50  ;;  %4728 = vperm.xlu1 %8856, %v795_v41   ;;  %12122 = vst [vmem:[#allocation28_spill] sm:$0xff] %v9617_v49  ;;  %v6502_v50 = vadd.f32 %v6501_v37, %v6500_v33  ;;  %v6610_v19 = vsel %vm5825_vm5, %v794_v44, 0.0  ;;  %v6515_v37 = vrot.slane %v6514_v26, 2 }
 0x11b   : > { %4683 = vperm.xlu0 %8855, %v786_v15   ;;  %v6511_v15 = vadd.f32 %v6510_v56, %v6509_v48  ;;  %v6566_v24 = vrot.slane %v6565_v4, 1  ;;  %v6611_v31 = vrot.slane %v6610_v19, 4 }
 0x11c   : > { %v6503_v2 = vrot.slane %v6502_v50, 1  ;;  %v6516_v51 = vadd.f32 %v6515_v37, %v6514_v26  ;;  %v782_v37 = vld [vmem:[%s9216_s13 + $0x320] sm:$0xff] }
 0x11d   : > { %v9630_v33 = vpop.permute.xlu0 %4233  ;;  %v6567_v35 = vadd.f32 %v6566_v24, %v6565_v4  ;;  %v6612_v48 = vadd.f32 %v6611_v31, %v6610_v19 }
 0x11e   : > { %4768 = vperm.xlu1 %8856, %v803_v7   ;;  %12124 = vst [vmem:[#allocation30_spill] sm:$0xff] %v9630_v33 }
 0x11f   : > { %4653 = vperm.xlu0 %8855, %v780_v28   ;;  %v6613_v60 = vrot.slane %v6612_v48, 2 }
 0x121   : > { %8494 = vmatmul.mubr.msk.bf16.gmra.mrb[60].mxu0 %vm2206_vm8, %v8931_v59  ;;  %v6569_v59 = vrot.slane %v6568_v55, 4 }
 0x122   : > { %8497 = vmatprep.mubr.msk.bf16.mxu0 %vm2206_vm8, %v8934_v63  ;;  %v8943_v63 = vld [vmem:[%s9188_s29 + $0x128] sm:$0xff]   ;;  %4698 = vperm.xlu1 %8856, %v789_v39  }
 0x123   : > { %4723 = vperm.xlu0 %8855, %v794_v44   ;;  %v6570_v16 = vadd.f32 %v6569_v59, %v6568_v55 }
 0x125   : > { %v6571_v28 = vrot.slane %v6570_v16, 2 }
 0x127   : > { %v6572_v41 = vadd.f32 %v6571_v28, %v6570_v16 }
 0x129   : > { %8498 = vmatmul.mubr.msk.bf16.gmra.mrb[64].mxu0 %vm2206_vm8, %v8935_v5  ;;  %v6558_v5 = vadd.f32 %v6557_v52, %v6556_v40  ;;  %v781_v40 = vld [vmem:[%s9216_s13 + $0x318] sm:$0xff]  ;;  %v6673_v52 = vsel %vm5825_vm5, %v803_v7, 0.0  ;;  %v6573_v56 = vrot.slane %v6572_v41, 1  ;;  %v6614_v7 = vadd.f32 %v6613_v60, %v6612_v48 }
 0x12a   : > { %8501 = vmatprep.mubr.msk.bf16.mxu0 %vm2206_vm8, %v8938_v8  ;;  %v802_v8 = vld [vmem:[%s9216_s13 + $0x3c0] sm:$0xff] }
 0x12b   : > { %v6559_v25 = vrot.slane %v6558_v5, 1  ;;  %4763 = vperm.xlu0 %8855, %v802_v8   ;;  %v6666_v55 = vsel %vm5825_vm5, %v802_v8, 0.0  ;;  %v6574_v16 = vadd.f32 %v6573_v56, %v6572_v41  ;;  %v9645_v8 = vpop.permute.xlu0 %4243  ;;  %v6615_v28 = vrot.slane %v6614_v7, 1 }
 0x12c   : > { %v6667_v4 = vrot.slane %v6666_v55, 4  ;;  %12126 = vst [vmem:[#allocation32_spill] sm:$0xff] %v9645_v8 }
 0x12d   : > { %v6560_v36 = vadd.f32 %v6559_v25, %v6558_v5  ;;  %v804_v5 = vld [vmem:[%s9216_s13 + $0x3d0] sm:$0xff]  ;;  %v6616_v39 = vadd.f32 %v6615_v28, %v6614_v7 }
 0x12e   : > { %4773 = vperm.xlu1 %8856, %v804_v5   ;;  %v6668_v24 = vadd.f32 %v6667_v4, %v6666_v55  ;;  %v8951_v55 = vld [vmem:[%s9188_s29 + $0x148] sm:$0xff]  }
 0x12f   : > { %4658 = vperm.xlu0 %8855, %v781_v40   ;;  %v9663_v56 = vpop.permute.xlu0 %4253 }
 0x130   : > { %12130 = vst [vmem:[#allocation36_spill] sm:$0xff] %v9663_v56 }
 0x131   : > { %8502 = vmatmul.mubr.msk.bf16.gmra.mrb[68].mxu0 %vm2206_vm8, %v8939_v22  ;;  %v6504_v22 = vadd.f32 %v6503_v2, %v6502_v50  ;;  %v7082_v50 = vsel %vm6984_vm6, %v6567_v35, %v6560_v36  ;;  %v6517_v2 = vrot.slane %v6516_v51, 1  ;;  %v6669_v35 = vrot.slane %v6668_v24, 2  ;;  %v790_v36 = vld [vmem:[%s9216_s13 + $0x360] sm:$0xff] }
 0x132   : > { %8505 = vmatprep.mubr.msk.bf16.mxu0 %vm2206_vm8, %v8942_v30  ;;  %v6619_v30 = vadd.f32 %v6618_v17, %v6617_v62  ;;  %v6674_v62 = vrot.slane %v6673_v52, 4  ;;  %v9648_v25 = vsel %vm6986_vm7, %v6574_v16, %v7082_v50  ;;  %4703 = vperm.xlu1 %8856, %v790_v36   ;;  %v8955_v36 = vld [vmem:[%s9188_s29 + $0x158] sm:$0xff]  }
 0x133   : > { %v7075_v34 = vsel %vm6984_vm6, %v6511_v15, %v6504_v22  ;;  %v9643_v15 = vpop.permute.xlu1 %4248  ;;  %v6518_v22 = vadd.f32 %v6517_v2, %v6516_v51  ;;  %4733 = vperm.xlu0 %8855, %v796_v6   ;;  %12127 = vst [vmem:[#allocation33_spill] sm:$0xff] %v9648_v25  ;;  %v6670_v41 = vadd.f32 %v6669_v35, %v6668_v24  ;;  %v8954_v2 = vld [vmem:[%s9188_s29 + $0x150] sm:$0xff]   ;;  %v9675_v28 = vpop.permute.xlu0 %4263 }
 0x134   : > { %v6620_v44 = vrot.slane %v6619_v30, 2  ;;  %12125 = vst [vmem:[#allocation31_spill] sm:$0xff] %v9643_v15  ;;  %v6675_v19 = vadd.f32 %v6674_v62, %v6673_v52  ;;  %v6624_v52 = vsel %vm5825_vm5, %v796_v6, 0.0  ;;  %v805_v62 = vld [vmem:[%s9216_s13 + $0x3d8] sm:$0xff]  ;;  %12132 = vst [vmem:[#allocation38_spill] sm:$0xff] %v9675_v28 }
 0x135   : > { %v9652_v31 = vsel %vm6986_vm7, %v6518_v22, %v7075_v34  ;;  %v6625_v60 = vrot.slane %v6624_v52, 4  ;;  %v783_v22 = vld [vmem:[%s9216_s13 + $0x328] sm:$0xff] }
 0x136   : > { %v6621_v59 = vadd.f32 %v6620_v44, %v6619_v30  ;;  %v6676_v30 = vrot.slane %v6675_v19, 2  ;;  %12128 = vst [vmem:[#allocation34_spill] sm:$0xff] %v9652_v31  ;;  %v6680_v44 = vsel %vm5825_vm5, %v804_v5, 0.0  ;;  %4778 = vperm.xlu1 %8856, %v805_v62   ;;  %v784_v62 = vld [vmem:[%s9216_s13 + $0x330] sm:$0xff]  ;;  %v8981_v31 = vld [vmem:[%s9188_s29 + $0x1c0] sm:$0xff]  }
 0x137   : > { %4663 = vperm.xlu0 %8855, %v782_v37   ;;  %v9658_v48 = vpop.permute.xlu1 %4258  ;;  %v6681_v51 = vrot.slane %v6680_v44, 4  ;;  %v6626_v16 = vadd.f32 %v6625_v60, %v6624_v52  ;;  %v792_v60 = vld [vmem:[%s9216_s13 + $0x370] sm:$0xff] }
 0x138   : > { %v6622_v17 = vrot.slane %v6621_v59, 1  ;;  %v6677_v40 = vadd.f32 %v6676_v30, %v6675_v19  ;;  %12129 = vst [vmem:[#allocation35_spill] sm:$0xff] %v9658_v48  ;;  %v791_v19 = vld [vmem:[%s9216_s13 + $0x368] sm:$0xff] }
 0x139   : > { %8506 = vmatmul.mubr.msk.bf16.gmra.mrb[72].mxu0 %vm2206_vm8, %v8943_v63  ;;  %v8947_v63 = vld [vmem:[%s9188_s29 + $0x138] sm:$0xff]   ;;  %v6682_v5 = vadd.f32 %v6681_v51, %v6680_v44  ;;  %v6627_v7 = vrot.slane %v6626_v16, 2 }
 0x13a   : > { %8509 = vmatprep.mubr.msk.bf16.mxu0 %vm2206_vm8, %v8946_v14  ;;  %v8950_v14 = vld [vmem:[%s9188_s29 + $0x140] sm:$0xff]   ;;  %v6623_v26 = vadd.f32 %v6622_v17, %v6621_v59  ;;  %v6678_v50 = vrot.slane %v6677_v40, 1  ;;  %v6671_v59 = vrot.slane %v6670_v41, 1  ;;  %4708 = vperm.xlu1 %8856, %v791_v19  }
 0x13b   : > { %v6683_v17 = vrot.slane %v6682_v5, 2  ;;  %v9673_v24 = vpop.permute.xlu1 %4268  ;;  %v6628_v30 = vadd.f32 %v6627_v7, %v6626_v16  ;;  %v793_v16 = vld [vmem:[%s9216_s13 + $0x378] sm:$0xff] }
 0x13c   : > { %v7089_v34 = vsel %vm6984_vm6, %v6623_v26, %v6616_v39  ;;  %v6679_v4 = vadd.f32 %v6678_v50, %v6677_v40  ;;  %12131 = vst [vmem:[#allocation37_spill] sm:$0xff] %v9673_v24  ;;  %v806_v39 = vld [vmem:[%s9216_s13 + $0x3e0] sm:$0xff]  ;;  %v8964_v7 = vld [vmem:[%s9188_s29 + $0x178] sm:$0xff]  }
 0x13d   : > { %v6684_v26 = vadd.f32 %v6683_v17, %v6682_v5  ;;  %v6629_v37 = vrot.slane %v6628_v30, 1  ;;  %v798_v40 = vld [vmem:[%s9216_s13 + $0x3a0] sm:$0xff]  ;;  %v8963_v5 = vld [vmem:[%s9188_s29 + $0x170] sm:$0xff]   ;;  %v785_v17 = vld [vmem:[%s9216_s13 + $0x338] sm:$0xff] }
 0x13e   : > { %4783 = vperm.xlu1 %8856, %v806_v39  }
 0x13f   : > { %v6685_v35 = vrot.slane %v6684_v26, 1  ;;  %v6630_v50 = vadd.f32 %v6629_v37, %v6628_v30  ;;  %v9681_v51 = vpop.permute.xlu1 %4278  ;;  %v8967_v30 = vld [vmem:[%s9188_s29 + $0x180] sm:$0xff]  }
 0x140   : > { %12133 = vst [vmem:[#allocation39_spill] sm:$0xff] %v9681_v51 }
 0x141   : > { %8510 = vmatmul.mubr.msk.bf16.gmra.mrb[76].mxu0 %vm2206_vm8, %v8947_v63  ;;  %v797_v63 = vld [vmem:[%s9216_s13 + $0x398] sm:$0xff]  ;;  %v6686_v44 = vadd.f32 %v6685_v35, %v6684_v26  ;;  %v800_v26 = vld [vmem:[%s9216_s13 + $0x3b0] sm:$0xff] }
 0x142   : > { %8513 = vmatprep.mubr.msk.bf16.mxu0 %vm2206_vm8, %v8950_v14  ;;  %v6672_v14 = vadd.f32 %v6671_v59, %v6670_v41  ;;  %4738 = vperm.xlu0 %8855, %v797_v63   ;;  %v8959_v41 = vld [vmem:[%s9188_s29 + $0x160] sm:$0xff]   ;;  %v9690_v59 = vsel %vm6986_vm7, %v6630_v50, %v7089_v34  ;;  %v8960_v63 = vld [vmem:[%s9188_s29 + $0x168] sm:$0xff]   ;;  %v809_v35 = vld [vmem:[%s9216_s13 + $0x3f8] sm:$0xff] }
 0x143   : > { %12136 = vst [vmem:[#allocation42_spill] sm:$0xff] %v9690_v59  ;;  %4713 = vperm.xlu1 %8856, %v792_v60  }
 0x144   : > { %v7096_v6 = vsel %vm6984_vm6, %v6679_v4, %v6672_v14  ;;  %v799_v4 = vld [vmem:[%s9216_s13 + $0x3a8] sm:$0xff]  ;;  %v9699_v14 = vpop.permute.xlu1 %4288 }
 0x145   : > { %v9684_v52 = vsel %vm6986_vm7, %v6686_v44, %v7096_v6  ;;  %12137 = vst [vmem:[#allocation43_spill] sm:$0xff] %v9699_v14 }
 0x146   : > { %4668 = vperm.xlu0 %8855, %v783_v22   ;;  %12134 = vst [vmem:[#allocation40_spill] sm:$0xff] %v9684_v52  ;;  %v808_v22 = vld [vmem:[%s9216_s13 + $0x3f0] sm:$0xff] }
 0x148   : > { %v9707_v6 = vpop.permute.xlu1 %4298 }
 0x149   : > { %8514 = vmatmul.mubr.msk.bf16.gmra.mrb[80].mxu0 %vm2206_vm8, %v8951_v55  ;;  %v9687_v55 = vpop.permute.xlu0 %4273  ;;  %12139 = vst [vmem:[#allocation45_spill] sm:$0xff] %v9707_v6 }
 0x14a   : > { %8517 = vmatprep.mubr.msk.bf16.mxu0 %vm2206_vm8, %v8954_v2  ;;  %4743 = vperm.xlu0 %8855, %v798_v40   ;;  %12135 = vst [vmem:[#allocation41_spill] sm:$0xff] %v9687_v55  ;;  %v807_v2 = vld [vmem:[%s9216_s13 + $0x3e8] sm:$0xff] }
 0x14b   : > { %4788 = vperm.xlu1 %8856, %v807_v2   ;;  %v8968_v40 = vld [vmem:[%s9188_s29 + $0x188] sm:$0xff]   ;;  %v8975_v2 = vld [vmem:[%s9188_s29 + $0x1a0] sm:$0xff]  }
 0x14c   : > { %v9719_v37 = vpop.permute.xlu1 %4308 }
 0x14d   : > { %v9701_v34 = vpop.permute.xlu0 %4283  ;;  %12141 = vst [vmem:[#allocation47_spill] sm:$0xff] %v9719_v37 }
 0x14e   : > { %4673 = vperm.xlu0 %8855, %v784_v62   ;;  %12138 = vst [vmem:[#allocation44_spill] sm:$0xff] %v9701_v34  ;;  %v9726_v44 = vpop.f32.mrb[0].mxu1 }
 0x14f   : > { %4718 = vperm.xlu1 %8856, %v793_v16   ;;  %v9729_v50 = vpop.f32.mrb[1].mxu1 }
 0x150   : > { %v9731_v60 = vpop.f32.mrb[2].mxu1 }
 0x151   : > { %8518 = vmatmul.mubr.msk.bf16.gmra.mrb[84].mxu0 %vm2206_vm8, %v8955_v36  ;;  %v9710_v19 = vpop.permute.xlu0 %4293  ;;  %v801_v36 = vld [vmem:[%s9216_s13 + $0x3b8] sm:$0xff]  ;;  %v9733_v62 = vpop.f32.mrb[3].mxu1 }
 0x152   : > { %8521 = vmatprep.mubr.msk.bf16.mxu0 %vm2206_vm8, %v8959_v41  ;;  %4748 = vperm.xlu0 %8855, %v799_v4   ;;  %12140 = vst [vmem:[#allocation46_spill] sm:$0xff] %v9710_v19  ;;  %v8971_v41 = vld [vmem:[%s9188_s29 + $0x190] sm:$0xff]  }
 0x153   : > { %4793 = vperm.xlu1 %8856, %v808_v22   ;;  %v8979_v22 = vld [vmem:[%s9188_s29 + $0x1b0] sm:$0xff]  }
 0x155   : > { %v9721_v39 = vpop.permute.xlu0 %4303 }
 0x156   : > { %4678 = vperm.xlu0 %8855, %v785_v17   ;;  %12142 = vst [vmem:[#allocation48_spill] sm:$0xff] %v9721_v39  ;;  %v9738_v4 = vpop.f32.mrb[4].mxu1 }
 0x157   : > { %4798 = vperm.xlu1 %8856, %v809_v35  }
 0x159   : > { %8522 = vmatmul.mubr.msk.bf16.gmra.mrb[88].mxu0 %vm2206_vm8, %v8960_v63  ;;  %v8972_v63 = vld [vmem:[%s9188_s29 + $0x198] sm:$0xff]  }
 0x15a   : > { %8525 = vmatprep.mubr.msk.bf16.mxu0 %vm2206_vm8, %v8963_v5  ;;  %4753 = vperm.xlu0 %8855, %v800_v26   ;;  %v9741_v5 = vpop.f32.mrb[5].mxu1 }
 0x15b   : > { %v9743_v16 = vpop.f32.mrb[6].mxu1 }
 0x15c   : > { %v9745_v17 = vpop.f32.mrb[7].mxu1 }
 0x15e   : > { %4758 = vperm.xlu0 %8855, %v801_v36   ;;  %v9750_v26 = vpop.f32.mrb[8].mxu1 }
 0x15f   : > { %v9758_v35 = vpop.f32.mrb[9].mxu1 }
 0x160   : > { %v9760_v36 = vpop.f32.mrb[10].mxu1 }
 0x161   : > { %8526 = vmatmul.mubr.msk.bf16.gmra.mrb[92].mxu0 %vm2206_vm8, %v8964_v7  ;;  %v8976_v7 = vld [vmem:[%s9188_s29 + $0x1a8] sm:$0xff]  }
 0x162   : > { %8529 = vmatprep.mubr.msk.bf16.mxu0 %vm2206_vm8, %v8967_v30  ;;  %v9755_v30 = vld [vmem:[%s12065_s5] ss:$0 sm:$0xff] }
 0x169   : > { %8530 = vmatmul.mubr.msk.bf16.gmra.mrb[96].mxu0 %vm2206_vm8, %v8968_v40 }
 0x16a   : > { %8533 = vmatprep.mubr.msk.bf16.mxu0 %vm2206_vm8, %v8971_v41  ;;  %v9762_v41 = vpop.f32.mrb[11].mxu1 }
 0x16b   : > { %v9771_v54 = vpop.f32.mrb[12].mxu1 }
 0x171   : > { %8534 = vmatmul.mubr.msk.bf16.gmra.mrb[100].mxu0 %vm2206_vm8, %v8972_v63 }
 0x172   : > { %8537 = vmatprep.mubr.msk.bf16.mxu0 %vm2206_vm8, %v8975_v2 }
 0x179   : > { %8538 = vmatmul.mubr.msk.bf16.gmra.mrb[104].mxu0 %vm2206_vm8, %v8976_v7  ;;  %v8980_v7 = vld [vmem:[%s9188_s29 + $0x1b8] sm:$0xff]  }
 0x17a   : > { %8541 = vmatprep.mubr.msk.bf16.mxu0 %vm2206_vm8, %v8979_v22 }
 0x17c   : > { %v8435_v40 = vpop.f32.mrb[0].mxu0 }
 0x17d   : > { %v2959_v63 = vadd.f32 %v8435_v40, %v9755_v30  ;;  %v2440_v2 = vpop.f32.mrb[1].mxu0 }
 0x17e   : > { %v2957_v25 = vadd.f32 %v9755_v30, %v2440_v2  ;;  %v8436_v52 = vpop.f32.mrb[2].mxu0  ;;  %v9774_v2 = vpop.f32.mrb[13].mxu1 }
 0x17f   : > { %v2960_v59 = vadd.f32 %v8436_v52, %v9755_v30  ;;  %v2443_v3 = vpop.f32.mrb[3].mxu0  ;;  %v3087_v53 = vmax.f32 %v2959_v63, 0.0  ;;  %v9776_v52 = vpop.f32.mrb[14].mxu1 }
 0x180   : > { %v2958_v22 = vadd.f32 %v9755_v30, %v2443_v3  ;;  %v3085_v21 = vmax.f32 %v2957_v25, 0.0  ;;  %v9778_v63 = vpop.f32.mrb[15].mxu1 }
 0x181   : > { %v3088_v9 = vmax.f32 %v2960_v59, 0.0  ;;  %8542 = vmatmul.mubr.msk.bf16.gmra.mrb[108].mxu0 %vm2206_vm8, %v8980_v7 }
 0x182   : > { %v3086_v40 = vmax.f32 %v2958_v22, 0.0  ;;  %8545 = vmatprep.mubr.msk.bf16.mxu0 %vm2206_vm8, %v8981_v31  ;;  %v8983_v31 = vld [vmem:[%s9188_s29 + $0x1d0] sm:$0xff]  }
 0x183   : > { %v3214_v43 = vpack.c.bf16 %v3088_v9, %v3087_v53 }
 0x184   : > { %v3213_v38 = vpack.c.bf16 %v3086_v40, %v3085_v21  ;;  %v8439_v3 = vpop.f32.mrb[4].mxu0 }
 0x185   : > { %v2963_v59 = vadd.f32 %v8439_v3, %v9755_v30  ;;  %v2456_v7 = vpop.f32.mrb[5].mxu0  ;;  %v9789_v3 = vpop.f32.mrb[16].mxu1 }
 0x186   : > { %v2961_v25 = vadd.f32 %v9755_v30, %v2456_v7  ;;  %v8440_v46 = vpop.f32.mrb[6].mxu0  ;;  %8565 = vmatprep.mubr.msk.bf16.mxu1 %vm3295_vm10, %v3213_v38  ;;  %v9792_v38 = vpop.f32.mrb[17].mxu1 }
 0x187   : > { %v2964_v22 = vadd.f32 %v8440_v46, %v9755_v30  ;;  %v2459_v9 = vpop.f32.mrb[7].mxu0  ;;  %8566 = vmatmul.mubr.msk.bf16.vlgmr.msra.gmra.mrb[56].mxu1 %vm3295_vm10, %v3214_v43  ;;  %v3091_v53 = vmax.f32 %v2963_v59, 0.0  ;;  %v9794_v11 = vpop.f32.mrb[18].mxu1 }
 0x188   : > { %v2962_v21 = vadd.f32 %v9755_v30, %v2459_v9  ;;  %v3089_v7 = vmax.f32 %v2961_v25, 0.0  ;;  %v9796_v9 = vpop.f32.mrb[19].mxu1  ;;  %v8985_v25 = vld [vmem:[%s9188_s29 + $0x1e0] sm:$0xff]  }
 0x189   : > { %v3092_v40 = vmax.f32 %v2964_v22, 0.0  ;;  %8546 = vmatmul.mubr.msk.bf16.gmra.mrb[112].mxu0 %vm2206_vm8, %v8982_v32  ;;  %v8984_v32 = vld [vmem:[%s9188_s29 + $0x1d8] sm:$0xff]  }
 0x18a   : > { %v3090_v61 = vmax.f32 %v2962_v21, 0.0  ;;  %8549 = vmatprep.mubr.msk.bf16.mxu0 %vm2206_vm8, %v8983_v31 }
 0x18b   : > { %v3216_v46 = vpack.c.bf16 %v3092_v40, %v3091_v53 }
 0x18c   : > { %v3215_v43 = vpack.c.bf16 %v3090_v61, %v3089_v7  ;;  %v8443_v20 = vpop.f32.mrb[8].mxu0 }
 0x18d   : > { %v2967_v59 = vadd.f32 %v8443_v20, %v9755_v30  ;;  %v2472_v22 = vpop.f32.mrb[9].mxu0  ;;  %v9807_v20 = vpop.f32.mrb[20].mxu1 }
 0x18e   : > { %v2965_v37 = vadd.f32 %v9755_v30, %v2472_v22  ;;  %v8444_v39 = vpop.f32.mrb[10].mxu0  ;;  %8569 = vmatprep.mubr.msk.bf16.mxu1 %vm3295_vm10, %v3215_v43  ;;  %v9810_v43 = vpop.f32.mrb[21].mxu1 }
 0x18f   : > { %v2968_v31 = vadd.f32 %v8444_v39, %v9755_v30  ;;  %v2475_v21 = vpop.f32.mrb[11].mxu0  ;;  %8570 = vmatmul.mubr.msk.bf16.gmra.mrb[60].mxu1 %vm3295_vm10, %v3216_v46  ;;  %v3095_v53 = vmax.f32 %v2967_v59, 0.0  ;;  %12143 = vst [vmem:[#allocation49_spill] sm:$0xff] %v9810_v43  ;;  %v9812_v14 = vpop.f32.mrb[22].mxu1 }
 0x190   : > { %v2966_v61 = vadd.f32 %v9755_v30, %v2475_v21  ;;  %v3093_v7 = vmax.f32 %v2965_v37, 0.0  ;;  %12144 = vst [vmem:[#allocation50_spill] sm:$0xff] %v9812_v14  ;;  %v9814_v21 = vpop.f32.mrb[23].mxu1  ;;  %v8987_v37 = vld [vmem:[%s9188_s29 + $0x1f0] sm:$0xff]  }
 0x191   : > { %v3096_v40 = vmax.f32 %v2968_v31, 0.0  ;;  %8550 = vmatmul.mubr.msk.bf16.gmra.mrb[116].mxu0 %vm2206_vm8, %v8984_v32  ;;  %12145 = vst [vmem:[#allocation51_spill] sm:$0xff] %v9814_v21  ;;  %v8986_v32 = vld [vmem:[%s9188_s29 + $0x1e8] sm:$0xff]  }
 0x192   : > { %v3094_v22 = vmax.f32 %v2966_v61, 0.0  ;;  %8553 = vmatprep.mubr.msk.bf16.mxu0 %vm2206_vm8, %v8985_v25 }
 0x193   : > { %v3218_v39 = vpack.c.bf16 %v3096_v40, %v3095_v53 }
 0x194   : > { %v3217_v46 = vpack.c.bf16 %v3094_v22, %v3093_v7  ;;  %v8447_v6 = vpop.f32.mrb[12].mxu0 }
 0x195   : > { %v2971_v59 = vadd.f32 %v8447_v6, %v9755_v30  ;;  %v2488_v31 = vpop.f32.mrb[13].mxu0  ;;  %v9825_v6 = vpop.f32.mrb[24].mxu1 }
 0x196   : > { %v2969_v34 = vadd.f32 %v9755_v30, %v2488_v31  ;;  %v8448_v19 = vpop.f32.mrb[14].mxu0  ;;  %8573 = vmatprep.mubr.msk.bf16.mxu1 %vm3295_vm10, %v3217_v46  ;;  %12146 = vst [vmem:[#allocation52_spill] sm:$0xff] %v9825_v6  ;;  %v9828_v46 = vpop.f32.mrb[25].mxu1 }
 0x197   : > { %v2972_v25 = vadd.f32 %v8448_v19, %v9755_v30  ;;  %v2491_v61 = vpop.f32.mrb[15].mxu0  ;;  %8574 = vmatmul.mubr.msk.bf16.gmra.mrb[64].mxu1 %vm3295_vm10, %v3218_v39  ;;  %v3099_v40 = vmax.f32 %v2971_v59, 0.0  ;;  %12147 = vst [vmem:[#allocation53_spill] sm:$0xff] %v9828_v46  ;;  %v9830_v19 = vpop.f32.mrb[26].mxu1 }
 0x198   : > { %v2970_v53 = vadd.f32 %v9755_v30, %v2491_v61  ;;  %v3097_v22 = vmax.f32 %v2969_v34, 0.0  ;;  %12148 = vst [vmem:[#allocation54_spill] sm:$0xff] %v9830_v19  ;;  %v9832_v28 = vpop.f32.mrb[27].mxu1  ;;  %v8988_v61 = vld [vmem:[%s9188_s29 + $0x1f8] sm:$0xff]  }
 0x199   : > { %v3100_v7 = vmax.f32 %v2972_v25, 0.0  ;;  %8554 = vmatmul.mubr.msk.bf16.gmra.mrb[120].mxu0 %vm2206_vm8, %v8986_v32  ;;  %12149 = vst [vmem:[#allocation55_spill] sm:$0xff] %v9832_v28 }
 0x19a   : > { %v3098_v31 = vmax.f32 %v2970_v53, 0.0  ;;  %8557 = vmatprep.mubr.msk.bf16.mxu0 %vm2206_vm8, %v8987_v37 }
 0x19b   : > { %v3220_v24 = vpack.c.bf16 %v3100_v7, %v3099_v40 }
 0x19c   : > { %v3219_v51 = vpack.c.bf16 %v3098_v31, %v3097_v22  ;;  %v8451_v39 = vpop.f32.mrb[16].mxu0  ;;  %v9842_v22 = vpop.f32.mrb[28].mxu1 }
 0x19d   : > { %v2975_v59 = vadd.f32 %v8451_v39, %v9755_v30  ;;  %v2504_v25 = vpop.f32.mrb[17].mxu0  ;;  %12150 = vst [vmem:[#allocation56_spill] sm:$0xff] %v9842_v22  ;;  %v9844_v15 = vpop.f32.mrb[29].mxu1 }
 0x19e   : > { %v2973_v32 = vadd.f32 %v9755_v30, %v2504_v25  ;;  %v8452_v55 = vpop.f32.mrb[18].mxu0  ;;  %8577 = vmatprep.mubr.msk.bf16.mxu1 %vm3295_vm10, %v3219_v51  ;;  %12151 = vst [vmem:[#allocation57_spill] sm:$0xff] %v9844_v15  ;;  %v9846_v48 = vpop.f32.mrb[30].mxu1 }
 0x19f   : > { %v2976_v34 = vadd.f32 %v8452_v55, %v9755_v30  ;;  %v2507_v37 = vpop.f32.mrb[19].mxu0  ;;  %8578 = vmatmul.mubr.msk.bf16.gmra.mrb[68].mxu1 %vm3295_vm10, %v3220_v24  ;;  %v3103_v40 = vmax.f32 %v2975_v59, 0.0  ;;  %12152 = vst [vmem:[#allocation58_spill] sm:$0xff] %v9846_v48  ;;  %v9848_v8 = vpop.f32.mrb[31].mxu1  ;;  %v9000_v48 = vld [vmem:[%s9216_s13 + $0x70] sm:$0xff] }
 0x1a0   : > { %v2974_v53 = vadd.f32 %v9755_v30, %v2507_v37  ;;  %v3101_v31 = vmax.f32 %v2973_v32, 0.0  ;;  %12153 = vst [vmem:[#allocation59_spill] sm:$0xff] %v9848_v8 }
 0x1a1   : > { %v3104_v7 = vmax.f32 %v2976_v34, 0.0  ;;  %8558 = vmatmul.mubr.msk.bf16.gmra.mrb[124].mxu0 %vm2206_vm8, %v8988_v61 }
 0x1a2   : > { %v3102_v39 = vmax.f32 %v2974_v53, 0.0 }
 0x1a3   : > { %v3222_v25 = vpack.c.bf16 %v3104_v7, %v3103_v40 }
 0x1a4   : > { %v3221_v51 = vpack.c.bf16 %v3102_v39, %v3101_v31  ;;  %v8455_v55 = vpop.f32.mrb[20].mxu0  ;;  %v9856_v31 = vpop.f32.mrb[32].mxu1 }
 0x1a5   : > { %v2979_v24 = vadd.f32 %v8455_v55, %v9755_v30  ;;  %v2520_v37 = vpop.f32.mrb[21].mxu0  ;;  %12154 = vst [vmem:[#allocation60_spill] sm:$0xff] %v9856_v31  ;;  %v9858_v55 = vpop.f32.mrb[33].mxu1 }
 0x1a6   : > { %v2977_v59 = vadd.f32 %v9755_v30, %v2520_v37  ;;  %v8456_v34 = vpop.f32.mrb[22].mxu0  ;;  %8581 = vmatprep.mubr.msk.bf16.mxu1 %vm3295_vm10, %v3221_v51  ;;  %12155 = vst [vmem:[#allocation61_spill] sm:$0xff] %v9858_v55  ;;  %v9860_v37 = vpop.f32.mrb[34].mxu1  ;;  %v8999_v55 = vld [vmem:[%s9216_s13 + $0x78] sm:$0xff] }
 0x1a7   : > { %v2980_v61 = vadd.f32 %v8456_v34, %v9755_v30  ;;  %v2523_v32 = vpop.f32.mrb[23].mxu0  ;;  %8582 = vmatmul.mubr.msk.bf16.gmra.mrb[72].mxu1 %vm3295_vm10, %v3222_v25  ;;  %v3107_v40 = vmax.f32 %v2979_v24, 0.0  ;;  %12156 = vst [vmem:[#allocation62_spill] sm:$0xff] %v9860_v37  ;;  %v9862_v49 = vpop.f32.mrb[35].mxu1 }
 0x1a8   : > { %v2978_v53 = vadd.f32 %v9755_v30, %v2523_v32  ;;  %v3105_v39 = vmax.f32 %v2977_v59, 0.0  ;;  %12157 = vst [vmem:[#allocation63_spill] sm:$0xff] %v9862_v49 }
 0x1a9   : > { %v3108_v7 = vmax.f32 %v2980_v61, 0.0 }
 0x1aa   : > { %v3106_v56 = vmax.f32 %v2978_v53, 0.0 }
 0x1ab   : > { %v3224_v47 = vpack.c.bf16 %v3108_v7, %v3107_v40  ;;  %v9870_v7 = vpop.f32.mrb[36].mxu1 }
 0x1ac   : > { %v3223_v27 = vpack.c.bf16 %v3106_v56, %v3105_v39  ;;  %v8459_v51 = vpop.f32.mrb[24].mxu0  ;;  %12158 = vst [vmem:[#allocation64_spill] sm:$0xff] %v9870_v7  ;;  %v8997_v7 = vld [vmem:[%s9216_s13 + $0x68] sm:$0xff] }
 0x1ad   : > { %v2983_v34 = vadd.f32 %v8459_v51, %v9755_v30  ;;  %v2536_v25 = vpop.f32.mrb[25].mxu0  ;;  %v9872_v51 = vpop.f32.mrb[37].mxu1 }
 0x1ae   : > { %v2981_v32 = vadd.f32 %v9755_v30, %v2536_v25  ;;  %v8460_v24 = vpop.f32.mrb[26].mxu0  ;;  %8585 = vmatprep.mubr.msk.bf16.mxu1 %vm3295_vm10, %v3223_v27  ;;  %12159 = vst [vmem:[#allocation65_spill] sm:$0xff] %v9872_v51  ;;  %v9874_v25 = vpop.f32.mrb[38].mxu1 }
 0x1af   : > { %v2984_v59 = vadd.f32 %v8460_v24, %v9755_v30  ;;  %v2539_v61 = vpop.f32.mrb[27].mxu0  ;;  %8586 = vmatmul.mubr.msk.bf16.gmra.mrb[76].mxu1 %vm3295_vm10, %v3224_v47  ;;  %v3111_v40 = vmax.f32 %v2983_v34, 0.0  ;;  %12160 = vst [vmem:[#allocation66_spill] sm:$0xff] %v9874_v25  ;;  %v9876_v12 = vpop.f32.mrb[39].mxu1 }
 0x1b0   : > { %v2982_v53 = vadd.f32 %v9755_v30, %v2539_v61  ;;  %v3109_v39 = vmax.f32 %v2981_v32, 0.0  ;;  %12161 = vst [vmem:[#allocation67_spill] sm:$0xff] %v9876_v12  ;;  %v8994_v12 = vld [vmem:[%s9216_s13 + $0x38] sm:$0xff] }
 0x1b1   : > { %v3112_v56 = vmax.f32 %v2984_v59, 0.0 }
 0x1b2   : > { %v3110_v33 = vmax.f32 %v2982_v53, 0.0 }
 0x1b3   : > { %v3226_v10 = vpack.c.bf16 %v3112_v56, %v3111_v40  ;;  %v9884_v56 = vpop.f32.mrb[40].mxu1 }
 0x1b4   : > { %v3225_v18 = vpack.c.bf16 %v3110_v33, %v3109_v39  ;;  %v8463_v27 = vpop.f32.mrb[28].mxu0  ;;  %12162 = vst [vmem:[#allocation68_spill] sm:$0xff] %v9884_v56  ;;  %v9886_v23 = vpop.f32.mrb[41].mxu1 }
 0x1b5   : > { %v2987_v24 = vadd.f32 %v8463_v27, %v9755_v30  ;;  %v2552_v47 = vpop.f32.mrb[29].mxu0  ;;  %12163 = vst [vmem:[#allocation69_spill] sm:$0xff] %v9886_v23  ;;  %v9888_v57 = vpop.f32.mrb[42].mxu1 }
 0x1b6   : > { %v2985_v61 = vadd.f32 %v9755_v30, %v2552_v47  ;;  %v8464_v34 = vpop.f32.mrb[30].mxu0  ;;  %8589 = vmatprep.mubr.msk.bf16.mxu1 %vm3295_vm10, %v3225_v18  ;;  %12164 = vst [vmem:[#allocation70_spill] sm:$0xff] %v9888_v57 }
 0x1b7   : > { %v2988_v32 = vadd.f32 %v8464_v34, %v9755_v30  ;;  %v2555_v59 = vpop.f32.mrb[31].mxu0  ;;  %8590 = vmatmul.mubr.msk.bf16.gmra.mrb[80].mxu1 %vm3295_vm10, %v3226_v10  ;;  %v3115_v33 = vmax.f32 %v2987_v24, 0.0  ;;  %v9890_v34 = vpop.f32.mrb[43].mxu1  ;;  %v5847_v10 = vsel %vm5825_vm5, %v8991_v58, 0.0 }
 0x1b8   : > { %v2986_v53 = vadd.f32 %v9755_v30, %v2555_v59  ;;  %v3113_v39 = vmax.f32 %v2985_v61, 0.0  ;;  %12165 = vst [vmem:[#allocation71_spill] sm:$0xff] %v9890_v34  ;;  %v9902_v45 = vpop.f32.mrb[44].mxu1 }
 0x1b9   : > { %v3116_v40 = vmax.f32 %v2988_v32, 0.0  ;;  %12166 = vst [vmem:[#allocation72_spill] sm:$0xff] %v9902_v45 }
 0x1ba   : > { %v3114_v27 = vmax.f32 %v2986_v53, 0.0  ;;  %v8992_v53 = vld [vmem:[%s9216_s13 + $0x28] sm:$0xff] }
 0x1bb   : > { %v3228_v47 = vpack.c.bf16 %v3116_v40, %v3115_v33  ;;  %v5861_v33 = vsel %vm5825_vm5, %v8992_v53, 0.0  ;;  %v9906_v53 = vpop.f32.mrb[45].mxu1 }
 0x1bc   : > { %v3227_v18 = vpack.c.bf16 %v3114_v27, %v3113_v39  ;;  %v8467_v0 = vpop.f32.mrb[32].mxu0  ;;  %v5848_v27 = vrot.slane %v5847_v10, 4  ;;  %v5862_v42 = vrot.slane %v5861_v33, 4  ;;  %12167 = vst [vmem:[#allocation73_spill] sm:$0xff] %v9906_v53  ;;  %v9908_v57 = vpop.f32.mrb[46].mxu1 }
 0x1bd   : > { %v2991_v24 = vadd.f32 %v8467_v0, %v9755_v30  ;;  %v2568_v32 = vpop.f32.mrb[33].mxu0  ;;  %12168 = vst [vmem:[#allocation74_spill] sm:$0xff] %v9908_v57 }
 0x1be   : > { %v2989_v59 = vadd.f32 %v9755_v30, %v2568_v32  ;;  %v8468_v61 = vpop.f32.mrb[34].mxu0  ;;  %8593 = vmatprep.mubr.msk.bf16.mxu1 %vm3295_vm10, %v3227_v18  ;;  %v8993_v32 = vld [vmem:[%s9216_s13 + $0x20] sm:$0xff]  ;;  %v5863_v56 = vadd.f32 %v5862_v42, %v5861_v33 }
 0x1bf   : > { %v2992_v40 = vadd.f32 %v8468_v61, %v9755_v30  ;;  %v2571_v39 = vpop.f32.mrb[35].mxu0  ;;  %8594 = vmatmul.mubr.msk.bf16.gmra.mrb[84].mxu1 %vm3295_vm10, %v3228_v47  ;;  %v3119_v1 = vmax.f32 %v2991_v24, 0.0  ;;  %v5854_v18 = vsel %vm5825_vm5, %v8993_v32, 0.0  ;;  %v5849_v47 = vadd.f32 %v5848_v27, %v5847_v10  ;;  %v9910_v24 = vpop.f32.mrb[47].mxu1  ;;  %v8995_v10 = vld [vmem:[%s9216_s13 + $0x30] sm:$0xff] }
 0x1c0   : > { %v2990_v58 = vadd.f32 %v9755_v30, %v2571_v39  ;;  %v3117_v34 = vmax.f32 %v2989_v59, 0.0  ;;  %12169 = vst [vmem:[#allocation75_spill] sm:$0xff] %v9910_v24  ;;  %v5875_v59 = vsel %vm5825_vm5, %v8994_v12, 0.0  ;;  %v5868_v27 = vsel %vm5825_vm5, %v8995_v10, 0.0  ;;  %v8996_v10 = vld [vmem:[%s9216_s13 + $0x58] sm:$0xff] }
 0x1c1   : > { %v3120_v0 = vmax.f32 %v2992_v40, 0.0  ;;  %v5855_v40 = vrot.slane %v5854_v18, 4 }
 0x1c2   : > { %v3118_v29 = vmax.f32 %v2990_v58, 0.0 }
 0x1c3   : > { %v3230_v61 = vpack.c.bf16 %v3120_v0, %v3119_v1  ;;  %v5856_v33 = vadd.f32 %v5855_v40, %v5854_v18  ;;  %v5876_v0 = vrot.slane %v5875_v59, 4 }
 0x1c4   : > { %v3229_v13 = vpack.c.bf16 %v3118_v29, %v3117_v34  ;;  %v8471_v39 = vpop.f32.mrb[36].mxu0  ;;  %v5850_v34 = vrot.slane %v5849_v47, 2 }
 0x1c5   : > { %v2995_v45 = vadd.f32 %v8471_v39, %v9755_v30  ;;  %v2584_v23 = vpop.f32.mrb[37].mxu0 }
 0x1c6   : > { %v2993_v58 = vadd.f32 %v9755_v30, %v2584_v23  ;;  %v8472_v32 = vpop.f32.mrb[38].mxu0  ;;  %8597 = vmatprep.mubr.msk.bf16.mxu1 %vm3295_vm10, %v3229_v13  ;;  %v9922_v23 = vpop.f32.mrb[48].mxu1  ;;  %v5864_v13 = vrot.slane %v5863_v56, 2  ;;  %v5851_v51 = vadd.f32 %v5850_v34, %v5849_v47 }
 0x1c7   : > { %v2996_v1 = vadd.f32 %v8472_v32, %v9755_v30  ;;  %v2587_v29 = vpop.f32.mrb[39].mxu0  ;;  %8598 = vmatmul.mubr.msk.bf16.gmra.mrb[88].mxu1 %vm3295_vm10, %v3230_v61  ;;  %v3123_v12 = vmax.f32 %v2995_v45, 0.0  ;;  %12170 = vst [vmem:[#allocation76_spill] sm:$0xff] %v9922_v23  ;;  %v9924_v57 = vpop.f32.mrb[49].mxu1  ;;  %v5869_v61 = vrot.slane %v5868_v27, 4  ;;  %v5877_v23 = vadd.f32 %v5876_v0, %v5875_v59 }
 0x1c8   : > { %v2994_v42 = vadd.f32 %v9755_v30, %v2587_v29  ;;  %v3121_v24 = vmax.f32 %v2993_v58, 0.0  ;;  %12171 = vst [vmem:[#allocation77_spill] sm:$0xff] %v9924_v57  ;;  %v9926_v25 = vpop.f32.mrb[50].mxu1  ;;  %v5903_v29 = vsel %vm5825_vm5, %v8996_v10, 0.0  ;;  %v5917_v58 = vsel %vm5825_vm5, %v8997_v7, 0.0 }
 0x1c9   : > { %v3124_v39 = vmax.f32 %v2996_v1, 0.0  ;;  %12172 = vst [vmem:[#allocation78_spill] sm:$0xff] %v9926_v25  ;;  %v9930_v45 = vpop.f32.mrb[51].mxu1  ;;  %v5857_v1 = vrot.slane %v5856_v33, 2  ;;  %v5865_v49 = vadd.f32 %v5864_v13, %v5863_v56  ;;  %v5870_v47 = vadd.f32 %v5869_v61, %v5868_v27 }
 0x1ca   : > { %v3122_v32 = vmax.f32 %v2994_v42, 0.0  ;;  %12173 = vst [vmem:[#allocation79_spill] sm:$0xff] %v9930_v45  ;;  %v5852_v59 = vrot.slane %v5851_v51, 1  ;;  %v5918_v7 = vrot.slane %v5917_v58, 4  ;;  %v5878_v56 = vrot.slane %v5877_v23, 2 }
 0x1cb   : > { %v3232_v53 = vpack.c.bf16 %v3124_v39, %v3123_v12  ;;  %v5858_v10 = vadd.f32 %v5857_v1, %v5856_v33  ;;  %v5866_v45 = vrot.slane %v5865_v49, 1 }
 0x1cc   : > { %v3231_v18 = vpack.c.bf16 %v3122_v32, %v3121_v24  ;;  %v8475_v40 = vpop.f32.mrb[40].mxu0  ;;  %v5904_v24 = vrot.slane %v5903_v29, 4  ;;  %v5879_v8 = vadd.f32 %v5878_v56, %v5877_v23 }
 0x1cd   : > { %v2999_v42 = vadd.f32 %v8475_v40, %v9755_v30  ;;  %v2600_v57 = vpop.f32.mrb[41].mxu0  ;;  %v9940_v40 = vpop.f32.mrb[52].mxu1 }
 0x1ce   : > { %v2997_v12 = vadd.f32 %v9755_v30, %v2600_v57  ;;  %v8476_v39 = vpop.f32.mrb[42].mxu0  ;;  %8601 = vmatprep.mubr.msk.bf16.mxu1 %vm3295_vm10, %v3231_v18  ;;  %12174 = vst [vmem:[#allocation80_spill] sm:$0xff] %v9940_v40  ;;  %v8998_v18 = vld [vmem:[%s9216_s13 + $0x60] sm:$0xff]  ;;  %v9944_v25 = vpop.f32.mrb[53].mxu1  ;;  %v5905_v37 = vadd.f32 %v5904_v24, %v5903_v29  ;;  %v9955_v24 = vadd.f32 %v5852_v59, %v5851_v51  ;;  %v9001_v59 = vld [vmem:[%s9216_s13 + $0x98] sm:$0xff] }
 0x1cf   : > { %v3000_v34 = vadd.f32 %v8476_v39, %v9755_v30  ;;  %v2603_v32 = vpop.f32.mrb[43].mxu0  ;;  %8602 = vmatmul.mubr.msk.bf16.gmra.mrb[92].mxu1 %vm3295_vm10, %v3232_v53  ;;  %v3127_v13 = vmax.f32 %v2999_v42, 0.0  ;;  %v5910_v27 = vsel %vm5825_vm5, %v8998_v18, 0.0  ;;  %12175 = vst [vmem:[#allocation81_spill] sm:$0xff] %v9944_v25  ;;  %v5871_v53 = vrot.slane %v5870_v47, 2  ;;  %v9948_v1 = vpop.f32.mrb[54].mxu1 }
 0x1d0   : > { %v2998_v0 = vadd.f32 %v9755_v30, %v2603_v32  ;;  %v3125_v61 = vmax.f32 %v2997_v12, 0.0  ;;  %v5931_v32 = vsel %vm5825_vm5, %v8999_v55, 0.0  ;;  %12176 = vst [vmem:[#allocation82_spill] sm:$0xff] %v9948_v1  ;;  %v5919_v42 = vadd.f32 %v5918_v7, %v5917_v58  ;;  %v9950_v31 = vpop.f32.mrb[55].mxu1  ;;  %12178 = vst [vmem:[#allocation84_spill] sm:$0xff] %v9955_v24 }
 0x1d1   : > { %v3128_v57 = vmax.f32 %v3000_v34, 0.0  ;;  %12177 = vst [vmem:[#allocation83_spill] sm:$0xff] %v9950_v31  ;;  %v5911_v18 = vrot.slane %v5910_v27, 4  ;;  %v5924_v12 = vsel %vm5825_vm5, %v9000_v48, 0.0  ;;  %v5859_v55 = vrot.slane %v5858_v10, 1 }
 0x1d2   : > { %v3126_v39 = vmax.f32 %v2998_v0, 0.0  ;;  %v9959_v7 = vadd.f32 %v5866_v45, %v5865_v49  ;;  %v9961_v23 = vadd.f32 %v5871_v53, %v5870_v47  ;;  %v5906_v56 = vrot.slane %v5905_v37, 2 }
 0x1d3   : > { %v3234_v33 = vpack.c.bf16 %v3128_v57, %v3127_v13  ;;  %v5932_v13 = vrot.slane %v5931_v32, 4  ;;  %v5925_v51 = vrot.slane %v5924_v12, 4  ;;  %v5880_v24 = vrot.slane %v5879_v8, 1 }
 0x1d4   : > { %v3233_v34 = vpack.c.bf16 %v3126_v39, %v3125_v61  ;;  %v8479_v40 = vpop.f32.mrb[44].mxu0  ;;  %12179 = vst [vmem:[#allocation85_spill] sm:$0xff] %v9959_v7  ;;  %v5959_v39 = vsel %vm5825_vm5, %v9001_v59, 0.0  ;;  %v9968_v47 = vadd.f32 %v5859_v55, %v5858_v10  ;;  %v5907_v31 = vadd.f32 %v5906_v56, %v5905_v37 }
 0x1d5   : > { %v3003_v0 = vadd.f32 %v8479_v40, %v9755_v30  ;;  %v2616_v29 = vpop.f32.mrb[45].mxu0  ;;  %v5920_v40 = vrot.slane %v5919_v42, 2  ;;  %v5933_v53 = vadd.f32 %v5932_v13, %v5931_v32  ;;  %v5960_v1 = vrot.slane %v5959_v39, 4  ;;  %v9003_v32 = vld [vmem:[%s9216_s13 + $0xa0] sm:$0xff] }
 0x1d6   : > { %v3001_v57 = vadd.f32 %v9755_v30, %v2616_v29  ;;  %v8480_v58 = vpop.f32.mrb[46].mxu0  ;;  %8605 = vmatprep.mubr.msk.bf16.mxu1 %vm3295_vm10, %v3233_v34  ;;  %v5912_v34 = vadd.f32 %v5911_v18, %v5910_v27  ;;  %12180 = vst [vmem:[#allocation86_spill] sm:$0xff] %v9968_v47  ;;  %v5926_v15 = vadd.f32 %v5925_v51, %v5924_v12  ;;  %v5966_v13 = vsel %vm5825_vm5, %v9003_v32, 0.0 }
 0x1d7   : > { %v3004_v48 = vadd.f32 %v8480_v58, %v9755_v30  ;;  %v2619_v61 = vpop.f32.mrb[47].mxu0  ;;  %8606 = vmatmul.mubr.msk.bf16.gmra.mrb[96].mxu1 %vm3295_vm10, %v3234_v33  ;;  %v3131_v49 = vmax.f32 %v3003_v0, 0.0  ;;  %v5873_v33 = vrot.slane %v9961_v23, 1  ;;  %v5921_v59 = vadd.f32 %v5920_v40, %v5919_v42  ;;  %v9005_v42 = vld [vmem:[%s9216_s13 + $0xb0] sm:$0xff] }
 0x1d8   : > { %v3002_v29 = vadd.f32 %v9755_v30, %v2619_v61  ;;  %v3129_v58 = vmax.f32 %v3001_v57, 0.0  ;;  %v9002_v61 = vld [vmem:[%s9216_s13 + $0xa8] sm:$0xff]  ;;  %v9973_v10 = vadd.f32 %v5880_v24, %v5879_v8  ;;  %v5913_v55 = vrot.slane %v5912_v34, 2 }
 0x1d9   : > { %v3132_v45 = vmax.f32 %v3004_v48, 0.0  ;;  %v5973_v27 = vsel %vm5825_vm5, %v9002_v61, 0.0  ;;  %v5934_v56 = vrot.slane %v5933_v53, 2  ;;  %v9004_v48 = vld [vmem:[%s9216_s13 + $0xb8] sm:$0xff]  ;;  %v5980_v12 = vsel %vm5825_vm5, %v9005_v42, 0.0 }
 0x1da   : > { %v3130_v7 = vmax.f32 %v3002_v29, 0.0  ;;  %12181 = vst [vmem:[#allocation87_spill] sm:$0xff] %v9973_v10  ;;  %v5987_v29 = vsel %vm5825_vm5, %v9004_v48, 0.0  ;;  %v5908_v8 = vrot.slane %v5907_v31, 1  ;;  %v5961_v24 = vadd.f32 %v5960_v1, %v5959_v39 }
 0x1db   : > { %v3236_v25 = vpack.c.bf16 %v3132_v45, %v3131_v49  ;;  %v5974_v51 = vrot.slane %v5973_v27, 4  ;;  %v5927_v61 = vrot.slane %v5926_v15, 2  ;;  %v5988_v48 = vrot.slane %v5987_v29, 4 }
 0x1dc   : > { %v3235_v18 = vpack.c.bf16 %v3130_v7, %v3129_v58  ;;  %v8483_v0 = vpop.f32.mrb[48].mxu0  ;;  %v5922_v58 = vrot.slane %v5921_v59, 1  ;;  %v5981_v42 = vrot.slane %v5980_v12, 4  ;;  %v5914_v47 = vadd.f32 %v5913_v55, %v5912_v34 }
 0x1dd   : > { %v3007_v57 = vadd.f32 %v8483_v0, %v9755_v30  ;;  %v2632_v37 = vpop.f32.mrb[49].mxu0  ;;  %v5967_v0 = vrot.slane %v5966_v13, 4  ;;  %v5962_v39 = vrot.slane %v5961_v24, 2  ;;  %v5975_v28 = vadd.f32 %v5974_v51, %v5973_v27 }
 0x1de   : > { %v3005_v40 = vadd.f32 %v9755_v30, %v2632_v37  ;;  %v8484_v7 = vpop.f32.mrb[50].mxu0  ;;  %8609 = vmatprep.mubr.msk.bf16.mxu1 %vm3295_vm10, %v3235_v18  ;;  %v5935_v18 = vadd.f32 %v5934_v56, %v5933_v53  ;;  %v5928_v6 = vadd.f32 %v5927_v61, %v5926_v15  ;;  %v9992_v43 = vadd.f32 %v5908_v8, %v5907_v31 }
 0x1df   : > { %v3008_v49 = vadd.f32 %v8484_v7, %v9755_v30  ;;  %v2635_v45 = vpop.f32.mrb[51].mxu0  ;;  %8610 = vmatmul.mubr.msk.bf16.gmra.mrb[100].mxu1 %vm3295_vm10, %v3236_v25  ;;  %v3135_v37 = vmax.f32 %v3007_v57, 0.0  ;;  %v9006_v7 = vld [vmem:[%s9216_s13 + $0xd8] sm:$0xff]  ;;  %v9990_v25 = vadd.f32 %v5873_v33, %v9961_v23  ;;  %v5968_v21 = vadd.f32 %v5967_v0, %v5966_v13 }
 0x1e0   : > { %v3006_v32 = vadd.f32 %v9755_v30, %v2635_v45  ;;  %v3133_v22 = vmax.f32 %v3005_v40, 0.0  ;;  %v6015_v19 = vsel %vm5825_vm5, %v9006_v7, 0.0  ;;  %12183 = vst [vmem:[#allocation89_spill] sm:$0xff] %v9992_v43  ;;  %v5989_v57 = vadd.f32 %v5988_v48, %v5987_v29 }
 0x1e1   : > { %v3136_v10 = vmax.f32 %v3008_v49, 0.0  ;;  %12182 = vst [vmem:[#allocation88_spill] sm:$0xff] %v9990_v25  ;;  %v5982_v34 = vadd.f32 %v5981_v42, %v5980_v12  ;;  %v9995_v27 = vadd.f32 %v5922_v58, %v5921_v59  ;;  %v5915_v56 = vrot.slane %v5914_v47, 1  ;;  %v9007_v59 = vld [vmem:[%s9216_s13 + $0xe8] sm:$0xff] }
 0x1e2   : > { %v3134_v1 = vmax.f32 %v3006_v32, 0.0  ;;  %v6016_v40 = vrot.slane %v6015_v19, 4  ;;  %v5936_v15 = vrot.slane %v5935_v18, 1  ;;  %v5976_v31 = vrot.slane %v5975_v28, 2 }
 0x1e3   : > { %v3238_v46 = vpack.c.bf16 %v3136_v10, %v3135_v37  ;;  %12184 = vst [vmem:[#allocation90_spill] sm:$0xff] %v9995_v27  ;;  %v5969_v29 = vrot.slane %v5968_v21, 2  ;;  %v6029_v12 = vsel %vm5825_vm5, %v9007_v59, 0.0  ;;  %v5990_v51 = vrot.slane %v5989_v57, 2 }
 0x1e4   : > { %v3237_v45 = vpack.c.bf16 %v3134_v1, %v3133_v22  ;;  %v8487_v14 = vpop.f32.mrb[52].mxu0  ;;  %v5963_v22 = vadd.f32 %v5962_v39, %v5961_v24  ;;  %v5983_v49 = vrot.slane %v5982_v34, 2  ;;  %v6017_v0 = vadd.f32 %v6016_v40, %v6015_v19  ;;  %v9008_v24 = vld [vmem:[%s9216_s13 + $0xe0] sm:$0xff]  ;;  %v9009_v19 = vld [vmem:[%s9216_s13 + $0xf8] sm:$0xff] }
 0x1e5   : > { %v3011_v53 = vadd.f32 %v8487_v14, %v9755_v30  ;;  %v2648_v55 = vpop.f32.mrb[53].mxu0  ;;  %v5929_v14 = vrot.slane %v5928_v6, 1  ;;  %v6022_v32 = vsel %vm5825_vm5, %v9008_v24, 0.0  ;;  %v6030_v1 = vrot.slane %v6029_v12, 4 }
 0x1e6   : > { %v3009_v10 = vadd.f32 %v9755_v30, %v2648_v55  ;;  %v8488_v23 = vpop.f32.mrb[54].mxu0  ;;  %8613 = vmatprep.mubr.msk.bf16.mxu1 %vm3295_vm10, %v3237_v45  ;;  %v5964_v37 = vrot.slane %v5963_v22, 1  ;;  %v10006_v7 = vadd.f32 %v5915_v56, %v5914_v47  ;;  %v10008_v45 = vadd.f32 %v5936_v15, %v5935_v18 }
 0x1e7   : > { %v3012_v33 = vadd.f32 %v8488_v23, %v9755_v30  ;;  %v2651_v13 = vpop.f32.mrb[55].mxu0  ;;  %8614 = vmatmul.mubr.msk.bf16.gmra.mrb[104].mxu1 %vm3295_vm10, %v3238_v46  ;;  %v3139_v58 = vmax.f32 %v3011_v53, 0.0  ;;  %v5977_v46 = vadd.f32 %v5976_v31, %v5975_v28  ;;  %v5970_v55 = vadd.f32 %v5969_v29, %v5968_v21 }
 0x1e8   : > { %v3010_v8 = vadd.f32 %v9755_v30, %v2651_v13  ;;  %v3137_v48 = vmax.f32 %v3009_v10, 0.0  ;;  %12185 = vst [vmem:[#allocation91_spill] sm:$0xff] %v10006_v7  ;;  %12186 = vst [vmem:[#allocation92_spill] sm:$0xff] %v10008_v45  ;;  %v5991_v53 = vadd.f32 %v5990_v51, %v5989_v57  ;;  %v6043_v40 = vsel %vm5825_vm5, %v9009_v19, 0.0 }
 0x1e9   : > { %v3140_v61 = vmax.f32 %v3012_v33, 0.0  ;;  %v6023_v33 = vrot.slane %v6022_v32, 4  ;;  %v5984_v28 = vadd.f32 %v5983_v49, %v5982_v34  ;;  %v6018_v31 = vrot.slane %v6017_v0, 2 }
 0x1ea   : > { %v3138_v42 = vmax.f32 %v3010_v8, 0.0  ;;  %v10013_v8 = vadd.f32 %v5929_v14, %v5928_v6  ;;  %v10017_v21 = vadd.f32 %v5964_v37, %v5963_v22  ;;  %v5978_v57 = vrot.slane %v5977_v46, 1  ;;  %v9010_v14 = vld [vmem:[%s9216_s13 + $0xf0] sm:$0xff] }
 0x1eb   : > { %v3240_v39 = vpack.c.bf16 %v3140_v61, %v3139_v58  ;;  %v6031_v56 = vadd.f32 %v6030_v1, %v6029_v12  ;;  %v5971_v51 = vrot.slane %v5970_v55, 1  ;;  %v6044_v6 = vrot.slane %v6043_v40, 4  ;;  %v8989_v1 = vld [vmem:[%s12068_s8] sm:$0xff]  }
 0x1ec   : > { %v3239_v23 = vpack.c.bf16 %v3138_v42, %v3137_v48  ;;  %v8491_v13 = vpop.f32.mrb[56].mxu0  ;;  %12187 = vst [vmem:[#allocation93_spill] sm:$0xff] %v10013_v8  ;;  %12188 = vst [vmem:[#allocation94_spill] sm:$0xff] %v10017_v21  ;;  %v6036_v34 = vsel %vm5825_vm5, %v9010_v14, 0.0  ;;  %v5992_v58 = vrot.slane %v5991_v53, 1  ;;  %v6024_v61 = vadd.f32 %v6023_v33, %v6022_v32  ;;  %v9013_v33 = vld [vmem:[%s9216_s13 + $0x120] sm:$0xff]  ;;  %8693 = vmatprep.subr.bf16.mxu1 %v8989_v1 }
 0x1ed   : > { %v3015_v59 = vadd.f32 %v8491_v13, %v9755_v30  ;;  %v2664_v10 = vpop.f32.mrb[57].mxu0  ;;  %v5985_v12 = vrot.slane %v5984_v28, 1  ;;  %v6019_v48 = vadd.f32 %v6018_v31, %v6017_v0  ;;  %v9011_v13 = vld [vmem:[%s9216_s13 + $0x118] sm:$0xff]  ;;  %8694 = vmatpush3.bf16.msra.mxu1 %v8989_v1 }
 0x1ee   : > { %v3013_v47 = vadd.f32 %v9755_v30, %v2664_v10  ;;  %v8492_v18 = vpop.f32.mrb[58].mxu0  ;;  %8617 = vmatprep.mubr.msk.bf16.mxu1 %vm3295_vm10, %v3239_v23  ;;  %v6037_v23 = vrot.slane %v6036_v34, 4  ;;  %v6071_v19 = vsel %vm5825_vm5, %v9011_v13, 0.0  ;;  %v6025_v14 = vrot.slane %v6024_v61, 2 }
 0x1ef   : > { %v3016_v15 = vadd.f32 %v8492_v18, %v9755_v30  ;;  %v2667_v29 = vpop.f32.mrb[59].mxu0  ;;  %8618 = vmatmul.mubr.msk.bf16.gmra.mrb[108].mxu1 %vm3295_vm10, %v3240_v39  ;;  %v3143_v22 = vmax.f32 %v3015_v59, 0.0  ;;  %v6032_v39 = vrot.slane %v6031_v56, 2  ;;  %v6045_v18 = vadd.f32 %v6044_v6, %v6043_v40 }
 0x1f0   : > { %v3014_v49 = vadd.f32 %v9755_v30, %v2667_v29  ;;  %v3141_v42 = vmax.f32 %v3013_v47, 0.0  ;;  %v9012_v29 = vld [vmem:[%s9216_s13 + $0x128] sm:$0xff]  ;;  %v6078_v59 = vsel %vm5825_vm5, %v9013_v33, 0.0  ;;  %v10033_v47 = vadd.f32 %v5978_v57, %v5977_v46 }
 0x1f1   : > { %v3144_v24 = vmax.f32 %v3016_v15, 0.0  ;;  %v6085_v32 = vsel %vm5825_vm5, %v9012_v29, 0.0  ;;  %v10035_v15 = vadd.f32 %v5971_v51, %v5970_v55  ;;  %v10040_v40 = vadd.f32 %v5985_v12, %v5984_v28 }
 0x1f2   : > { %v3142_v37 = vmax.f32 %v3014_v49, 0.0  ;;  %12189 = vst [vmem:[#allocation95_spill] sm:$0xff] %v10033_v47  ;;  %v6072_v6 = vrot.slane %v6071_v19, 4  ;;  %v6020_v46 = vrot.slane %v6019_v48, 1  ;;  %v6086_v55 = vrot.slane %v6085_v32, 4 }
 0x1f3   : > { %v3242_v10 = vpack.c.bf16 %v3144_v24, %v3143_v22  ;;  %12190 = vst [vmem:[#allocation96_spill] sm:$0xff] %v10035_v15  ;;  %v10038_v22 = vadd.f32 %v5992_v58, %v5991_v53  ;;  %12192 = vst [vmem:[#allocation98_spill] sm:$0xff] %v10040_v40  ;;  %v6079_v57 = vrot.slane %v6078_v59, 4  ;;  %v6033_v53 = vadd.f32 %v6032_v39, %v6031_v56  ;;  %v9016_v56 = vld [vmem:[%s9216_s13 + $0x158] sm:$0xff] }
 0x1f4   : > { %v3241_v0 = vpack.c.bf16 %v3142_v37, %v3141_v42  ;;  %v8495_v31 = vpop.f32.mrb[60].mxu0  ;;  %v6046_v28 = vrot.slane %v6045_v18, 2  ;;  %v6038_v58 = vadd.f32 %v6037_v23, %v6036_v34  ;;  %v6026_v1 = vadd.f32 %v6025_v14, %v6024_v61 }
 0x1f5   : > { %v3019_v49 = vadd.f32 %v8495_v31, %v9755_v30  ;;  %v2680_v45 = vpop.f32.mrb[61].mxu0  ;;  %12191 = vst [vmem:[#allocation97_spill] sm:$0xff] %v10038_v22  ;;  %v9015_v31 = vld [vmem:[%s9216_s13 + $0x130] sm:$0xff]  ;;  %v6087_v7 = vadd.f32 %v6086_v55, %v6085_v32  ;;  %v6127_v39 = vsel %vm5825_vm5, %v9016_v56, 0.0 }
 0x1f6   : > { %v3017_v24 = vadd.f32 %v9755_v30, %v2680_v45  ;;  %v8496_v42 = vpop.f32.mrb[62].mxu0  ;;  %8621 = vmatprep.mubr.msk.bf16.mxu1 %vm3295_vm10, %v3241_v0  ;;  %v9014_v45 = vld [vmem:[%s9216_s13 + $0x138] sm:$0xff]  ;;  %v6073_v0 = vadd.f32 %v6072_v6, %v6071_v19  ;;  %v6092_v8 = vsel %vm5825_vm5, %v9015_v31, 0.0  ;;  %v6047_v23 = vadd.f32 %v6046_v28, %v6045_v18 }
 0x1f7   : > { %v3020_v51 = vadd.f32 %v8496_v42, %v9755_v30  ;;  %v2683_v37 = vpop.f32.mrb[63].mxu0  ;;  %8622 = vmatmul.mubr.msk.bf16.gmra.mrb[112].mxu1 %vm3295_vm10, %v3242_v10  ;;  %v6099_v13 = vsel %vm5825_vm5, %v9014_v45, 0.0  ;;  %v3147_v29 = vmax.f32 %v3019_v49, 0.0  ;;  %v6080_v10 = vadd.f32 %v6079_v57, %v6078_v59 }
 0x1f8   : > { %v3018_v12 = vadd.f32 %v9755_v30, %v2683_v37  ;;  %v3145_v42 = vmax.f32 %v3017_v24, 0.0  ;;  %v6039_v37 = vrot.slane %v6038_v58, 2  ;;  %v6100_v61 = vrot.slane %v6099_v13, 4 }
 0x1f9   : > { %v3148_v33 = vmax.f32 %v3020_v51, 0.0  ;;  %v10053_v49 = vadd.f32 %v6020_v46, %v6019_v48  ;;  %v6034_v19 = vrot.slane %v6033_v53, 1  ;;  %v6093_v6 = vrot.slane %v6092_v8, 4 }
 0x1fa   : > { %v3146_v27 = vmax.f32 %v3018_v12, 0.0  ;;  %v6027_v12 = vrot.slane %v6026_v1, 1  ;;  %v6074_v32 = vrot.slane %v6073_v0, 2  ;;  %v6128_v59 = vrot.slane %v6127_v39, 4 }
 0x1fb   : > { %v3244_v34 = vpack.c.bf16 %v3148_v33, %v3147_v29  ;;  %12193 = vst [vmem:[#allocation99_spill] sm:$0xff] %v10053_v49  ;;  %v6088_v18 = vrot.slane %v6087_v7, 2  ;;  %v6081_v28 = vrot.slane %v6080_v10, 2  ;;  %v6048_v33 = vrot.slane %v6047_v23, 1 }
 0x1fc   : > { %v3243_v14 = vpack.c.bf16 %v3146_v27, %v3145_v42  ;;  %v8499_v45 = vpop.f32.mrb[64].mxu0  ;;  %v9017_v27 = vld [vmem:[%s9216_s13 + $0x168] sm:$0xff]  ;;  %v6040_v31 = vadd.f32 %v6039_v37, %v6038_v58  ;;  %v6101_v42 = vadd.f32 %v6100_v61, %v6099_v13  ;;  %v6129_v22 = vadd.f32 %v6128_v59, %v6127_v39 }
 0x1fd   : > { %v3023_v51 = vadd.f32 %v8499_v45, %v9755_v30  ;;  %v2696_v24 = vpop.f32.mrb[65].mxu0  ;;  %v6141_v48 = vsel %vm5825_vm5, %v9017_v27, 0.0  ;;  %v6094_v45 = vadd.f32 %v6093_v6, %v6092_v8  ;;  %v6075_v47 = vadd.f32 %v6074_v32, %v6073_v0  ;;  %v9020_v32 = vld [vmem:[%s9216_s13 + $0x170] sm:$0xff] }
 0x1fe   : > { %v3021_v55 = vadd.f32 %v9755_v30, %v2696_v24  ;;  %v8500_v57 = vpop.f32.mrb[66].mxu0  ;;  %8625 = vmatprep.mubr.msk.bf16.mxu1 %vm3295_vm10, %v3243_v14  ;;  %v9018_v24 = vld [vmem:[%s9216_s13 + $0x160] sm:$0xff]  ;;  %v6142_v40 = vrot.slane %v6141_v48, 4  ;;  %v6082_v15 = vadd.f32 %v6081_v28, %v6080_v10  ;;  %v6102_v58 = vrot.slane %v6101_v42, 2 }
 0x1ff   : > { %v3024_v46 = vadd.f32 %v8500_v57, %v9755_v30  ;;  %v2699_v29 = vpop.f32.mrb[67].mxu0  ;;  %8626 = vmatmul.mubr.msk.bf16.gmra.mrb[116].mxu1 %vm3295_vm10, %v3244_v34  ;;  %v6134_v43 = vsel %vm5825_vm5, %v9018_v24, 0.0  ;;  %v3151_v14 = vmax.f32 %v3023_v51, 0.0  ;;  %v6089_v57 = vadd.f32 %v6088_v18, %v6087_v7 }
 0x200   : > { %v3022_v56 = vadd.f32 %v9755_v30, %v2699_v29  ;;  %v3149_v49 = vmax.f32 %v3021_v55, 0.0  ;;  %v10065_v34 = vadd.f32 %v6034_v19, %v6033_v53  ;;  %v6135_v13 = vrot.slane %v6134_v43, 4 }
 0x201   : > { %v3152_v25 = vmax.f32 %v3024_v46, 0.0  ;;  %v10067_v8 = vadd.f32 %v6027_v12, %v6026_v1  ;;  %v6041_v6 = vrot.slane %v6040_v31, 1  ;;  %v6095_v29 = vrot.slane %v6094_v45, 2 }
 0x202   : > { %v3150_v27 = vmax.f32 %v3022_v56, 0.0  ;;  %12194 = vst [vmem:[#allocation100_spill] sm:$0xff] %v10065_v34  ;;  %v10070_v59 = vadd.f32 %v6048_v33, %v6047_v23  ;;  %v6130_v0 = vrot.slane %v6129_v22, 2  ;;  %v6143_v7 = vadd.f32 %v6142_v40, %v6141_v48  ;;  %v9021_v48 = vld [vmem:[%s9216_s13 + $0x1a0] sm:$0xff] }
 0x203   : > { %v3246_v21 = vpack.c.bf16 %v3152_v25, %v3151_v14  ;;  %12195 = vst [vmem:[#allocation101_spill] sm:$0xff] %v10067_v8  ;;  %v10075_v25 = vld [vmem:[%s12065_s5] ss:$0 sm:$0xff]  ;;  %v6076_v10 = vrot.slane %v6075_v47, 1  ;;  %v6103_v40 = vadd.f32 %v6102_v58, %v6101_v42  ;;  %v6136_v12 = vadd.f32 %v6135_v13, %v6134_v43 }
 0x204   : > { %v3245_v37 = vpack.c.bf16 %v3150_v27, %v3149_v49  ;;  %v8503_v61 = vpop.f32.mrb[68].mxu0  ;;  %12196 = vst [vmem:[#allocation102_spill] sm:$0xff] %v10070_v59  ;;  %v6090_v49 = vrot.slane %v6089_v57, 1  ;;  %v6148_v55 = vsel %vm5825_vm5, %v9020_v32, 0.0  ;;  %v6096_v28 = vadd.f32 %v6095_v29, %v6094_v45  ;;  %v12297_v59 = vld [vmem:[#allocation37_spill] sm:$0xff] }
 0x205   : > { %v3027_v51 = vadd.f32 %v8503_v61, %v9755_v30  ;;  %v2712_v39 = vpop.f32.mrb[69].mxu0  ;;  %v6083_v30 = vrot.slane %v6082_v15, 1  ;;  %v6190_v46 = vsel %vm5825_vm5, %v9021_v48, 0.0  ;;  %v6131_v24 = vadd.f32 %v6130_v0, %v6129_v22 }
 0x206   : > { %v3025_v53 = vadd.f32 %v10075_v25, %v2712_v39  ;;  %v8504_v1 = vpop.f32.mrb[70].mxu0  ;;  %8629 = vmatprep.mubr.msk.bf16.mxu1 %vm3295_vm10, %v3245_v37  ;;  %v6144_v14 = vrot.slane %v6143_v7, 2  ;;  %v10086_v61 = vadd.f32 %v6041_v6, %v6040_v31  ;;  %v6149_v43 = vrot.slane %v6148_v55, 4 }
 0x207   : > { %v3028_v19 = vadd.f32 %v10075_v25, %v8504_v1  ;;  %v2715_v23 = vpop.f32.mrb[71].mxu0  ;;  %8630 = vmatmul.mubr.msk.bf16.gmra.mrb[120].mxu1 %vm3295_vm10, %v3246_v21  ;;  %v3155_v33 = vmax.f32 %v3027_v51, 0.0  ;;  %v10088_v21 = vadd.f32 %v6076_v10, %v6075_v47  ;;  %v10090_v58 = vadd.f32 %v6090_v49, %v6089_v57  ;;  %v9022_v47 = vld [vmem:[%s9216_s13 + $0x1a8] sm:$0xff] }
 0x208   : > { %v3026_v18 = vadd.f32 %v10075_v25, %v2715_v23  ;;  %v3153_v27 = vmax.f32 %v3025_v53, 0.0  ;;  %12197 = vst [vmem:[#allocation103_spill] sm:$0xff] %v10086_v61  ;;  %v6137_v13 = vrot.slane %v6136_v12, 2  ;;  %v6191_v45 = vrot.slane %v6190_v46, 4  ;;  %v9023_v23 = vld [vmem:[%s9216_s13 + $0x1e0] sm:$0xff] }
 0x209   : > { %v3156_v56 = vmax.f32 %v3028_v19, 0.0  ;;  %12198 = vst [vmem:[#allocation104_spill] sm:$0xff] %v10088_v21  ;;  %12199 = vst [vmem:[#allocation105_spill] sm:$0xff] %v10090_v58  ;;  %v10092_v51 = vadd.f32 %v6083_v30, %v6082_v15  ;;  %v6104_v22 = vrot.slane %v6103_v40, 1  ;;  %v6097_v0 = vrot.slane %v6096_v28, 1 }
 0x20a   : > { %v3154_v37 = vmax.f32 %v3026_v18, 0.0  ;;  %v6132_v6 = vrot.slane %v6131_v24, 1  ;;  %v6145_v1 = vadd.f32 %v6144_v14, %v6143_v7  ;;  %v6197_v10 = vsel %vm5825_vm5, %v9022_v47, 0.0  ;;  %v9025_v47 = vld [vmem:[%s9216_s13 + $0x1e8] sm:$0xff] }
 0x20b   : > { %v3248_v42 = vpack.c.bf16 %v3156_v56, %v3155_v33  ;;  %12200 = vst [vmem:[#allocation106_spill] sm:$0xff] %v10092_v51  ;;  %v6150_v19 = vadd.f32 %v6149_v43, %v6148_v55  ;;  %v6246_v15 = vsel %vm5825_vm5, %v9023_v23, 0.0  ;;  %v6138_v7 = vadd.f32 %v6137_v13, %v6136_v12 }
 0x20c   : > { %v3247_v29 = vpack.c.bf16 %v3154_v37, %v3153_v27  ;;  %v8507_v39 = vpop.f32.mrb[72].mxu0  ;;  %v6192_v18 = vadd.f32 %v6191_v45, %v6190_v46  ;;  %v10106_v33 = vadd.f32 %v6104_v22, %v6103_v40  ;;  %v10108_v55 = vadd.f32 %v6097_v0, %v6096_v28 }
 0x20d   : > { %v2737_v53 = vadd.f32 %v8507_v39, %v9726_v44  ;;  %v2728_v31 = vpop.f32.mrb[73].mxu0  ;;  %v6198_v56 = vrot.slane %v6197_v10, 4  ;;  %v10111_v27 = vadd.f32 %v6132_v6, %v6131_v24  ;;  %v6247_v37 = vrot.slane %v6246_v15, 4 }
 0x20e   : > { %v2729_v57 = vadd.f32 %v2728_v31, %v9729_v50  ;;  %v8508_v49 = vpop.f32.mrb[74].mxu0  ;;  %8633 = vmatprep.mubr.msk.bf16.mxu1 %vm3295_vm10, %v3247_v29  ;;  %12201 = vst [vmem:[#allocation107_spill] sm:$0xff] %v10106_v33  ;;  %12202 = vst [vmem:[#allocation108_spill] sm:$0xff] %v10108_v55  ;;  %v6146_v46 = vrot.slane %v6145_v1, 1  ;;  %v6139_v40 = vrot.slane %v6138_v7, 1  ;;  %v6193_v45 = vrot.slane %v6192_v18, 2 }
 0x20f   : > { %v3031_v30 = vadd.f32 %v10075_v25, %v2737_v53  ;;  %v2740_v44 = vadd.f32 %v8508_v49, %v9731_v60  ;;  %v2731_v32 = vpop.f32.mrb[75].mxu0  ;;  %8634 = vmatmul.mubr.msk.bf16.gmra.mrb[124].mxu1 %vm3295_vm10, %v3248_v42  ;;  %12203 = vst [vmem:[#allocation109_spill] sm:$0xff] %v10111_v27  ;;  %v9024_v60 = vld [vmem:[%s9216_s13 + $0x178] sm:$0xff]  ;;  %v6151_v42 = vrot.slane %v6150_v19, 2  ;;  %v6199_v22 = vadd.f32 %v6198_v56, %v6197_v10 }
 0x210   : > { %v3029_v48 = vadd.f32 %v10075_v25, %v2729_v57  ;;  %v2732_v50 = vadd.f32 %v2731_v32, %v9733_v62  ;;  %v6155_v43 = vsel %vm5825_vm5, %v9024_v60, 0.0  ;;  %v6248_v6 = vadd.f32 %v6247_v37, %v6246_v15 }
 0x211   : > { %v3032_v14 = vadd.f32 %v10075_v25, %v2740_v44  ;;  %v3159_v13 = vmax.f32 %v3031_v30, 0.0  ;;  %v6156_v0 = vrot.slane %v6155_v43, 4  ;;  %v6253_v57 = vsel %vm5825_vm5, %v9025_v47, 0.0 }
 0x212   : > { %v3030_v12 = vadd.f32 %v10075_v25, %v2732_v50  ;;  %v3157_v28 = vmax.f32 %v3029_v48, 0.0  ;;  %v10120_v44 = vadd.f32 %v6146_v46, %v6145_v1  ;;  %v6152_v32 = vadd.f32 %v6151_v42, %v6150_v19  ;;  %v9027_v1 = vld [vmem:[%s9216_s13 + $0x1b0] sm:$0xff] }
 0x213   : > { %v3160_v62 = vmax.f32 %v3032_v14, 0.0  ;;  %v6194_v56 = vadd.f32 %v6193_v45, %v6192_v18  ;;  %v6254_v60 = vrot.slane %v6253_v57, 4  ;;  %v6204_v19 = vsel %vm5825_vm5, %v9027_v1, 0.0 }
 0x214   : > { %v3158_v29 = vmax.f32 %v3030_v12, 0.0  ;;  %v8511_v39 = vpop.f32.mrb[76].mxu0  ;;  %12204 = vst [vmem:[#allocation110_spill] sm:$0xff] %v10120_v44  ;;  %v6200_v18 = vrot.slane %v6199_v22, 2  ;;  %v6249_v46 = vrot.slane %v6248_v6, 2 }
 0x215   : > { %v3250_v24 = vpack.c.bf16 %v3160_v62, %v3159_v13  ;;  %v2753_v53 = vadd.f32 %v8511_v39, %v9738_v4  ;;  %v2744_v31 = vpop.f32.mrb[77].mxu0  ;;  %v9026_v4 = vld [vmem:[%s9216_s13 + $0x1f0] sm:$0xff]  ;;  %v6153_v13 = vrot.slane %v6152_v32, 1 }
 0x216   : > { %v3249_v49 = vpack.c.bf16 %v3158_v29, %v3157_v28  ;;  %v2745_v23 = vadd.f32 %v2744_v31, %v9741_v5  ;;  %v8512_v30 = vpop.f32.mrb[78].mxu0  ;;  %v6260_v15 = vsel %vm5825_vm5, %v9026_v4, 0.0  ;;  %v6157_v5 = vadd.f32 %v6156_v0, %v6155_v43 }
 0x217   : > { %v3035_v10 = vadd.f32 %v10075_v25, %v2753_v53  ;;  %v2756_v48 = vadd.f32 %v8512_v30, %v9743_v16  ;;  %v2747_v50 = vpop.f32.mrb[79].mxu0  ;;  %v10133_v16 = vadd.f32 %v6139_v40, %v6138_v7  ;;  %v6261_v62 = vrot.slane %v6260_v15, 4 }
 0x218   : > { %v3033_v14 = vadd.f32 %v10075_v25, %v2745_v23  ;;  %v2748_v37 = vadd.f32 %v2747_v50, %v9745_v17  ;;  %8637 = vmatprep.mubr.msk.bf16.mxu1 %vm3295_vm10, %v3249_v49  ;;  %v6195_v28 = vrot.slane %v6194_v56, 1  ;;  %v6205_v43 = vrot.slane %v6204_v19, 4  ;;  %v9028_v50 = vld [vmem:[%s9216_s13 + $0x1f8] sm:$0xff] }
 0x219   : > { %v3036_v12 = vadd.f32 %v10075_v25, %v2756_v48  ;;  %8638 = vmatmul.mubr.msk.bf16.gmra.mrb[128].mxu1 %vm3295_vm10, %v3250_v24  ;;  %12205 = vst [vmem:[#allocation111_spill] sm:$0xff] %v10133_v16  ;;  %v3163_v17 = vmax.f32 %v3035_v10, 0.0  ;;  %v6158_v53 = vrot.slane %v6157_v5, 2  ;;  %v6255_v31 = vadd.f32 %v6254_v60, %v6253_v57 }
 0x21a   : > { %v3034_v42 = vadd.f32 %v10075_v25, %v2748_v37  ;;  %v3161_v29 = vmax.f32 %v3033_v14, 0.0  ;;  %v6201_v24 = vadd.f32 %v6200_v18, %v6199_v22  ;;  %v6250_v49 = vadd.f32 %v6249_v46, %v6248_v6 }
 0x21b   : > { %v3164_v45 = vmax.f32 %v3036_v12, 0.0  ;;  %v6262_v48 = vadd.f32 %v6261_v62, %v6260_v15  ;;  %v6267_v4 = vsel %vm5825_vm5, %v9028_v50, 0.0  ;;  %v10142_v60 = vadd.f32 %v6153_v13, %v6152_v32  ;;  %v9029_v15 = vld [vmem:[%s9216_s13 + $0x1b8] sm:$0xff] }
 0x21c   : > { %v3162_v39 = vmax.f32 %v3034_v42, 0.0  ;;  %v8515_v0 = vpop.f32.mrb[80].mxu0  ;;  %v6256_v1 = vrot.slane %v6255_v31, 2  ;;  %v6211_v12 = vsel %vm5825_vm5, %v9029_v15, 0.0  ;;  %v6202_v32 = vrot.slane %v6201_v24, 1 }
 0x21d   : > { %v3252_v47 = vpack.c.bf16 %v3164_v45, %v3163_v17  ;;  %v2769_v7 = vadd.f32 %v8515_v0, %v9750_v26  ;;  %v2760_v40 = vpop.f32.mrb[81].mxu0  ;;  %12206 = vst [vmem:[#allocation112_spill] sm:$0xff] %v10142_v60  ;;  %v6206_v26 = vadd.f32 %v6205_v43, %v6204_v19  ;;  %v6268_v46 = vrot.slane %v6267_v4, 4 }
 0x21e   : > { %v3251_v23 = vpack.c.bf16 %v3162_v39, %v3161_v29  ;;  %v2761_v30 = vadd.f32 %v2760_v40, %v9758_v35  ;;  %v8516_v10 = vpop.f32.mrb[82].mxu0  ;;  %v6159_v35 = vadd.f32 %v6158_v53, %v6157_v5  ;;  %v6251_v42 = vrot.slane %v6250_v49, 1 }
 0x21f   : > { %v3039_v14 = vadd.f32 %v10075_v25, %v2769_v7  ;;  %v2772_v37 = vadd.f32 %v8516_v10, %v9760_v36  ;;  %v2763_v57 = vpop.f32.mrb[83].mxu0  ;;  %v10151_v36 = vadd.f32 %v6195_v28, %v6194_v56  ;;  %v6207_v5 = vrot.slane %v6206_v26, 2  ;;  %v9030_v7 = vld [vmem:[%s9216_s13 + $0x260] sm:$0xff] }
 0x220   : > { %v3037_v22 = vadd.f32 %v10075_v25, %v2761_v30  ;;  %v2764_v6 = vadd.f32 %v2763_v57, %v9762_v41  ;;  %8641 = vmatprep.mubr.msk.bf16.mxu1 %vm3295_vm10, %v3251_v23  ;;  %v6263_v41 = vrot.slane %v6262_v48, 2  ;;  %v6212_v17 = vrot.slane %v6211_v12, 4 }
 0x221   : > { %v3040_v18 = vadd.f32 %v10075_v25, %v2772_v37  ;;  %8642 = vmatmul.mubr.msk.bf16.gmra.mrb[132].mxu1 %vm3295_vm10, %v3252_v47  ;;  %12207 = vst [vmem:[#allocation113_spill] sm:$0xff] %v10151_v36  ;;  %v3167_v13 = vmax.f32 %v3039_v14, 0.0  ;;  %v6160_v39 = vrot.slane %v6159_v35, 1  ;;  %v6257_v0 = vadd.f32 %v6256_v1, %v6255_v31  ;;  %v9031_v14 = vld [vmem:[%s9216_s13 + $0x220] sm:$0xff] }
 0x222   : > { %v3038_v19 = vadd.f32 %v10075_v25, %v2764_v6  ;;  %v3165_v45 = vmax.f32 %v3037_v22, 0.0  ;;  %v6269_v47 = vadd.f32 %v6268_v46, %v6267_v4  ;;  %v6358_v40 = vsel %vm5825_vm5, %v9030_v7, 0.0 }
 0x223   : > { %v3168_v62 = vmax.f32 %v3040_v18, 0.0  ;;  %v6264_v50 = vadd.f32 %v6263_v41, %v6262_v48  ;;  %v6302_v37 = vsel %vm5825_vm5, %v9031_v14, 0.0  ;;  %v6208_v6 = vadd.f32 %v6207_v5, %v6206_v26 }
 0x224   : > { %v3166_v43 = vmax.f32 %v3038_v19, 0.0  ;;  %v8519_v29 = vpop.f32.mrb[84].mxu0  ;;  %v10165_v15 = vadd.f32 %v6202_v32, %v6201_v24  ;;  %v6359_v48 = vrot.slane %v6358_v40, 4  ;;  %v6270_v26 = vrot.slane %v6269_v47, 2 }
 0x225   : > { %v3254_v53 = vpack.c.bf16 %v3168_v62, %v3167_v13  ;;  %v2785_v56 = vadd.f32 %v8519_v29, %v9771_v54  ;;  %v2776_v28 = vpop.f32.mrb[85].mxu0  ;;  %v6213_v54 = vadd.f32 %v6212_v17, %v6211_v12  ;;  %v6303_v12 = vrot.slane %v6302_v37, 4  ;;  %v9032_v17 = vld [vmem:[%s9216_s13 + $0x228] sm:$0xff] }
 0x226   : > { %v3253_v23 = vpack.c.bf16 %v3166_v43, %v3165_v45  ;;  %v2777_v30 = vadd.f32 %v2776_v28, %v9774_v2  ;;  %v8520_v10 = vpop.f32.mrb[86].mxu0  ;;  %12208 = vst [vmem:[#allocation114_spill] sm:$0xff] %v10165_v15  ;;  %v10167_v2 = vadd.f32 %v6251_v42, %v6250_v49  ;;  %v6258_v19 = vrot.slane %v6257_v0, 1 }
 0x227   : > { %v3043_v57 = vadd.f32 %v10075_v25, %v2785_v56  ;;  %v2788_v31 = vadd.f32 %v8520_v10, %v9776_v52  ;;  %v2779_v22 = vpop.f32.mrb[87].mxu0  ;;  %v10171_v52 = vadd.f32 %v6160_v39, %v6159_v35  ;;  %v6209_v24 = vrot.slane %v6208_v6, 1 }
 0x228   : > { %v3041_v4 = vadd.f32 %v10075_v25, %v2777_v30  ;;  %v2780_v1 = vadd.f32 %v2779_v22, %v9778_v63  ;;  %8645 = vmatprep.mubr.msk.bf16.mxu1 %vm3295_vm10, %v3253_v23  ;;  %12209 = vst [vmem:[#allocation115_spill] sm:$0xff] %v10167_v2  ;;  %v6265_v63 = vrot.slane %v6264_v50, 1  ;;  %v6214_v32 = vrot.slane %v6213_v54, 2 }
 0x229   : > { %v3044_v18 = vadd.f32 %v10075_v25, %v2788_v31  ;;  %8646 = vmatmul.mubr.msk.bf16.gmra.mrb[136].mxu1 %vm3295_vm10, %v3254_v53  ;;  %12210 = vst [vmem:[#allocation116_spill] sm:$0xff] %v10171_v52  ;;  %v3171_v41 = vmax.f32 %v3043_v57, 0.0  ;;  %v6360_v5 = vadd.f32 %v6359_v48, %v6358_v40  ;;  %v6309_v45 = vsel %vm5825_vm5, %v9032_v17, 0.0  ;;  %v9033_v57 = vld [vmem:[%s9216_s13 + $0x268] sm:$0xff] }
 0x22a   : > { %v3042_v46 = vadd.f32 %v10075_v25, %v2780_v1  ;;  %v3169_v49 = vmax.f32 %v3041_v4, 0.0  ;;  %v6271_v39 = vadd.f32 %v6270_v26, %v6269_v47  ;;  %v6304_v53 = vadd.f32 %v6303_v12, %v6302_v37  ;;  %v9035_v12 = vld [vmem:[%s9216_s13 + $0x2a0] sm:$0xff] }
 0x22b   : > { %v3172_v13 = vmax.f32 %v3044_v18, 0.0  ;;  %v10178_v23 = vadd.f32 %v6258_v19, %v6257_v0  ;;  %v10180_v30 = vadd.f32 %v6265_v63, %v6264_v50  ;;  %v6310_v47 = vrot.slane %v6309_v45, 4  ;;  %v9034_v50 = vld [vmem:[%s9216_s13 + $0x2e0] sm:$0xff] }
 0x22c   : > { %v3170_v42 = vmax.f32 %v3042_v46, 0.0  ;;  %v8523_v62 = vpop.f32.mrb[88].mxu0  ;;  %v6361_v0 = vrot.slane %v6360_v5, 2  ;;  %v6470_v22 = vsel %vm5825_vm5, %v9034_v50, 0.0  ;;  %v6272_v1 = vrot.slane %v6271_v39, 1 }
 0x22d   : > { %v3256_v35 = vpack.c.bf16 %v3172_v13, %v3171_v41  ;;  %v2801_v43 = vadd.f32 %v8523_v62, %v9789_v3  ;;  %v2792_v29 = vpop.f32.mrb[89].mxu0  ;;  %12211 = vst [vmem:[#allocation117_spill] sm:$0xff] %v10178_v23  ;;  %12212 = vst [vmem:[#allocation118_spill] sm:$0xff] %v10180_v30  ;;  %v6365_v3 = vsel %vm5825_vm5, %v9033_v57, 0.0  ;;  %v6305_v48 = vrot.slane %v6304_v53, 2 }
 0x22e   : > { %v3255_v56 = vpack.c.bf16 %v3170_v42, %v3169_v49  ;;  %v2793_v28 = vadd.f32 %v2792_v29, %v9792_v38  ;;  %v8524_v7 = vpop.f32.mrb[90].mxu0  ;;  %v6215_v38 = vadd.f32 %v6214_v32, %v6213_v54  ;;  %v6366_v26 = vrot.slane %v6365_v3, 4  ;;  %v12215_v29 = vld [vmem:[#allocation49_spill] sm:$0xff] }
 0x22f   : > { %v3047_v40 = vadd.f32 %v10075_v25, %v2801_v43  ;;  %v2804_v10 = vadd.f32 %v8524_v7, %v9794_v11  ;;  %v2795_v14 = vpop.f32.mrb[91].mxu0  ;;  %v10193_v11 = vadd.f32 %v6209_v24, %v6208_v6  ;;  %v6311_v19 = vadd.f32 %v6310_v47, %v6309_v45  ;;  %v9036_v45 = vld [vmem:[%s9216_s13 + $0x270] sm:$0xff] }
 0x230   : > { %v3045_v37 = vadd.f32 %v10075_v25, %v2793_v28  ;;  %v2796_v31 = vadd.f32 %v2795_v14, %v9796_v9  ;;  %8649 = vmatprep.mubr.msk.bf16.mxu1 %vm3295_vm10, %v3255_v56  ;;  %v6414_v9 = vsel %vm5825_vm5, %v9035_v12, 0.0  ;;  %v6471_v63 = vrot.slane %v6470_v22, 4  ;;  %v12216_v14 = vld [vmem:[#allocation50_spill] sm:$0xff] }
 0x231   : > { %v3048_v4 = vadd.f32 %v10075_v25, %v2804_v10  ;;  %8650 = vmatmul.mubr.msk.bf16.gmra.mrb[140].mxu1 %vm3295_vm10, %v3256_v35  ;;  %12213 = vst [vmem:[#allocation119_spill] sm:$0xff] %v10193_v11  ;;  %v3175_v46 = vmax.f32 %v3047_v40, 0.0  ;;  %v6216_v49 = vrot.slane %v6215_v38, 1  ;;  %v6362_v42 = vadd.f32 %v6361_v0, %v6360_v5 }
 0x232   : > { %v3046_v18 = vadd.f32 %v10075_v25, %v2796_v31  ;;  %v3173_v41 = vmax.f32 %v3045_v37, 0.0  ;;  %v10199_v17 = vadd.f32 %v6305_v48, %v6304_v53  ;;  %v6415_v35 = vrot.slane %v6414_v9, 4  ;;  %v12217_v37 = vld [vmem:[#allocation51_spill] sm:$0xff] }
 0x233   : > { %v3176_v54 = vmax.f32 %v3048_v4, 0.0  ;;  %v6367_v7 = vadd.f32 %v6366_v26, %v6365_v3  ;;  %v6372_v40 = vsel %vm5825_vm5, %v9036_v45, 0.0  ;;  %v6312_v47 = vrot.slane %v6311_v19, 2  ;;  %v9037_v26 = vld [vmem:[%s9216_s13 + $0x230] sm:$0xff] }
 0x234   : > { %v3174_v13 = vmax.f32 %v3046_v18, 0.0  ;;  %v8527_v32 = vpop.f32.mrb[92].mxu0  ;;  %12214 = vst [vmem:[#allocation120_spill] sm:$0xff] %v10199_v17  ;;  %v10209_v0 = vadd.f32 %v6272_v1, %v6271_v39  ;;  %v10211_v3 = vadd.f32 %v6216_v49, %v6215_v38  ;;  %v6363_v50 = vrot.slane %v6362_v42, 1  ;;  %v12222_v45 = vld [vmem:[#allocation53_spill] sm:$0xff] }
 0x235   : > { %v3258_v6 = vpack.c.bf16 %v3176_v54, %v3175_v46  ;;  %v2817_v24 = vadd.f32 %v8527_v32, %v9807_v20  ;;  %v2808_v62 = vpop.f32.mrb[93].mxu0  ;;  %v6472_v20 = vadd.f32 %v6471_v63, %v6470_v22  ;;  %v6416_v48 = vadd.f32 %v6415_v35, %v6414_v9 }
 0x236   : > { %v3257_v43 = vpack.c.bf16 %v3174_v13, %v3173_v41  ;;  %v2809_v56 = vadd.f32 %v2808_v62, %v12215_v29  ;;  %v8528_v28 = vpop.f32.mrb[94].mxu0  ;;  %12218 = vst [vmem:[#allocation49_spill] sm:$0xff] %v10209_v0  ;;  %12219 = vst [vmem:[#allocation50_spill] sm:$0xff] %v10211_v3  ;;  %v6373_v18 = vrot.slane %v6372_v40, 4  ;;  %v6316_v22 = vsel %vm5825_vm5, %v9037_v26, 0.0  ;;  %v12221_v62 = vld [vmem:[#allocation52_spill] sm:$0xff] }
 0x237   : > { %v3051_v10 = vadd.f32 %v10075_v25, %v2817_v24  ;;  %v2820_v5 = vadd.f32 %v8528_v28, %v12216_v14  ;;  %v2811_v57 = vpop.f32.mrb[95].mxu0  ;;  %v6368_v54 = vrot.slane %v6367_v7, 2  ;;  %v10219_v38 = vadd.f32 %v6312_v47, %v6311_v19  ;;  %v12225_v47 = vld [vmem:[#allocation54_spill] sm:$0xff] }
 0x238   : > { %v3049_v53 = vadd.f32 %v10075_v25, %v2809_v56  ;;  %v2812_v31 = vadd.f32 %v2811_v57, %v12217_v37  ;;  %8653 = vmatprep.mubr.msk.bf16.mxu1 %vm3295_vm10, %v3257_v43  ;;  %v6473_v63 = vrot.slane %v6472_v20, 2  ;;  %v6317_v49 = vrot.slane %v6316_v22, 4 }
 0x239   : > { %v3052_v4 = vadd.f32 %v10075_v25, %v2820_v5  ;;  %8654 = vmatmul.mubr.msk.bf16.gmra.mrb[144].mxu1 %vm3295_vm10, %v3258_v6  ;;  %v3179_v39 = vmax.f32 %v3051_v10, 0.0  ;;  %12220 = vst [vmem:[#allocation51_spill] sm:$0xff] %v10219_v38  ;;  %v9038_v6 = vld [vmem:[%s9216_s13 + $0x2a8] sm:$0xff]  ;;  %v6417_v29 = vrot.slane %v6416_v48, 2  ;;  %v6374_v56 = vadd.f32 %v6373_v18, %v6372_v40 }
 0x23a   : > { %v3050_v12 = vadd.f32 %v10075_v25, %v2812_v31  ;;  %v3177_v41 = vmax.f32 %v3049_v53, 0.0  ;;  %v6421_v9 = vsel %vm5825_vm5, %v9038_v6, 0.0  ;;  %v10225_v14 = vadd.f32 %v6363_v50, %v6362_v42  ;;  %v12226_v18 = vld [vmem:[#allocation55_spill] sm:$0xff]  ;;  %v9039_v50 = vld [vmem:[%s9216_s13 + $0x2b0] sm:$0xff]  ;;  %v9041_v6 = vld [vmem:[%s9216_s13 + $0x278] sm:$0xff] }
 0x23b   : > { %v3180_v1 = vmax.f32 %v3052_v4, 0.0  ;;  %v10227_v5 = vadd.f32 %v6368_v54, %v6367_v7  ;;  %v6422_v4 = vrot.slane %v6421_v9, 4  ;;  %v10235_v42 = vadd.f32 %v6473_v63, %v6472_v20 }
 0x23c   : > { %v3178_v13 = vmax.f32 %v3050_v12, 0.0  ;;  %v8531_v32 = vpop.f32.mrb[96].mxu0  ;;  %12223 = vst [vmem:[#allocation52_spill] sm:$0xff] %v10225_v14  ;;  %v6318_v7 = vadd.f32 %v6317_v49, %v6316_v22  ;;  %v6428_v12 = vsel %vm5825_vm5, %v9039_v50, 0.0  ;;  %v6379_v20 = vsel %vm5825_vm5, %v9041_v6, 0.0  ;;  %v9042_v22 = vld [vmem:[%s9216_s13 + $0x238] sm:$0xff] }
 0x23d   : > { %v3260_v24 = vpack.c.bf16 %v3180_v1, %v3179_v39  ;;  %v2833_v35 = vadd.f32 %v8531_v32, %v12221_v62  ;;  %v2824_v43 = vpop.f32.mrb[97].mxu0  ;;  %12224 = vst [vmem:[#allocation53_spill] sm:$0xff] %v10227_v5  ;;  %12227 = vst [vmem:[#allocation54_spill] sm:$0xff] %v10235_v42  ;;  %v10241_v39 = vadd.f32 %v6417_v29, %v6416_v48  ;;  %v6375_v1 = vrot.slane %v6374_v56, 2  ;;  %v12238_v14 = vld [vmem:[#allocation61_spill] sm:$0xff] }
 0x23e   : > { %v3259_v28 = vpack.c.bf16 %v3178_v13, %v3177_v41  ;;  %v2825_v10 = vadd.f32 %v2824_v43, %v12222_v45  ;;  %v8532_v19 = vpop.f32.mrb[98].mxu0  ;;  %v9040_v41 = vld [vmem:[%s9216_s13 + $0x2e8] sm:$0xff]  ;;  %v6323_v63 = vsel %vm5825_vm5, %v9042_v22, 0.0  ;;  %v6429_v43 = vrot.slane %v6428_v12, 4 }
 0x23f   : > { %v3055_v57 = vadd.f32 %v10075_v25, %v2833_v35  ;;  %v2836_v53 = vadd.f32 %v8532_v19, %v12225_v47  ;;  %v2827_v37 = vpop.f32.mrb[99].mxu0  ;;  %v6477_v13 = vsel %vm5825_vm5, %v9040_v41, 0.0  ;;  %v6423_v35 = vadd.f32 %v6422_v4, %v6421_v9  ;;  %v12228_v19 = vld [vmem:[#allocation56_spill] sm:$0xff]  ;;  %v12229_v41 = vld [vmem:[#allocation57_spill] sm:$0xff] }
 0x240   : > { %v3053_v40 = vadd.f32 %v10075_v25, %v2825_v10  ;;  %v2828_v26 = vadd.f32 %v2827_v37, %v12226_v18  ;;  %8657 = vmatprep.mubr.msk.bf16.mxu1 %vm3295_vm10, %v3259_v28  ;;  %v6319_v28 = vrot.slane %v6318_v7, 2  ;;  %v6478_v45 = vrot.slane %v6477_v13, 4  ;;  %v9043_v18 = vld [vmem:[%s9216_s13 + $0x2b8] sm:$0xff] }
 0x241   : > { %v3056_v54 = vadd.f32 %v10075_v25, %v2836_v53  ;;  %8658 = vmatmul.mubr.msk.bf16.gmra.mrb[148].mxu1 %vm3295_vm10, %v3260_v24  ;;  %v3183_v49 = vmax.f32 %v3055_v57, 0.0  ;;  %v6380_v37 = vrot.slane %v6379_v20, 4  ;;  %v6324_v9 = vrot.slane %v6323_v63, 4 }
 0x242   : > { %v3054_v32 = vadd.f32 %v10075_v25, %v2828_v26  ;;  %v3181_v24 = vmax.f32 %v3053_v40, 0.0  ;;  %v6435_v26 = vsel %vm5825_vm5, %v9043_v18, 0.0  ;;  %v12231_v40 = vld [vmem:[#allocation58_spill] sm:$0xff] }
 0x243   : > { %v3184_v62 = vmax.f32 %v3056_v54, 0.0  ;;  %v10254_v54 = vadd.f32 %v6375_v1, %v6374_v56  ;;  %v10262_v56 = vadd.f32 %v6319_v28, %v6318_v7  ;;  %v6436_v1 = vrot.slane %v6435_v26, 4 }
 0x244   : > { %v3182_v48 = vmax.f32 %v3054_v32, 0.0  ;;  %v8535_v29 = vpop.f32.mrb[100].mxu0 }
 0x245   : > { %v3262_v10 = vpack.c.bf16 %v3184_v62, %v3183_v49  ;;  %v2849_v47 = vadd.f32 %v8535_v29, %v12228_v19  ;;  %v2840_v53 = vpop.f32.mrb[101].mxu0  ;;  %12230 = vst [vmem:[#allocation55_spill] sm:$0xff] %v10254_v54  ;;  %v6424_v49 = vrot.slane %v6423_v35, 2  ;;  %v6430_v62 = vadd.f32 %v6429_v43, %v6428_v12  ;;  %v12232_v19 = vld [vmem:[#allocation59_spill] sm:$0xff]  ;;  %12233 = vst [vmem:[#allocation56_spill] sm:$0xff] %v10262_v56  ;;  %v9044_v12 = vld [vmem:[%s9216_s13 + $0x2f0] sm:$0xff] }
 0x246   : > { %v3261_v50 = vpack.c.bf16 %v3182_v48, %v3181_v24  ;;  %v2841_v6 = vadd.f32 %v2840_v53, %v12229_v41  ;;  %v8536_v57 = vpop.f32.mrb[102].mxu0  ;;  %v6419_v24 = vrot.slane %v10241_v39, 1  ;;  %v10268_v53 = vadd.f32 %v6380_v37, %v6379_v20 }
 0x247   : > { %v3059_v4 = vadd.f32 %v10075_v25, %v2849_v47  ;;  %v2852_v32 = vadd.f32 %v8536_v57, %v12231_v40  ;;  %v2843_v22 = vpop.f32.mrb[103].mxu0  ;;  %v10266_v47 = vadd.f32 %v6478_v45, %v6477_v13  ;;  %v6484_v43 = vsel %vm5825_vm5, %v9044_v12, 0.0 }
 0x248   : > { %v3057_v29 = vadd.f32 %v10075_v25, %v2841_v6  ;;  %v2844_v18 = vadd.f32 %v2843_v22, %v12232_v19  ;;  %8661 = vmatprep.mubr.msk.bf16.mxu1 %vm3295_vm10, %v3261_v50  ;;  %12235 = vst [vmem:[#allocation58_spill] sm:$0xff] %v10268_v53  ;;  %v10273_v6 = vadd.f32 %v6324_v9, %v6323_v63  ;;  %v9045_v50 = vld [vmem:[%s9216_s13 + $0x2f8] sm:$0xff]  ;;  %v6485_v20 = vrot.slane %v6484_v43, 4  ;;  %v12237_v19 = vld [vmem:[#allocation60_spill] sm:$0xff] }
 0x249   : > { %v3060_v48 = vadd.f32 %v10075_v25, %v2852_v32  ;;  %8662 = vmatmul.mubr.msk.bf16.gmra.mrb[152].mxu1 %vm3295_vm10, %v3262_v10  ;;  %12234 = vst [vmem:[#allocation57_spill] sm:$0xff] %v10266_v47  ;;  %v6491_v7 = vsel %vm5825_vm5, %v9045_v50, 0.0  ;;  %v3187_v28 = vmax.f32 %v3059_v4, 0.0  ;;  %v6425_v40 = vadd.f32 %v6424_v49, %v6423_v35  ;;  %v9046_v63 = vld [vmem:[%s9216_s13 + $0x398] sm:$0xff] }
 0x24a   : > { %v3058_v41 = vadd.f32 %v10075_v25, %v2844_v18  ;;  %12236 = vst [vmem:[#allocation59_spill] sm:$0xff] %v10273_v6  ;;  %v6431_v32 = vrot.slane %v6430_v62, 2  ;;  %v3185_v10 = vmax.f32 %v3057_v29, 0.0  ;;  %v6437_v37 = vadd.f32 %v6436_v1, %v6435_v26  ;;  %v12240_v26 = vld [vmem:[#allocation62_spill] sm:$0xff] }
 0x24b   : > { %v3188_v57 = vmax.f32 %v3060_v48, 0.0  ;;  %v6492_v18 = vrot.slane %v6491_v7, 4  ;;  %v6631_v9 = vsel %vm5825_vm5, %v9046_v63, 0.0  ;;  %v10282_v35 = vadd.f32 %v6419_v24, %v10241_v39 }
 0x24c   : > { %v3186_v13 = vmax.f32 %v3058_v41, 0.0  ;;  %v8539_v45 = vpop.f32.mrb[104].mxu0  ;;  %v6438_v39 = vrot.slane %v6437_v37, 2  ;;  %v6632_v24 = vrot.slane %v6631_v9, 4 }
 0x24d   : > { %v3264_v22 = vpack.c.bf16 %v3188_v57, %v3187_v28  ;;  %v2865_v12 = vadd.f32 %v8539_v45, %v12237_v19  ;;  %v2856_v31 = vpop.f32.mrb[105].mxu0  ;;  %12239 = vst [vmem:[#allocation60_spill] sm:$0xff] %v10282_v35  ;;  %v6432_v28 = vadd.f32 %v6431_v32, %v6430_v62  ;;  %v6426_v45 = vrot.slane %v6425_v40, 1  ;;  %v9047_v32 = vld [vmem:[%s9216_s13 + $0x3a0] sm:$0xff] }
 0x24e   : > { %v3263_v46 = vpack.c.bf16 %v3186_v13, %v3185_v10  ;;  %v2857_v50 = vadd.f32 %v2856_v31, %v12238_v14  ;;  %v8540_v4 = vpop.f32.mrb[106].mxu0  ;;  %v12241_v10 = vld [vmem:[#allocation63_spill] sm:$0xff]  ;;  %v10294_v19 = vadd.f32 %v6485_v20, %v6484_v43  ;;  %v6638_v63 = vsel %vm5825_vm5, %v9047_v32, 0.0  ;;  %v12270_v35 = vld [vmem:[#allocation74_spill] sm:$0xff] }
 0x24f   : > { %v3063_v29 = vadd.f32 %v10075_v25, %v2865_v12  ;;  %v2868_v1 = vadd.f32 %v8540_v4, %v12240_v26  ;;  %v2859_v48 = vpop.f32.mrb[107].mxu0  ;;  %v10296_v12 = vadd.f32 %v6492_v18, %v6491_v7  ;;  %v10305_v20 = vadd.f32 %v6438_v39, %v6437_v37  ;;  %v12249_v37 = vld [vmem:[#allocation66_spill] sm:$0xff] }
 0x250   : > { %v3061_v57 = vadd.f32 %v10075_v25, %v2857_v50  ;;  %v2860_v14 = vadd.f32 %v2859_v48, %v12241_v10  ;;  %8665 = vmatprep.mubr.msk.bf16.mxu1 %vm3295_vm10, %v3263_v46  ;;  %12242 = vst [vmem:[#allocation61_spill] sm:$0xff] %v10294_v19  ;;  %v9048_v46 = vld [vmem:[%s9216_s13 + $0x3a8] sm:$0xff]  ;;  %v6433_v48 = vrot.slane %v6432_v28, 1  ;;  %v9049_v10 = vld [vmem:[%s9216_s13 + $0x3b0] sm:$0xff]  ;;  %v10307_v7 = vadd.f32 %v6632_v24, %v6631_v9 }
 0x251   : > { %v3064_v13 = vadd.f32 %v10075_v25, %v2868_v1  ;;  %8666 = vmatmul.mubr.msk.bf16.gmra.mrb[156].mxu1 %vm3295_vm10, %v3264_v22  ;;  %12243 = vst [vmem:[#allocation62_spill] sm:$0xff] %v10296_v12  ;;  %v6645_v50 = vsel %vm5825_vm5, %v9048_v46, 0.0  ;;  %v3191_v4 = vmax.f32 %v3063_v29, 0.0  ;;  %v6652_v1 = vsel %vm5825_vm5, %v9049_v10, 0.0  ;;  %12244 = vst [vmem:[#allocation63_spill] sm:$0xff] %v10305_v20  ;;  %v12247_v29 = vld [vmem:[#allocation65_spill] sm:$0xff] }
 0x252   : > { %v3062_v62 = vadd.f32 %v10075_v25, %v2860_v14  ;;  %v3189_v22 = vmax.f32 %v3061_v57, 0.0  ;;  %12245 = vst [vmem:[#allocation121_spill] sm:$0xff] %v10307_v7  ;;  %v12246_v14 = vld [vmem:[#allocation64_spill] sm:$0xff]  ;;  %v6639_v49 = vrot.slane %v6638_v63, 4  ;;  %v6646_v38 = vrot.slane %v6645_v50, 4  ;;  %v12250_v10 = vld [vmem:[#allocation67_spill] sm:$0xff] }
 0x253   : > { %v3192_v26 = vmax.f32 %v3064_v13, 0.0  ;;  %v10311_v54 = vadd.f32 %v6426_v45, %v6425_v40  ;;  %v6653_v57 = vrot.slane %v6652_v1, 4  ;;  %v10323_v40 = vld [vmem:[%s12067_s7] ss:$0 sm:$0xff]  ;;  %v10325_v45 = vadd.f32 %v6433_v48, %v6432_v28 }
 0x254   : > { %v3190_v41 = vmax.f32 %v3062_v62, 0.0  ;;  %v8543_v43 = vpop.f32.mrb[108].mxu0 }
 0x255   : > { %v3266_v18 = vpack.c.bf16 %v3192_v26, %v3191_v4  ;;  %v2881_v31 = vadd.f32 %v8543_v43, %v12246_v14  ;;  %v2872_v32 = vpop.f32.mrb[109].mxu0  ;;  %12248 = vst [vmem:[#allocation64_spill] sm:$0xff] %v10311_v54  ;;  %12251 = vst [vmem:[#allocation65_spill] sm:$0xff] %v10325_v45  ;;  %v10340_v48 = vadd.f32 %v6653_v57, %v6652_v1  ;;  %v12255_v4 = vld [vmem:[#allocation68_spill] sm:$0xff] }
 0x256   : > { %v3265_v46 = vpack.c.bf16 %v3190_v41, %v3189_v22  ;;  %v2873_v13 = vadd.f32 %v2872_v32, %v12247_v29  ;;  %v8544_v17 = vpop.f32.mrb[110].mxu0  ;;  %v10335_v32 = vadd.f32 %v6639_v49, %v6638_v63 }
 0x257   : > { %v3067_v62 = vadd.f32 %v10075_v25, %v2881_v31  ;;  %v2884_v39 = vadd.f32 %v8544_v17, %v12249_v37  ;;  %v2875_v9 = vpop.f32.mrb[111].mxu0  ;;  %v9050_v31 = vld [vmem:[%s9216_s13 + $0x3b8] sm:$0xff]  ;;  %12254 = vst [vmem:[#allocation122_spill] sm:$0xff] %v10340_v48 }
 0x258   : > { %v3065_v26 = vadd.f32 %v10075_v25, %v2873_v13  ;;  %v2876_v41 = vadd.f32 %v2875_v9, %v12250_v10  ;;  %8669 = vmatprep.mubr.msk.bf16.mxu1 %vm3295_vm10, %v3265_v46  ;;  %v10330_v22 = vsel %vm5825_vm5, %v9050_v31, 0.0  ;;  %12252 = vst [vmem:[#allocation66_spill] sm:$0xff] %v10335_v32  ;;  %v10337_v46 = vadd.f32 %v6646_v38, %v6645_v50 }
 0x259   : > { %v3068_v43 = vadd.f32 %v10075_v25, %v2884_v39  ;;  %8670 = vmatmul.mubr.msk.bf16.gmra.mrb[160].mxu1 %vm3295_vm10, %v3266_v18  ;;  %v3195_v13 = vmax.f32 %v3067_v62, 0.0 }
 0x25a   : > { %12253 = vst [vmem:[#allocation67_spill] sm:$0xff] %v10337_v46  ;;  %v3066_v29 = vadd.f32 %v10075_v25, %v2876_v41  ;;  %v8567_v28 = vpop.f32.mrb[56].mxu1  ;;  %v3193_v31 = vmax.f32 %v3065_v26, 0.0 }
 0x25b   : > { %v3196_v37 = vmax.f32 %v3068_v43, 0.0  ;;  %v3531_v9 = vadd.f32 %v8567_v28, %v10323_v40  ;;  %v3522_v10 = vpop.f32.mrb[57].mxu1  ;;  %v12256_v28 = vld [vmem:[#allocation69_spill] sm:$0xff] }
 0x25c   : > { %v3194_v18 = vmax.f32 %v3066_v29, 0.0  ;;  %v3523_v14 = vadd.f32 %v10323_v40, %v3522_v10  ;;  %v8547_v49 = vpop.f32.mrb[112].mxu0  ;;  %v8568_v63 = vpop.f32.mrb[58].mxu1  ;;  %v12257_v29 = vld [vmem:[#allocation13_spill] sm:$0xff] }
 0x25d   : > { %v3268_v38 = vpack.c.bf16 %v3196_v37, %v3195_v13  ;;  %v4035_v50 = vmax.f32 %v3531_v9, 0.0  ;;  %v2897_v41 = vadd.f32 %v8547_v49, %v12255_v4  ;;  %v3534_v1 = vadd.f32 %v8568_v63, %v10323_v40  ;;  %v2888_v57 = vpop.f32.mrb[113].mxu0  ;;  %v3525_v62 = vpop.f32.mrb[59].mxu1  ;;  %v12258_v13 = vld [vmem:[#allocation70_spill] sm:$0xff] }
 0x25e   : > { %v3267_v43 = vpack.c.bf16 %v3194_v18, %v3193_v31  ;;  %v4033_v24 = vmax.f32 %v3523_v14, 0.0  ;;  %v2889_v17 = vadd.f32 %v2888_v57, %v12256_v28  ;;  %v3526_v39 = vadd.f32 %v10323_v40, %v3525_v62  ;;  %v8548_v26 = vpop.f32.mrb[114].mxu0  ;;  %v12259_v4 = vld [vmem:[#allocation14_spill] sm:$0xff]  ;;  %v12260_v31 = vld [vmem:[#allocation71_spill] sm:$0xff] }
 0x25f   : > { %v4803_v56 = vmul.f32 %v12257_v29, %v4035_v50  ;;  %v3071_v10 = vadd.f32 %v10075_v25, %v2897_v41  ;;  %v4036_v5 = vmax.f32 %v3534_v1, 0.0  ;;  %v2900_v37 = vadd.f32 %v8548_v26, %v12258_v13  ;;  %v2891_v9 = vpop.f32.mrb[115].mxu0  ;;  %v12261_v62 = vld [vmem:[#allocation15_spill] sm:$0xff]  ;;  %v12262_v26 = vld [vmem:[#allocation16_spill] sm:$0xff] }
 0x260   : > { %v4801_v49 = vmul.f32 %v12259_v4, %v4033_v24  ;;  %v3069_v63 = vadd.f32 %v10075_v25, %v2889_v17  ;;  %v4034_v53 = vmax.f32 %v3526_v39, 0.0  ;;  %v2892_v14 = vadd.f32 %v2891_v9, %v12260_v31  ;;  %8673 = vmatprep.mubr.msk.bf16.mxu1 %vm3295_vm10, %v3267_v43 }
 0x261   : > { %v4943_v18 = vsel %vm3295_vm10, %v4803_v56, 0.0  ;;  %v3199_v57 = vmax.f32 %v3071_v10, 0.0  ;;  %v4804_v50 = vmul.f32 %v12261_v62, %v4036_v5  ;;  %v3072_v41 = vadd.f32 %v10075_v25, %v2900_v37  ;;  %8674 = vmatmul.mubr.msk.bf16.gmra.mrb[164].mxu1 %vm3295_vm10, %v3268_v38 }
 0x262   : > { %v4944_v1 = vrot.slane %v4943_v18, 4  ;;  %v4929_v28 = vsel %vm3295_vm10, %v4801_v49, 0.0  ;;  %v3197_v24 = vmax.f32 %v3069_v63, 0.0  ;;  %v4802_v17 = vmul.f32 %v12262_v26, %v4034_v53  ;;  %v8571_v39 = vpop.f32.mrb[60].mxu1 }
 0x263   : > { %v4930_v29 = vrot.slane %v4929_v28, 4  ;;  %v4950_v13 = vsel %vm3295_vm10, %v4804_v50, 0.0  ;;  %v3200_v43 = vmax.f32 %v3072_v41, 0.0  ;;  %v3070_v56 = vadd.f32 %v10075_v25, %v2892_v14  ;;  %v3538_v10 = vpop.f32.mrb[61].mxu1 }
 0x264   : > { %v4945_v9 = vadd.f32 %v4944_v1, %v4943_v18  ;;  %v4951_v5 = vrot.slane %v4950_v13, 4  ;;  %v4936_v37 = vsel %vm3295_vm10, %v4802_v17, 0.0  ;;  %v3547_v38 = vadd.f32 %v8571_v39, %v10323_v40  ;;  %v8551_v4 = vpop.f32.mrb[116].mxu0  ;;  %v8572_v31 = vpop.f32.mrb[62].mxu1  ;;  %v12263_v39 = vld [vmem:[#allocation72_spill] sm:$0xff] }
 0x265   : > { %v4931_v49 = vadd.f32 %v4930_v29, %v4929_v28  ;;  %v4937_v63 = vrot.slane %v4936_v37, 4  ;;  %v3270_v62 = vpack.c.bf16 %v3200_v43, %v3199_v57  ;;  %v3198_v53 = vmax.f32 %v3070_v56, 0.0  ;;  %v2904_v26 = vpop.f32.mrb[117].mxu0  ;;  %v10366_v42 = vpop.f32.mrb[63].mxu1  ;;  %v12264_v29 = vld [vmem:[#allocation22_spill] sm:$0xff] }
 0x266   : > { %v4946_v50 = vrot.slane %v4945_v9, 2  ;;  %v4952_v41 = vadd.f32 %v4951_v5, %v4950_v13  ;;  %v4039_v45 = vmax.f32 %v3547_v38, 0.0  ;;  %v3539_v14 = vadd.f32 %v10323_v40, %v3538_v10  ;;  %v10369_v18 = vpop.f32.mrb[118].mxu0 }
 0x267   : > { %v4932_v1 = vrot.slane %v4931_v49, 2  ;;  %v4938_v17 = vadd.f32 %v4937_v63, %v4936_v37  ;;  %v3269_v7 = vpack.c.bf16 %v3198_v53, %v3197_v24  ;;  %v2913_v12 = vadd.f32 %v8551_v4, %v12263_v39  ;;  %v10372_v54 = vpop.f32.mrb[119].mxu0 }
 0x268   : > { %v4947_v28 = vadd.f32 %v4946_v50, %v4945_v9  ;;  %v4953_v57 = vrot.slane %v4952_v41, 2  ;;  %v4807_v43 = vmul.f32 %v12264_v29, %v4039_v45  ;;  %v4037_v56 = vmax.f32 %v3539_v14, 0.0  ;;  %v12267_v9 = vld [vmem:[#allocation20_spill] sm:$0xff] }
 0x269   : > { %v12265_v13 = vrot.slane %v10330_v22, 4  ;;  %v4933_v10 = vadd.f32 %v4932_v1, %v4931_v49  ;;  %v4939_v38 = vrot.slane %v4938_v17, 2  ;;  %v3550_v48 = vadd.f32 %v8572_v31, %v10323_v40  ;;  %8677 = vmatprep.mubr.msk.bf16.mxu1 %vm3295_vm10, %v3269_v7 }
 0x26a   : > { %v4948_v24 = vrot.slane %v4947_v28, 1  ;;  %v4954_v37 = vadd.f32 %v4953_v57, %v4952_v41  ;;  %v4971_v4 = vsel %vm3295_vm10, %v4807_v43, 0.0  ;;  %v4805_v63 = vmul.f32 %v12267_v9, %v4037_v56  ;;  %8678 = vmatmul.mubr.msk.bf16.gmra.mrb[168].mxu1 %vm3295_vm10, %v3270_v62  ;;  %v8575_v45 = vpop.f32.mrb[64].mxu1 }
 0x26b   : > { %v10378_v5 = vadd.f32 %v12265_v13, %v10330_v22  ;;  %v4934_v53 = vrot.slane %v4933_v10, 1  ;;  %v4940_v50 = vadd.f32 %v4939_v38, %v4938_v17  ;;  %v4972_v14 = vrot.slane %v4971_v4, 4  ;;  %v10388_v49 = vpop.f32.mrb[65].mxu1  ;;  %v12268_v38 = vld [vmem:[#allocation21_spill] sm:$0xff] }
 0x26c   : > { %v10386_v22 = vadd.f32 %v10075_v25, %v2913_v12  ;;  %v4949_v31 = vadd.f32 %v4948_v24, %v4947_v28  ;;  %v4955_v1 = vrot.slane %v4954_v37, 1  ;;  %v4957_v7 = vsel %vm3295_vm10, %v4805_v63, 0.0  ;;  %v10391_v39 = vpop.f32.mrb[120].mxu0  ;;  %v10393_v57 = vpop.f32.mrb[66].mxu1  ;;  %v12269_v24 = vld [vmem:[#allocation73_spill] sm:$0xff] }
 0x26d   : > { %12266 = vst [vmem:[#allocation68_spill] sm:$0xff] %v10378_v5  ;;  %v4040_v41 = vmax.f32 %v3550_v48, 0.0  ;;  %v4935_v29 = vadd.f32 %v4934_v53, %v4933_v10  ;;  %v4941_v62 = vrot.slane %v4940_v50, 1  ;;  %v4973_v43 = vadd.f32 %v4972_v14, %v4971_v4  ;;  %v10395_v17 = vpop.f32.mrb[121].mxu0  ;;  %v10397_v13 = vpop.f32.mrb[67].mxu1  ;;  %v8990_v4 = vld [vmem:[%s12068_s8 + $0x8] sm:$0xff]  }
 0x26e   : > { %v4958_v56 = vrot.slane %v4957_v7, 4  ;;  %v6724_v25 = vpack.c.bf16 %v4949_v31, %v4949_v31  ;;  %v4956_v12 = vadd.f32 %v4955_v1, %v4954_v37  ;;  %v2905_v9 = vadd.f32 %v2904_v26, %v12269_v24  ;;  %v10401_v63 = vpop.f32.mrb[122].mxu0  ;;  %v10413_v26 = vld [vmem:[%s12065_s5] ss:$0 sm:$0xff]  ;;  %8695 = vmatprep.subr.bf16.mxu1 %v8990_v4 }
 0x26f   : > { %v4808_v28 = vmul.f32 %v12268_v38, %v4040_v41  ;;  %v6722_v48 = vpack.c.bf16 %v4935_v29, %v4935_v29  ;;  %v4942_v5 = vadd.f32 %v4941_v62, %v4940_v50  ;;  %v4974_v19 = vrot.slane %v4973_v43, 2  ;;  %v10403_v10 = vpop.f32.mrb[123].mxu0  ;;  %8696 = vmatpush3.bf16.msra.mxu1 %v8990_v4 }
 0x270   : > { %v4959_v6 = vadd.f32 %v4958_v56, %v4957_v7  ;;  %v7265_v53 = vunpack.c.l.b16 %v6724_v25  ;;  %v3203_v14 = vmax.f32 %v10386_v22, 0.0  ;;  %v3073_v50 = vadd.f32 %v10413_v26, %v2905_v9 }
 0x271   : > { %v4978_v37 = vsel %vm3295_vm10, %v4808_v28, 0.0  ;;  %v6725_v31 = vpack.c.bf16 %v4956_v12, %v4956_v12  ;;  %v6723_v1 = vpack.c.bf16 %v4942_v5, %v4942_v5  ;;  %v4975_v7 = vadd.f32 %v4974_v19, %v4973_v43  ;;  %v12271_v43 = vld [vmem:[#allocation75_spill] sm:$0xff] }
 0x272   : > { %v4960_v41 = vrot.slane %v4959_v6, 2  ;;  %v7263_v29 = vunpack.c.l.b16 %v6722_v48  ;;  %v4979_v62 = vrot.slane %v4978_v37, 4  ;;  %v3201_v56 = vmax.f32 %v3073_v50, 0.0  ;;  %v10418_v25 = vpop.f32.mrb[68].mxu1 }
 0x273   : > { %v3542_v22 = vadd.f32 %v10323_v40, %v10366_v42  ;;  %v7264_v38 = vunpack.c.l.b16 %v6723_v1  ;;  %v4976_v28 = vrot.slane %v4975_v7, 1  ;;  %v2916_v9 = vadd.f32 %v10369_v18, %v12270_v35  ;;  %v10422_v12 = vpop.f32.mrb[69].mxu1 }
 0x274   : > { %v4961_v24 = vadd.f32 %v4960_v41, %v4959_v6  ;;  %v4980_v19 = vadd.f32 %v4979_v62, %v4978_v37  ;;  %v2908_v48 = vadd.f32 %v10372_v54, %v12271_v43  ;;  %v3563_v50 = vadd.f32 %v8575_v45, %v10323_v40  ;;  %v10427_v52 = vpop.f32.mrb[124].mxu0  ;;  %v10429_v42 = vpop.f32.mrb[70].mxu1  ;;  %v12272_v62 = vld [vmem:[#allocation19_spill] sm:$0xff] }
 0x275   : > { %v4038_v5 = vmax.f32 %v3542_v22, 0.0  ;;  %v7391_v4 = vsel %vm6984_vm6, %v7264_v38, %v7263_v29  ;;  %v4977_v1 = vadd.f32 %v4976_v28, %v4975_v7  ;;  %v3076_v41 = vadd.f32 %v10413_v26, %v2916_v9  ;;  %v10433_v35 = vpop.f32.mrb[125].mxu0  ;;  %v10435_v18 = vpop.f32.mrb[71].mxu1 }
 0x276   : > { %v4962_v6 = vrot.slane %v4961_v24, 1  ;;  %v10438_v37 = vsel %vm6986_vm7, %v7265_v53, %v7391_v4  ;;  %v4981_v54 = vrot.slane %v4980_v19, 2  ;;  %v3074_v22 = vadd.f32 %v10413_v26, %v2908_v48  ;;  %v10442_v43 = vpop.f32.mrb[126].mxu0 }
 0x277   : > { %v4806_v45 = vmul.f32 %v12272_v62, %v4038_v5  ;;  %v6728_v46 = vpack.c.bf16 %v4977_v1, %v4977_v1  ;;  %v3204_v7 = vmax.f32 %v3076_v41, 0.0  ;;  %v4043_v38 = vmax.f32 %v3563_v50, 0.0  ;;  %v10444_v28 = vpop.f32.mrb[127].mxu0  ;;  %v12273_v1 = vld [vmem:[#allocation26_spill] sm:$0xff] }
 0x278   : > { %v4963_v29 = vadd.f32 %v4962_v6, %v4961_v24  ;;  %v4982_v9 = vadd.f32 %v4981_v54, %v4980_v19  ;;  %v3202_v60 = vmax.f32 %v3074_v22, 0.0  ;;  %v3555_v53 = vadd.f32 %v10323_v40, %v10388_v49  ;;  %v12274_v54 = vld [vmem:[#allocation76_spill] sm:$0xff] }
 0x279   : > { %v4964_v47 = vsel %vm3295_vm10, %v4806_v45, 0.0  ;;  %v10449_v4 = vunpack.c.l.b16 %v6725_v31  ;;  %v3272_v48 = vpack.c.bf16 %v3204_v7, %v3203_v14  ;;  %v4811_v24 = vmul.f32 %v12273_v1, %v4043_v38 }
 0x27a   : > { %v6726_v5 = vpack.c.bf16 %v4963_v29, %v4963_v29  ;;  %v4965_v62 = vrot.slane %v4964_v47, 4  ;;  %v4983_v32 = vrot.slane %v4982_v9, 1  ;;  %v3271_v20 = vpack.c.bf16 %v3202_v60, %v3201_v56  ;;  %v10452_v50 = vpop.f32.mrb[72].mxu1  ;;  %v12275_v60 = vld [vmem:[#allocation24_spill] sm:$0xff]  ;;  %v12276_v29 = vld [vmem:[#allocation77_spill] sm:$0xff] }
 0x27b   : > { %v4041_v6 = vmax.f32 %v3555_v53, 0.0  ;;  %v10454_v41 = vunpack.c.l.b16 %v6728_v46  ;;  %v2929_v45 = vadd.f32 %v10391_v39, %v12274_v54  ;;  %v3566_v49 = vadd.f32 %v10393_v57, %v10323_v40  ;;  %v10460_v31 = vpop.f32.mrb[73].mxu1 }
 0x27c   : > { %v4966_v19 = vadd.f32 %v4965_v62, %v4964_v47  ;;  %v4984_v22 = vadd.f32 %v4983_v32, %v4982_v9  ;;  %v4999_v14 = vsel %vm3295_vm10, %v4811_v24, 0.0  ;;  %v2921_v7 = vadd.f32 %v10395_v17, %v12276_v29  ;;  %8681 = vmatprep.mubr.msk.bf16.mxu1 %vm3295_vm10, %v3271_v20  ;;  %v10467_v46 = vpop.f32.mrb[74].mxu1 }
 0x27d   : > { %v4809_v56 = vmul.f32 %v12275_v60, %v4041_v6  ;;  %v5000_v38 = vrot.slane %v4999_v14, 4  ;;  %v3079_v39 = vadd.f32 %v10413_v26, %v2929_v45  ;;  %v4044_v53 = vmax.f32 %v3566_v49, 0.0  ;;  %8682 = vmatmul.mubr.msk.bf16.gmra.mrb[172].mxu1 %vm3295_vm10, %v3272_v48  ;;  %v10471_v57 = vpop.f32.mrb[75].mxu1  ;;  %v12277_v49 = vld [vmem:[#allocation25_spill] sm:$0xff] }
 0x27e   : > { %v4967_v47 = vrot.slane %v4966_v19, 2  ;;  %v10473_v32 = vunpack.c.l.b16 %v6726_v5  ;;  %v6729_v9 = vpack.c.bf16 %v4984_v22, %v4984_v22  ;;  %v3558_v17 = vadd.f32 %v10323_v40, %v10397_v13  ;;  %v12278_v22 = vld [vmem:[#allocation78_spill] sm:$0xff]  ;;  %v12279_v13 = vld [vmem:[#allocation23_spill] sm:$0xff] }
 0x27f   : > { %v4985_v62 = vsel %vm3295_vm10, %v4809_v56, 0.0  ;;  %v5001_v1 = vadd.f32 %v5000_v38, %v4999_v14  ;;  %v3077_v6 = vadd.f32 %v10413_v26, %v2921_v7  ;;  %v3207_v45 = vmax.f32 %v3079_v39, 0.0  ;;  %v12280_v14 = vld [vmem:[#allocation79_spill] sm:$0xff] }
 0x280   : > { %v4968_v20 = vadd.f32 %v4967_v47, %v4966_v19  ;;  %v4986_v24 = vrot.slane %v4985_v62, 4  ;;  %v10479_v54 = vunpack.c.l.b16 %v6729_v9  ;;  %v4812_v48 = vmul.f32 %v12277_v49, %v4044_v53 }
 0x281   : > { %v4042_v60 = vmax.f32 %v3558_v17, 0.0  ;;  %v5002_v5 = vrot.slane %v5001_v1, 2  ;;  %v2932_v56 = vadd.f32 %v10401_v63, %v12278_v22  ;;  %v2924_v47 = vadd.f32 %v10403_v10, %v12280_v14 }
 0x282   : > { %v4969_v29 = vrot.slane %v4968_v20, 1  ;;  %v4987_v44 = vadd.f32 %v4986_v24, %v4985_v62  ;;  %v5006_v0 = vsel %vm3295_vm10, %v4812_v48, 0.0  ;;  %v3579_v7 = vadd.f32 %v10418_v25, %v10323_v40  ;;  %v10490_v38 = vpop.f32.mrb[76].mxu1 }
 0x283   : > { %v4810_v19 = vmul.f32 %v12279_v13, %v4042_v60  ;;  %v5003_v53 = vadd.f32 %v5002_v5, %v5001_v1  ;;  %v5007_v17 = vrot.slane %v5006_v0, 4  ;;  %v10492_v62 = vpop.f32.mrb[77].mxu1  ;;  %v3080_v24 = vadd.f32 %v10413_v26, %v2932_v56  ;;  %v12281_v5 = vld [vmem:[#allocation30_spill] sm:$0xff] }
 0x284   : > { %v4970_v39 = vadd.f32 %v4969_v29, %v4968_v20  ;;  %v4988_v9 = vrot.slane %v4987_v44, 2  ;;  %v3078_v49 = vadd.f32 %v10413_v26, %v2924_v47  ;;  %v4047_v48 = vmax.f32 %v3579_v7, 0.0  ;;  %v10497_v60 = vpop.f32.mrb[78].mxu1 }
 0x285   : > { %v4992_v63 = vsel %vm3295_vm10, %v4810_v19, 0.0  ;;  %v5004_v10 = vrot.slane %v5003_v53, 1  ;;  %v5008_v25 = vadd.f32 %v5007_v17, %v5006_v0  ;;  %v3205_v13 = vmax.f32 %v3077_v6, 0.0  ;;  %v10499_v14 = vpop.f32.mrb[79].mxu1 }
 0x286   : > { %v4989_v22 = vadd.f32 %v4988_v9, %v4987_v44  ;;  %v4993_v20 = vrot.slane %v4992_v63, 4  ;;  %v3208_v1 = vmax.f32 %v3080_v24, 0.0  ;;  %v3206_v29 = vmax.f32 %v3078_v49, 0.0  ;;  %v12282_v24 = vld [vmem:[#allocation80_spill] sm:$0xff] }
 0x287   : > { %v4815_v33 = vmul.f32 %v12281_v5, %v4047_v48  ;;  %v6727_v16 = vpack.c.bf16 %v4970_v39, %v4970_v39  ;;  %v5005_v19 = vadd.f32 %v5004_v10, %v5003_v53  ;;  %v5009_v56 = vrot.slane %v5008_v25, 2 }
 0x288   : > { %v4990_v30 = vrot.slane %v4989_v22, 1  ;;  %v4994_v55 = vadd.f32 %v4993_v20, %v4992_v63  ;;  %v3274_v47 = vpack.c.bf16 %v3208_v1, %v3207_v45  ;;  %v3273_v7 = vpack.c.bf16 %v3206_v29, %v3205_v13  ;;  %v12283_v1 = vld [vmem:[#allocation81_spill] sm:$0xff] }
 0x289   : > { %v5027_v23 = vsel %vm3295_vm10, %v4815_v33, 0.0  ;;  %v6732_v58 = vpack.c.bf16 %v5005_v19, %v5005_v19  ;;  %v5010_v0 = vadd.f32 %v5009_v56, %v5008_v25  ;;  %v3571_v17 = vadd.f32 %v10323_v40, %v10422_v12  ;;  %v12284_v19 = vld [vmem:[#allocation28_spill] sm:$0xff] }
 0x28a   : > { %v4991_v44 = vadd.f32 %v4990_v30, %v4989_v22  ;;  %v5028_v6 = vrot.slane %v5027_v23, 4  ;;  %v4995_v9 = vrot.slane %v4994_v55, 2  ;;  %v2945_v49 = vadd.f32 %v10427_v52, %v12282_v24  ;;  %8685 = vmatprep.mubr.msk.bf16.mxu1 %vm3295_vm10, %v3273_v7  ;;  %v10510_v45 = vpop.f32.mrb[80].mxu1 }
 0x28b   : > { %v3582_v39 = vadd.f32 %v10429_v42, %v10323_v40  ;;  %v10512_v53 = vunpack.c.l.b16 %v6727_v16  ;;  %v5011_v30 = vrot.slane %v5010_v0, 1  ;;  %8686 = vmatmul.mubr.msk.bf16.gmra.mrb[176].mxu1 %vm3295_vm10, %v3274_v47  ;;  %v10515_v48 = vpop.f32.mrb[81].mxu1  ;;  %v4045_v10 = vmax.f32 %v3571_v17, 0.0  ;;  %v12285_v47 = vld [vmem:[#allocation29_spill] sm:$0xff] }
 0x28c   : > { %v6730_v33 = vpack.c.bf16 %v4991_v44, %v4991_v44  ;;  %v5029_v63 = vadd.f32 %v5028_v6, %v5027_v23  ;;  %v4996_v12 = vadd.f32 %v4995_v9, %v4994_v55  ;;  %v3083_v52 = vadd.f32 %v10413_v26, %v2945_v49  ;;  %v10518_v25 = vpop.f32.mrb[82].mxu1  ;;  %v10532_v49 = vpop.permute.xlu0 %4313 }
 0x28d   : > { %v4048_v22 = vmax.f32 %v3582_v39, 0.0  ;;  %v7273_v42 = vunpack.c.l.b16 %v6732_v58  ;;  %v5012_v13 = vadd.f32 %v5011_v30, %v5010_v0  ;;  %v2937_v16 = vadd.f32 %v10433_v35, %v12283_v1  ;;  %v10522_v29 = vpop.f32.mrb[83].mxu1  ;;  %v12286_v35 = vld [vmem:[#allocation82_spill] sm:$0xff] }
 0x28e   : > { %v5030_v20 = vrot.slane %v5029_v63, 2  ;;  %v7271_v23 = vunpack.c.l.b16 %v6730_v33  ;;  %v4997_v5 = vrot.slane %v4996_v12, 1  ;;  %v4813_v56 = vmul.f32 %v12284_v19, %v4045_v10 }
 0x28f   : > { %v4816_v55 = vmul.f32 %v12285_v47, %v4048_v22  ;;  %v6733_v7 = vpack.c.bf16 %v5012_v13, %v5012_v13  ;;  %v3211_v6 = vmax.f32 %v3083_v52, 0.0  ;;  %v3574_v9 = vadd.f32 %v10323_v40, %v10435_v18  ;;  %v12288_v47 = vld [vmem:[#allocation27_spill] sm:$0xff] }
 0x290   : > { %v5031_v44 = vadd.f32 %v5030_v20, %v5029_v63  ;;  %v4998_v58 = vadd.f32 %v4997_v5, %v4996_v12  ;;  %v5013_v0 = vsel %vm3295_vm10, %v4813_v56, 0.0  ;;  %v2948_v24 = vadd.f32 %v10442_v43, %v12286_v35  ;;  %v12287_v5 = vld [vmem:[#allocation83_spill] sm:$0xff] }
 0x291   : > { %v5034_v17 = vsel %vm3295_vm10, %v4816_v55, 0.0  ;;  %v5014_v33 = vrot.slane %v5013_v0, 4  ;;  %v3081_v10 = vadd.f32 %v10413_v26, %v2937_v16  ;;  %v10535_v63 = vunpack.c.l.b16 %v6733_v7 }
 0x292   : > { %v5032_v39 = vrot.slane %v5031_v44, 1  ;;  %v5035_v30 = vrot.slane %v5034_v17, 4  ;;  %v6731_v52 = vpack.c.bf16 %v4998_v58, %v4998_v58  ;;  %v4046_v22 = vmax.f32 %v3574_v9, 0.0  ;;  %v10538_v12 = vpop.f32.mrb[84].mxu1 }
 0x293   : > { %v3084_v18 = vadd.f32 %v10413_v26, %v2948_v24  ;;  %v5015_v20 = vadd.f32 %v5014_v33, %v5013_v0  ;;  %v2940_v43 = vadd.f32 %v10444_v28, %v12287_v5  ;;  %v10542_v19 = vpop.f32.mrb[85].mxu1  ;;  %v3595_v7 = vadd.f32 %v10452_v50, %v10323_v40 }
 0x294   : > { %v5033_v13 = vadd.f32 %v5032_v39, %v5031_v44  ;;  %v5036_v1 = vadd.f32 %v5035_v30, %v5034_v17  ;;  %v7272_v56 = vunpack.c.l.b16 %v6731_v52  ;;  %v4814_v55 = vmul.f32 %v12288_v47, %v4046_v22  ;;  %v10547_v9 = vpop.f32.mrb[86].mxu1  ;;  %v10554_v30 = vpop.permute.xlu0 %4323  ;;  %v12289_v47 = vld [vmem:[#allocation36_spill] sm:$0xff] }
 0x295   : > { %v3212_v16 = vmax.f32 %v3084_v18, 0.0  ;;  %v5016_v58 = vrot.slane %v5015_v20, 2  ;;  %v3209_v24 = vmax.f32 %v3081_v10, 0.0  ;;  %v3082_v44 = vadd.f32 %v10413_v26, %v2940_v43  ;;  %v10550_v0 = vpop.f32.mrb[87].mxu1 }
 0x296   : > { %v5037_v35 = vrot.slane %v5036_v1, 2  ;;  %v7398_v28 = vsel %vm6984_vm6, %v7272_v56, %v7271_v23  ;;  %v5020_v17 = vsel %vm3295_vm10, %v4814_v55, 0.0  ;;  %v4051_v33 = vmax.f32 %v3595_v7, 0.0 }
 0x297   : > { %v3276_v39 = vpack.c.bf16 %v3212_v16, %v3211_v6  ;;  %v10557_v52 = vsel %vm6986_vm7, %v7273_v42, %v7398_v28  ;;  %v6736_v50 = vpack.c.bf16 %v5033_v13, %v5033_v13  ;;  %v5017_v22 = vadd.f32 %v5016_v58, %v5015_v20 }
 0x298   : > { %v5038_v18 = vadd.f32 %v5037_v35, %v5036_v1  ;;  %v5021_v5 = vrot.slane %v5020_v17, 4  ;;  %v3210_v10 = vmax.f32 %v3082_v44, 0.0  ;;  %v4819_v26 = vmul.f32 %v12289_v47, %v4051_v33  ;;  %v12290_v33 = vld [vmem:[#allocation32_spill] sm:$0xff] }
 0x299   : > { %v3587_v43 = vadd.f32 %v10323_v40, %v10460_v31  ;;  %v5018_v23 = vrot.slane %v5017_v22, 1  ;;  %v3598_v6 = vadd.f32 %v10467_v46, %v10323_v40  ;;  %v3590_v55 = vadd.f32 %v10323_v40, %v10471_v57 }
 0x29a   : > { %v5039_v56 = vrot.slane %v5038_v18, 1  ;;  %v5022_v42 = vadd.f32 %v5021_v5, %v5020_v17  ;;  %v3275_v16 = vpack.c.bf16 %v3210_v10, %v3209_v24  ;;  %v5055_v13 = vsel %vm3295_vm10, %v4819_v26, 0.0  ;;  %v10567_v1 = vpop.f32.mrb[88].mxu1  ;;  %v10577_v17 = vpop.permute.xlu0 %4333  ;;  %v12291_v10 = vld [vmem:[#allocation35_spill] sm:$0xff] }
 0x29b   : > { %v4049_v20 = vmax.f32 %v3587_v43, 0.0  ;;  %v5019_v7 = vadd.f32 %v5018_v23, %v5017_v22  ;;  %v5056_v35 = vrot.slane %v5055_v13, 4  ;;  %v4052_v44 = vmax.f32 %v3598_v6, 0.0  ;;  %v10569_v31 = vpop.f32.mrb[89].mxu1  ;;  %v12292_v6 = vld [vmem:[#allocation31_spill] sm:$0xff] }
 0x29c   : > { %v5040_v58 = vadd.f32 %v5039_v56, %v5038_v18  ;;  %v5023_v28 = vrot.slane %v5022_v42, 2  ;;  %v4050_v46 = vmax.f32 %v3590_v55, 0.0  ;;  %8689 = vmatprep.mubr.msk.bf16.mxu1 %vm3295_vm10, %v3275_v16  ;;  %v3611_v57 = vadd.f32 %v10490_v38, %v10323_v40  ;;  %v10575_v24 = vpop.f32.mrb[90].mxu1 }
 0x29d   : > { %v4817_v47 = vmul.f32 %v12290_v33, %v4049_v20  ;;  %v10579_v5 = vunpack.c.l.b16 %v6736_v50  ;;  %v6734_v22 = vpack.c.bf16 %v5019_v7, %v5019_v7  ;;  %v5057_v18 = vadd.f32 %v5056_v35, %v5055_v13  ;;  %8690 = vmatmul.mubr.msk.bf16.gmra.mrb[180].mxu1 %vm3295_vm10, %v3276_v39  ;;  %v10583_v43 = vpop.f32.mrb[91].mxu1  ;;  %v12293_v35 = vld [vmem:[#allocation41_spill] sm:$0xff] }
 0x29e   : > { %v4820_v26 = vmul.f32 %v12291_v10, %v4052_v44  ;;  %v5024_v23 = vadd.f32 %v5023_v28, %v5022_v42  ;;  %v4818_v55 = vmul.f32 %v12292_v6, %v4050_v46  ;;  %v4055_v38 = vmax.f32 %v3611_v57, 0.0 }
 0x29f   : > { %v5041_v56 = vsel %vm3295_vm10, %v4817_v47, 0.0  ;;  %v10587_v16 = vunpack.c.l.b16 %v6734_v22  ;;  %v6737_v20 = vpack.c.bf16 %v5040_v58, %v5040_v58  ;;  %v5058_v33 = vrot.slane %v5057_v18, 2 }
 0x2a0   : > { %v5042_v50 = vrot.slane %v5041_v56, 4  ;;  %v5025_v27 = vrot.slane %v5024_v23, 1  ;;  %v5062_v13 = vsel %vm3295_vm10, %v4820_v26, 0.0  ;;  %v5048_v7 = vsel %vm3295_vm10, %v4818_v55, 0.0  ;;  %v10599_v26 = vpop.permute.xlu0 %4343 }
 0x2a1   : > { %v4823_v39 = vmul.f32 %v12293_v35, %v4055_v38  ;;  %v5059_v44 = vadd.f32 %v5058_v33, %v5057_v18  ;;  %v5063_v42 = vrot.slane %v5062_v13, 4  ;;  %v5049_v28 = vrot.slane %v5048_v7, 4 }
 0x2a2   : > { %v5043_v10 = vadd.f32 %v5042_v50, %v5041_v56  ;;  %v5026_v47 = vadd.f32 %v5025_v27, %v5024_v23  ;;  %v3603_v57 = vadd.f32 %v10323_v40, %v10492_v62  ;;  %v3614_v58 = vadd.f32 %v10497_v60, %v10323_v40  ;;  %v10597_v22 = vpop.f32.mrb[92].mxu1  ;;  %v10605_v62 = vpop.permute.xlu1 %4318 }
 0x2a3   : > { %v5083_v46 = vsel %vm3295_vm10, %v4823_v39, 0.0  ;;  %v5060_v6 = vrot.slane %v5059_v44, 1  ;;  %v5064_v38 = vadd.f32 %v5063_v42, %v5062_v13  ;;  %v5050_v18 = vadd.f32 %v5049_v28, %v5048_v7  ;;  %v10601_v56 = vpop.f32.mrb[93].mxu1  ;;  %v12294_v7 = vld [vmem:[#allocation38_spill] sm:$0xff]  ;;  %v12295_v28 = vld [vmem:[#allocation39_spill] sm:$0xff] }
 0x2a4   : > { %v5044_v55 = vrot.slane %v5043_v10, 2  ;;  %v6735_v33 = vpack.c.bf16 %v5026_v47, %v5026_v47  ;;  %v5084_v27 = vrot.slane %v5083_v46, 4  ;;  %v4053_v23 = vmax.f32 %v3603_v57, 0.0  ;;  %v10603_v35 = vpop.f32.mrb[94].mxu1 }
 0x2a5   : > { %v4056_v50 = vmax.f32 %v3614_v58, 0.0  ;;  %v5061_v39 = vadd.f32 %v5060_v6, %v5059_v44  ;;  %v5065_v2 = vrot.slane %v5064_v38, 2  ;;  %v5051_v51 = vrot.slane %v5050_v18, 2  ;;  %v10607_v21 = vpop.f32.mrb[95].mxu1 }
 0x2a6   : > { %v5045_v60 = vadd.f32 %v5044_v55, %v5043_v10  ;;  %v10609_v3 = vunpack.c.l.b16 %v6737_v20  ;;  %v5085_v13 = vadd.f32 %v5084_v27, %v5083_v46  ;;  %v4821_v42 = vmul.f32 %v12294_v7, %v4053_v23  ;;  %v10619_v20 = vpop.permute.xlu0 %4353 }
 0x2a7   : > { %v4824_v47 = vmul.f32 %v12295_v28, %v4056_v50  ;;  %v10613_v11 = vunpack.c.l.b16 %v6735_v33  ;;  %v5066_v58 = vadd.f32 %v5065_v2, %v5064_v38  ;;  %v5052_v15 = vadd.f32 %v5051_v51, %v5050_v18  ;;  %v10623_v51 = vpop.permute.xlu1 %4328 }
 0x2a8   : > { %v5046_v57 = vrot.slane %v5045_v60, 1  ;;  %v5086_v36 = vrot.slane %v5085_v13, 2  ;;  %v5069_v44 = vsel %vm3295_vm10, %v4821_v42, 0.0  ;;  %v3606_v6 = vadd.f32 %v10323_v40, %v10499_v14 }
 0x2a9   : > { %v5090_v10 = vsel %vm3295_vm10, %v4824_v47, 0.0  ;;  %v6740_v46 = vpack.c.bf16 %v5061_v39, %v5061_v39  ;;  %v5067_v27 = vrot.slane %v5066_v58, 1  ;;  %v5053_v23 = vrot.slane %v5052_v15, 1 }
 0x2aa   : > { %v5047_v55 = vadd.f32 %v5046_v57, %v5045_v60  ;;  %v5087_v50 = vadd.f32 %v5086_v36, %v5085_v13  ;;  %v5070_v33 = vrot.slane %v5069_v44, 4  ;;  %v5091_v7 = vrot.slane %v5090_v10, 4  ;;  %v10621_v2 = vpop.f32.mrb[96].mxu1 }
 0x2ab   : > { %v4054_v28 = vmax.f32 %v3606_v6, 0.0  ;;  %12296 = vst [vmem:[#allocation69_spill] sm:$0xff] %v10621_v2  ;;  %v5068_v18 = vadd.f32 %v5067_v27, %v5066_v58  ;;  %v5054_v42 = vadd.f32 %v5053_v23, %v5052_v15  ;;  %v3627_v14 = vadd.f32 %v10510_v45, %v10323_v40  ;;  %v10627_v47 = vpop.f32.mrb[97].mxu1  ;;  %v10635_v27 = vpop.permute.xlu0 %4363 }
 0x2ac   : > { %v6738_v38 = vpack.c.bf16 %v5047_v55, %v5047_v55  ;;  %v5088_v39 = vrot.slane %v5087_v50, 1  ;;  %v5071_v60 = vadd.f32 %v5070_v33, %v5069_v44  ;;  %v5092_v57 = vadd.f32 %v5091_v7, %v5090_v10  ;;  %v10630_v13 = vpop.f32.mrb[98].mxu1  ;;  %v12298_v33 = vld [vmem:[#allocation46_spill] sm:$0xff] }
 0x2ad   : > { %v4822_v36 = vmul.f32 %v12297_v59, %v4054_v28  ;;  %v7281_v6 = vunpack.c.l.b16 %v6740_v46  ;;  %v6741_v61 = vpack.c.bf16 %v5068_v18, %v5068_v18  ;;  %v6739_v34 = vpack.c.bf16 %v5054_v42, %v5054_v42  ;;  %v10632_v2 = vpop.f32.mrb[99].mxu1  ;;  %v10640_v42 = vpop.permute.xlu1 %4338 }
 0x2ae   : > { %v4059_v8 = vmax.f32 %v3627_v14, 0.0  ;;  %v5089_v58 = vadd.f32 %v5088_v39, %v5087_v50  ;;  %v5072_v15 = vrot.slane %v5071_v60, 2  ;;  %v5093_v55 = vrot.slane %v5092_v57, 2 }
 0x2af   : > { %v5076_v45 = vsel %vm3295_vm10, %v4822_v36, 0.0  ;;  %v7279_v23 = vunpack.c.l.b16 %v6738_v38  ;;  %v7280_v44 = vunpack.c.l.b16 %v6739_v34  ;;  %v7282_v7 = vunpack.c.l.b16 %v6741_v61 }
 0x2b0   : > { %v5077_v10 = vrot.slane %v5076_v45, 4  ;;  %v4827_v59 = vmul.f32 %v12298_v33, %v4059_v8  ;;  %v5073_v28 = vadd.f32 %v5072_v15, %v5071_v60  ;;  %v5094_v46 = vadd.f32 %v5093_v55, %v5092_v57 }
 0x2b1   : > { %v3619_v18 = vadd.f32 %v10323_v40, %v10515_v48  ;;  %v7405_v50 = vsel %vm6984_vm6, %v7280_v44, %v7279_v23  ;;  %v3630_v34 = vadd.f32 %v10518_v25, %v10323_v40  ;;  %v6744_v8 = vpack.c.bf16 %v5089_v58, %v5089_v58  ;;  %v10656_v58 = vpop.permute.xlu0 %4373 }
 0x2b2   : > { %v5078_v14 = vadd.f32 %v5077_v10, %v5076_v45  ;;  %v5111_v39 = vsel %vm3295_vm10, %v4827_v59, 0.0  ;;  %v7406_v38 = vsel %vm6986_vm7, %v7281_v6, %v7405_v50  ;;  %v5074_v61 = vrot.slane %v5073_v28, 1  ;;  %v10647_v57 = vpop.f32.mrb[100].mxu1 }
 0x2b3   : > { %v5095_v60 = vrot.slane %v5094_v46, 1  ;;  %v7407_v48 = vsel %vm6988_vm9, %v7282_v7, %v7406_v38  ;;  %v5112_v15 = vrot.slane %v5111_v39, 4  ;;  %v4057_v55 = vmax.f32 %v3619_v18, 0.0  ;;  %v10650_v23 = vpop.f32.mrb[101].mxu1  ;;  %v12301_v7 = vld [vmem:[#allocation44_spill] sm:$0xff] }
 0x2b4   : > { %v5079_v36 = vrot.slane %v5078_v14, 2  ;;  %12299 = vst [vmem:[#allocation13_spill] sm:$0xff] %v10650_v23  ;;  %v5075_v45 = vadd.f32 %v5074_v61, %v5073_v28  ;;  %v4060_v10 = vmax.f32 %v3630_v34, 0.0  ;;  %v3622_v25 = vadd.f32 %v10323_v40, %v10522_v29  ;;  %v10654_v6 = vpop.f32.mrb[102].mxu1  ;;  %v12303_v34 = vld [vmem:[#allocation45_spill] sm:$0xff]  ;;  %v10664_v29 = vpop.permute.xlu1 %4348 }
 0x2b5   : > { %v5096_v44 = vadd.f32 %v5095_v60, %v5094_v46  ;;  %12300 = vst [vmem:[#allocation70_spill] sm:$0xff] %v10654_v6  ;;  %v5113_v59 = vadd.f32 %v5112_v15, %v5111_v39  ;;  %v4825_v50 = vmul.f32 %v12301_v7, %v4057_v55  ;;  %v3643_v18 = vadd.f32 %v10538_v12, %v10323_v40  ;;  %v10661_v38 = vpop.f32.mrb[103].mxu1 }
 0x2b6   : > { %v5080_v33 = vadd.f32 %v5079_v36, %v5078_v14  ;;  %12302 = vst [vmem:[#allocation14_spill] sm:$0xff] %v10661_v38  ;;  %v7285_v28 = vunpack.c.l.b16 %v6744_v8  ;;  %v6742_v46 = vpack.c.bf16 %v5075_v45, %v5075_v45  ;;  %v4828_v61 = vmul.f32 %v12303_v34, %v4060_v10  ;;  %v12304_v45 = vld [vmem:[#allocation43_spill] sm:$0xff] }
 0x2b7   : > { %v4058_v60 = vmax.f32 %v3622_v25, 0.0  ;;  %v5114_v23 = vrot.slane %v5113_v59, 2  ;;  %v5097_v14 = vsel %vm3295_vm10, %v4825_v50, 0.0  ;;  %v4063_v39 = vmax.f32 %v3643_v18, 0.0 }
 0x2b8   : > { %v5081_v6 = vrot.slane %v5080_v33, 1  ;;  %v7283_v36 = vunpack.c.l.b16 %v6742_v46  ;;  %v6745_v15 = vpack.c.bf16 %v5096_v44, %v5096_v44  ;;  %v5098_v55 = vrot.slane %v5097_v14, 4  ;;  %v10676_v44 = vpop.permute.xlu0 %4383 }
 0x2b9   : > { %v5118_v40 = vsel %vm3295_vm10, %v4828_v61, 0.0  ;;  %v5115_v7 = vadd.f32 %v5114_v23, %v5113_v59  ;;  %v4826_v38 = vmul.f32 %v12304_v45, %v4058_v60  ;;  %v4831_v34 = vmul.f32 %v10532_v49, %v4063_v39 }
 0x2ba   : > { %v5082_v12 = vadd.f32 %v5081_v6, %v5080_v33  ;;  %v5119_v8 = vrot.slane %v5118_v40, 4  ;;  %v7408_v10 = vsel %vm6990_vm11, %v7283_v36, %v7407_v48  ;;  %v5099_v25 = vadd.f32 %v5098_v55, %v5097_v14  ;;  %v10674_v18 = vpop.f32.mrb[104].mxu1 }
 0x2bb   : > { %v7393_v50 = vsel %vm6988_vm9, %v10449_v4, %v10438_v37  ;;  %v5116_v61 = vrot.slane %v5115_v7, 1  ;;  %v5104_v23 = vsel %vm3295_vm10, %v4826_v38, 0.0  ;;  %v10679_v33 = vpop.f32.mrb[105].mxu1  ;;  %v5139_v60 = vsel %vm3295_vm10, %v4831_v34, 0.0  ;;  %v10686_v37 = vpop.permute.xlu1 %4358 }
 0x2bc   : > { %v6743_v46 = vpack.c.bf16 %v5082_v12, %v5082_v12  ;;  %v5120_v6 = vadd.f32 %v5119_v8, %v5118_v40  ;;  %v5100_v59 = vrot.slane %v5099_v25, 2  ;;  %v5105_v48 = vrot.slane %v5104_v23, 4  ;;  %v10684_v14 = vpop.f32.mrb[106].mxu1 }
 0x2bd   : > { %v7394_v49 = vsel %vm6990_vm11, %v10473_v32, %v7393_v50  ;;  %v5117_v39 = vadd.f32 %v5116_v61, %v5115_v7  ;;  %v5140_v55 = vrot.slane %v5139_v60, 4  ;;  %v10688_v40 = vpop.f32.mrb[107].mxu1  ;;  %v7400_v45 = vsel %vm6988_vm9, %v10535_v63, %v10557_v52 }
 0x2be   : > { %v7284_v4 = vunpack.c.l.b16 %v6743_v46  ;;  %v5121_v36 = vrot.slane %v5120_v6, 2  ;;  %12305 = vst [vmem:[#allocation71_spill] sm:$0xff] %v10688_v40  ;;  %v5101_v38 = vadd.f32 %v5100_v59, %v5099_v25  ;;  %v5106_v12 = vadd.f32 %v5105_v48, %v5104_v23  ;;  %v10703_v23 = vpop.permute.xlu0 %4393 }
 0x2bf   : > { %v7395_v8 = vsel %vm6992_vm12, %v10512_v53, %v7394_v49  ;;  %v10695_v32 = vunpack.c.l.b16 %v6745_v15  ;;  %v5141_v46 = vadd.f32 %v5140_v55, %v5139_v60  ;;  %v6748_v53 = vpack.c.bf16 %v5117_v39, %v5117_v39  ;;  %v10718_v60 = vpop.permute.xlu1 %4368 }
 0x2c0   : > { %v7409_v34 = vsel %vm6992_vm12, %v7284_v4, %v7408_v10  ;;  %v5122_v50 = vadd.f32 %v5121_v36, %v5120_v6  ;;  %v5102_v61 = vrot.slane %v5101_v38, 1  ;;  %v5107_v40 = vrot.slane %v5106_v12, 2 }
 0x2c1   : > { %v10699_v7 = vsel %vm6994_vm13, %v7285_v28, %v7409_v34  ;;  %v7396_v25 = vsel %vm6994_vm13, %v10454_v41, %v7395_v8  ;;  %v5142_v48 = vrot.slane %v5141_v46, 2  ;;  %v7401_v10 = vsel %vm6990_vm11, %v10587_v16, %v7400_v45  ;;  %v10712_v28 = vld [vmem:[%s12067_s7] ss:$0 sm:$0xff] }
 0x2c2   : > { %v5123_v59 = vrot.slane %v5122_v50, 1  ;;  %v7397_v63 = vsel %vm6996_vm14, %v10479_v54, %v7396_v25  ;;  %v5103_v52 = vadd.f32 %v5102_v61, %v5101_v38  ;;  %v5108_v15 = vadd.f32 %v5107_v40, %v5106_v12  ;;  %v10716_v6 = vpop.f32.mrb[108].mxu1  ;;  %v12306_v61 = vld [vmem:[#allocation48_spill] sm:$0xff] }
 0x2c3   : > { %v3635_v41 = vadd.f32 %v10712_v28, %v10542_v19  ;;  %v5143_v4 = vadd.f32 %v5142_v48, %v5141_v46  ;;  %v7402_v54 = vsel %vm6992_vm12, %v10613_v11, %v7401_v10  ;;  %v3646_v16 = vadd.f32 %v10712_v28, %v10547_v9  ;;  %v10724_v39 = vpop.f32.mrb[109].mxu1 }
 0x2c4   : > { %v5124_v49 = vadd.f32 %v5123_v59, %v5122_v50  ;;  %v6746_v36 = vpack.c.bf16 %v5103_v52, %v5103_v52  ;;  %v5109_v55 = vrot.slane %v5108_v15, 1  ;;  %v7403_v40 = vsel %vm6994_vm13, %v10579_v5, %v7402_v54  ;;  %v10728_v38 = vpop.f32.mrb[110].mxu1  ;;  %v10735_v59 = vpop.permute.xlu0 %4408 }
 0x2c5   : > { %v4061_v19 = vmax.f32 %v3635_v41, 0.0  ;;  %v5144_v8 = vrot.slane %v5143_v4, 1  ;;  %v7404_v45 = vsel %vm6996_vm14, %v10609_v3, %v7403_v40  ;;  %v4064_v34 = vmax.f32 %v3646_v16, 0.0  ;;  %v10732_v11 = vpop.f32.mrb[111].mxu1 }
 0x2c6   : > { %v6749_v12 = vpack.c.bf16 %v5124_v49, %v5124_v49  ;;  %v7289_v50 = vunpack.c.l.b16 %v6748_v53  ;;  %v5110_v9 = vadd.f32 %v5109_v55, %v5108_v15  ;;  %v7503_v46 = vpack.c.b16 %v7404_v45, %v7397_v63  ;;  %v10748_v15 = vpop.permute.xlu1 %4378 }
 0x2c7   : > { %v4829_v25 = vmul.f32 %v12306_v61, %v4061_v19  ;;  %v7287_v48 = vunpack.c.l.b16 %v6746_v36  ;;  %v10737_v5 = vadd.f32 %v5144_v8, %v5143_v4  ;;  %v4832_v52 = vmul.f32 %v10605_v62, %v4064_v34  ;;  %v12307_v8 = vld [vmem:[#allocation47_spill] sm:$0xff] }
 0x2c8   : > { %v3638_v10 = vadd.f32 %v10712_v28, %v10550_v0  ;;  %v6747_v41 = vpack.c.bf16 %v5110_v9, %v5110_v9  ;;  %8697 = vmatprep.mubr.msk.bf16.mxu1 %vm3295_vm10, %v7503_v46  ;;  %v3659_v53 = vadd.f32 %v10712_v28, %v10567_v1  ;;  %v3651_v63 = vadd.f32 %v10712_v28, %v10569_v31 }
 0x2c9   : > { %v5125_v3 = vsel %vm3295_vm10, %v4829_v25, 0.0  ;;  %v7290_v49 = vunpack.c.l.b16 %v6749_v12  ;;  %v5146_v62 = vsel %vm3295_vm10, %v4832_v52, 0.0  ;;  %v6752_v19 = vpack.c.bf16 %v10737_v5, %v10737_v5  ;;  %v10765_v52 = vpop.permute.xlu0 %4448 }
 0x2ca   : > { %v5126_v4 = vrot.slane %v5125_v3, 4  ;;  %v4062_v54 = vmax.f32 %v3638_v10, 0.0  ;;  %v7288_v16 = vunpack.c.l.b16 %v6747_v41  ;;  %v5147_v0 = vrot.slane %v5146_v62, 4  ;;  %v10751_v40 = vpop.f32.mrb[112].mxu1  ;;  %12308 = vst [vmem:[#allocation15_spill] sm:$0xff] %v10765_v52 }
 0x2cb   : > { %v4067_v36 = vmax.f32 %v3659_v53, 0.0  ;;  %v4065_v55 = vmax.f32 %v3651_v63, 0.0  ;;  %v3662_v31 = vadd.f32 %v10712_v28, %v10575_v24  ;;  %v10758_v12 = vpop.f32.mrb[113].mxu1 }
 0x2cc   : > { %v5127_v1 = vadd.f32 %v5126_v4, %v5125_v3  ;;  %v4830_v45 = vmul.f32 %v12307_v8, %v4062_v54  ;;  %v7412_v34 = vsel %vm6984_vm6, %v7288_v16, %v7287_v48  ;;  %v5148_v9 = vadd.f32 %v5147_v0, %v5146_v62  ;;  %v10763_v25 = vpop.f32.mrb[114].mxu1  ;;  %v10773_v4 = vpop.permute.xlu1 %4388 }
 0x2cd   : > { %v4835_v46 = vmul.f32 %v10577_v17, %v4067_v36  ;;  %v4833_v61 = vmul.f32 %v10554_v30, %v4065_v55  ;;  %v7413_v5 = vsel %vm6986_vm7, %v7289_v50, %v7412_v34  ;;  %v4068_v3 = vmax.f32 %v3662_v31, 0.0  ;;  %v10769_v24 = vpop.f32.mrb[115].mxu1 }
 0x2ce   : > { %v5128_v10 = vrot.slane %v5127_v1, 2  ;;  %v5132_v41 = vsel %vm3295_vm10, %v4830_v45, 0.0  ;;  %v7414_v53 = vsel %vm6988_vm9, %v7290_v49, %v7413_v5  ;;  %v5149_v48 = vrot.slane %v5148_v9, 2 }
 0x2cf   : > { %v5133_v63 = vrot.slane %v5132_v41, 4  ;;  %v5167_v17 = vsel %vm3295_vm10, %v4835_v46, 0.0  ;;  %v5153_v54 = vsel %vm3295_vm10, %v4833_v61, 0.0  ;;  %v4836_v50 = vmul.f32 %v10640_v42, %v4068_v3  ;;  %v10784_v42 = vpop.permute.xlu0 %4453 }
 0x2d0   : > { %v5129_v30 = vadd.f32 %v5128_v10, %v5127_v1  ;;  %v5168_v62 = vrot.slane %v5167_v17, 4  ;;  %v5150_v16 = vadd.f32 %v5149_v48, %v5148_v9  ;;  %v5154_v36 = vrot.slane %v5153_v54, 4 }
 0x2d1   : > { %v5134_v0 = vadd.f32 %v5133_v63, %v5132_v41  ;;  %v3654_v55 = vadd.f32 %v10712_v28, %v10583_v43  ;;  %v5174_v45 = vsel %vm3295_vm10, %v4836_v50, 0.0  ;;  %v3675_v31 = vadd.f32 %v10712_v28, %v10597_v22  ;;  %v10790_v22 = vpop.permute.xlu1 %4403 }
 0x2d2   : > { %v5130_v8 = vrot.slane %v5129_v30, 1  ;;  %v5169_v49 = vadd.f32 %v5168_v62, %v5167_v17  ;;  %v5151_v34 = vrot.slane %v5150_v16, 1  ;;  %v5155_v46 = vadd.f32 %v5154_v36, %v5153_v54  ;;  %v10782_v61 = vpop.f32.mrb[116].mxu1 }
 0x2d3   : > { %v5135_v1 = vrot.slane %v5134_v0, 2  ;;  %v5175_v5 = vrot.slane %v5174_v45, 4  ;;  %12309 = vst [vmem:[#allocation16_spill] sm:$0xff] %v10782_v61  ;;  %v4066_v41 = vmax.f32 %v3654_v55, 0.0  ;;  %v4071_v3 = vmax.f32 %v3675_v31, 0.0  ;;  %v10786_v43 = vpop.f32.mrb[117].mxu1 }
 0x2d4   : > { %v5131_v9 = vadd.f32 %v5130_v8, %v5129_v30  ;;  %v5170_v10 = vrot.slane %v5169_v49, 2  ;;  %12310 = vst [vmem:[#allocation72_spill] sm:$0xff] %v10786_v43  ;;  %v5152_v48 = vadd.f32 %v5151_v34, %v5150_v16  ;;  %v5156_v17 = vrot.slane %v5155_v46, 2  ;;  %v10788_v50 = vpop.f32.mrb[118].mxu1 }
 0x2d5   : > { %v5136_v63 = vadd.f32 %v5135_v1, %v5134_v0  ;;  %v5176_v62 = vadd.f32 %v5175_v5, %v5174_v45  ;;  %v4834_v52 = vmul.f32 %v10623_v51, %v4066_v41  ;;  %v4839_v61 = vmul.f32 %v10619_v20, %v4071_v3  ;;  %v10794_v30 = vpop.f32.mrb[119].mxu1 }
 0x2d6   : > { %v6750_v54 = vpack.c.bf16 %v5131_v9, %v5131_v9  ;;  %v5171_v36 = vadd.f32 %v5170_v10, %v5169_v49  ;;  %12311 = vst [vmem:[#allocation22_spill] sm:$0xff] %v10794_v30  ;;  %v7293_v55 = vunpack.c.l.b16 %v6752_v19  ;;  %v5157_v31 = vadd.f32 %v5156_v17, %v5155_v46  ;;  %v10798_v10 = vpop.permute.xlu0 %4458 }
 0x2d7   : > { %v5137_v8 = vrot.slane %v5136_v63, 1  ;;  %v5177_v43 = vrot.slane %v5176_v62, 2  ;;  %v5160_v45 = vsel %vm3295_vm10, %v4834_v52, 0.0  ;;  %v5195_v34 = vsel %vm3295_vm10, %v4839_v61, 0.0  ;;  %v10805_v61 = vpop.permute.xlu1 %4443 }
 0x2d8   : > { %v7291_v16 = vunpack.c.l.b16 %v6750_v54  ;;  %v5172_v0 = vrot.slane %v5171_v36, 1  ;;  %v6753_v1 = vpack.c.bf16 %v5152_v48, %v5152_v48  ;;  %v5158_v9 = vrot.slane %v5157_v31, 1 }
 0x2d9   : > { %v5138_v5 = vadd.f32 %v5137_v8, %v5136_v63  ;;  %v5178_v49 = vadd.f32 %v5177_v43, %v5176_v62  ;;  %v5161_v41 = vrot.slane %v5160_v45, 4  ;;  %v5196_v19 = vrot.slane %v5195_v34, 4 }
 0x2da   : > { %v7415_v20 = vsel %vm6990_vm11, %v7291_v16, %v7414_v53  ;;  %v5173_v51 = vadd.f32 %v5172_v0, %v5171_v36  ;;  %v5159_v46 = vadd.f32 %v5158_v9, %v5157_v31  ;;  %v3667_v54 = vadd.f32 %v10712_v28, %v10601_v56  ;;  %v10803_v52 = vpop.f32.mrb[120].mxu1 }
 0x2db   : > { %v6751_v3 = vpack.c.bf16 %v5138_v5, %v5138_v5  ;;  %v5179_v17 = vrot.slane %v5178_v49, 1  ;;  %12312 = vst [vmem:[#allocation20_spill] sm:$0xff] %v10803_v52  ;;  %v5162_v63 = vadd.f32 %v5161_v41, %v5160_v45  ;;  %v5197_v43 = vadd.f32 %v5196_v19, %v5195_v34  ;;  %v10809_v53 = vpop.f32.mrb[121].mxu1  ;;  %v10819_v41 = vpop.permute.xlu0 %4463 }
 0x2dc   : > { %v6756_v48 = vpack.c.bf16 %v5173_v51, %v5173_v51  ;;  %v3678_v62 = vadd.f32 %v10712_v28, %v10603_v35  ;;  %v6754_v8 = vpack.c.bf16 %v5159_v46, %v5159_v46  ;;  %v4069_v31 = vmax.f32 %v3667_v54, 0.0  ;;  %v10811_v0 = vpop.f32.mrb[122].mxu1 }
 0x2dd   : > { %v7292_v36 = vunpack.c.l.b16 %v6751_v3  ;;  %v5180_v16 = vadd.f32 %v5179_v17, %v5178_v49  ;;  %v10813_v5 = vunpack.c.l.b16 %v6753_v1  ;;  %v5163_v56 = vrot.slane %v5162_v63, 2  ;;  %v10815_v30 = vpop.f32.mrb[123].mxu1 }
 0x2de   : > { %v5198_v9 = vrot.slane %v5197_v43, 2  ;;  %v4072_v52 = vmax.f32 %v3678_v62, 0.0  ;;  %12313 = vst [vmem:[#allocation21_spill] sm:$0xff] %v10815_v30  ;;  %v7297_v34 = vunpack.c.l.b16 %v6756_v48  ;;  %v7295_v51 = vunpack.c.l.b16 %v6754_v8  ;;  %v10830_v62 = vpop.permute.xlu1 %4413 }
 0x2df   : > { %v7416_v45 = vsel %vm6992_vm12, %v7292_v36, %v7415_v20  ;;  %v4837_v35 = vmul.f32 %v10599_v26, %v4069_v31  ;;  %v5164_v19 = vadd.f32 %v5163_v56, %v5162_v63  ;;  %v6757_v46 = vpack.c.bf16 %v5180_v16, %v5180_v16  ;;  %v12314_v20 = vld [vmem:[#allocation69_spill] sm:$0xff]  ;;  %v10845_v30 = vpop.permute.xlu0 %4468 }
 0x2e0   : > { %v10822_v49 = vsel %vm6994_vm13, %v7293_v55, %v7416_v45  ;;  %v5199_v3 = vadd.f32 %v5198_v9, %v5197_v43  ;;  %v4840_v1 = vmul.f32 %v10686_v37, %v4072_v52  ;;  %v3670_v54 = vadd.f32 %v10712_v28, %v10607_v21 }
 0x2e1   : > { %v5181_v17 = vsel %vm3295_vm10, %v4837_v35, 0.0  ;;  %v3691_v48 = vadd.f32 %v10712_v28, %v12314_v20  ;;  %v5165_v26 = vrot.slane %v5164_v19, 1  ;;  %v3683_v37 = vadd.f32 %v10712_v28, %v10627_v47 }
 0x2e2   : > { %v5200_v36 = vrot.slane %v5199_v3, 1  ;;  %v5182_v8 = vrot.slane %v5181_v17, 4  ;;  %v5202_v55 = vsel %vm3295_vm10, %v4840_v1, 0.0  ;;  %v4070_v43 = vmax.f32 %v3670_v54, 0.0  ;;  %v10835_v52 = vpop.f32.mrb[124].mxu1 }
 0x2e3   : > { %v5203_v63 = vrot.slane %v5202_v55, 4  ;;  %v4075_v31 = vmax.f32 %v3691_v48, 0.0  ;;  %12315 = vst [vmem:[#allocation73_spill] sm:$0xff] %v10835_v52  ;;  %v5166_v16 = vadd.f32 %v5165_v26, %v5164_v19  ;;  %v3694_v9 = vadd.f32 %v10712_v28, %v10630_v13  ;;  %v10839_v45 = vpop.f32.mrb[125].mxu1 }
 0x2e4   : > { %v5201_v21 = vadd.f32 %v5200_v36, %v5199_v3  ;;  %v5183_v56 = vadd.f32 %v5182_v8, %v5181_v17  ;;  %12316 = vst [vmem:[#allocation74_spill] sm:$0xff] %v10839_v45  ;;  %v4838_v20 = vmul.f32 %v10664_v29, %v4070_v43  ;;  %v4073_v54 = vmax.f32 %v3683_v37, 0.0  ;;  %v10843_v48 = vpop.f32.mrb[126].mxu1 }
 0x2e5   : > { %v5204_v35 = vadd.f32 %v5203_v63, %v5202_v55  ;;  %v4843_v1 = vmul.f32 %v10656_v58, %v4075_v31  ;;  %12317 = vst [vmem:[#allocation75_spill] sm:$0xff] %v10843_v48  ;;  %v10847_v47 = vunpack.c.l.b16 %v6757_v46  ;;  %v6755_v19 = vpack.c.bf16 %v5166_v16, %v5166_v16  ;;  %v10849_v26 = vpop.f32.mrb[127].mxu1  ;;  %v10854_v58 = vpop.permute.xlu1 %4418 }
 0x2e6   : > { %v5184_v3 = vrot.slane %v5183_v56, 2  ;;  %v4076_v17 = vmax.f32 %v3694_v9, 0.0  ;;  %12318 = vst [vmem:[#allocation19_spill] sm:$0xff] %v10849_v26  ;;  %v5188_v36 = vsel %vm3295_vm10, %v4838_v20, 0.0  ;;  %v4841_v29 = vmul.f32 %v10635_v27, %v4073_v54 }
 0x2e7   : > { %v5205_v13 = vrot.slane %v5204_v35, 2  ;;  %v5223_v8 = vsel %vm3295_vm10, %v4843_v1, 0.0  ;;  %v7296_v55 = vunpack.c.l.b16 %v6755_v19  ;;  %v6760_v63 = vpack.c.bf16 %v5201_v21, %v5201_v21 }
 0x2e8   : > { %v5185_v43 = vadd.f32 %v5184_v3, %v5183_v56  ;;  %v5189_v31 = vrot.slane %v5188_v36, 4  ;;  %v5224_v37 = vrot.slane %v5223_v8, 4  ;;  %v5209_v16 = vsel %vm3295_vm10, %v4841_v29, 0.0  ;;  %v10863_v56 = vpop.permute.xlu0 %4433 }
 0x2e9   : > { %v5206_v46 = vadd.f32 %v5205_v13, %v5204_v35  ;;  %v4844_v9 = vmul.f32 %v10748_v15, %v4076_v17  ;;  %v7419_v26 = vsel %vm6984_vm6, %v7296_v55, %v7295_v51  ;;  %v5210_v45 = vrot.slane %v5209_v16, 4 }
 0x2ea   : > { %v5186_v48 = vrot.slane %v5185_v43, 1  ;;  %v5190_v20 = vadd.f32 %v5189_v31, %v5188_v36  ;;  %v10860_v1 = vsel %vm6986_vm7, %v7297_v34, %v7419_v26  ;;  %v5225_v54 = vadd.f32 %v5224_v37, %v5223_v8  ;;  %v10871_v26 = vpop.permute.xlu1 %4423 }
 0x2eb   : > { %v5207_v27 = vrot.slane %v5206_v46, 1  ;;  %v5230_v21 = vsel %vm3295_vm10, %v4844_v9, 0.0  ;;  %v5211_v3 = vadd.f32 %v5210_v45, %v5209_v16  ;;  %v3686_v51 = vadd.f32 %v10712_v28, %v10632_v2 }
 0x2ec   : > { %v5187_v35 = vadd.f32 %v5186_v48, %v5185_v43  ;;  %v5191_v19 = vrot.slane %v5190_v20, 2  ;;  %v5231_v13 = vrot.slane %v5230_v21, 4  ;;  %v5226_v15 = vrot.slane %v5225_v54, 2  ;;  %v10869_v34 = vpop.f32.mrb[128].mxu1 }
 0x2ed   : > { %v5208_v29 = vadd.f32 %v5207_v27, %v5206_v46  ;;  %v3707_v17 = vadd.f32 %v10712_v28, %v10647_v57  ;;  %12319 = vst [vmem:[#allocation26_spill] sm:$0xff] %v10869_v34  ;;  %v5212_v55 = vrot.slane %v5211_v3, 2  ;;  %v10873_v48 = vpop.f32.mrb[129].mxu1  ;;  %v10875_v45 = vunpack.c.l.b16 %v6760_v63  ;;  %v10885_v63 = vpop.permute.xlu0 %4438 }
 0x2ee   : > { %v6758_v36 = vpack.c.bf16 %v5187_v35, %v5187_v35  ;;  %v5192_v8 = vadd.f32 %v5191_v19, %v5190_v20  ;;  %v5232_v31 = vadd.f32 %v5231_v13, %v5230_v21  ;;  %v5227_v43 = vadd.f32 %v5226_v15, %v5225_v54  ;;  %v10877_v16 = vpop.f32.mrb[130].mxu1 }
 0x2ef   : > { %v4074_v46 = vmax.f32 %v3686_v51, 0.0  ;;  %v4079_v37 = vmax.f32 %v3707_v17, 0.0  ;;  %12320 = vst [vmem:[#allocation76_spill] sm:$0xff] %v10877_v16  ;;  %v6761_v2 = vpack.c.bf16 %v5208_v29, %v5208_v29  ;;  %v5213_v57 = vadd.f32 %v5212_v55, %v5211_v3  ;;  %v10879_v34 = vpop.f32.mrb[131].mxu1  ;;  %v10895_v17 = vpop.permute.xlu1 %4428 }
 0x2f0   : > { %v5193_v9 = vrot.slane %v5192_v8, 1  ;;  %v5233_v27 = vrot.slane %v5232_v31, 2  ;;  %12321 = vst [vmem:[#allocation24_spill] sm:$0xff] %v10879_v34  ;;  %v10881_v52 = vunpack.c.l.b16 %v6758_v36  ;;  %v5228_v20 = vrot.slane %v5227_v43, 1 }
 0x2f1   : > { %v4842_v21 = vmul.f32 %v10718_v60, %v4074_v46  ;;  %v4847_v35 = vmul.f32 %v10703_v23, %v4079_v37  ;;  %v5214_v19 = vrot.slane %v5213_v57, 1  ;;  %v7411_v29 = vsel %vm6996_vm14, %v10695_v32, %v10699_v7 }
 0x2f2   : > { %v5194_v54 = vadd.f32 %v5193_v9, %v5192_v8  ;;  %v5234_v13 = vadd.f32 %v5233_v27, %v5232_v31  ;;  %v5229_v3 = vadd.f32 %v5228_v20, %v5227_v43  ;;  %v7418_v60 = vsel %vm6996_vm14, %v10813_v5, %v10822_v49  ;;  %v12322_v9 = vld [vmem:[#allocation13_spill] sm:$0xff] }
 0x2f3   : > { %v5216_v15 = vsel %vm3295_vm10, %v4842_v21, 0.0  ;;  %v5251_v51 = vsel %vm3295_vm10, %v4847_v35, 0.0  ;;  %v5215_v36 = vadd.f32 %v5214_v19, %v5213_v57  ;;  %v7504_v37 = vpack.c.b16 %v7418_v60, %v7411_v29 }
 0x2f4   : > { %v6759_v23 = vpack.c.bf16 %v5194_v54, %v5194_v54  ;;  %v5235_v8 = vrot.slane %v5234_v13, 1  ;;  %v5217_v55 = vrot.slane %v5216_v15, 4  ;;  %v6764_v31 = vpack.c.bf16 %v5229_v3, %v5229_v3  ;;  %v10899_v7 = vpop.f32.mrb[132].mxu1  ;;  %v12325_v54 = vld [vmem:[#allocation70_spill] sm:$0xff]  ;;  %v10912_v3 = vpop.permute.xlu0 %4483 }
 0x2f5   : > { %v5252_v46 = vrot.slane %v5251_v51, 4  ;;  %v3699_v32 = vadd.f32 %v10712_v28, %v12322_v9  ;;  %12323 = vst [vmem:[#allocation77_spill] sm:$0xff] %v10899_v7  ;;  %v10901_v43 = vunpack.c.l.b16 %v6761_v2  ;;  %v6762_v27 = vpack.c.bf16 %v5215_v36, %v5215_v36  ;;  %v10903_v5 = vpop.f32.mrb[133].mxu1  ;;  %8698 = vmatmul.mubr.msk.bf16.vlgmr.msra.gmra.mrb[184].mxu1 %vm3295_vm10, %v7504_v37  ;;  %v4399_v37 = vpop.permute.xlu1 %4398 }
 0x2f6   : > { %v5236_v20 = vadd.f32 %v5235_v8, %v5234_v13  ;;  %v5218_v21 = vadd.f32 %v5217_v55, %v5216_v15  ;;  %12324 = vst [vmem:[#allocation25_spill] sm:$0xff] %v10903_v5  ;;  %v10905_v49 = vunpack.c.l.b16 %v6759_v23  ;;  %v3710_v19 = vadd.f32 %v10712_v28, %v12325_v54  ;;  %v10910_v29 = vpop.f32.mrb[134].mxu1  ;;  %v12327_v13 = vld [vmem:[#allocation14_spill] sm:$0xff] }
 0x2f7   : > { %v5253_v57 = vadd.f32 %v5252_v46, %v5251_v51  ;;  %v4077_v35 = vmax.f32 %v3699_v32, 0.0  ;;  %12326 = vst [vmem:[#allocation78_spill] sm:$0xff] %v10910_v29  ;;  %v7305_v2 = vunpack.c.l.b16 %v6764_v31  ;;  %v7303_v60 = vunpack.c.l.b16 %v6762_v27  ;;  %v10916_v8 = vpop.f32.mrb[135].mxu1 }
 0x2f8   : > { %v5219_v36 = vrot.slane %v5218_v21, 2  ;;  %v3702_v15 = vadd.f32 %v10712_v28, %v12327_v13  ;;  %12328 = vst [vmem:[#allocation23_spill] sm:$0xff] %v10916_v8  ;;  %v4080_v55 = vmax.f32 %v3710_v19, 0.0  ;;  %v3723_v46 = vadd.f32 %v10712_v28, %v10674_v18 }
 0x2f9   : > { %v5254_v23 = vrot.slane %v5253_v57, 2  ;;  %v4845_v51 = vmul.f32 %v10676_v44, %v4077_v35  ;;  %v6765_v9 = vpack.c.bf16 %v5236_v20, %v5236_v20  ;;  %v3715_v31 = vadd.f32 %v10712_v28, %v10679_v33  ;;  %v10931_v33 = vpop.permute.xlu0 %4523 }
 0x2fa   : > { %v5220_v32 = vadd.f32 %v5219_v36, %v5218_v21  ;;  %v4078_v54 = vmax.f32 %v3702_v15, 0.0  ;;  %v4848_v13 = vmul.f32 %v4399_v37, %v4080_v55  ;;  %v4083_v5 = vmax.f32 %v3723_v46, 0.0 }
 0x2fb   : > { %v5255_v27 = vadd.f32 %v5254_v23, %v5253_v57  ;;  %v5237_v29 = vsel %vm3295_vm10, %v4845_v51, 0.0  ;;  %v4081_v35 = vmax.f32 %v3715_v31, 0.0  ;;  %v3726_v21 = vadd.f32 %v10712_v28, %v10684_v14 }
 0x2fc   : > { %v5221_v8 = vrot.slane %v5220_v32, 1  ;;  %v5238_v7 = vrot.slane %v5237_v29, 4  ;;  %v4846_v44 = vmul.f32 %v10773_v4, %v4078_v54  ;;  %v5258_v18 = vsel %vm3295_vm10, %v4848_v13, 0.0  ;;  %v10929_v36 = vpop.f32.mrb[136].mxu1 }
 0x2fd   : > { %v5256_v19 = vrot.slane %v5255_v27, 1  ;;  %v4851_v20 = vmul.f32 %v10830_v62, %v4083_v5  ;;  %12329 = vst [vmem:[#allocation79_spill] sm:$0xff] %v10929_v36  ;;  %v5259_v23 = vrot.slane %v5258_v18, 4  ;;  %v10934_v55 = vpop.f32.mrb[137].mxu1  ;;  %v4849_v62 = vmul.f32 %v10790_v22, %v4081_v35 }
 0x2fe   : > { %v5222_v57 = vadd.f32 %v5221_v8, %v5220_v32  ;;  %v5239_v15 = vadd.f32 %v5238_v7, %v5237_v29  ;;  %v5244_v51 = vsel %vm3295_vm10, %v4846_v44, 0.0  ;;  %12330 = vst [vmem:[#allocation30_spill] sm:$0xff] %v10934_v55  ;;  %v10938_v5 = vpop.f32.mrb[138].mxu1  ;;  %v10942_v7 = vunpack.c.l.b16 %v6765_v9 }
 0x2ff   : > { %v5257_v4 = vadd.f32 %v5256_v19, %v5255_v27  ;;  %v5245_v46 = vrot.slane %v5244_v51, 4  ;;  %v5279_v37 = vsel %vm3295_vm10, %v4851_v20, 0.0  ;;  %12331 = vst [vmem:[#allocation80_spill] sm:$0xff] %v10938_v5  ;;  %v5260_v31 = vadd.f32 %v5259_v23, %v5258_v18  ;;  %v10940_v36 = vpop.f32.mrb[139].mxu1  ;;  %v10946_v5 = vpop.permute.xlu0 %4493 }
 0x300   : > { %v6763_v14 = vpack.c.bf16 %v5222_v57, %v5222_v57  ;;  %v5240_v54 = vrot.slane %v5239_v15, 2  ;;  %v5280_v13 = vrot.slane %v5279_v37, 4  ;;  %12332 = vst [vmem:[#allocation81_spill] sm:$0xff] %v10940_v36  ;;  %v5265_v8 = vsel %vm3295_vm10, %v4849_v62, 0.0 }
 0x301   : > { %v5246_v29 = vadd.f32 %v5245_v46, %v5244_v51  ;;  %v4084_v32 = vmax.f32 %v3726_v21, 0.0  ;;  %v5261_v19 = vrot.slane %v5260_v31, 2  ;;  %v6768_v55 = vpack.c.bf16 %v5257_v4, %v5257_v4 }
 0x302   : > { %v7304_v27 = vunpack.c.l.b16 %v6763_v14  ;;  %v5241_v44 = vadd.f32 %v5240_v54, %v5239_v15  ;;  %v5281_v20 = vadd.f32 %v5280_v13, %v5279_v37  ;;  %v5266_v35 = vrot.slane %v5265_v8, 4  ;;  %v10957_v13 = vpop.permute.xlu1 %4473 }
 0x303   : > { %v5247_v22 = vrot.slane %v5246_v29, 2  ;;  %v4852_v57 = vmul.f32 %v10854_v58, %v4084_v32  ;;  %v5262_v9 = vadd.f32 %v5261_v19, %v5260_v31  ;;  %v12335_v32 = vld [vmem:[#allocation71_spill] sm:$0xff] }
 0x304   : > { %v7426_v18 = vsel %vm6984_vm6, %v7304_v27, %v7303_v60  ;;  %v5242_v23 = vrot.slane %v5241_v44, 1  ;;  %v5282_v36 = vrot.slane %v5281_v20, 2  ;;  %v5267_v46 = vadd.f32 %v5266_v35, %v5265_v8  ;;  %v10953_v37 = vpop.f32.mrb[140].mxu1 }
 0x305   : > { %v10950_v51 = vsel %vm6986_vm7, %v7305_v2, %v7426_v18  ;;  %v5248_v21 = vadd.f32 %v5247_v22, %v5246_v29  ;;  %v5286_v15 = vsel %vm3295_vm10, %v4852_v57, 0.0  ;;  %12333 = vst [vmem:[#allocation28_spill] sm:$0xff] %v10953_v37  ;;  %v5263_v62 = vrot.slane %v5262_v9, 1  ;;  %v10955_v54 = vpop.f32.mrb[141].mxu1 }
 0x306   : > { %v5243_v4 = vadd.f32 %v5242_v23, %v5241_v44  ;;  %v5283_v14 = vadd.f32 %v5282_v36, %v5281_v20  ;;  %v5287_v58 = vrot.slane %v5286_v15, 4  ;;  %12334 = vst [vmem:[#allocation29_spill] sm:$0xff] %v10955_v54  ;;  %v5268_v31 = vrot.slane %v5267_v46, 2  ;;  %v10963_v8 = vpop.f32.mrb[142].mxu1  ;;  %v10967_v23 = vpop.permute.xlu0 %4563 }
 0x307   : > { %v5249_v60 = vrot.slane %v5248_v21, 1  ;;  %v3718_v2 = vadd.f32 %v10712_v28, %v12335_v32  ;;  %v3739_v29 = vadd.f32 %v10712_v28, %v10716_v6  ;;  %v5264_v19 = vadd.f32 %v5263_v62, %v5262_v9  ;;  %v10965_v36 = vpop.f32.mrb[143].mxu1 }
 0x308   : > { %v6766_v27 = vpack.c.bf16 %v5243_v4, %v5243_v4  ;;  %v5284_v44 = vrot.slane %v5283_v14, 1  ;;  %v5288_v22 = vadd.f32 %v5287_v58, %v5286_v15  ;;  %v5269_v35 = vadd.f32 %v5268_v31, %v5267_v46  ;;  %v10979_v58 = vpop.permute.xlu1 %4478 }
 0x309   : > { %v5250_v20 = vadd.f32 %v5249_v60, %v5248_v21  ;;  %v4082_v57 = vmax.f32 %v3718_v2, 0.0  ;;  %v4087_v18 = vmax.f32 %v3739_v29, 0.0  ;;  %v10969_v54 = vunpack.c.l.b16 %v6768_v55 }
 0x30a   : > { %v6769_v32 = vpack.c.bf16 %v5264_v19, %v5264_v19  ;;  %v5285_v37 = vadd.f32 %v5284_v44, %v5283_v14  ;;  %v5289_v34 = vrot.slane %v5288_v22, 2  ;;  %v5270_v16 = vrot.slane %v5269_v35, 1 }
 0x30b   : > { %v6767_v6 = vpack.c.bf16 %v5250_v20, %v5250_v20  ;;  %v4850_v4 = vmul.f32 %v10735_v59, %v4082_v57  ;;  %v4855_v9 = vmul.f32 %v10863_v56, %v4087_v18  ;;  %v10973_v15 = vunpack.c.l.b16 %v6766_v27 }
 0x30c   : > { %v10975_v62 = vunpack.c.l.b16 %v6769_v32  ;;  %v5290_v21 = vadd.f32 %v5289_v34, %v5288_v22  ;;  %v3731_v46 = vadd.f32 %v10712_v28, %v10724_v39  ;;  %v6772_v55 = vpack.c.bf16 %v5285_v37, %v5285_v37  ;;  %v10983_v2 = vpop.f32.mrb[144].mxu1  ;;  %v10995_v22 = vpop.permute.xlu0 %4603 }
 0x30d   : > { %v5271_v60 = vadd.f32 %v5270_v16, %v5269_v35  ;;  %v5272_v14 = vsel %vm3295_vm10, %v4850_v4, 0.0  ;;  %v5307_v31 = vsel %vm3295_vm10, %v4855_v9, 0.0  ;;  %v10985_v59 = vunpack.c.l.b16 %v6767_v6  ;;  %v10987_v19 = vpop.f32.mrb[145].mxu1  ;;  %12338 = vst [vmem:[#allocation27_spill] sm:$0xff] %v10995_v22 }
 0x30e   : > { %v5291_v56 = vrot.slane %v5290_v21, 1  ;;  %v5273_v29 = vrot.slane %v5272_v14, 4  ;;  %v5308_v27 = vrot.slane %v5307_v31, 4  ;;  %12336 = vst [vmem:[#allocation82_spill] sm:$0xff] %v10987_v19  ;;  %v4085_v44 = vmax.f32 %v3731_v46, 0.0  ;;  %v10993_v37 = vpop.f32.mrb[146].mxu1  ;;  %v11004_v19 = vpop.permute.xlu1 %4488 }
 0x30f   : > { %v6770_v34 = vpack.c.bf16 %v5271_v60, %v5271_v60  ;;  %v3742_v39 = vadd.f32 %v10712_v28, %v10728_v38  ;;  %v3734_v16 = vadd.f32 %v10712_v28, %v10732_v11  ;;  %12337 = vst [vmem:[#allocation83_spill] sm:$0xff] %v10993_v37  ;;  %v3755_v18 = vadd.f32 %v10712_v28, %v10751_v40  ;;  %v10999_v32 = vpop.f32.mrb[147].mxu1 }
 0x310   : > { %v5292_v20 = vadd.f32 %v5291_v56, %v5290_v21  ;;  %v5274_v35 = vadd.f32 %v5273_v29, %v5272_v14  ;;  %v5309_v57 = vadd.f32 %v5308_v27, %v5307_v31  ;;  %12339 = vst [vmem:[#allocation36_spill] sm:$0xff] %v10999_v32  ;;  %v11001_v6 = vunpack.c.l.b16 %v6772_v55 }
 0x311   : > { %v4853_v4 = vmul.f32 %v10871_v26, %v4085_v44  ;;  %v4088_v38 = vmax.f32 %v3742_v39, 0.0  ;;  %v4086_v9 = vmax.f32 %v3734_v16, 0.0  ;;  %v7311_v46 = vunpack.c.l.b16 %v6770_v34 }
 0x312   : > { %v5275_v11 = vrot.slane %v5274_v35, 2  ;;  %v5310_v60 = vrot.slane %v5309_v57, 2  ;;  %v4091_v37 = vmax.f32 %v3755_v18, 0.0  ;;  %v3747_v55 = vadd.f32 %v10712_v28, %v10758_v12  ;;  %v11016_v18 = vpop.permute.xlu0 %4498 }
 0x313   : > { %v5293_v21 = vsel %vm3295_vm10, %v4853_v4, 0.0  ;;  %v4856_v14 = vmul.f32 %v10885_v63, %v4088_v38  ;;  %v4854_v40 = vmul.f32 %v10895_v17, %v4086_v9  ;;  %v6773_v31 = vpack.c.bf16 %v5292_v20, %v5292_v20 }
 0x314   : > { %v5276_v56 = vadd.f32 %v5275_v11, %v5274_v35  ;;  %v5311_v26 = vadd.f32 %v5310_v60, %v5309_v57  ;;  %v5294_v29 = vrot.slane %v5293_v21, 4  ;;  %v4859_v44 = vmul.f32 %v10784_v42, %v4091_v37  ;;  %v11014_v16 = vpop.f32.mrb[148].mxu1  ;;  %v11022_v60 = vpop.permute.xlu1 %4528 }
 0x315   : > { %v5314_v27 = vsel %vm3295_vm10, %v4856_v14, 0.0  ;;  %v5300_v34 = vsel %vm3295_vm10, %v4854_v40, 0.0  ;;  %v4089_v39 = vmax.f32 %v3747_v55, 0.0  ;;  %12340 = vst [vmem:[#allocation32_spill] sm:$0xff] %v11014_v16  ;;  %v3758_v57 = vadd.f32 %v10712_v28, %v10763_v25 }
 0x316   : > { %v5277_v63 = vrot.slane %v5276_v56, 1  ;;  %v5312_v17 = vrot.slane %v5311_v26, 1  ;;  %v5295_v4 = vadd.f32 %v5294_v29, %v5293_v21  ;;  %v5315_v38 = vrot.slane %v5314_v27, 4 }
 0x317   : > { %v5301_v12 = vrot.slane %v5300_v34, 4  ;;  %v5335_v20 = vsel %vm3295_vm10, %v4859_v44, 0.0  ;;  %v4857_v35 = vmul.f32 %v10805_v61, %v4089_v39  ;;  %v4092_v21 = vmax.f32 %v3758_v57, 0.0 }
 0x318   : > { %v5278_v9 = vadd.f32 %v5277_v63, %v5276_v56  ;;  %v5313_v11 = vadd.f32 %v5312_v17, %v5311_v26  ;;  %v5296_v42 = vrot.slane %v5295_v4, 2  ;;  %v5316_v37 = vadd.f32 %v5315_v38, %v5314_v27  ;;  %v11028_v56 = vpop.permute.xlu0 %4573 }
 0x319   : > { %v5302_v14 = vadd.f32 %v5301_v12, %v5300_v34  ;;  %v5336_v40 = vrot.slane %v5335_v20, 4  ;;  %v5321_v55 = vsel %vm3295_vm10, %v4857_v35, 0.0  ;;  %v11025_v29 = vunpack.c.l.b16 %v6773_v31 }
 0x31a   : > { %v6771_v16 = vpack.c.bf16 %v5278_v9, %v5278_v9  ;;  %v5297_v44 = vadd.f32 %v5296_v42, %v5295_v4  ;;  %v5317_v32 = vrot.slane %v5316_v37, 2  ;;  %v5322_v22 = vrot.slane %v5321_v55, 4 }
 0x31b   : > { %v5303_v61 = vrot.slane %v5302_v14, 2  ;;  %v5337_v39 = vadd.f32 %v5336_v40, %v5335_v20  ;;  %v4860_v25 = vmul.f32 %v10798_v10, %v4092_v21  ;;  %v6776_v27 = vpack.c.bf16 %v5313_v11, %v5313_v11  ;;  %v11032_v20 = vpop.permute.xlu1 %4533  ;;  %v11040_v40 = vpop.f32.mrb[149].mxu1 }
 0x31c   : > { %v7312_v26 = vunpack.c.l.b16 %v6771_v16  ;;  %v5298_v63 = vrot.slane %v5297_v44, 1  ;;  %v5318_v34 = vadd.f32 %v5317_v32, %v5316_v37  ;;  %v5323_v12 = vadd.f32 %v5322_v22, %v5321_v55 }
 0x31d   : > { %v5304_v17 = vadd.f32 %v5303_v61, %v5302_v14  ;;  %v5338_v38 = vrot.slane %v5337_v39, 2  ;;  %v5342_v31 = vsel %vm3295_vm10, %v4860_v25, 0.0  ;;  %v3750_v22 = vadd.f32 %v10712_v28, %v10769_v24  ;;  %v11044_v25 = vpop.permute.xlu0 %4503 }
 0x31e   : > { %v7433_v35 = vsel %vm6984_vm6, %v7312_v26, %v7311_v46  ;;  %v5299_v4 = vadd.f32 %v5298_v63, %v5297_v44  ;;  %v5319_v57 = vrot.slane %v5318_v34, 1  ;;  %v5343_v9 = vrot.slane %v5342_v31, 4  ;;  %v12341_v44 = vld [vmem:[#allocation16_spill] sm:$0xff] }
 0x31f   : > { %v11036_v10 = vsel %vm6986_vm7, %v11001_v6, %v7433_v35  ;;  %v5305_v16 = vrot.slane %v5304_v17, 1  ;;  %v5339_v11 = vadd.f32 %v5338_v38, %v5337_v39  ;;  %v5324_v42 = vrot.slane %v5323_v12, 2 }
 0x320   : > { %v6774_v32 = vpack.c.bf16 %v5299_v4, %v5299_v4  ;;  %v5320_v37 = vadd.f32 %v5319_v57, %v5318_v34  ;;  %v5344_v14 = vadd.f32 %v5343_v9, %v5342_v31  ;;  %v3771_v61 = vadd.f32 %v10712_v28, %v12341_v44  ;;  %v11054_v9 = vpop.permute.xlu1 %4568 }
 0x321   : > { %v5306_v46 = vadd.f32 %v5305_v16, %v5304_v17  ;;  %v5340_v55 = vrot.slane %v5339_v11, 1  ;;  %v5325_v21 = vadd.f32 %v5324_v42, %v5323_v12  ;;  %v11046_v6 = vunpack.c.l.b16 %v6776_v27  ;;  %v12342_v17 = vld [vmem:[#allocation15_spill] sm:$0xff]  ;;  %v11072_v44 = vpop.permute.xlu0 %4578 }
 0x322   : > { %v6777_v39 = vpack.c.bf16 %v5320_v37, %v5320_v37  ;;  %v5345_v26 = vrot.slane %v5344_v14, 2  ;;  %v4090_v63 = vmax.f32 %v3750_v22, 0.0  ;;  %v4095_v35 = vmax.f32 %v3771_v61, 0.0 }
 0x323   : > { %v6775_v34 = vpack.c.bf16 %v5306_v46, %v5306_v46  ;;  %v5341_v38 = vadd.f32 %v5340_v55, %v5339_v11  ;;  %v5326_v31 = vrot.slane %v5325_v21, 1  ;;  %v11048_v24 = vunpack.c.l.b16 %v6774_v32  ;;  %v11059_v11 = vpop.f32.mrb[150].mxu1 }
 0x324   : > { %v5346_v4 = vadd.f32 %v5345_v26, %v5344_v14  ;;  %v4858_v57 = vmul.f32 %v12342_v17, %v4090_v63  ;;  %v7421_v12 = vsel %vm6988_vm9, %v10847_v47, %v10860_v1  ;;  %v11056_v27 = vunpack.c.l.b16 %v6777_v39  ;;  %v11067_v1 = vpop.f32.mrb[151].mxu1 }
 0x325   : > { %v6780_v16 = vpack.c.bf16 %v5341_v38, %v5341_v38  ;;  %v5327_v42 = vadd.f32 %v5326_v31, %v5325_v21  ;;  %v4863_v37 = vmul.f32 %v10957_v13, %v4095_v35  ;;  %v7422_v14 = vsel %vm6990_vm11, %v10881_v52, %v7421_v12  ;;  %v11078_v63 = vpop.f32.mrb[152].mxu1  ;;  %v12343_v12 = vld [vmem:[#allocation72_spill] sm:$0xff] }
 0x326   : > { %v5347_v22 = vrot.slane %v5346_v4, 1  ;;  %v5328_v32 = vsel %vm3295_vm10, %v4858_v57, 0.0  ;;  %v7428_v47 = vsel %vm6988_vm9, %v10942_v7, %v10950_v51  ;;  %v11069_v46 = vunpack.c.l.b16 %v6775_v34 }
 0x327   : > { %v6778_v55 = vpack.c.bf16 %v5327_v42, %v5327_v42  ;;  %v5329_v21 = vrot.slane %v5328_v32, 4  ;;  %v5363_v13 = vsel %vm3295_vm10, %v4863_v37, 0.0  ;;  %v7423_v26 = vsel %vm6992_vm12, %v10905_v49, %v7422_v14 }
 0x328   : > { %v5348_v61 = vadd.f32 %v5347_v22, %v5346_v4  ;;  %v5364_v39 = vrot.slane %v5363_v13, 4  ;;  %v7429_v52 = vsel %vm6990_vm11, %v10973_v15, %v7428_v47  ;;  %v11080_v7 = vunpack.c.l.b16 %v6780_v16  ;;  %v11092_v4 = vpop.permute.xlu1 %4608  ;;  %v11100_v16 = vpop.f32.mrb[153].mxu1  ;;  %v12345_v22 = vld [vmem:[#allocation22_spill] sm:$0xff] }
 0x329   : > { %v5330_v51 = vadd.f32 %v5329_v21, %v5328_v32  ;;  %v7424_v34 = vsel %vm6994_vm13, %v10875_v45, %v7423_v26  ;;  %v7430_v38 = vsel %vm6992_vm12, %v10985_v59, %v7429_v52  ;;  %v11086_v31 = vunpack.c.l.b16 %v6778_v55  ;;  %12344 = vst [vmem:[#allocation35_spill] sm:$0xff] %v11100_v16  ;;  %v12346_v55 = vld [vmem:[#allocation20_spill] sm:$0xff]  ;;  %v11106_v21 = vpop.permute.xlu0 %4508  ;;  %v11118_v52 = vpop.f32.mrb[154].mxu1 }
 0x32a   : > { %v5365_v35 = vadd.f32 %v5364_v39, %v5363_v13  ;;  %v7425_v49 = vsel %vm6996_vm14, %v10901_v43, %v7424_v34  ;;  %v7431_v15 = vsel %vm6994_vm13, %v10969_v54, %v7430_v38  ;;  %v3763_v45 = vadd.f32 %v10712_v28, %v12343_v12  ;;  %v11114_v39 = vld [vmem:[%s12067_s7] ss:$0 sm:$0xff]  ;;  %12347 = vst [vmem:[#allocation31_spill] sm:$0xff] %v11118_v52 }
 0x32b   : > { %v5331_v17 = vrot.slane %v5330_v51, 2  ;;  %v7432_v57 = vsel %vm6996_vm14, %v10975_v62, %v7431_v15  ;;  %v3774_v59 = vadd.f32 %v10712_v28, %v10788_v50  ;;  %v6781_v42 = vpack.c.bf16 %v5348_v61, %v5348_v61 }
 0x32c   : > { %v5366_v37 = vrot.slane %v5365_v35, 2  ;;  %v7505_v43 = vpack.c.b16 %v7432_v57, %v7425_v49  ;;  %v3766_v54 = vadd.f32 %v10712_v28, %v12345_v22  ;;  %v4093_v14 = vmax.f32 %v3763_v45, 0.0  ;;  %v11122_v49 = vpop.f32.mrb[155].mxu1  ;;  %v11125_v57 = vpop.permute.xlu1 %4538 }
 0x32d   : > { %v5332_v32 = vadd.f32 %v5331_v17, %v5330_v51  ;;  %v4096_v47 = vmax.f32 %v3774_v59, 0.0  ;;  %v3787_v62 = vadd.f32 %v10712_v28, %v12346_v55  ;;  %v3779_v61 = vadd.f32 %v10712_v28, %v10809_v53  ;;  %12348 = vst [vmem:[#allocation41_spill] sm:$0xff] %v11122_v49 }
 0x32e   : > { %v5367_v13 = vadd.f32 %v5366_v37, %v5365_v35  ;;  %8701 = vmatprep.mubr.msk.bf16.mxu1 %vm3295_vm10, %v7505_v43  ;;  %v4094_v50 = vmax.f32 %v3766_v54, 0.0  ;;  %v3790_v26 = vadd.f32 %v11114_v39, %v10811_v0  ;;  %v4861_v34 = vmul.f32 %v10819_v41, %v4093_v14 }
 0x32f   : > { %v5333_v51 = vrot.slane %v5332_v32, 1  ;;  %v4864_v38 = vmul.f32 %v10979_v58, %v4096_v47  ;;  %v4099_v35 = vmax.f32 %v3787_v62, 0.0  ;;  %v4097_v53 = vmax.f32 %v3779_v61, 0.0  ;;  %v11135_v47 = vpop.permute.xlu0 %4583 }
 0x330   : > { %v5368_v15 = vrot.slane %v5367_v13, 1  ;;  %v4862_v28 = vmul.f32 %v10845_v30, %v4094_v50  ;;  %v4100_v17 = vmax.f32 %v3790_v26, 0.0  ;;  %v5349_v0 = vsel %vm3295_vm10, %v4861_v34, 0.0 }
 0x331   : > { %v5334_v12 = vadd.f32 %v5333_v51, %v5332_v32  ;;  %v5370_v45 = vsel %vm3295_vm10, %v4864_v38, 0.0  ;;  %v4867_v59 = vmul.f32 %v10946_v5, %v4099_v35  ;;  %v5350_v58 = vrot.slane %v5349_v0, 4 }
 0x332   : > { %v11130_v41 = vadd.f32 %v5368_v15, %v5367_v13  ;;  %v5371_v37 = vrot.slane %v5370_v45, 4  ;;  %v5356_v43 = vsel %vm3295_vm10, %v4862_v28, 0.0  ;;  %v4865_v14 = vmul.f32 %v10912_v3, %v4097_v53  ;;  %v11143_v3 = vpop.f32.mrb[156].mxu1  ;;  %v11145_v15 = vpop.permute.xlu1 %4613 }
 0x333   : > { %v6779_v22 = vpack.c.bf16 %v5334_v12, %v5334_v12  ;;  %v5357_v54 = vrot.slane %v5356_v43, 4  ;;  %v5391_v30 = vsel %vm3295_vm10, %v4867_v59, 0.0  ;;  %v11137_v32 = vunpack.c.l.b16 %v6781_v42  ;;  %12349 = vst [vmem:[#allocation38_spill] sm:$0xff] %v11143_v3 }
 0x334   : > { %v5351_v55 = vadd.f32 %v5350_v58, %v5349_v0  ;;  %v5372_v62 = vadd.f32 %v5371_v37, %v5370_v45  ;;  %v5392_v50 = vrot.slane %v5391_v30, 4  ;;  %v5377_v61 = vsel %vm3295_vm10, %v4865_v14, 0.0  ;;  %v11150_v0 = vpop.f32.mrb[157].mxu1 }
 0x335   : > { %v7320_v5 = vunpack.c.l.b16 %v6779_v22  ;;  %v5358_v13 = vadd.f32 %v5357_v54, %v5356_v43  ;;  %v4868_v26 = vmul.f32 %v11016_v18, %v4100_v17  ;;  %v6784_v51 = vpack.c.bf16 %v11130_v41, %v11130_v41  ;;  %12350 = vst [vmem:[#allocation39_spill] sm:$0xff] %v11150_v0  ;;  %v11156_v41 = vpop.f32.mrb[158].mxu1  ;;  %v12352_v22 = vld [vmem:[#allocation21_spill] sm:$0xff] }
 0x336   : > { %v5352_v34 = vrot.slane %v5351_v55, 2  ;;  %v5373_v38 = vrot.slane %v5372_v62, 2  ;;  %v5393_v35 = vadd.f32 %v5392_v50, %v5391_v30  ;;  %v5378_v53 = vrot.slane %v5377_v61, 4  ;;  %12351 = vst [vmem:[#allocation37_spill] sm:$0xff] %v11156_v41  ;;  %v11160_v54 = vpop.f32.mrb[159].mxu1  ;;  %v4514_v30 = vpop.permute.xlu0 %4513 }
 0x337   : > { %v7440_v42 = vsel %vm6984_vm6, %v7320_v5, %v11086_v31  ;;  %v5359_v28 = vrot.slane %v5358_v13, 2  ;;  %v5398_v12 = vsel %vm3295_vm10, %v4868_v26, 0.0  ;;  %v3782_v31 = vadd.f32 %v11114_v39, %v12352_v22  ;;  %12353 = vst [vmem:[#allocation46_spill] sm:$0xff] %v11160_v54  ;;  %v12354_v26 = vld [vmem:[#allocation73_spill] sm:$0xff] }
 0x338   : > { %v11154_v18 = vsel %vm6986_vm7, %v11080_v7, %v7440_v42  ;;  %v5353_v17 = vadd.f32 %v5352_v34, %v5351_v55  ;;  %v5374_v45 = vadd.f32 %v5373_v38, %v5372_v62  ;;  %v5394_v59 = vrot.slane %v5393_v35, 2 }
 0x339   : > { %v5360_v58 = vadd.f32 %v5359_v28, %v5358_v13  ;;  %v5379_v37 = vadd.f32 %v5378_v53, %v5377_v61  ;;  %v5399_v43 = vrot.slane %v5398_v12, 4  ;;  %v3803_v7 = vadd.f32 %v11114_v39, %v12354_v26  ;;  %v11164_v53 = vpop.permute.xlu1 %4543  ;;  %v11167_v26 = vpop.f32.mrb[160].mxu1 }
 0x33a   : > { %v5354_v14 = vrot.slane %v5353_v17, 1  ;;  %v5375_v50 = vrot.slane %v5374_v45, 1  ;;  %v5395_v5 = vadd.f32 %v5394_v59, %v5393_v35  ;;  %v4098_v38 = vmax.f32 %v3782_v31, 0.0  ;;  %12355 = vst [vmem:[#allocation44_spill] sm:$0xff] %v11167_v26  ;;  %v11172_v31 = vpop.permute.xlu0 %4588 }
 0x33b   : > { %v5361_v55 = vrot.slane %v5360_v58, 1  ;;  %v5380_v62 = vrot.slane %v5379_v37, 2  ;;  %v5400_v34 = vadd.f32 %v5399_v43, %v5398_v12  ;;  %v4103_v28 = vmax.f32 %v3803_v7, 0.0 }
 0x33c   : > { %v5355_v42 = vadd.f32 %v5354_v14, %v5353_v17  ;;  %v5376_v13 = vadd.f32 %v5375_v50, %v5374_v45  ;;  %v5396_v61 = vrot.slane %v5395_v5, 1  ;;  %v4866_v0 = vmul.f32 %v11004_v19, %v4098_v38  ;;  %v11170_v45 = vpop.f32.mrb[161].mxu1 }
 0x33d   : > { %v5362_v22 = vadd.f32 %v5361_v55, %v5360_v58  ;;  %v5381_v41 = vadd.f32 %v5380_v62, %v5379_v37  ;;  %v5401_v54 = vrot.slane %v5400_v34, 2  ;;  %v4871_v49 = vmul.f32 %v4514_v30, %v4103_v28  ;;  %12356 = vst [vmem:[#allocation45_spill] sm:$0xff] %v11170_v45  ;;  %v11180_v50 = vpop.f32.mrb[162].mxu1  ;;  %v11189_v38 = vpop.permute.xlu1 %4618 }
 0x33e   : > { %v6782_v3 = vpack.c.bf16 %v5355_v42, %v5355_v42  ;;  %v6785_v35 = vpack.c.bf16 %v5376_v13, %v5376_v13  ;;  %v5397_v59 = vadd.f32 %v5396_v61, %v5395_v5  ;;  %v5384_v17 = vsel %vm3295_vm10, %v4866_v0, 0.0  ;;  %12357 = vst [vmem:[#allocation43_spill] sm:$0xff] %v11180_v50  ;;  %v11183_v55 = vpop.f32.mrb[163].mxu1  ;;  %v12360_v61 = vld [vmem:[#allocation75_spill] sm:$0xff]  ;;  %v4519_v50 = vpop.permute.xlu0 %4518 }
 0x33f   : > { %v6783_v52 = vpack.c.bf16 %v5362_v22, %v5362_v22  ;;  %v5382_v12 = vrot.slane %v5381_v41, 1  ;;  %v5402_v43 = vadd.f32 %v5401_v54, %v5400_v34  ;;  %v11174_v58 = vunpack.c.l.b16 %v6784_v51  ;;  %12358 = vst [vmem:[#allocation48_spill] sm:$0xff] %v11183_v55  ;;  %v12359_v51 = vld [vmem:[#allocation74_spill] sm:$0xff] }
 0x340   : > { %v11176_v37 = vunpack.c.l.b16 %v6782_v3  ;;  %v11178_v19 = vunpack.c.l.b16 %v6785_v35  ;;  %v5385_v14 = vrot.slane %v5384_v17, 4  ;;  %v6788_v30 = vpack.c.bf16 %v5397_v59, %v5397_v59 }
 0x341   : > { %v5383_v5 = vadd.f32 %v5382_v12, %v5381_v41  ;;  %v5403_v7 = vrot.slane %v5402_v43, 1  ;;  %v5419_v54 = vsel %vm3295_vm10, %v4871_v49, 0.0  ;;  %v11185_v0 = vunpack.c.l.b16 %v6783_v52  ;;  %v12361_v41 = vld [vmem:[#allocation19_spill] sm:$0xff]  ;;  %v12362_v52 = vld [vmem:[#allocation26_spill] sm:$0xff] }
 0x342   : > { %v5386_v62 = vadd.f32 %v5385_v14, %v5384_v17  ;;  %v5420_v34 = vrot.slane %v5419_v54, 4  ;;  %v3795_v3 = vadd.f32 %v11114_v39, %v12359_v51  ;;  %v3806_v28 = vadd.f32 %v11114_v39, %v12360_v61  ;;  %v11198_v61 = vpop.f32.mrb[164].mxu1 }
 0x343   : > { %v6786_v42 = vpack.c.bf16 %v5383_v5, %v5383_v5  ;;  %v5404_v13 = vadd.f32 %v5403_v7, %v5402_v43  ;;  %v3798_v22 = vadd.f32 %v11114_v39, %v12361_v41  ;;  %v3819_v12 = vadd.f32 %v11114_v39, %v12362_v52  ;;  %12363 = vst [vmem:[#allocation47_spill] sm:$0xff] %v11198_v61 }
 0x344   : > { %v5387_v49 = vrot.slane %v5386_v62, 2  ;;  %v5421_v35 = vadd.f32 %v5420_v34, %v5419_v54  ;;  %v4101_v59 = vmax.f32 %v3795_v3, 0.0  ;;  %v7329_v17 = vunpack.c.l.b16 %v6788_v30 }
 0x345   : > { %v7327_v14 = vunpack.c.l.b16 %v6786_v42  ;;  %v4104_v55 = vmax.f32 %v3806_v28, 0.0  ;;  %v4102_v51 = vmax.f32 %v3798_v22, 0.0  ;;  %v4107_v7 = vmax.f32 %v3819_v12, 0.0  ;;  %v12364_v12 = vld [vmem:[#allocation76_spill] sm:$0xff] }
 0x346   : > { %v5388_v45 = vadd.f32 %v5387_v49, %v5386_v62  ;;  %v5422_v5 = vrot.slane %v5421_v35, 2  ;;  %v4869_v43 = vmul.f32 %v11044_v25, %v4101_v59  ;;  %v6789_v26 = vpack.c.bf16 %v5404_v13, %v5404_v13  ;;  %v11205_v62 = vpop.permute.xlu1 %4548 }
 0x347   : > { %v4872_v41 = vmul.f32 %v4519_v50, %v4104_v55  ;;  %v4870_v54 = vmul.f32 %v11106_v21, %v4102_v51  ;;  %v3811_v34 = vadd.f32 %v11114_v39, %v10873_v48  ;;  %v4875_v28 = vmul.f32 %v11032_v20, %v4107_v7 }
 0x348   : > { %v5389_v3 = vrot.slane %v5388_v45, 1  ;;  %v5423_v30 = vadd.f32 %v5422_v5, %v5421_v35  ;;  %v5405_v42 = vsel %vm3295_vm10, %v4869_v43, 0.0  ;;  %v3822_v20 = vadd.f32 %v11114_v39, %v12364_v12 }
 0x349   : > { %v5406_v22 = vrot.slane %v5405_v42, 4  ;;  %v5426_v25 = vsel %vm3295_vm10, %v4872_v41, 0.0  ;;  %v5412_v49 = vsel %vm3295_vm10, %v4870_v54, 0.0  ;;  %v4105_v13 = vmax.f32 %v3811_v34, 0.0 }
 0x34a   : > { %v5390_v50 = vadd.f32 %v5389_v3, %v5388_v45  ;;  %v5424_v55 = vrot.slane %v5423_v30, 1  ;;  %v5427_v21 = vrot.slane %v5426_v25, 4  ;;  %v5413_v59 = vrot.slane %v5412_v49, 4 }
 0x34b   : > { %v5407_v52 = vadd.f32 %v5406_v22, %v5405_v42  ;;  %v5447_v48 = vsel %vm3295_vm10, %v4875_v28, 0.0  ;;  %v4873_v35 = vmul.f32 %v10931_v33, %v4105_v13  ;;  %v4108_v45 = vmax.f32 %v3822_v20, 0.0  ;;  %v11216_v28 = vpop.permute.xlu1 %4623 }
 0x34c   : > { %v6787_v51 = vpack.c.bf16 %v5390_v50, %v5390_v50  ;;  %v5425_v5 = vadd.f32 %v5424_v55, %v5423_v30  ;;  %v5428_v43 = vadd.f32 %v5427_v21, %v5426_v25  ;;  %v5414_v7 = vadd.f32 %v5413_v59, %v5412_v49  ;;  %v11220_v21 = vpop.permute.xlu0 %4593 }
 0x34d   : > { %v5408_v41 = vrot.slane %v5407_v52, 2  ;;  %v5448_v61 = vrot.slane %v5447_v48, 4  ;;  %v5433_v54 = vsel %vm3295_vm10, %v4873_v35, 0.0  ;;  %v11214_v34 = vunpack.c.l.b16 %v6789_v26 }
 0x34e   : > { %v7328_v3 = vunpack.c.l.b16 %v6787_v51  ;;  %v5429_v42 = vrot.slane %v5428_v43, 2  ;;  %v5415_v22 = vrot.slane %v5414_v7, 2  ;;  %v5434_v16 = vrot.slane %v5433_v54, 4 }
 0x34f   : > { %v5409_v33 = vadd.f32 %v5408_v41, %v5407_v52  ;;  %v5449_v13 = vadd.f32 %v5448_v61, %v5447_v48  ;;  %v4876_v50 = vmul.f32 %v11125_v57, %v4108_v45  ;;  %v6792_v25 = vpack.c.bf16 %v5425_v5, %v5425_v5  ;;  %v12365_v52 = vld [vmem:[#allocation24_spill] sm:$0xff] }
 0x350   : > { %v7447_v30 = vsel %vm6984_vm6, %v7328_v3, %v7327_v14  ;;  %v5430_v49 = vadd.f32 %v5429_v42, %v5428_v43  ;;  %v5416_v55 = vadd.f32 %v5415_v22, %v5414_v7  ;;  %v5435_v12 = vadd.f32 %v5434_v16, %v5433_v54  ;;  %v11228_v7 = vpop.f32.mrb[165].mxu1  ;;  %v4554_v54 = vpop.permute.xlu1 %4553 }
 0x351   : > { %v11223_v26 = vsel %vm6986_vm7, %v7329_v17, %v7447_v30  ;;  %v5410_v59 = vrot.slane %v5409_v33, 1  ;;  %v5450_v35 = vrot.slane %v5449_v13, 2  ;;  %v5454_v61 = vsel %vm3295_vm10, %v4876_v50, 0.0 }
 0x352   : > { %v5431_v20 = vrot.slane %v5430_v49, 1  ;;  %v5417_v51 = vrot.slane %v5416_v55, 1  ;;  %v3814_v57 = vadd.f32 %v11114_v39, %v12365_v52  ;;  %v5436_v5 = vrot.slane %v5435_v12, 2 }
 0x353   : > { %v5411_v48 = vadd.f32 %v5410_v59, %v5409_v33  ;;  %v5451_v14 = vadd.f32 %v5450_v35, %v5449_v13  ;;  %v5455_v43 = vrot.slane %v5454_v61, 4  ;;  %v7435_v16 = vsel %vm6988_vm9, %v11025_v29, %v11036_v10 }
 0x354   : > { %v5432_v41 = vadd.f32 %v5431_v20, %v5430_v49  ;;  %v5418_v45 = vadd.f32 %v5417_v51, %v5416_v55  ;;  %v4106_v17 = vmax.f32 %v3814_v57, 0.0  ;;  %v5437_v22 = vadd.f32 %v5436_v5, %v5435_v12  ;;  %v11238_v49 = vpop.permute.xlu0 %4598 }
 0x355   : > { %v6790_v3 = vpack.c.bf16 %v5411_v48, %v5411_v48  ;;  %v5452_v42 = vrot.slane %v5451_v14, 1  ;;  %v5456_v50 = vadd.f32 %v5455_v43, %v5454_v61  ;;  %v11233_v30 = vunpack.c.l.b16 %v6792_v25  ;;  %v12367_v43 = vld [vmem:[#allocation25_spill] sm:$0xff] }
 0x356   : > { %v6793_v33 = vpack.c.bf16 %v5432_v41, %v5432_v41  ;;  %v4874_v13 = vmul.f32 %v11022_v60, %v4106_v17  ;;  %v7436_v59 = vsel %vm6990_vm11, %v11048_v24, %v7435_v16  ;;  %v6791_v55 = vpack.c.bf16 %v5418_v45, %v5418_v45  ;;  %v11256_v45 = vpop.f32.mrb[166].mxu1 }
 0x357   : > { %v5453_v35 = vadd.f32 %v5452_v42, %v5451_v14  ;;  %v5438_v20 = vrot.slane %v5437_v22, 1  ;;  %v5457_v51 = vrot.slane %v5456_v50, 2  ;;  %v11240_v29 = vunpack.c.l.b16 %v6790_v3  ;;  %v12366_v14 = vld [vmem:[#allocation77_spill] sm:$0xff] }
 0x358   : > { %v11242_v10 = vunpack.c.l.b16 %v6793_v33  ;;  %v5440_v12 = vsel %vm3295_vm10, %v4874_v13, 0.0  ;;  %v7437_v25 = vsel %vm6992_vm12, %v11069_v46, %v7436_v59  ;;  %v7442_v48 = vsel %vm6988_vm9, %v11137_v32, %v11154_v18  ;;  %v11258_v46 = vpop.permute.xlu1 %4628  ;;  %v11268_v33 = vpop.permute.xlu0 %4643 }
 0x359   : > { %v6796_v61 = vpack.c.bf16 %v5453_v35, %v5453_v35  ;;  %v5439_v60 = vadd.f32 %v5438_v20, %v5437_v22  ;;  %v5458_v52 = vadd.f32 %v5457_v51, %v5456_v50  ;;  %v5441_v57 = vrot.slane %v5440_v12, 4 }
 0x35a   : > { %v7438_v24 = vsel %vm6994_vm13, %v11046_v6, %v7437_v25  ;;  %v3835_v5 = vadd.f32 %v11114_v39, %v12366_v14  ;;  %v3827_v41 = vadd.f32 %v11114_v39, %v12367_v43  ;;  %v11260_v17 = vunpack.c.l.b16 %v6791_v55  ;;  %v11262_v6 = vpop.f32.mrb[167].mxu1 }
 0x35b   : > { %v6794_v16 = vpack.c.bf16 %v5439_v60, %v5439_v60  ;;  %v5459_v3 = vrot.slane %v5458_v52, 1  ;;  %v5442_v42 = vadd.f32 %v5441_v57, %v5440_v12  ;;  %12368 = vst [vmem:[#allocation69_spill] sm:$0xff] %v11262_v6  ;;  %v7439_v32 = vsel %vm6996_vm14, %v11056_v27, %v7438_v24  ;;  %v11274_v20 = vpop.f32.mrb[168].mxu1  ;;  %v12372_v24 = vld [vmem:[#allocation23_spill] sm:$0xff] }
 0x35c   : > { %v7443_v18 = vsel %vm6990_vm11, %v11176_v37, %v7442_v48  ;;  %v4111_v22 = vmax.f32 %v3835_v5, 0.0  ;;  %v4109_v50 = vmax.f32 %v3827_v41, 0.0  ;;  %v7337_v13 = vunpack.c.l.b16 %v6796_v61  ;;  %12369 = vst [vmem:[#allocation13_spill] sm:$0xff] %v11274_v20  ;;  %v12370_v37 = vld [vmem:[#allocation78_spill] sm:$0xff]  ;;  %v11281_v60 = vpop.f32.mrb[169].mxu1  ;;  %v4559_v5 = vpop.permute.xlu1 %4558 }
 0x35d   : > { %v11270_v59 = vadd.f32 %v5459_v3, %v5458_v52  ;;  %v5443_v55 = vrot.slane %v5442_v42, 2  ;;  %v7444_v35 = vsel %vm6992_vm12, %v11185_v0, %v7443_v18  ;;  %v3838_v25 = vadd.f32 %v11114_v39, %v12370_v37  ;;  %12371 = vst [vmem:[#allocation70_spill] sm:$0xff] %v11281_v60  ;;  %v11287_v48 = vpop.f32.mrb[170].mxu1  ;;  %v12374_v18 = vld [vmem:[#allocation79_spill] sm:$0xff] }
 0x35e   : > { %v7445_v51 = vsel %vm6994_vm13, %v11174_v58, %v7444_v35  ;;  %v4879_v27 = vmul.f32 %v4554_v54, %v4111_v22  ;;  %v4877_v12 = vmul.f32 %v11164_v53, %v4109_v50  ;;  %v7335_v61 = vunpack.c.l.b16 %v6794_v16  ;;  %12373 = vst [vmem:[#allocation14_spill] sm:$0xff] %v11287_v48  ;;  %v11302_v37 = vpop.f32.mrb[171].mxu1 }
 0x35f   : > { %v5444_v52 = vadd.f32 %v5443_v55, %v5442_v42  ;;  %v7446_v57 = vsel %vm6996_vm14, %v11178_v19, %v7445_v51  ;;  %v3830_v0 = vadd.f32 %v11114_v39, %v12372_v24  ;;  %v4112_v54 = vmax.f32 %v3838_v25, 0.0  ;;  %v11298_v55 = vpop.permute.xlu0 %4683  ;;  %12377 = vst [vmem:[#allocation71_spill] sm:$0xff] %v11302_v37 }
 0x360   : > { %v7506_v14 = vpack.c.b16 %v7446_v57, %v7439_v32  ;;  %v5475_v58 = vsel %vm3295_vm10, %v4879_v27, 0.0  ;;  %v5461_v53 = vsel %vm3295_vm10, %v4877_v12, 0.0  ;;  %v6797_v43 = vpack.c.bf16 %v11270_v59, %v11270_v59  ;;  %v12375_v32 = vld [vmem:[#allocation30_spill] sm:$0xff]  ;;  %v12376_v12 = vld [vmem:[#allocation80_spill] sm:$0xff] }
 0x361   : > { %v5445_v41 = vrot.slane %v5444_v52, 1  ;;  %v5476_v16 = vrot.slane %v5475_v58, 4  ;;  %v5462_v3 = vrot.slane %v5461_v53, 4  ;;  %v4880_v19 = vmul.f32 %v4559_v5, %v4112_v54 }
 0x362   : > { %8702 = vmatmul.mubr.msk.bf16.gmra.mrb[188].mxu1 %vm3295_vm10, %v7506_v14  ;;  %v4110_v42 = vmax.f32 %v3830_v0, 0.0  ;;  %v3851_v22 = vadd.f32 %v11114_v39, %v12374_v18  ;;  %v3843_v50 = vadd.f32 %v11114_v39, %v12375_v32  ;;  %v3854_v59 = vadd.f32 %v11114_v39, %v12376_v12 }
 0x363   : > { %v5446_v35 = vadd.f32 %v5445_v41, %v5444_v52  ;;  %v5477_v51 = vadd.f32 %v5476_v16, %v5475_v58  ;;  %v5463_v27 = vadd.f32 %v5462_v3, %v5461_v53  ;;  %v5482_v25 = vsel %vm3295_vm10, %v4880_v19, 0.0 }
 0x364   : > { %v4878_v57 = vmul.f32 %v11205_v62, %v4110_v42  ;;  %v4115_v24 = vmax.f32 %v3851_v22, 0.0  ;;  %v4113_v0 = vmax.f32 %v3843_v50, 0.0  ;;  %v5483_v18 = vrot.slane %v5482_v25, 4  ;;  %v11312_v50 = vpop.permute.xlu0 %4653 }
 0x365   : > { %v6795_v14 = vpack.c.bf16 %v5446_v35, %v5446_v35  ;;  %v5478_v54 = vrot.slane %v5477_v51, 2  ;;  %v5464_v5 = vrot.slane %v5463_v27, 2  ;;  %v4116_v53 = vmax.f32 %v3854_v59, 0.0 }
 0x366   : > { %v5468_v32 = vsel %vm3295_vm10, %v4878_v57, 0.0  ;;  %v4883_v52 = vmul.f32 %v11028_v56, %v4115_v24  ;;  %v4881_v58 = vmul.f32 %v10967_v23, %v4113_v0  ;;  %v5484_v12 = vadd.f32 %v5483_v18, %v5482_v25  ;;  %v11318_v25 = vpop.f32.mrb[172].mxu1 }
 0x367   : > { %v7336_v41 = vunpack.c.l.b16 %v6795_v14  ;;  %v5479_v16 = vadd.f32 %v5478_v54, %v5477_v51  ;;  %v5465_v3 = vadd.f32 %v5464_v5, %v5463_v27  ;;  %v5469_v19 = vrot.slane %v5468_v32, 4  ;;  %12378 = vst [vmem:[#allocation16_spill] sm:$0xff] %v11318_v25  ;;  %v11321_v5 = vpop.f32.mrb[173].mxu1  ;;  %v12384_v25 = vld [vmem:[#allocation28_spill] sm:$0xff] }
 0x368   : > { %v5503_v62 = vsel %vm3295_vm10, %v4883_v52, 0.0  ;;  %v5489_v42 = vsel %vm3295_vm10, %v4881_v58, 0.0  ;;  %v4884_v22 = vmul.f32 %v11072_v44, %v4116_v53  ;;  %v5485_v24 = vrot.slane %v5484_v12, 2  ;;  %12379 = vst [vmem:[#allocation15_spill] sm:$0xff] %v11321_v5  ;;  %v11323_v53 = vpop.f32.mrb[174].mxu1 }
 0x369   : > { %v7454_v35 = vsel %vm6984_vm6, %v7336_v41, %v7335_v61  ;;  %v5480_v57 = vrot.slane %v5479_v16, 1  ;;  %v5466_v56 = vrot.slane %v5465_v3, 1  ;;  %v5470_v51 = vadd.f32 %v5469_v19, %v5468_v32  ;;  %12380 = vst [vmem:[#allocation72_spill] sm:$0xff] %v11323_v53  ;;  %v12381_v19 = vld [vmem:[#allocation81_spill] sm:$0xff] }
 0x36a   : > { %v11316_v23 = vsel %vm6986_vm7, %v7337_v13, %v7454_v35  ;;  %v5504_v27 = vrot.slane %v5503_v62, 4  ;;  %v5490_v59 = vrot.slane %v5489_v42, 4  ;;  %v5486_v54 = vadd.f32 %v5485_v24, %v5484_v12 }
 0x36b   : > { %v5481_v0 = vadd.f32 %v5480_v57, %v5479_v16  ;;  %v5467_v14 = vadd.f32 %v5466_v56, %v5465_v3  ;;  %v5510_v44 = vsel %vm3295_vm10, %v4884_v22, 0.0  ;;  %v5471_v18 = vrot.slane %v5470_v51, 2  ;;  %v11329_v16 = vpop.f32.mrb[175].mxu1  ;;  %v11331_v3 = vpop.permute.xlu1 %4633 }
 0x36c   : > { %v5505_v61 = vadd.f32 %v5504_v27, %v5503_v62  ;;  %v5491_v52 = vadd.f32 %v5490_v59, %v5489_v42  ;;  %v5511_v58 = vrot.slane %v5510_v44, 4  ;;  %v11325_v13 = vunpack.c.l.b16 %v6797_v43  ;;  %12382 = vst [vmem:[#allocation22_spill] sm:$0xff] %v11329_v16  ;;  %v11333_v62 = vpop.permute.xlu0 %4723 }
 0x36d   : > { %v6800_v32 = vpack.c.bf16 %v5481_v0, %v5481_v0  ;;  %v5487_v41 = vrot.slane %v5486_v54, 1  ;;  %v3846_v35 = vadd.f32 %v11114_v39, %v12381_v19  ;;  %v5472_v12 = vadd.f32 %v5471_v18, %v5470_v51  ;;  %12383 = vst [vmem:[#allocation20_spill] sm:$0xff] %v11333_v62  ;;  %v12385_v18 = vld [vmem:[#allocation29_spill] sm:$0xff] }
 0x36e   : > { %v5506_v22 = vrot.slane %v5505_v61, 2  ;;  %v5492_v57 = vrot.slane %v5491_v52, 2  ;;  %v5512_v56 = vadd.f32 %v5511_v58, %v5510_v44  ;;  %v6798_v24 = vpack.c.bf16 %v5467_v14, %v5467_v14  ;;  %v11342_v14 = vpop.f32.mrb[176].mxu1 }
 0x36f   : > { %v11335_v42 = vunpack.c.l.b16 %v6800_v32  ;;  %v5488_v43 = vadd.f32 %v5487_v41, %v5486_v54  ;;  %v4114_v27 = vmax.f32 %v3846_v35, 0.0  ;;  %v5473_v59 = vrot.slane %v5472_v12, 1  ;;  %12386 = vst [vmem:[#allocation21_spill] sm:$0xff] %v11342_v14  ;;  %v11347_v35 = vpop.f32.mrb[177].mxu1 }
 0x370   : > { %v5507_v0 = vadd.f32 %v5506_v22, %v5505_v61  ;;  %v5493_v53 = vadd.f32 %v5492_v57, %v5491_v52  ;;  %v5513_v5 = vrot.slane %v5512_v56, 2  ;;  %v3867_v51 = vadd.f32 %v11114_v39, %v12384_v25  ;;  %12387 = vst [vmem:[#allocation73_spill] sm:$0xff] %v11347_v35 }
 0x371   : > { %v6801_v19 = vpack.c.bf16 %v5488_v43, %v5488_v43  ;;  %v4882_v16 = vmul.f32 %v11054_v9, %v4114_v27  ;;  %v3859_v44 = vadd.f32 %v11114_v39, %v12385_v18  ;;  %v5474_v58 = vadd.f32 %v5473_v59, %v5472_v12  ;;  %v11349_v9 = vpop.permute.xlu1 %4638  ;;  %v11351_v12 = vpop.f32.mrb[178].mxu1 }
 0x372   : > { %v5508_v37 = vrot.slane %v5507_v0, 1  ;;  %v5494_v32 = vrot.slane %v5493_v53, 1  ;;  %v5514_v62 = vadd.f32 %v5513_v5, %v5512_v56  ;;  %v11344_v54 = vunpack.c.l.b16 %v6798_v24  ;;  %12388 = vst [vmem:[#allocation74_spill] sm:$0xff] %v11351_v12  ;;  %v11353_v27 = vpop.permute.xlu0 %4763  ;;  %v11359_v59 = vpop.f32.mrb[179].mxu1 }
 0x373   : > { %v5496_v61 = vsel %vm3295_vm10, %v4882_v16, 0.0  ;;  %v4119_v52 = vmax.f32 %v3867_v51, 0.0  ;;  %v4117_v41 = vmax.f32 %v3859_v44, 0.0  ;;  %v6799_v25 = vpack.c.bf16 %v5474_v58, %v5474_v58  ;;  %12389 = vst [vmem:[#allocation75_spill] sm:$0xff] %v11353_v27  ;;  %12390 = vst [vmem:[#allocation19_spill] sm:$0xff] %v11359_v59  ;;  %v12393_v27 = vld [vmem:[#allocation83_spill] sm:$0xff] }
 0x374   : > { %v5509_v22 = vadd.f32 %v5508_v37, %v5507_v0  ;;  %v5495_v57 = vadd.f32 %v5494_v32, %v5493_v53  ;;  %v5515_v43 = vrot.slane %v5514_v62, 1  ;;  %v5497_v5 = vrot.slane %v5496_v61, 4 }
 0x375   : > { %v4887_v56 = vmul.f32 %v11220_v21, %v4119_v52  ;;  %v4885_v24 = vmul.f32 %v11135_v47, %v4117_v41  ;;  %v3870_v16 = vadd.f32 %v11114_v39, %v10963_v8  ;;  %v11361_v51 = vunpack.c.l.b16 %v6801_v19 }
 0x376   : > { %v6804_v18 = vpack.c.bf16 %v5509_v22, %v5509_v22  ;;  %v6802_v37 = vpack.c.bf16 %v5495_v57, %v5495_v57  ;;  %v11363_v53 = vadd.f32 %v5515_v43, %v5514_v62  ;;  %v5498_v0 = vadd.f32 %v5497_v5, %v5496_v61  ;;  %v11374_v22 = vpop.permute.xlu1 %4648  ;;  %v12391_v43 = vld [vmem:[#allocation82_spill] sm:$0xff] }
 0x377   : > { %v5531_v44 = vsel %vm3295_vm10, %v4887_v56, 0.0  ;;  %v5517_v58 = vsel %vm3295_vm10, %v4885_v24, 0.0  ;;  %v4120_v32 = vmax.f32 %v3870_v16, 0.0  ;;  %v11367_v21 = vunpack.c.l.b16 %v6799_v25  ;;  %v11382_v56 = vpop.f32.mrb[180].mxu1  ;;  %v11384_v24 = vpop.permute.xlu0 %4658 }
 0x378   : > { %v11369_v47 = vunpack.c.l.b16 %v6804_v18  ;;  %v7343_v52 = vunpack.c.l.b16 %v6802_v37  ;;  %v5532_v8 = vrot.slane %v5531_v44, 4  ;;  %v5499_v41 = vrot.slane %v5498_v0, 2  ;;  %12392 = vst [vmem:[#allocation26_spill] sm:$0xff] %v11382_v56 }
 0x379   : > { %v5518_v59 = vrot.slane %v5517_v58, 4  ;;  %v4888_v19 = vmul.f32 %v11238_v49, %v4120_v32  ;;  %v3862_v62 = vadd.f32 %v11114_v39, %v10965_v36  ;;  %v6805_v61 = vpack.c.bf16 %v11363_v53, %v11363_v53 }
 0x37a   : > { %v5533_v57 = vadd.f32 %v5532_v8, %v5531_v44  ;;  %v3883_v25 = vadd.f32 %v11114_v39, %v10983_v2  ;;  %v3875_v5 = vadd.f32 %v11114_v39, %v12391_v43  ;;  %v5500_v49 = vadd.f32 %v5499_v41, %v5498_v0  ;;  %v12394_v0 = vld [vmem:[#allocation27_spill] sm:$0xff] }
 0x37b   : > { %v5519_v16 = vadd.f32 %v5518_v59, %v5517_v58  ;;  %v5538_v36 = vsel %vm3295_vm10, %v4888_v19, 0.0  ;;  %v4118_v18 = vmax.f32 %v3862_v62, 0.0  ;;  %v3886_v43 = vadd.f32 %v11114_v39, %v12393_v27 }
 0x37c   : > { %v5534_v37 = vrot.slane %v5533_v57, 2  ;;  %v5539_v32 = vrot.slane %v5538_v36, 4  ;;  %v4123_v12 = vmax.f32 %v3883_v25, 0.0  ;;  %v4121_v53 = vmax.f32 %v3875_v5, 0.0  ;;  %v11393_v25 = vpop.permute.xlu1 %4688 }
 0x37d   : > { %v5501_v44 = vrot.slane %v5500_v49, 1  ;;  %v5520_v8 = vrot.slane %v5519_v16, 2  ;;  %v4886_v2 = vmul.f32 %v11172_v31, %v4118_v18  ;;  %v4124_v62 = vmax.f32 %v3886_v43, 0.0  ;;  %v11396_v18 = vpop.permute.xlu0 %4733 }
 0x37e   : > { %v5535_v35 = vadd.f32 %v5534_v37, %v5533_v57  ;;  %v5540_v56 = vadd.f32 %v5539_v32, %v5538_v36  ;;  %v4891_v14 = vmul.f32 %v11145_v15, %v4123_v12  ;;  %v4889_v59 = vmul.f32 %v12394_v0, %v4121_v53  ;;  %12395 = vst [vmem:[#allocation76_spill] sm:$0xff] %v11396_v18 }
 0x37f   : > { %v5502_v58 = vadd.f32 %v5501_v44, %v5500_v49  ;;  %v5521_v41 = vadd.f32 %v5520_v8, %v5519_v16  ;;  %v5524_v19 = vsel %vm3295_vm10, %v4886_v2, 0.0  ;;  %v4892_v8 = vmul.f32 %v11189_v38, %v4124_v62 }
 0x380   : > { %v5536_v5 = vrot.slane %v5535_v35, 1  ;;  %v5541_v48 = vrot.slane %v5540_v56, 2  ;;  %v5525_v60 = vrot.slane %v5524_v19, 4  ;;  %v5559_v31 = vsel %vm3295_vm10, %v4891_v14, 0.0 }
 0x381   : > { %v6803_v27 = vpack.c.bf16 %v5502_v58, %v5502_v58  ;;  %v5522_v57 = vrot.slane %v5521_v41, 1  ;;  %v5560_v36 = vrot.slane %v5559_v31, 4  ;;  %v5545_v15 = vsel %vm3295_vm10, %v4889_v59, 0.0  ;;  %v11402_v59 = vpop.permute.xlu1 %4693 }
 0x382   : > { %v5537_v12 = vadd.f32 %v5536_v5, %v5535_v35  ;;  %v5542_v49 = vadd.f32 %v5541_v48, %v5540_v56  ;;  %v5526_v16 = vadd.f32 %v5525_v60, %v5524_v19  ;;  %v5546_v37 = vrot.slane %v5545_v15, 4  ;;  %v11410_v56 = vpop.f32.mrb[181].mxu1 }
 0x383   : > { %v7344_v32 = vunpack.c.l.b16 %v6803_v27  ;;  %v5523_v53 = vadd.f32 %v5522_v57, %v5521_v41  ;;  %v5561_v44 = vadd.f32 %v5560_v36, %v5559_v31  ;;  %v5566_v6 = vsel %vm3295_vm10, %v4892_v8, 0.0  ;;  %v11412_v41 = vpop.permute.xlu0 %4663  ;;  %v12397_v36 = vld [vmem:[#allocation32_spill] sm:$0xff] }
 0x384   : > { %v6808_v2 = vpack.c.bf16 %v5537_v12, %v5537_v12  ;;  %v5543_v43 = vrot.slane %v5542_v49, 1  ;;  %v5527_v0 = vrot.slane %v5526_v16, 2  ;;  %v5547_v14 = vadd.f32 %v5546_v37, %v5545_v15 }
 0x385   : > { %v7461_v18 = vsel %vm6984_vm6, %v7344_v32, %v7343_v52  ;;  %v6806_v58 = vpack.c.bf16 %v5523_v53, %v5523_v53  ;;  %v5562_v20 = vrot.slane %v5561_v44, 2  ;;  %v11404_v48 = vunpack.c.l.b16 %v6805_v61  ;;  %v12396_v61 = vld [vmem:[#allocation36_spill] sm:$0xff] }
 0x386   : > { %v11408_v60 = vsel %vm6986_vm7, %v11369_v47, %v7461_v18  ;;  %v5544_v35 = vadd.f32 %v5543_v43, %v5542_v49  ;;  %v5528_v38 = vadd.f32 %v5527_v0, %v5526_v16  ;;  %v11414_v19 = vunpack.c.l.b16 %v6808_v2  ;;  %v11427_v43 = vpop.permute.xlu1 %4728 }
 0x387   : > { %v5563_v52 = vadd.f32 %v5562_v20, %v5561_v44  ;;  %v5548_v62 = vrot.slane %v5547_v14, 2  ;;  %v5567_v5 = vrot.slane %v5566_v6, 4  ;;  %v11416_v31 = vunpack.c.l.b16 %v6806_v58 }
 0x388   : > { %v5529_v27 = vrot.slane %v5528_v38, 1  ;;  %v3878_v57 = vadd.f32 %v11114_v39, %v12396_v61  ;;  %v3899_v47 = vadd.f32 %v11114_v39, %v12397_v36  ;;  %v7449_v49 = vsel %vm6988_vm9, %v11214_v34, %v11223_v26  ;;  %v11433_v26 = vpop.permute.xlu0 %4738 }
 0x389   : > { %v5564_v18 = vrot.slane %v5563_v52, 1  ;;  %v5549_v15 = vadd.f32 %v5548_v62, %v5547_v14  ;;  %v5568_v12 = vadd.f32 %v5567_v5, %v5566_v6  ;;  %v6809_v16 = vpack.c.bf16 %v5544_v35, %v5544_v35  ;;  %v11437_v62 = vpop.f32.mrb[182].mxu1 }
 0x38a   : > { %v5530_v20 = vadd.f32 %v5529_v27, %v5528_v38  ;;  %v4122_v37 = vmax.f32 %v3878_v57, 0.0  ;;  %v4127_v32 = vmax.f32 %v3899_v47, 0.0  ;;  %v7450_v2 = vsel %vm6990_vm11, %v11240_v29, %v7449_v49  ;;  %v11447_v36 = vpop.f32.mrb[183].mxu1 }
 0x38b   : > { %v5565_v53 = vadd.f32 %v5564_v18, %v5563_v52  ;;  %v5550_v44 = vrot.slane %v5549_v15, 1  ;;  %v5569_v8 = vrot.slane %v5568_v12, 2  ;;  %v7451_v34 = vsel %vm6992_vm12, %v11260_v17, %v7450_v2 }
 0x38c   : > { %v6807_v0 = vpack.c.bf16 %v5530_v20, %v5530_v20  ;;  %v4890_v14 = vmul.f32 %v11092_v4, %v4122_v37  ;;  %v4895_v6 = vmul.f32 %v11331_v3, %v4127_v32  ;;  %v7452_v52 = vsel %vm6994_vm13, %v11233_v30, %v7451_v34 }
 0x38d   : > { %v6812_v58 = vpack.c.bf16 %v5565_v53, %v5565_v53  ;;  %v5551_v35 = vadd.f32 %v5550_v44, %v5549_v15  ;;  %v5570_v38 = vadd.f32 %v5569_v8, %v5568_v12  ;;  %v11439_v29 = vunpack.c.l.b16 %v6809_v16 }
 0x38e   : > { %v5552_v5 = vsel %vm3295_vm10, %v4890_v14, 0.0  ;;  %v5587_v4 = vsel %vm3295_vm10, %v4895_v6, 0.0  ;;  %v7453_v3 = vsel %vm6996_vm14, %v11242_v10, %v7452_v52  ;;  %v11445_v17 = vunpack.c.l.b16 %v6807_v0 }
 0x38f   : > { %v6810_v27 = vpack.c.bf16 %v5551_v35, %v5551_v35  ;;  %v5571_v61 = vrot.slane %v5570_v38, 1  ;;  %v5553_v57 = vrot.slane %v5552_v5, 4  ;;  %v5588_v47 = vrot.slane %v5587_v4, 4 }
 0x390   : > { %v7456_v30 = vsel %vm6988_vm9, %v11325_v13, %v11316_v23  ;;  %v3891_v18 = vadd.f32 %v11114_v39, %v11040_v40  ;;  %v3902_v15 = vadd.f32 %v11114_v39, %v11059_v11  ;;  %v11456_v12 = vunpack.c.l.b16 %v6812_v58  ;;  %v11462_v23 = vpop.permute.xlu1 %4768  ;;  %v11464_v13 = vpop.permute.xlu0 %4668 }
 0x391   : > { %v5572_v10 = vadd.f32 %v5571_v61, %v5570_v38  ;;  %v5554_v49 = vadd.f32 %v5553_v57, %v5552_v5  ;;  %v7457_v16 = vsel %vm6990_vm11, %v11344_v54, %v7456_v30  ;;  %v5589_v20 = vadd.f32 %v5588_v47, %v5587_v4  ;;  %v12399_v61 = vld [vmem:[#allocation31_spill] sm:$0xff] }
 0x392   : > { %v7458_v37 = vsel %vm6992_vm12, %v11367_v21, %v7457_v16  ;;  %v4125_v32 = vmax.f32 %v3891_v18, 0.0  ;;  %v4128_v53 = vmax.f32 %v3902_v15, 0.0  ;;  %v7351_v40 = vunpack.c.l.b16 %v6810_v27  ;;  %v12398_v27 = vld [vmem:[#allocation35_spill] sm:$0xff] }
 0x393   : > { %v5555_v44 = vrot.slane %v5554_v49, 2  ;;  %v7459_v11 = vsel %vm6994_vm13, %v11335_v42, %v7458_v37  ;;  %v3894_v8 = vadd.f32 %v11114_v39, %v11067_v1  ;;  %v5590_v2 = vrot.slane %v5589_v20, 2 }
 0x394   : > { %v7460_v54 = vsel %vm6996_vm14, %v11361_v51, %v7459_v11  ;;  %v4893_v21 = vmul.f32 %v11216_v28, %v4125_v32  ;;  %v4896_v0 = vmul.f32 %v11349_v9, %v4128_v53  ;;  %v6813_v14 = vpack.c.bf16 %v5572_v10, %v5572_v10  ;;  %v11484_v47 = vpop.permute.xlu1 %4698  ;;  %v11486_v30 = vpop.permute.xlu0 %4743 }
 0x395   : > { %v5556_v6 = vadd.f32 %v5555_v44, %v5554_v49  ;;  %v7507_v34 = vpack.c.b16 %v7460_v54, %v7453_v3  ;;  %v4126_v58 = vmax.f32 %v3894_v8, 0.0  ;;  %v5591_v35 = vadd.f32 %v5590_v2, %v5589_v20 }
 0x396   : > { %v5573_v38 = vsel %vm3295_vm10, %v4893_v21, 0.0  ;;  %v5594_v42 = vsel %vm3295_vm10, %v4896_v0, 0.0  ;;  %v3915_v1 = vadd.f32 %v11114_v39, %v11078_v63  ;;  %v3907_v3 = vadd.f32 %v11114_v39, %v12398_v27 }
 0x397   : > { %v5557_v52 = vrot.slane %v5556_v6, 1  ;;  %8705 = vmatprep.mubr.msk.bf16.mxu1 %vm3295_vm10, %v7507_v34  ;;  %v5574_v51 = vrot.slane %v5573_v38, 4  ;;  %v5595_v5 = vrot.slane %v5594_v42, 4  ;;  %v4894_v28 = vmul.f32 %v11258_v46, %v4126_v58 }
 0x398   : > { %v5592_v9 = vrot.slane %v5591_v35, 1  ;;  %v4131_v4 = vmax.f32 %v3915_v1, 0.0  ;;  %v3918_v57 = vadd.f32 %v11114_v39, %v12399_v61  ;;  %v4129_v20 = vmax.f32 %v3907_v3, 0.0 }
 0x399   : > { %v5558_v63 = vadd.f32 %v5557_v52, %v5556_v6  ;;  %v5575_v18 = vadd.f32 %v5574_v51, %v5573_v38  ;;  %v5596_v15 = vadd.f32 %v5595_v5, %v5594_v42  ;;  %v5580_v10 = vsel %vm3295_vm10, %v4894_v28, 0.0  ;;  %v11496_v38 = vpop.permute.xlu1 %4773  ;;  %v4674_v42 = vpop.permute.xlu0 %4673 }
 0x39a   : > { %v5593_v49 = vadd.f32 %v5592_v9, %v5591_v35  ;;  %v5581_v16 = vrot.slane %v5580_v10, 4  ;;  %v4899_v46 = vmul.f32 %v11312_v50, %v4131_v4  ;;  %v4132_v44 = vmax.f32 %v3918_v57, 0.0 }
 0x39b   : > { %v6811_v37 = vpack.c.bf16 %v5558_v63, %v5558_v63  ;;  %v5576_v32 = vrot.slane %v5575_v18, 2  ;;  %v5597_v53 = vrot.slane %v5596_v15, 2  ;;  %v11490_v11 = vunpack.c.l.b16 %v6813_v14  ;;  %v12400_v63 = vld [vmem:[#allocation41_spill] sm:$0xff] }
 0x39c   : > { %v5582_v39 = vadd.f32 %v5581_v16, %v5580_v10  ;;  %v5615_v8 = vsel %vm3295_vm10, %v4899_v46, 0.0  ;;  %v4897_v2 = vmul.f32 %v11268_v33, %v4129_v20  ;;  %v6816_v34 = vpack.c.bf16 %v5593_v49, %v5593_v49 }
 0x39d   : > { %v7352_v54 = vunpack.c.l.b16 %v6811_v37  ;;  %v5577_v21 = vadd.f32 %v5576_v32, %v5575_v18  ;;  %v5598_v0 = vadd.f32 %v5597_v53, %v5596_v15  ;;  %v5616_v6 = vrot.slane %v5615_v8, 4 }
 0x39e   : > { %v5583_v58 = vrot.slane %v5582_v39, 2  ;;  %v5601_v50 = vsel %vm3295_vm10, %v4897_v2, 0.0  ;;  %v4900_v35 = vmul.f32 %v11384_v24, %v4132_v44  ;;  %v11513_v44 = vpop.permute.xlu1 %4703 }
 0x39f   : > { %v7468_v14 = vsel %vm6984_vm6, %v7352_v54, %v7351_v40  ;;  %v5578_v1 = vrot.slane %v5577_v21, 1  ;;  %v5599_v52 = vrot.slane %v5598_v0, 1  ;;  %v5617_v51 = vadd.f32 %v5616_v6, %v5615_v8  ;;  %v11507_v40 = vld [vmem:[%s12067_s7] ss:$0 sm:$0xff] }
 0x3a0   : > { %v11501_v33 = vsel %vm6986_vm7, %v11456_v12, %v7468_v14  ;;  %v5584_v5 = vadd.f32 %v5583_v58, %v5582_v39  ;;  %v5602_v28 = vrot.slane %v5601_v50, 4  ;;  %v5622_v9 = vsel %vm3295_vm10, %v4900_v35, 0.0  ;;  %v12401_v12 = vld [vmem:[#allocation38_spill] sm:$0xff]  ;;  %v11515_v39 = vpop.permute.xlu0 %4748 }
 0x3a1   : > { %v5579_v4 = vadd.f32 %v5578_v1, %v5577_v21  ;;  %v5600_v27 = vadd.f32 %v5599_v52, %v5598_v0  ;;  %v5618_v3 = vrot.slane %v5617_v51, 2  ;;  %v5623_v24 = vrot.slane %v5622_v9, 4  ;;  %v12402_v1 = vld [vmem:[#allocation39_spill] sm:$0xff] }
 0x3a2   : > { %v5585_v61 = vrot.slane %v5584_v5, 1  ;;  %v5603_v57 = vadd.f32 %v5602_v28, %v5601_v50  ;;  %v3910_v18 = vadd.f32 %v11507_v40, %v12400_v63  ;;  %v3931_v15 = vadd.f32 %v11507_v40, %v12401_v12  ;;  %v12404_v63 = vld [vmem:[#allocation46_spill] sm:$0xff]  ;;  %v11532_v12 = vpop.permute.xlu1 %4778 }
 0x3a3   : > { %v6814_v10 = vpack.c.bf16 %v5579_v4, %v5579_v4  ;;  %v6817_v49 = vpack.c.bf16 %v5600_v27, %v5600_v27  ;;  %v5619_v16 = vadd.f32 %v5618_v3, %v5617_v51  ;;  %v5624_v46 = vadd.f32 %v5623_v24, %v5622_v9  ;;  %v12403_v51 = vld [vmem:[#allocation37_spill] sm:$0xff] }
 0x3a4   : > { %v5586_v20 = vadd.f32 %v5585_v61, %v5584_v5  ;;  %v5604_v37 = vrot.slane %v5603_v57, 2  ;;  %v4130_v32 = vmax.f32 %v3910_v18, 0.0  ;;  %v4135_v53 = vmax.f32 %v3931_v15, 0.0  ;;  %v4679_v15 = vpop.permute.xlu0 %4678 }
 0x3a5   : > { %v11517_v8 = vunpack.c.l.b16 %v6816_v34  ;;  %v11519_v2 = vunpack.c.l.b16 %v6814_v10  ;;  %v5620_v54 = vrot.slane %v5619_v16, 1  ;;  %v5625_v21 = vrot.slane %v5624_v46, 2 }
 0x3a6   : > { %v6815_v0 = vpack.c.bf16 %v5586_v20, %v5586_v20  ;;  %v5605_v6 = vadd.f32 %v5604_v37, %v5603_v57  ;;  %v4898_v58 = vmul.f32 %v11374_v22, %v4130_v32  ;;  %v4903_v50 = vmul.f32 %v4674_v42, %v4135_v53 }
 0x3a7   : > { %v5621_v35 = vadd.f32 %v5620_v54, %v5619_v16  ;;  %v5626_v14 = vadd.f32 %v5625_v21, %v5624_v46  ;;  %v3923_v52 = vadd.f32 %v11507_v40, %v12402_v1  ;;  %v3934_v5 = vadd.f32 %v11507_v40, %v12403_v51 }
 0x3a8   : > { %v11526_v28 = vunpack.c.l.b16 %v6817_v49  ;;  %v5606_v34 = vrot.slane %v5605_v6, 1  ;;  %v5608_v9 = vsel %vm3295_vm10, %v4898_v58, 0.0  ;;  %v5643_v4 = vsel %vm3295_vm10, %v4903_v50, 0.0  ;;  %v12405_v58 = vld [vmem:[#allocation44_spill] sm:$0xff] }
 0x3a9   : > { %v6820_v27 = vpack.c.bf16 %v5621_v35, %v5621_v35  ;;  %v5627_v3 = vrot.slane %v5626_v14, 1  ;;  %v5609_v24 = vrot.slane %v5608_v9, 4  ;;  %v5644_v22 = vrot.slane %v5643_v4, 4 }
 0x3aa   : > { %v5607_v42 = vadd.f32 %v5606_v34, %v5605_v6  ;;  %v4133_v61 = vmax.f32 %v3923_v52, 0.0  ;;  %v4136_v57 = vmax.f32 %v3934_v5, 0.0  ;;  %v3926_v18 = vadd.f32 %v11507_v40, %v12404_v63 }
 0x3ab   : > { %v11534_v10 = vunpack.c.l.b16 %v6815_v0  ;;  %v5628_v49 = vadd.f32 %v5627_v3, %v5626_v14  ;;  %v5610_v16 = vadd.f32 %v5609_v24, %v5608_v9  ;;  %v5645_v46 = vadd.f32 %v5644_v22, %v5643_v4  ;;  %v11545_v24 = vpop.permute.xlu1 %4708 }
 0x3ac   : > { %v6818_v20 = vpack.c.bf16 %v5607_v42, %v5607_v42  ;;  %v4901_v37 = vmul.f32 %v11412_v41, %v4133_v61  ;;  %v4904_v32 = vmul.f32 %v4679_v15, %v4136_v57  ;;  %v4134_v53 = vmax.f32 %v3926_v18, 0.0  ;;  %v12407_v15 = vld [vmem:[#allocation43_spill] sm:$0xff] }
 0x3ad   : > { %v7361_v54 = vunpack.c.l.b16 %v6820_v27  ;;  %v5611_v21 = vrot.slane %v5610_v16, 2  ;;  %v5646_v6 = vrot.slane %v5645_v46, 2  ;;  %v3947_v50 = vadd.f32 %v11507_v40, %v12405_v58  ;;  %v12406_v27 = vld [vmem:[#allocation45_spill] sm:$0xff] }
 0x3ae   : > { %v6821_v35 = vpack.c.bf16 %v5628_v49, %v5628_v49  ;;  %v5629_v1 = vsel %vm3295_vm10, %v4901_v37, 0.0  ;;  %v5650_v0 = vsel %vm3295_vm10, %v4904_v32, 0.0  ;;  %v4902_v14 = vmul.f32 %v11464_v13, %v4134_v53 }
 0x3af   : > { %v7359_v52 = vunpack.c.l.b16 %v6818_v20  ;;  %v5612_v51 = vadd.f32 %v5611_v21, %v5610_v16  ;;  %v5647_v5 = vadd.f32 %v5646_v6, %v5645_v46  ;;  %v5630_v34 = vrot.slane %v5629_v1, 4 }
 0x3b0   : > { %v5651_v41 = vrot.slane %v5650_v0, 4  ;;  %v5636_v9 = vsel %vm3295_vm10, %v4902_v14, 0.0  ;;  %v4139_v4 = vmax.f32 %v3947_v50, 0.0  ;;  %v3939_v3 = vadd.f32 %v11507_v40, %v12406_v27 }
 0x3b1   : > { %v5613_v22 = vrot.slane %v5612_v51, 1  ;;  %v5648_v42 = vrot.slane %v5647_v5, 1  ;;  %v5631_v61 = vadd.f32 %v5630_v34, %v5629_v1  ;;  %v5637_v57 = vrot.slane %v5636_v9, 4 }
 0x3b2   : > { %v5652_v63 = vadd.f32 %v5651_v41, %v5650_v0  ;;  %v4907_v13 = vmul.f32 %v11402_v59, %v4139_v4  ;;  %v4137_v18 = vmax.f32 %v3939_v3, 0.0  ;;  %v3950_v49 = vadd.f32 %v11507_v40, %v12407_v15 }
 0x3b3   : > { %v5614_v16 = vadd.f32 %v5613_v22, %v5612_v51  ;;  %v5649_v46 = vadd.f32 %v5648_v42, %v5647_v5  ;;  %v5632_v20 = vrot.slane %v5631_v61, 2  ;;  %v5638_v37 = vadd.f32 %v5637_v57, %v5636_v9  ;;  %v11556_v5 = vpop.permute.xlu1 %4783 }
 0x3b4   : > { %v5653_v32 = vrot.slane %v5652_v63, 2  ;;  %v5671_v53 = vsel %vm3295_vm10, %v4907_v13, 0.0  ;;  %v4905_v21 = vmul.f32 %v11298_v55, %v4137_v18  ;;  %v4140_v6 = vmax.f32 %v3950_v49, 0.0 }
 0x3b5   : > { %v11552_v58 = vunpack.c.l.b16 %v6821_v35  ;;  %v6819_v50 = vpack.c.bf16 %v5614_v16, %v5614_v16  ;;  %v5633_v1 = vadd.f32 %v5632_v20, %v5631_v61  ;;  %v5639_v0 = vrot.slane %v5638_v37, 2  ;;  %v12408_v20 = vld [vmem:[#allocation48_spill] sm:$0xff] }
 0x3b6   : > { %v5654_v59 = vadd.f32 %v5653_v32, %v5652_v63  ;;  %v5672_v14 = vrot.slane %v5671_v53, 4  ;;  %v5657_v34 = vsel %vm3295_vm10, %v4905_v21, 0.0  ;;  %v4908_v51 = vmul.f32 %v11484_v47, %v4140_v6  ;;  %v12409_v6 = vld [vmem:[#allocation47_spill] sm:$0xff] }
 0x3b7   : > { %v7360_v41 = vunpack.c.l.b16 %v6819_v50  ;;  %v6824_v9 = vpack.c.bf16 %v5649_v46, %v5649_v46  ;;  %v5634_v4 = vrot.slane %v5633_v1, 1  ;;  %v5640_v27 = vadd.f32 %v5639_v0, %v5638_v37  ;;  %v4714_v50 = vpop.permute.xlu1 %4713 }
 0x3b8   : > { %v5655_v3 = vrot.slane %v5654_v59, 1  ;;  %v5673_v55 = vadd.f32 %v5672_v14, %v5671_v53  ;;  %v5658_v22 = vrot.slane %v5657_v34, 4  ;;  %v5678_v35 = vsel %vm3295_vm10, %v4908_v51, 0.0 }
 0x3b9   : > { %v7475_v42 = vsel %vm6984_vm6, %v7360_v41, %v7359_v52  ;;  %v5635_v61 = vadd.f32 %v5634_v4, %v5633_v1  ;;  %v5641_v57 = vrot.slane %v5640_v27, 1  ;;  %v5679_v63 = vrot.slane %v5678_v35, 4 }
 0x3ba   : > { %v11561_v13 = vsel %vm6986_vm7, %v7361_v54, %v7475_v42  ;;  %v5656_v47 = vadd.f32 %v5655_v3, %v5654_v59  ;;  %v5674_v18 = vrot.slane %v5673_v55, 2  ;;  %v5659_v15 = vadd.f32 %v5658_v22, %v5657_v34 }
 0x3bb   : > { %v6822_v49 = vpack.c.bf16 %v5635_v61, %v5635_v61  ;;  %v5642_v16 = vadd.f32 %v5641_v57, %v5640_v27  ;;  %v5680_v46 = vadd.f32 %v5679_v63, %v5678_v35  ;;  %v3942_v37 = vadd.f32 %v11507_v40, %v12408_v20 }
 0x3bc   : > { %v6825_v32 = vpack.c.bf16 %v5656_v47, %v5656_v47  ;;  %v5675_v53 = vadd.f32 %v5674_v18, %v5673_v55  ;;  %v5660_v21 = vrot.slane %v5659_v15, 2  ;;  %v3963_v52 = vadd.f32 %v11507_v40, %v12409_v6 }
 0x3bd   : > { %v11567_v1 = vunpack.c.l.b16 %v6824_v9  ;;  %v11569_v54 = vunpack.c.l.b16 %v6822_v49  ;;  %v5681_v0 = vrot.slane %v5680_v46, 2  ;;  %v4138_v59 = vmax.f32 %v3942_v37, 0.0 }
 0x3be   : > { %v6823_v14 = vpack.c.bf16 %v5642_v16, %v5642_v16  ;;  %v5676_v34 = vrot.slane %v5675_v53, 1  ;;  %v5661_v51 = vadd.f32 %v5660_v21, %v5659_v15  ;;  %v4143_v41 = vmax.f32 %v3963_v52, 0.0 }
 0x3bf   : > { %v11571_v4 = vunpack.c.l.b16 %v6825_v32  ;;  %v5682_v27 = vadd.f32 %v5681_v0, %v5680_v46  ;;  %v4906_v3 = vmul.f32 %v11393_v25, %v4138_v59  ;;  %v7463_v55 = vsel %vm6988_vm9, %v11404_v48, %v11408_v60  ;;  %v11586_v60 = vpop.permute.xlu1 %4788 }
 0x3c0   : > { %v5677_v22 = vadd.f32 %v5676_v34, %v5675_v53  ;;  %v5662_v9 = vrot.slane %v5661_v51, 1  ;;  %v4911_v35 = vmul.f32 %v4714_v50, %v4143_v41  ;;  %v7464_v42 = vsel %vm6990_vm11, %v11416_v31, %v7463_v55 }
 0x3c1   : > { %v5683_v61 = vrot.slane %v5682_v27, 1  ;;  %v5664_v57 = vsel %vm3295_vm10, %v4906_v3, 0.0  ;;  %v7465_v63 = vsel %vm6992_vm12, %v11445_v17, %v7464_v42  ;;  %v7470_v25 = vsel %vm6988_vm9, %v11490_v11, %v11501_v33  ;;  %v12413_v42 = vld [vmem:[#allocation14_spill] sm:$0xff] }
 0x3c2   : > { %v6828_v47 = vpack.c.bf16 %v5677_v22, %v5677_v22  ;;  %v5663_v18 = vadd.f32 %v5662_v9, %v5661_v51  ;;  %v5665_v15 = vrot.slane %v5664_v57, 4  ;;  %v5699_v48 = vsel %vm3295_vm10, %v4911_v35, 0.0  ;;  %v12410_v51 = vld [vmem:[#allocation69_spill] sm:$0xff] }
 0x3c3   : > { %v5684_v49 = vadd.f32 %v5683_v61, %v5682_v27  ;;  %v5700_v16 = vrot.slane %v5699_v48, 4  ;;  %v7466_v31 = vsel %vm6994_vm13, %v11414_v19, %v7465_v63  ;;  %v7471_v46 = vsel %vm6990_vm11, %v11519_v2, %v7470_v25  ;;  %v4719_v41 = vpop.permute.xlu1 %4718 }
 0x3c4   : > { %v11592_v17 = vunpack.c.l.b16 %v6823_v14  ;;  %v6826_v20 = vpack.c.bf16 %v5663_v18, %v5663_v18  ;;  %v5666_v37 = vadd.f32 %v5665_v15, %v5664_v57  ;;  %v7467_v11 = vsel %vm6996_vm14, %v11439_v29, %v7466_v31 }
 0x3c5   : > { %v11596_v33 = vunpack.c.l.b16 %v6828_v47  ;;  %v5701_v32 = vadd.f32 %v5700_v16, %v5699_v48  ;;  %v7472_v53 = vsel %vm6992_vm12, %v11534_v10, %v7471_v46  ;;  %v3955_v21 = vadd.f32 %v11507_v40, %v11228_v7 }
 0x3c6   : > { %v6829_v19 = vpack.c.bf16 %v5684_v49, %v5684_v49  ;;  %v5667_v6 = vrot.slane %v5666_v37, 2  ;;  %v7473_v2 = vsel %vm6994_vm13, %v11517_v8, %v7472_v53  ;;  %v3966_v52 = vadd.f32 %v11507_v40, %v11256_v45  ;;  %v12411_v8 = vld [vmem:[#allocation13_spill] sm:$0xff]  ;;  %v12412_v45 = vld [vmem:[#allocation70_spill] sm:$0xff] }
 0x3c7   : > { %v7367_v50 = vunpack.c.l.b16 %v6826_v20  ;;  %v5702_v0 = vrot.slane %v5701_v32, 2  ;;  %v7474_v29 = vsel %vm6996_vm14, %v11526_v28, %v7473_v2  ;;  %v4141_v59 = vmax.f32 %v3955_v21, 0.0 }
 0x3c8   : > { %v5668_v14 = vadd.f32 %v5667_v6, %v5666_v37  ;;  %v7508_v34 = vpack.c.b16 %v7474_v29, %v7467_v11  ;;  %v4144_v10 = vmax.f32 %v3966_v52, 0.0  ;;  %v3958_v7 = vadd.f32 %v11507_v40, %v12410_v51  ;;  %v11618_v57 = vpop.f32.mrb[184].mxu1  ;;  %v12414_v37 = vld [vmem:[#allocation76_spill] sm:$0xff] }
 0x3c9   : > { %v5703_v27 = vadd.f32 %v5702_v0, %v5701_v32  ;;  %v4909_v3 = vmul.f32 %v11513_v44, %v4141_v59  ;;  %v3979_v55 = vadd.f32 %v11507_v40, %v12411_v8  ;;  %v3971_v22 = vadd.f32 %v11507_v40, %v12412_v45  ;;  %v11621_v18 = vpop.f32.mrb[185].mxu1  ;;  %v12415_v32 = vld [vmem:[#allocation20_spill] sm:$0xff] }
 0x3ca   : > { %v5669_v9 = vrot.slane %v5668_v14, 1  ;;  %8706 = vmatmul.mubr.msk.bf16.gmra.mrb[192].mxu1 %vm3295_vm10, %v7508_v34  ;;  %v4912_v28 = vmul.f32 %v4719_v41, %v4144_v10  ;;  %v4142_v35 = vmax.f32 %v3958_v7, 0.0  ;;  %v3982_v61 = vadd.f32 %v11507_v40, %v12413_v42  ;;  %v11625_v31 = vpop.f32.mrb[186].mxu1 }
 0x3cb   : > { %v5704_v63 = vrot.slane %v5703_v27, 1  ;;  %v5685_v25 = vsel %vm3295_vm10, %v4909_v3, 0.0  ;;  %v4147_v44 = vmax.f32 %v3979_v55, 0.0  ;;  %v4145_v47 = vmax.f32 %v3971_v22, 0.0  ;;  %v11629_v21 = vpop.f32.mrb[187].mxu1 }
 0x3cc   : > { %v5670_v15 = vadd.f32 %v5669_v9, %v5668_v14  ;;  %v5686_v48 = vrot.slane %v5685_v25, 4  ;;  %v5706_v49 = vsel %vm3295_vm10, %v4912_v28, 0.0  ;;  %v4910_v16 = vmul.f32 %v11545_v24, %v4142_v35 }
 0x3cd   : > { %v5705_v46 = vadd.f32 %v5704_v63, %v5703_v27  ;;  %v5707_v20 = vrot.slane %v5706_v49, 4  ;;  %v4915_v11 = vmul.f32 %v12414_v37, %v4147_v44  ;;  %v4913_v53 = vmul.f32 %v12415_v32, %v4145_v47  ;;  %v12416_v44 = vld [vmem:[#allocation71_spill] sm:$0xff] }
 0x3ce   : > { %v6827_v6 = vpack.c.bf16 %v5670_v15, %v5670_v15  ;;  %v5687_v2 = vadd.f32 %v5686_v48, %v5685_v25  ;;  %v5692_v52 = vsel %vm3295_vm10, %v4910_v16, 0.0  ;;  %v4148_v0 = vmax.f32 %v3982_v61, 0.0 }
 0x3cf   : > { %v11632_v29 = vunpack.c.l.b16 %v6829_v19  ;;  %v5708_v59 = vadd.f32 %v5707_v20, %v5706_v49  ;;  %v5693_v14 = vrot.slane %v5692_v52, 4  ;;  %v5727_v24 = vsel %vm3295_vm10, %v4915_v11, 0.0  ;;  %v12417_v20 = vld [vmem:[#allocation16_spill] sm:$0xff] }
 0x3d0   : > { %v7368_v34 = vunpack.c.l.b16 %v6827_v6  ;;  %v5688_v10 = vrot.slane %v5687_v2, 2  ;;  %v5728_v51 = vrot.slane %v5727_v24, 4  ;;  %v5713_v7 = vsel %vm3295_vm10, %v4913_v53, 0.0 }
 0x3d1   : > { %v6832_v41 = vpack.c.bf16 %v5705_v46, %v5705_v46  ;;  %v5709_v27 = vrot.slane %v5708_v59, 2  ;;  %v5694_v3 = vadd.f32 %v5693_v14, %v5692_v52  ;;  %v5714_v8 = vrot.slane %v5713_v7, 4 }
 0x3d2   : > { %v7482_v55 = vsel %vm6984_vm6, %v7368_v34, %v7367_v50  ;;  %v5689_v45 = vadd.f32 %v5688_v10, %v5687_v2  ;;  %v5729_v22 = vadd.f32 %v5728_v51, %v5727_v24  ;;  %v4916_v19 = vmul.f32 %v11433_v26, %v4148_v0 }
 0x3d3   : > { %v11640_v9 = vsel %vm6986_vm7, %v11596_v33, %v7482_v55  ;;  %v5710_v28 = vadd.f32 %v5709_v27, %v5708_v59  ;;  %v5695_v35 = vrot.slane %v5694_v3, 2  ;;  %v5715_v42 = vadd.f32 %v5714_v8, %v5713_v7  ;;  %v4754_v59 = vpop.permute.xlu0 %4753 }
 0x3d4   : > { %v5690_v61 = vrot.slane %v5689_v45, 1  ;;  %v5730_v63 = vrot.slane %v5729_v22, 2  ;;  %v5734_v25 = vsel %vm3295_vm10, %v4916_v19, 0.0  ;;  %v3974_v47 = vadd.f32 %v11507_v40, %v12416_v44 }
 0x3d5   : > { %v5711_v15 = vrot.slane %v5710_v28, 1  ;;  %v5696_v50 = vadd.f32 %v5695_v35, %v5694_v3  ;;  %v5716_v48 = vrot.slane %v5715_v42, 2  ;;  %v5735_v49 = vrot.slane %v5734_v25, 4  ;;  %v12418_v35 = vld [vmem:[#allocation15_spill] sm:$0xff] }
 0x3d6   : > { %v5691_v16 = vadd.f32 %v5690_v61, %v5689_v45  ;;  %v5731_v26 = vadd.f32 %v5730_v63, %v5729_v22  ;;  %v4146_v46 = vmax.f32 %v3974_v47, 0.0  ;;  %v3995_v33 = vadd.f32 %v11507_v40, %v12417_v20 }
 0x3d7   : > { %v5712_v37 = vadd.f32 %v5711_v15, %v5710_v28  ;;  %v5697_v11 = vrot.slane %v5696_v50, 1  ;;  %v5717_v32 = vadd.f32 %v5716_v48, %v5715_v42  ;;  %v5736_v53 = vadd.f32 %v5735_v49, %v5734_v25 }
 0x3d8   : > { %v6830_v6 = vpack.c.bf16 %v5691_v16, %v5691_v16  ;;  %v5732_v2 = vrot.slane %v5731_v26, 1  ;;  %v4914_v52 = vmul.f32 %v11427_v43, %v4146_v46  ;;  %v4151_v0 = vmax.f32 %v3995_v33, 0.0  ;;  %v12420_v46 = vld [vmem:[#allocation22_spill] sm:$0xff] }
 0x3d9   : > { %v6833_v14 = vpack.c.bf16 %v5712_v37, %v5712_v37  ;;  %v5698_v24 = vadd.f32 %v5697_v11, %v5696_v50  ;;  %v5718_v34 = vrot.slane %v5717_v32, 1  ;;  %v5737_v10 = vrot.slane %v5736_v53, 2  ;;  %v12419_v50 = vld [vmem:[#allocation72_spill] sm:$0xff] }
 0x3da   : > { %v11648_v51 = vunpack.c.l.b16 %v6832_v41  ;;  %v5733_v7 = vadd.f32 %v5732_v2, %v5731_v26  ;;  %v5720_v27 = vsel %vm3295_vm10, %v4914_v52, 0.0  ;;  %v4919_v3 = vmul.f32 %v4754_v59, %v4151_v0  ;;  %v12422_v59 = vld [vmem:[#allocation73_spill] sm:$0xff] }
 0x3db   : > { %v11651_v8 = vunpack.c.l.b16 %v6830_v6  ;;  %v6831_v55 = vpack.c.bf16 %v5698_v24, %v5698_v24  ;;  %v5719_v45 = vadd.f32 %v5718_v34, %v5717_v32  ;;  %v5738_v22 = vadd.f32 %v5737_v10, %v5736_v53  ;;  %v12421_v32 = vld [vmem:[#allocation21_spill] sm:$0xff]  ;;  %v4759_v6 = vpop.permute.xlu0 %4758 }
 0x3dc   : > { %v6836_v19 = vpack.c.bf16 %v5733_v7, %v5733_v7  ;;  %v5721_v28 = vrot.slane %v5720_v27, 4  ;;  %v5755_v43 = vsel %vm3295_vm10, %v4919_v3, 0.0  ;;  %v3987_v42 = vadd.f32 %v11507_v40, %v12418_v35 }
 0x3dd   : > { %v11656_v61 = vunpack.c.l.b16 %v6833_v14  ;;  %v6834_v41 = vpack.c.bf16 %v5719_v45, %v5719_v45  ;;  %v5739_v63 = vrot.slane %v5738_v22, 1  ;;  %v5756_v25 = vrot.slane %v5755_v43, 4 }
 0x3de   : > { %v11658_v44 = vunpack.c.l.b16 %v6831_v55  ;;  %v5722_v47 = vadd.f32 %v5721_v28, %v5720_v27  ;;  %v4149_v15 = vmax.f32 %v3987_v42, 0.0  ;;  %v3998_v48 = vadd.f32 %v11507_v40, %v12419_v50 }
 0x3df   : > { %v7377_v49 = vunpack.c.l.b16 %v6836_v19  ;;  %v5740_v16 = vadd.f32 %v5739_v63, %v5738_v22  ;;  %v5757_v26 = vadd.f32 %v5756_v25, %v5755_v43  ;;  %v3990_v20 = vadd.f32 %v11507_v40, %v12420_v46 }
 0x3e0   : > { %v5723_v33 = vrot.slane %v5722_v47, 2  ;;  %v4917_v37 = vmul.f32 %v11486_v30, %v4149_v15  ;;  %v4152_v11 = vmax.f32 %v3998_v48, 0.0  ;;  %v4011_v53 = vadd.f32 %v11507_v40, %v12421_v32  ;;  %v12423_v15 = vld [vmem:[#allocation75_spill] sm:$0xff] }
 0x3e1   : > { %v7375_v2 = vunpack.c.l.b16 %v6834_v41  ;;  %v5758_v52 = vrot.slane %v5757_v26, 2  ;;  %v4150_v0 = vmax.f32 %v3990_v20, 0.0  ;;  %v4003_v14 = vadd.f32 %v11507_v40, %v12422_v59 }
 0x3e2   : > { %v5724_v24 = vadd.f32 %v5723_v33, %v5722_v47  ;;  %v5741_v34 = vsel %vm3295_vm10, %v4917_v37, 0.0  ;;  %v4920_v10 = vmul.f32 %v4759_v6, %v4152_v11  ;;  %v4155_v7 = vmax.f32 %v4011_v53, 0.0  ;;  %v12424_v33 = vld [vmem:[#allocation74_spill] sm:$0xff] }
 0x3e3   : > { %v6837_v27 = vpack.c.bf16 %v5740_v16, %v5740_v16  ;;  %v5759_v3 = vadd.f32 %v5758_v52, %v5757_v26  ;;  %v5742_v55 = vrot.slane %v5741_v34, 4  ;;  %v4918_v30 = vmul.f32 %v11515_v39, %v4150_v0 }
 0x3e4   : > { %v5725_v45 = vrot.slane %v5724_v24, 1  ;;  %v5762_v22 = vsel %vm3295_vm10, %v4920_v10, 0.0  ;;  %v4923_v19 = vmul.f32 %v11496_v38, %v4155_v7  ;;  %v4153_v28 = vmax.f32 %v4003_v14, 0.0 }
 0x3e5   : > { %v5760_v43 = vrot.slane %v5759_v3, 1  ;;  %v5743_v35 = vadd.f32 %v5742_v55, %v5741_v34  ;;  %v5763_v42 = vrot.slane %v5762_v22, 4  ;;  %v5748_v41 = vsel %vm3295_vm10, %v4918_v30, 0.0 }
 0x3e6   : > { %v5726_v63 = vadd.f32 %v5725_v45, %v5724_v24  ;;  %v5749_v25 = vrot.slane %v5748_v41, 4  ;;  %v5783_v47 = vsel %vm3295_vm10, %v4923_v19, 0.0  ;;  %v4921_v50 = vmul.f32 %v12423_v15, %v4153_v28 }
 0x3e7   : > { %v5761_v48 = vadd.f32 %v5760_v43, %v5759_v3  ;;  %v5744_v16 = vrot.slane %v5743_v35, 2  ;;  %v5764_v39 = vadd.f32 %v5763_v42, %v5762_v22  ;;  %v5784_v26 = vrot.slane %v5783_v47, 4 }
 0x3e8   : > { %v6835_v46 = vpack.c.bf16 %v5726_v63, %v5726_v63  ;;  %v5750_v20 = vadd.f32 %v5749_v25, %v5748_v41  ;;  %v5769_v38 = vsel %vm3295_vm10, %v4921_v50, 0.0  ;;  %v4014_v37 = vadd.f32 %v11507_v40, %v12424_v33  ;;  %v12425_v41 = vld [vmem:[#allocation19_spill] sm:$0xff] }
 0x3e9   : > { %v11679_v11 = vunpack.c.l.b16 %v6837_v27  ;;  %v5745_v32 = vadd.f32 %v5744_v16, %v5743_v35  ;;  %v5765_v53 = vrot.slane %v5764_v39, 2  ;;  %v5785_v6 = vadd.f32 %v5784_v26, %v5783_v47  ;;  %v12426_v16 = vld [vmem:[#allocation26_spill] sm:$0xff] }
 0x3ea   : > { %v7376_v52 = vunpack.c.l.b16 %v6835_v46  ;;  %v5751_v0 = vrot.slane %v5750_v20, 2  ;;  %v5770_v59 = vrot.slane %v5769_v38, 4  ;;  %v4156_v14 = vmax.f32 %v4014_v37, 0.0 }
 0x3eb   : > { %v6840_v24 = vpack.c.bf16 %v5761_v48, %v5761_v48  ;;  %v5746_v34 = vrot.slane %v5745_v32, 1  ;;  %v5766_v10 = vadd.f32 %v5765_v53, %v5764_v39  ;;  %v5786_v7 = vrot.slane %v5785_v6, 2  ;;  %v4794_v53 = vpop.permute.xlu1 %4793 }
 0x3ec   : > { %v7489_v3 = vsel %vm6984_vm6, %v7376_v52, %v7375_v2  ;;  %v5752_v55 = vadd.f32 %v5751_v0, %v5750_v20  ;;  %v5771_v30 = vadd.f32 %v5770_v59, %v5769_v38  ;;  %v4924_v45 = vmul.f32 %v11532_v12, %v4156_v14 }
 0x3ed   : > { %v11684_v27 = vsel %vm6986_vm7, %v7377_v49, %v7489_v3  ;;  %v5747_v22 = vadd.f32 %v5746_v34, %v5745_v32  ;;  %v5767_v19 = vrot.slane %v5766_v10, 1  ;;  %v5787_v28 = vadd.f32 %v5786_v7, %v5785_v6 }
 0x3ee   : > { %v5753_v43 = vrot.slane %v5752_v55, 1  ;;  %v5772_v35 = vrot.slane %v5771_v30, 2  ;;  %v5790_v42 = vsel %vm3295_vm10, %v4924_v45, 0.0  ;;  %v4006_v63 = vadd.f32 %v11507_v40, %v12425_v41 }
 0x3ef   : > { %v6838_v25 = vpack.c.bf16 %v5747_v22, %v5747_v22  ;;  %v5768_v47 = vadd.f32 %v5767_v19, %v5766_v10  ;;  %v5788_v2 = vrot.slane %v5787_v28, 1  ;;  %v5791_v15 = vrot.slane %v5790_v42, 4 }
 0x3f0   : > { %v5754_v50 = vadd.f32 %v5753_v43, %v5752_v55  ;;  %v5773_v48 = vadd.f32 %v5772_v35, %v5771_v30  ;;  %v4154_v12 = vmax.f32 %v4006_v63, 0.0  ;;  %v4027_v49 = vadd.f32 %v11507_v40, %v12426_v16 }
 0x3f1   : > { %v11691_v39 = vunpack.c.l.b16 %v6840_v24  ;;  %v6841_v26 = vpack.c.bf16 %v5768_v47, %v5768_v47  ;;  %v5789_v46 = vadd.f32 %v5788_v2, %v5787_v28  ;;  %v5792_v20 = vadd.f32 %v5791_v15, %v5790_v42 }
 0x3f2   : > { %v6839_v38 = vpack.c.bf16 %v5754_v50, %v5754_v50  ;;  %v5774_v33 = vrot.slane %v5773_v48, 1  ;;  %v4922_v37 = vmul.f32 %v11462_v23, %v4154_v12  ;;  %v4159_v32 = vmax.f32 %v4027_v49, 0.0  ;;  %v4799_v12 = vpop.permute.xlu1 %4798 }
 0x3f3   : > { %v7379_v6 = vunpack.c.l.b16 %v6838_v25  ;;  %v11694_v52 = vunpack.c.l.b16 %v6841_v26  ;;  %v5793_v0 = vrot.slane %v5792_v20, 2  ;;  %v7477_v59 = vsel %vm6988_vm9, %v11552_v58, %v11561_v13 }
 0x3f4   : > { %v6844_v14 = vpack.c.bf16 %v5789_v46, %v5789_v46  ;;  %v5775_v24 = vadd.f32 %v5774_v33, %v5773_v48  ;;  %v5776_v34 = vsel %vm3295_vm10, %v4922_v37, 0.0  ;;  %v4927_v10 = vmul.f32 %v4794_v53, %v4159_v32  ;;  %v12427_v32 = vld [vmem:[#allocation5_spill] sm:$0xff]  ;;  %v12428_v53 = vld [vmem:[#allocation94_spill] sm:$0xff] }
 0x3f5   : > { %v7380_v7 = vunpack.c.l.b16 %v6839_v38  ;;  %v5794_v3 = vadd.f32 %v5793_v0, %v5792_v20  ;;  %v5777_v55 = vrot.slane %v5776_v34, 4  ;;  %v7478_v23 = vsel %vm6990_vm11, %v11569_v54, %v7477_v59 }
 0x3f6   : > { %v6842_v30 = vpack.c.bf16 %v5775_v24, %v5775_v24  ;;  %v5811_v45 = vsel %vm3295_vm10, %v4927_v10, 0.0  ;;  %v7479_v22 = vsel %vm6992_vm12, %v11592_v17, %v7478_v23  ;;  %v7484_v58 = vsel %vm6988_vm9, %v11632_v29, %v11640_v9  ;;  %v12429_v10 = vld [vmem:[#allocation96_spill] sm:$0xff] }
 0x3f7   : > { %v5795_v13 = vrot.slane %v5794_v3, 1  ;;  %v5778_v19 = vadd.f32 %v5777_v55, %v5776_v34  ;;  %v5812_v28 = vrot.slane %v5811_v45, 4  ;;  %v7480_v43 = vsel %vm6994_vm13, %v11567_v1, %v7479_v22 }
 0x3f8   : > { %v11710_v35 = vunpack.c.l.b16 %v6844_v14  ;;  %v7481_v54 = vsel %vm6996_vm14, %v11571_v4, %v7480_v43  ;;  %v7485_v42 = vsel %vm6990_vm11, %v11651_v8, %v7484_v58  ;;  %v4019_v17 = vadd.f32 %v11507_v40, %v11410_v56  ;;  %v12434_v43 = vld [vmem:[#allocation6_spill] sm:$0xff] }
 0x3f9   : > { %v5796_v41 = vadd.f32 %v5795_v13, %v5794_v3  ;;  %v5779_v29 = vrot.slane %v5778_v19, 2  ;;  %v5813_v9 = vadd.f32 %v5812_v28, %v5811_v45  ;;  %v7486_v63 = vsel %vm6992_vm12, %v11658_v44, %v7485_v42  ;;  %v12431_v3 = vld [vmem:[#allocation84_spill] sm:$0xff]  ;;  %v12432_v13 = vld [vmem:[#allocation95_spill] sm:$0xff] }
 0x3fa   : > { %v7487_v1 = vsel %vm6994_vm13, %v11648_v51, %v7486_v63  ;;  %v4157_v25 = vmax.f32 %v4019_v17, 0.0  ;;  %v4030_v47 = vadd.f32 %v11507_v40, %v11437_v62  ;;  %v4022_v4 = vadd.f32 %v11507_v40, %v11447_v36  ;;  %v11771_v63 = vld [vmem:[#allocation2] ss:$0 sm:$0xff] }
 0x3fb   : > { %v7383_v8 = vunpack.c.l.b16 %v6842_v30  ;;  %v5780_v2 = vadd.f32 %v5779_v29, %v5778_v19  ;;  %v5814_v15 = vrot.slane %v5813_v9, 2  ;;  %v7488_v56 = vsel %vm6996_vm14, %v11656_v61, %v7487_v1  ;;  %v12433_v19 = vld [vmem:[#allocation86_spill] sm:$0xff] }
 0x3fc   : > { %v7509_v44 = vpack.c.b16 %v7488_v56, %v7481_v54  ;;  %v4925_v51 = vmul.f32 %v11556_v5, %v4157_v25  ;;  %v4160_v50 = vmax.f32 %v4030_v47, 0.0  ;;  %v4158_v48 = vmax.f32 %v4022_v4, 0.0  ;;  %v12435_v54 = vld [vmem:[#allocation99_spill] sm:$0xff]  ;;  %v12436_v47 = vld [vmem:[#allocation98_spill] sm:$0xff] }
 0x3fd   : > { %v6845_v62 = vpack.c.bf16 %v5796_v41, %v5796_v41  ;;  %v5781_v16 = vrot.slane %v5780_v2, 1  ;;  %v5815_v49 = vadd.f32 %v5814_v15, %v5813_v9  ;;  %v7491_v36 = vsel %vm6988_vm9, %v11679_v11, %v11684_v27 }
 0x3fe   : > { %8709 = vmatprep.mubr.msk.bf16.mxu1 %vm3295_vm10, %v7509_v44  ;;  %v5797_v40 = vsel %vm3295_vm10, %v4925_v51, 0.0  ;;  %v4928_v61 = vmul.f32 %v4799_v12, %v4160_v50  ;;  %v4926_v26 = vmul.f32 %v11586_v60, %v4158_v48  ;;  %v7492_v46 = vsel %vm6990_vm11, %v7379_v6, %v7491_v36  ;;  %v12438_v51 = vld [vmem:[#allocation97_spill] sm:$0xff] }
 0x3ff   : > { %v5782_v5 = vadd.f32 %v5781_v16, %v5780_v2  ;;  %v5816_v20 = vrot.slane %v5815_v49, 1  ;;  %v5798_v38 = vrot.slane %v5797_v40, 4  ;;  %v7493_v33 = vsel %vm6992_vm12, %v7380_v7, %v7492_v46  ;;  %v12437_v2 = vld [vmem:[#allocation85_spill] sm:$0xff]  ;;  %v12442_v46 = vld [vmem:[#allocation100_spill] sm:$0xff] }
 0x400   : > { %v5818_v37 = vsel %vm3295_vm10, %v4928_v61, 0.0  ;;  %v5804_v11 = vsel %vm3295_vm10, %v4926_v26, 0.0  ;;  %v7494_v27 = vsel %vm6994_vm13, %v11691_v39, %v7493_v33  ;;  %v7007_v60 = vsel %vm6988_vm9, %v12428_v53, %v12427_v32  ;;  %v12430_v39 = vld [vmem:[#allocation3_spill] sm:$0xff]  ;;  %v12440_v16 = vld [vmem:[#allocation101_spill] sm:$0xff]  ;;  %v12444_v53 = vld [vmem:[#allocation102_spill] sm:$0xff] }
 0x401   : > { %v6843_v6 = vpack.c.bf16 %v5782_v5, %v5782_v5  ;;  %v5817_v0 = vadd.f32 %v5816_v20, %v5815_v49  ;;  %v5799_v59 = vadd.f32 %v5798_v38, %v5797_v40  ;;  %v5819_v14 = vrot.slane %v5818_v37, 4  ;;  %v12441_v61 = vld [vmem:[#allocation87_spill] sm:$0xff] }
 0x402   : > { %v5805_v24 = vrot.slane %v5804_v11, 4  ;;  %v11751_v34 = vsel %vm6996_vm14, %v11694_v52, %v7494_v27  ;;  %v7008_v7 = vsel %vm6990_vm11, %v12429_v10, %v7007_v60  ;;  %v6989_v55 = vsel %vm6988_vm9, %v12431_v3, %v12430_v39  ;;  %v12447_v10 = vld [vmem:[#allocation91_spill] sm:$0xff] }
 0x403   : > { %v7386_v23 = vunpack.c.l.b16 %v6845_v62  ;;  %v7384_v30 = vunpack.c.l.b16 %v6843_v6  ;;  %v5800_v45 = vrot.slane %v5799_v59, 2  ;;  %v5820_v22 = vadd.f32 %v5819_v14, %v5818_v37  ;;  %v12439_v62 = vld [vmem:[#allocation88_spill] sm:$0xff]  ;;  %v12443_v37 = vld [vmem:[#allocation103_spill] sm:$0xff] }
 0x404   : > { %v5806_v58 = vadd.f32 %v5805_v24, %v5804_v11  ;;  %v7009_v52 = vsel %vm6992_vm12, %v12432_v13, %v7008_v7  ;;  %v6991_v28 = vsel %vm6990_vm11, %v12433_v19, %v6989_v55  ;;  %v7014_v42 = vsel %vm6988_vm9, %v12435_v54, %v12434_v43  ;;  %v12445_v6 = vld [vmem:[#allocation4_spill] sm:$0xff]  ;;  %v12448_v55 = vld [vmem:[#allocation90_spill] sm:$0xff]  ;;  %v12451_v13 = vld [vmem:[#allocation93_spill] sm:$0xff] }
 0x405   : > { %v7496_v17 = vsel %vm6984_vm6, %v7384_v30, %v7383_v8  ;;  %v6848_v41 = vpack.c.bf16 %v5817_v0, %v5817_v0  ;;  %v5801_v29 = vadd.f32 %v5800_v45, %v5799_v59  ;;  %v5821_v9 = vrot.slane %v5820_v22, 2  ;;  %v12446_v0 = vld [vmem:[#allocation89_spill] sm:$0xff]  ;;  %v12452_v19 = vld [vmem:[#allocation114_spill] sm:$0xff] }
 0x406   : > { %v7497_v1 = vsel %vm6986_vm7, %v11710_v35, %v7496_v17  ;;  %v5807_v25 = vrot.slane %v5806_v58, 2  ;;  %v7010_v4 = vsel %vm6994_vm13, %v12436_v47, %v7009_v52  ;;  %v6993_v15 = vsel %vm6992_vm12, %v12437_v2, %v6991_v28  ;;  %v12449_v30 = vld [vmem:[#allocation9_spill] sm:$0xff] }
 0x407   : > { %v5802_v56 = vrot.slane %v5801_v29, 1  ;;  %v5822_v44 = vadd.f32 %v5821_v9, %v5820_v22  ;;  %v7498_v8 = vsel %vm6988_vm9, %v7386_v23, %v7497_v1  ;;  %v7011_v50 = vsel %vm6996_vm14, %v12438_v51, %v7010_v4  ;;  %v12450_v45 = vld [vmem:[#allocation113_spill] sm:$0xff]  ;;  %v12456_v4 = vld [vmem:[#allocation7_spill] sm:$0xff] }
 0x408   : > { %v5808_v48 = vadd.f32 %v5807_v25, %v5806_v58  ;;  %v7121_v12 = vmul.f32 %v11771_v63, %v7011_v50  ;;  %v6995_v35 = vsel %vm6994_vm13, %v12439_v62, %v6993_v15  ;;  %v7015_v49 = vsel %vm6990_vm11, %v12440_v16, %v7014_v42  ;;  %v12453_v42 = vld [vmem:[#allocation92_spill] sm:$0xff]  ;;  %v12455_v25 = vld [vmem:[#allocation50_spill] sm:$0xff]  ;;  %v12460_v51 = vld [vmem:[#allocation115_spill] sm:$0xff] }
 0x409   : > { %v5803_v36 = vadd.f32 %v5802_v56, %v5801_v29  ;;  %v5823_v40 = vrot.slane %v5822_v44, 1  ;;  %v6997_v26 = vsel %vm6996_vm14, %v12441_v61, %v6995_v35  ;;  %v7016_v5 = vsel %vm6992_vm12, %v12442_v46, %v7015_v49  ;;  %v12454_v29 = vld [vmem:[#allocation119_spill] sm:$0xff]  ;;  %v12458_v56 = vld [vmem:[#allocation106_spill] sm:$0xff]  ;;  %v12463_v49 = vld [vmem:[#allocation105_spill] sm:$0xff] }
 0x40a   : > { %v5809_v20 = vrot.slane %v5808_v48, 1  ;;  %v7590_v38 = vadd.f32 %v11618_v57, %v7121_v12  ;;  %v7119_v33 = vmul.f32 %v11771_v63, %v6997_v26  ;;  %v7017_v11 = vsel %vm6994_vm13, %v12443_v37, %v7016_v5  ;;  %v12462_v12 = vld [vmem:[#allocation109_spill] sm:$0xff]  ;;  %v12465_v46 = vld [vmem:[#allocation108_spill] sm:$0xff] }
 0x40b   : > { %v6846_v27 = vpack.c.bf16 %v5803_v36, %v5803_v36  ;;  %v5824_v32 = vadd.f32 %v5823_v40, %v5822_v44  ;;  %v7018_v60 = vsel %vm6996_vm14, %v12444_v53, %v7017_v11  ;;  %v7000_v59 = vsel %vm6988_vm9, %v12446_v0, %v12445_v6  ;;  %v12464_v40 = vld [vmem:[#allocation117_spill] sm:$0xff]  ;;  %v12471_v0 = vld [vmem:[#allocation63_spill] sm:$0xff] }
 0x40c   : > { %v5810_v14 = vadd.f32 %v5809_v20, %v5808_v48  ;;  %7646 = vst.msk [vmem:[%s11791_s22 + $0x10] sm:$0xff] %vm5825_vm5, %v7590_v38  ;;  %v7582_v57 = vadd.f32 %v11621_v18, %v7119_v33  ;;  %v7122_v24 = vmul.f32 %v11771_v63, %v7018_v60  ;;  %v7001_v7 = vsel %vm6990_vm11, %v12447_v10, %v7000_v59  ;;  %v12461_v48 = vld [vmem:[#allocation8_spill] sm:$0xff]  ;;  %v12466_v20 = vld [vmem:[#allocation118_spill] sm:$0xff]  ;;  %v12467_v33 = vld [vmem:[#allocation111_spill] sm:$0xff] }
 0x40d   : > { %v7387_v39 = vunpack.c.l.b16 %v6846_v27  ;;  %v6849_v3 = vpack.c.bf16 %v5824_v32, %v5824_v32  ;;  %v7002_v23 = vsel %vm6992_vm12, %v12448_v55, %v7001_v7  ;;  %v7036_v22 = vsel %vm6990_vm11, %v12450_v45, %v12449_v30  ;;  %v12469_v32 = vld [vmem:[#allocation49_spill] sm:$0xff]  ;;  %v12470_v60 = vld [vmem:[#allocation110_spill] sm:$0xff]  ;;  %v12474_v7 = vld [vmem:[#allocation112_spill] sm:$0xff] }
 0x40e   : > { %v6847_v58 = vpack.c.bf16 %v5810_v14, %v5810_v14  ;;  %7644 = vst.msk [vmem:[%s11791_s22] sm:$0xff] %vm5825_vm5, %v7582_v57  ;;  %v7593_v18 = vadd.f32 %v11625_v31, %v7122_v24  ;;  %v7003_v52 = vsel %vm6994_vm13, %v12451_v13, %v7002_v23  ;;  %v7037_v28 = vsel %vm6992_vm12, %v12452_v19, %v7036_v22  ;;  %v12473_v57 = vld [vmem:[#allocation66_spill] sm:$0xff]  ;;  %v12477_v30 = vld [vmem:[#allocation67_spill] sm:$0xff]  ;;  %v12478_v22 = vld [vmem:[#allocation116_spill] sm:$0xff] }
 0x40f   : > { %v7389_v43 = vunpack.c.l.b16 %v6848_v41  ;;  %v7499_v54 = vsel %vm6990_vm11, %v7387_v39, %v7498_v8  ;;  %v7004_v17 = vsel %vm6996_vm14, %v12453_v42, %v7003_v52  ;;  %v7038_v9 = vsel %vm6994_vm13, %v12454_v29, %v7037_v28  ;;  %v12457_v41 = vld [vmem:[#allocation104_spill] sm:$0xff]  ;;  %v12459_v8 = vld [vmem:[#allocation10_spill] sm:$0xff]  ;;  %v12481_v19 = vld [vmem:[#allocation59_spill] sm:$0xff] }
 0x410   : > { %v7388_v1 = vunpack.c.l.b16 %v6847_v58  ;;  %7647 = vst.msk [vmem:[%s11791_s22 + $0x18] sm:$0xff] %vm5825_vm5, %v7593_v18  ;;  %v7120_v31 = vmul.f32 %v11771_v63, %v7004_v17  ;;  %v11834_v47 = vsel %vm6996_vm14, %v12455_v25, %v7038_v9  ;;  %v7021_v2 = vsel %vm6988_vm9, %v12457_v41, %v12456_v4  ;;  %v12479_v18 = vld [vmem:[#allocation18_spill] sm:$0xff]  ;;  %v12480_v13 = vld [vmem:[#allocation60_spill] sm:$0xff]  ;;  %v12489_v41 = vld [vmem:[#allocation121_spill] sm:$0xff] }
 0x411   : > { %v7390_v15 = vunpack.c.l.b16 %v6849_v3  ;;  %v7022_v44 = vsel %vm6990_vm11, %v12458_v56, %v7021_v2  ;;  %v7043_v50 = vsel %vm6990_vm11, %v12460_v51, %v12459_v8  ;;  %v7028_v62 = vsel %vm6988_vm9, %v12462_v12, %v12461_v48  ;;  %v12475_v3 = vld [vmem:[#allocation57_spill] sm:$0xff]  ;;  %v12485_v17 = vld [vmem:[#allocation122_spill] sm:$0xff]  ;;  %v12486_v9 = vld [vmem:[#allocation64_spill] sm:$0xff] }
 0x412   : > { %v7500_v35 = vsel %vm6992_vm12, %v7388_v1, %v7499_v54  ;;  %v7585_v16 = vadd.f32 %v11629_v21, %v7120_v31  ;;  %v7023_v36 = vsel %vm6992_vm12, %v12463_v49, %v7022_v44  ;;  %v7044_v61 = vsel %vm6992_vm12, %v12464_v40, %v7043_v50  ;;  %v12468_v21 = vld [vmem:[#allocation107_spill] sm:$0xff]  ;;  %v12487_v31 = vld [vmem:[#allocation62_spill] sm:$0xff]  ;;  %v12491_v56 = vld [vmem:[#allocation68_spill] sm:$0xff] }
 0x413   : > { %v7501_v26 = vsel %vm6994_vm13, %v7389_v43, %v7500_v35  ;;  %v7024_v5 = vsel %vm6994_vm13, %v12465_v46, %v7023_v36  ;;  %v7045_v38 = vsel %vm6994_vm13, %v12466_v20, %v7044_v61  ;;  %v7029_v37 = vsel %vm6990_vm11, %v12467_v33, %v7028_v62  ;;  %v12483_v43 = vld [vmem:[#allocation61_spill] sm:$0xff]  ;;  %v12493_v50 = vld [vmem:[#allocation54_spill] sm:$0xff]  ;;  %v12497_v61 = vld [vmem:[#allocation56_spill] sm:$0xff] }
 0x414   : > { %v7502_v11 = vsel %vm6996_vm14, %v7390_v15, %v7501_v26  ;;  %7645 = vst.msk [vmem:[%s11791_s22 + $0x8] sm:$0xff] %vm5825_vm5, %v7585_v16  ;;  %v11865_v27 = vsel %vm6996_vm14, %v12468_v21, %v7024_v5  ;;  %v11869_v53 = vsel %vm6996_vm14, %v12469_v32, %v7045_v38  ;;  %v7030_v6 = vsel %vm6992_vm12, %v12470_v60, %v7029_v37  ;;  %v12492_v8 = vld [vmem:[#allocation65_spill] sm:$0xff]  ;;  %v12494_v12 = vld [vmem:[#allocation58_spill] sm:$0xff]  ;;  %v12498_v20 = vld [vmem:[#allocation55_spill] sm:$0xff] }
 0x415   : > { %v12472_v59 = vrot.slane %v12471_v0, 1  ;;  %v6641_v24 = vrot.slane %v12473_v57, 2  ;;  %v7510_v10 = vpack.c.b16 %v7502_v11, %v11751_v34  ;;  %v7031_v39 = vsel %vm6994_vm13, %v12474_v7, %v7030_v6  ;;  %v12496_v36 = vld [vmem:[#allocation53_spill] sm:$0xff]  ;;  %v12499_v21 = vld [vmem:[#allocation120_spill] sm:$0xff] }
 0x416   : > { %v12476_v55 = vrot.slane %v12475_v3, 2  ;;  %v6648_v45 = vrot.slane %v12477_v30, 2  ;;  %v11886_v58 = vsel %vm6996_vm14, %v12478_v22, %v7031_v39  ;;  %v7064_v52 = vsel %vm6990_vm11, %v12480_v13, %v12479_v18 }
 0x417   : > { %v6441_v14 = vadd.f32 %v12472_v59, %v12471_v0  ;;  %v12482_v34 = vrot.slane %v12481_v19, 2  ;;  %v12484_v54 = vrot.slane %v12483_v43, 2  ;;  %v6655_v29 = vrot.slane %v12485_v17, 2  ;;  %8710 = vmatmul.mubr.msk.bf16.gmra.mrb[196].mxu1 %vm3295_vm10, %v7510_v10 }
 0x418   : > { %v6481_v23 = vadd.f32 %v12476_v55, %v12475_v3  ;;  %v7065_v1 = vsel %vm6992_vm12, %v12486_v9, %v7064_v52  ;;  %v12488_v25 = vrot.slane %v12487_v31, 2  ;;  %v12490_v2 = vrot.slane %v12489_v41, 2 }
 0x419   : > { %v6327_v28 = vadd.f32 %v12482_v34, %v12481_v19  ;;  %v6488_v42 = vadd.f32 %v12484_v54, %v12483_v43  ;;  %v6662_v44 = vrot.slane %v12491_v56, 2  ;;  %v7066_v51 = vsel %vm6994_vm13, %v12492_v8, %v7065_v1  ;;  %v12503_v54 = vld [vmem:[#allocation12_spill] sm:$0xff] }
 0x41a   : > { %v6495_v4 = vadd.f32 %v12488_v25, %v12487_v31  ;;  %v6635_v15 = vadd.f32 %v12490_v2, %v12489_v41  ;;  %v6475_v48 = vrot.slane %v12493_v50, 1  ;;  %v12495_v62 = vrot.slane %v12494_v12, 2  ;;  %v12504_v31 = vld [vmem:[#allocation17_spill] sm:$0xff]  ;;  %v12506_v2 = vld [vmem:[#allocation52_spill] sm:$0xff] }
 0x41b   : > { %v6642_v16 = vadd.f32 %v6641_v24, %v12473_v57  ;;  %v11916_v49 = vsel %vm6996_vm14, %v6441_v14, %v7066_v51  ;;  %v6370_v40 = vrot.slane %v12496_v36, 1  ;;  %v6321_v26 = vrot.slane %v12497_v61, 1  ;;  %v12501_v14 = vld [vmem:[#allocation51_spill] sm:$0xff] }
 0x41c   : > { %v6383_v35 = vadd.f32 %v12495_v62, %v12494_v12  ;;  %v6482_v46 = vrot.slane %v6481_v23, 1  ;;  %v6649_v5 = vadd.f32 %v6648_v45, %v12477_v30  ;;  %v6377_v38 = vrot.slane %v12498_v20, 1  ;;  %v12507_v12 = vld [vmem:[#allocation42_spill] sm:$0xff] }
 0x41d   : > { %v6328_v33 = vrot.slane %v6327_v28, 1  ;;  %v6489_v37 = vrot.slane %v6488_v42, 1  ;;  %v6656_v11 = vadd.f32 %v6655_v29, %v12485_v17  ;;  %v12500_v32 = vrot.slane %v12499_v21, 1 }
 0x41e   : > { %v6496_v6 = vrot.slane %v6495_v4, 1  ;;  %v6636_v0 = vrot.slane %v6635_v15, 1  ;;  %v6663_v59 = vadd.f32 %v6662_v44, %v12491_v56  ;;  %v12502_v57 = vrot.slane %v12501_v14, 1 }
 0x41f   : > { %v6308_v60 = vadd.f32 %v12500_v32, %v12499_v21  ;;  %v6476_v10 = vadd.f32 %v6475_v48, %v12493_v50  ;;  %v6384_v7 = vrot.slane %v6383_v35, 1  ;;  %v6643_v39 = vrot.slane %v6642_v16, 1 }
 0x420   : > { %v6315_v24 = vadd.f32 %v12502_v57, %v12501_v14  ;;  %v6371_v3 = vadd.f32 %v6370_v40, %v12496_v36  ;;  %v6322_v55 = vadd.f32 %v6321_v26, %v12497_v61  ;;  %v6483_v30 = vadd.f32 %v6482_v46, %v6481_v23  ;;  %v9058_v14 = vld [vmem:[%s9216_s13 + $0x3d8] sm:$0xff] }
 0x421   : > { %v6650_v45 = vrot.slane %v6649_v5, 1  ;;  %v6378_v22 = vadd.f32 %v6377_v38, %v12498_v20  ;;  %v6329_v18 = vadd.f32 %v6328_v33, %v6327_v28  ;;  %v6490_v13 = vadd.f32 %v6489_v37, %v6488_v42  ;;  %v12505_v42 = vld [vmem:[#allocation11_spill] sm:$0xff] }
 0x422   : > { %v6657_v52 = vrot.slane %v6656_v11, 1  ;;  %v6497_v19 = vadd.f32 %v6496_v6, %v6495_v4  ;;  %v6637_v34 = vadd.f32 %v6636_v0, %v6635_v15  ;;  %v6664_v43 = vrot.slane %v6663_v59, 1  ;;  %v9057_v0 = vld [vmem:[%s9216_s13 + $0x320] sm:$0xff] }
 0x423   : > { %v7050_v17 = vsel %vm6990_vm11, %v6308_v60, %v12503_v54  ;;  %v6385_v29 = vadd.f32 %v6384_v7, %v6383_v35  ;;  %v6644_v9 = vadd.f32 %v6643_v39, %v6642_v16  ;;  %v7071_v25 = vsel %vm6990_vm11, %v6476_v10, %v12504_v31  ;;  %v9056_v60 = vld [vmem:[%s9216_s13 + $0x318] sm:$0xff]  ;;  %v9059_v7 = vld [vmem:[%s9216_s13 + $0x328] sm:$0xff] }
 0x424   : > { %v7051_v1 = vsel %vm6992_vm12, %v6315_v24, %v7050_v17  ;;  %v6651_v23 = vadd.f32 %v6650_v45, %v6649_v5  ;;  %v7072_v28 = vsel %vm6992_vm12, %v6483_v30, %v7071_v25  ;;  %v7057_v4 = vsel %vm6990_vm11, %v12506_v2, %v12505_v42  ;;  %v9061_v30 = vld [vmem:[%s9216_s13 + $0x360] sm:$0xff]  ;;  %v9065_v17 = vld [vmem:[%s9216_s13 + $0x338] sm:$0xff] }
 0x425   : > { %v7052_v41 = vsel %vm6994_vm13, %v6322_v55, %v7051_v1  ;;  %v6658_v15 = vadd.f32 %v6657_v52, %v6656_v11  ;;  %v7073_v44 = vsel %vm6994_vm13, %v6490_v13, %v7072_v28  ;;  %v7058_v8 = vsel %vm6992_vm12, %v6371_v3, %v7057_v4  ;;  %v9060_v3 = vld [vmem:[%s9216_s13 + $0x3e0] sm:$0xff]  ;;  %v9063_v52 = vld [vmem:[%s9216_s13 + $0x3e8] sm:$0xff]  ;;  %v9068_v28 = vld [vmem:[%s9216_s13 + $0x3f8] sm:$0xff] }
 0x426   : > { %v11945_v56 = vsel %vm6996_vm14, %v6329_v18, %v7052_v41  ;;  %v11950_v51 = vsel %vm6996_vm14, %v6497_v19, %v7073_v44  ;;  %v7059_v50 = vsel %vm6994_vm13, %v6378_v22, %v7058_v8  ;;  %v6665_v48 = vadd.f32 %v6664_v43, %v6663_v59  ;;  %v9062_v18 = vld [vmem:[%s9216_s13 + $0x330] sm:$0xff]  ;;  %v9064_v43 = vld [vmem:[%s9216_s13 + $0x368] sm:$0xff]  ;;  %v9069_v44 = vld [vmem:[%s9216_s13 + $0x378] sm:$0xff] }
 0x427   : > { %v7091_v62 = vsel %vm6988_vm9, %v6637_v34, %v12507_v12  ;;  %v11956_v35 = vsel %vm6996_vm14, %v6385_v29, %v7059_v50  ;;  %v7125_v26 = vmul.f32 %v11771_v63, %v11834_v47  ;;  %v7123_v46 = vmul.f32 %v11771_v63, %v11865_v27 }
 0x428   : > { %v7092_v16 = vsel %vm6990_vm11, %v6644_v9, %v7091_v62  ;;  %v7126_v5 = vmul.f32 %v11771_v63, %v11869_v53  ;;  %v7124_v38 = vmul.f32 %v11771_v63, %v11886_v58  ;;  %v9055_v53 = vld [vmem:[%s9216_s13 + $0x358] sm:$0xff]  ;;  %v6519_v6 = vsel %vm5825_vm5, %v9056_v60, 0.0  ;;  %v9066_v9 = vld [vmem:[%s9216_s13 + $0x3f0] sm:$0xff] }
 0x429   : > { %v7093_v36 = vsel %vm6992_vm12, %v6651_v23, %v7092_v16  ;;  %v6575_v58 = vsel %vm5825_vm5, %v9055_v53, 0.0  ;;  %v6526_v59 = vsel %vm5825_vm5, %v9057_v0, 0.0  ;;  %v6687_v57 = vsel %vm5825_vm5, %v9058_v14, 0.0  ;;  %v9067_v23 = vld [vmem:[%s9216_s13 + $0x370] sm:$0xff] }
 0x42a   : > { %v7094_v40 = vsel %vm6994_vm13, %v6658_v15, %v7093_v36  ;;  %v6576_v24 = vrot.slane %v6575_v58, 4  ;;  %v6520_v10 = vrot.slane %v6519_v6, 4  ;;  %v6533_v39 = vsel %vm5825_vm5, %v9059_v7, 0.0 }
 0x42b   : > { %v11962_v61 = vsel %vm6996_vm14, %v6665_v48, %v7094_v40  ;;  %v6694_v55 = vsel %vm5825_vm5, %v9060_v3, 0.0  ;;  %v6582_v45 = vsel %vm5825_vm5, %v9061_v30, 0.0  ;;  %v6527_v22 = vrot.slane %v6526_v59, 4 }
 0x42c   : > { %v6540_v13 = vsel %vm5825_vm5, %v9062_v18, 0.0  ;;  %v6701_v19 = vsel %vm5825_vm5, %v9063_v52, 0.0  ;;  %v6688_v34 = vrot.slane %v6687_v57, 4  ;;  %v6589_v54 = vsel %vm5825_vm5, %v9064_v43, 0.0 }
 0x42d   : > { %v6547_v29 = vsel %vm5825_vm5, %v9065_v17, 0.0  ;;  %v6708_v1 = vsel %vm5825_vm5, %v9066_v9, 0.0  ;;  %v6534_v31 = vrot.slane %v6533_v39, 4  ;;  %v6695_v25 = vrot.slane %v6694_v55, 4 }
 0x42e   : > { %v6596_v41 = vsel %vm5825_vm5, %v9067_v23, 0.0  ;;  %v6715_v42 = vsel %vm5825_vm5, %v9068_v28, 0.0  ;;  %v6583_v2 = vrot.slane %v6582_v45, 4  ;;  %v6541_v4 = vrot.slane %v6540_v13, 4 }
 0x42f   : > { %v6702_v15 = vrot.slane %v6701_v19, 4  ;;  %v6603_v8 = vsel %vm5825_vm5, %v9069_v44, 0.0  ;;  %v6521_v50 = vadd.f32 %v6520_v10, %v6519_v6  ;;  %v6590_v48 = vrot.slane %v6589_v54, 4 }
 0x430   : > { %v6548_v12 = vrot.slane %v6547_v29, 4  ;;  %v6709_v62 = vrot.slane %v6708_v1, 4  ;;  %v6528_v16 = vadd.f32 %v6527_v22, %v6526_v59  ;;  %v6689_v36 = vadd.f32 %v6688_v34, %v6687_v57 }
 0x431   : > { %v6597_v40 = vrot.slane %v6596_v41, 4 }
 0x432   : > { %v6529_v53 = vrot.slane %v6528_v16, 2  ;;  %v6690_v60 = vrot.slane %v6689_v36, 2 }
 0x433   : > { %v6598_v6 = vadd.f32 %v6597_v40, %v6596_v41 }
 0x434   : > { %v6691_v22 = vadd.f32 %v6690_v60, %v6689_v36  ;;  %v12508_v60 = vld [vmem:[#allocation34_spill] sm:$0xff] }
 0x435   : > { %v8703_v20 = vpop.f32.mrb[188].mxu1  ;;  %v6599_v18 = vrot.slane %v6598_v6, 2 }
 0x436   : > { %v7606_v33 = vadd.f32 %v8703_v20, %v7125_v26  ;;  %v7597_v37 = vpop.f32.mrb[189].mxu1  ;;  %v6716_v26 = vrot.slane %v6715_v42, 4  ;;  %v6696_v20 = vadd.f32 %v6695_v25, %v6694_v55  ;;  %v6692_v41 = vrot.slane %v6691_v22, 1 }
 0x437   : > { %v7598_v11 = vadd.f32 %v7597_v37, %v7123_v46  ;;  %v8704_v21 = vpop.f32.mrb[190].mxu1  ;;  %v6577_v46 = vadd.f32 %v6576_v24, %v6575_v58  ;;  %v6542_v37 = vadd.f32 %v6541_v4, %v6540_v13  ;;  %v6600_v28 = vadd.f32 %v6599_v18, %v6598_v6 }
 0x438   : > { %7650 = vst.msk [vmem:[%s11791_s22 + $0x30] sm:$0xff] %vm5825_vm5, %v7606_v33  ;;  %v7609_v47 = vadd.f32 %v8704_v21, %v7126_v5  ;;  %v7600_v32 = vpop.f32.mrb[191].mxu1  ;;  %v6535_v5 = vadd.f32 %v6534_v31, %v6533_v39  ;;  %v6584_v33 = vadd.f32 %v6583_v2, %v6582_v45  ;;  %v6522_v21 = vrot.slane %v6521_v50, 2 }
 0x439   : > { %7648 = vst.msk [vmem:[%s11791_s22 + $0x20] sm:$0xff] %vm5825_vm5, %v7598_v11  ;;  %v7601_v27 = vadd.f32 %v7600_v32, %v7124_v38  ;;  %v6604_v38 = vrot.slane %v6603_v8, 4  ;;  %v6703_v11 = vadd.f32 %v6702_v15, %v6701_v19  ;;  %v6549_v32 = vadd.f32 %v6548_v12, %v6547_v29 }
 0x43a   : > { %7651 = vst.msk [vmem:[%s11791_s22 + $0x38] sm:$0xff] %vm5825_vm5, %v7609_v47  ;;  %v6591_v47 = vadd.f32 %v6590_v48, %v6589_v54  ;;  %v6717_v0 = vadd.f32 %v6716_v26, %v6715_v42  ;;  %v6578_v14 = vrot.slane %v6577_v46, 2  ;;  %v6536_v59 = vrot.slane %v6535_v5, 2 }
 0x43b   : > { %7649 = vst.msk [vmem:[%s11791_s22 + $0x28] sm:$0xff] %vm5825_vm5, %v7601_v27  ;;  %v6710_v27 = vadd.f32 %v6709_v62, %v6708_v1  ;;  %v6697_v57 = vrot.slane %v6696_v20, 2  ;;  %v6605_v10 = vadd.f32 %v6604_v38, %v6603_v8  ;;  %v6585_v7 = vrot.slane %v6584_v33, 2 }
 0x43c   : > { %v6543_v58 = vrot.slane %v6542_v37, 2  ;;  %v6704_v24 = vrot.slane %v6703_v11, 2  ;;  %v6523_v39 = vadd.f32 %v6522_v21, %v6521_v50  ;;  %v6592_v3 = vrot.slane %v6591_v47, 2 }
 0x43d   : > { %v6550_v55 = vrot.slane %v6549_v32, 2  ;;  %v6711_v30 = vrot.slane %v6710_v27, 2  ;;  %v6530_v45 = vadd.f32 %v6529_v53, %v6528_v16  ;;  %v6718_v13 = vrot.slane %v6717_v0, 2 }
 0x43e   : > { %v6579_v52 = vadd.f32 %v6578_v14, %v6577_v46  ;;  %v6537_v19 = vadd.f32 %v6536_v59, %v6535_v5  ;;  %v6698_v34 = vadd.f32 %v6697_v57, %v6696_v20  ;;  %v6606_v43 = vrot.slane %v6605_v10, 2  ;;  %v12509_v57 = vld [vmem:[#allocation40_spill] sm:$0xff] }
 0x43f   : > { %v6586_v54 = vadd.f32 %v6585_v7, %v6584_v33  ;;  %v6544_v17 = vadd.f32 %v6543_v58, %v6542_v37  ;;  %v6705_v29 = vadd.f32 %v6704_v24, %v6703_v11  ;;  %v6524_v9 = vrot.slane %v6523_v39, 1 }
 0x440   : > { %v6593_v1 = vadd.f32 %v6592_v3, %v6591_v47  ;;  %v6551_v31 = vadd.f32 %v6550_v55, %v6549_v32  ;;  %v6712_v25 = vadd.f32 %v6711_v30, %v6710_v27  ;;  %v6531_v23 = vrot.slane %v6530_v45, 1 }
 0x441   : > { %v6719_v42 = vadd.f32 %v6718_v13, %v6717_v0  ;;  %v6580_v2 = vrot.slane %v6579_v52, 1  ;;  %v6538_v4 = vrot.slane %v6537_v19, 1  ;;  %v6699_v15 = vrot.slane %v6698_v34, 1 }
 0x442   : > { %v6607_v44 = vadd.f32 %v6606_v43, %v6605_v10  ;;  %v6587_v8 = vrot.slane %v6586_v54, 1  ;;  %v6545_v50 = vrot.slane %v6544_v17, 1  ;;  %v6706_v48 = vrot.slane %v6705_v29, 1 }
 0x443   : > { %v6525_v12 = vadd.f32 %v6524_v9, %v6523_v39  ;;  %v6594_v62 = vrot.slane %v6593_v1, 1  ;;  %v6552_v16 = vrot.slane %v6551_v31, 1  ;;  %v6713_v36 = vrot.slane %v6712_v25, 1  ;;  %v12510_v39 = vld [vmem:[#allocation33_spill] sm:$0xff] }
 0x444   : > { %v6532_v40 = vadd.f32 %v6531_v23, %v6530_v45  ;;  %v6693_v26 = vadd.f32 %v6692_v41, %v6691_v22  ;;  %v6601_v46 = vrot.slane %v6600_v28, 1  ;;  %v6720_v5 = vrot.slane %v6719_v42, 1 }
 0x445   : > { %v6581_v20 = vadd.f32 %v6580_v2, %v6579_v52  ;;  %v6539_v38 = vadd.f32 %v6538_v4, %v6537_v19  ;;  %v6700_v33 = vadd.f32 %v6699_v15, %v6698_v34  ;;  %v6608_v37 = vrot.slane %v6607_v44, 1 }
 0x446   : > { %v6588_v11 = vadd.f32 %v6587_v8, %v6586_v54  ;;  %v6546_v21 = vadd.f32 %v6545_v50, %v6544_v17  ;;  %v6707_v47 = vadd.f32 %v6706_v48, %v6705_v29  ;;  %v6595_v32 = vadd.f32 %v6594_v62, %v6593_v1 }
 0x447   : > { %v6714_v27 = vadd.f32 %v6713_v36, %v6712_v25  ;;  %v6553_v53 = vadd.f32 %v6552_v16, %v6551_v31  ;;  %v7077_v6 = vsel %vm6988_vm9, %v6525_v12, %v12508_v60  ;;  %v6602_v0 = vadd.f32 %v6601_v46, %v6600_v28 }
 0x448   : > { %v7078_v14 = vsel %vm6990_vm11, %v6532_v40, %v7077_v6  ;;  %v6721_v59 = vadd.f32 %v6720_v5, %v6719_v42  ;;  %v7098_v10 = vsel %vm6988_vm9, %v6693_v26, %v12509_v57  ;;  %v6609_v24 = vadd.f32 %v6608_v37, %v6607_v44 }
 0x449   : > { %v7079_v7 = vsel %vm6992_vm12, %v6539_v38, %v7078_v14  ;;  %v7099_v58 = vsel %vm6990_vm11, %v6700_v33, %v7098_v10  ;;  %v7084_v3 = vsel %vm6988_vm9, %v6581_v20, %v12510_v39  ;;  %v7129_v43 = vmul.f32 %v11771_v63, %v11916_v49 }
 0x44a   : > { %v7080_v55 = vsel %vm6994_vm13, %v6546_v21, %v7079_v7  ;;  %v7100_v30 = vsel %vm6992_vm12, %v6707_v47, %v7099_v58  ;;  %v7085_v45 = vsel %vm6990_vm11, %v6588_v11, %v7084_v3  ;;  %v7127_v54 = vmul.f32 %v11771_v63, %v11945_v56 }
 0x44b   : > { %v7081_v22 = vsel %vm6996_vm14, %v6553_v53, %v7080_v55  ;;  %v7101_v18 = vsel %vm6994_vm13, %v6714_v27, %v7100_v30  ;;  %v7086_v13 = vsel %vm6992_vm12, %v6595_v32, %v7085_v45  ;;  %v7130_v17 = vmul.f32 %v11771_v63, %v11950_v51 }
 0x44c   : > { %v7102_v52 = vsel %vm6996_vm14, %v6721_v59, %v7101_v18  ;;  %v7087_v19 = vsel %vm6994_vm13, %v6602_v0, %v7086_v13  ;;  %v7128_v9 = vmul.f32 %v11771_v63, %v11956_v35  ;;  %v7133_v56 = vmul.f32 %v11771_v63, %v11962_v61 }
 0x44d   : > { %v7088_v34 = vsel %vm6996_vm14, %v6609_v24, %v7087_v19  ;;  %v7131_v51 = vmul.f32 %v11771_v63, %v7081_v22  ;;  %v7134_v35 = vmul.f32 %v11771_v63, %v7102_v52 }
 0x44e   : > { %v7132_v2 = vmul.f32 %v11771_v63, %v7088_v34 }
 0x49d   : > { %v8707_v29 = vpop.f32.mrb[192].mxu1 }
 0x49e   : > { %v7622_v1 = vadd.f32 %v8707_v29, %v7129_v43  ;;  %v7613_v31 = vpop.f32.mrb[193].mxu1 }
 0x49f   : > { %v7614_v25 = vadd.f32 %v7613_v31, %v7127_v54  ;;  %v8708_v23 = vpop.f32.mrb[194].mxu1 }
 0x4a0   : > { %7654 = vst.msk [vmem:[%s11791_s22 + $0x50] sm:$0xff] %vm5825_vm5, %v7622_v1  ;;  %v7625_v41 = vadd.f32 %v8708_v23, %v7130_v17  ;;  %v7616_v28 = vpop.f32.mrb[195].mxu1 }
 0x4a1   : > { %7652 = vst.msk [vmem:[%s11791_s22 + $0x40] sm:$0xff] %vm5825_vm5, %v7614_v25  ;;  %v7617_v49 = vadd.f32 %v7616_v28, %v7128_v9 }
 0x4a2   : > { %7655 = vst.msk [vmem:[%s11791_s22 + $0x58] sm:$0xff] %vm5825_vm5, %v7625_v41 }
 0x4a3   : > { %7653 = vst.msk [vmem:[%s11791_s22 + $0x48] sm:$0xff] %vm5825_vm5, %v7617_v49 }
 0x4ea   : > { %v8711_v42 = vpop.f32.mrb[196].mxu1 }
 0x4eb   : > { %v7638_v4 = vadd.f32 %v8711_v42, %v7133_v56  ;;  %v7629_v15 = vpop.f32.mrb[197].mxu1 }
 0x4ec   : > { %v7630_v44 = vadd.f32 %v7629_v15, %v7131_v51  ;;  %v8712_v8 = vpop.f32.mrb[198].mxu1 }
 0x4ed   : > { %7658 = vst.msk [vmem:[%s11791_s22 + $0x70] sm:$0xff] %vm5825_vm5, %v7638_v4  ;;  %v7641_v50 = vadd.f32 %v8712_v8, %v7134_v35  ;;  %v7632_v48 = vpop.f32.mrb[199].mxu1 }
 0x4ee   : > { %7656 = vst.msk [vmem:[%s11791_s22 + $0x60] sm:$0xff] %vm5825_vm5, %v7630_v44  ;;  %v7633_v12 = vadd.f32 %v7632_v48, %v7132_v2 }
 0x4ef   : > { %7659 = vst.msk [vmem:[%s11791_s22 + $0x78] sm:$0xff] %vm5825_vm5, %v7641_v50 }
 0x4f0   : > { %7657 = vst.msk [vmem:[%s11791_s22 + $0x68] sm:$0xff] %vm5825_vm5, %v7633_v12 }
 0x4f1 PF: > { %s22_s15 = sadd.s32 1, %s9076_s15  }
 0x4f2   : > { %p19_p5 = scmp.ge.s32.totalorder %s22_s15, 4  }
 0x4f4   :  { %21 = sbr.rel (!%p19_p5) target bundleno = 3 (0x3), region = 96 }

</bundles_post_ra>
